<compile_context>
chip_gen: v7x
topology: tpu7x:2x2x1
jax: 0.10.0
libtpu: 0.0.40
codegen_flags: <defaults>
</compile_context>

<pallas_src>
import math

import jax
import jax.numpy as jnp
from jax.experimental import pallas as pl
from jax.experimental.pallas import tpu as pltpu

D_MODEL = 512
D_FF = 2048
LN_EPS = 1e-5
NUM_LAYERS = 2

# "int8": per-output-channel int8 storage of the large weights (default).
# "bf16": plain bf16 streaming.  "f32": full precision storage.
WEIGHT_FORMAT = "int8"


def _to_mxu(w):
    """Weight tile -> bf16 MXU operand (int8 routed via f32; |q|<=127 exact in bf16)."""
    if w.dtype == jnp.int8:
        w = w.astype(jnp.float32)
    return w.astype(jnp.bfloat16)


# ---------------------------------------------------------------------------
# Fused kernel: dim_up+PE -> num_layers x encoder layer -> PReLU -> predict
# grid = (layer, batch_tile); weights indexed only by layer.
# ---------------------------------------------------------------------------
def fused_kernel(
    x_ref, wup_ref, bup_ref,                        # input + dim_up (+PE folded), f32
    wattn_ref, w1_ref, b1s_ref, w2_ref, vecs_ref,   # per-layer blocks (grid axis 0)
    wpred_ref, bpreds_ref, alpha_ref,               # head
    o_ref,                                          # output tile (BM, out_pad)
    h_ref,                                          # VMEM scratch (n_bt, BM, D) carry
):
    l = pl.program_id(0)
    bt = pl.program_id(1)
    mxu = jnp.bfloat16

    # ---- dim_up linear (f32, per review) + positional-encoding row 0 --------
    @pl.when(l == 0)
    def _():
        h_ref[bt] = (
            jnp.dot(x_ref[...], wup_ref[...], preferred_element_type=jnp.float32)
            + bup_ref[...]
        )

    h = h_ref[bt]                          # (BM, D) f32, carried across layers
    vecs = vecs_ref[...]                   # (8, D) f32 packed per-layer vectors
    b_attn, s_attn = vecs[0:1], vecs[1:2]
    g1, beta1 = vecs[2:3], vecs[3:4]
    b2, s_w2 = vecs[4:5], vecs[5:6]
    g2, beta2 = vecs[6:7], vecs[7:8]
    b1s = b1s_ref[...]                     # (2, D_FF) f32
    b1, s_w1 = b1s[0:1], b1s[1:2]

    # ---- self-attention, seq_len == 1 ----------------------------------------
    # softmax over a single key is exactly 1 => attention == x @ (Wv@Wo) + bv@Wo+bo,
    # pre-folded at init.  Per-channel dequant scale applied to the f32 result.
    attn = (
        jnp.dot(h.astype(mxu), _to_mxu(wattn_ref[...]),
                preferred_element_type=jnp.float32) * s_attn
        + b_attn
    )
    h = h + attn                           # residual (dropout = identity, eval mode)

    # ---- LayerNorm 1 ----------------------------------------------------------
    mu = jnp.mean(h, axis=-1, keepdims=True)
    var = jnp.mean(jnp.square(h - mu), axis=-1, keepdims=True)
    h = (h - mu) * jax.lax.rsqrt(var + LN_EPS) * g1 + beta1

    # ---- feed-forward (relu) --------------------------------------------------
    z = (
        jnp.dot(h.astype(mxu), _to_mxu(w1_ref[...]),
                preferred_element_type=jnp.float32) * s_w1
        + b1
    )
    z = jnp.maximum(z, 0.0)
    ff = (
        jnp.dot(z.astype(mxu), _to_mxu(w2_ref[...]),
                preferred_element_type=jnp.float32) * s_w2
        + b2
    )
    h = h + ff                             # residual (dropout = identity)

    # ---- LayerNorm 2 ----------------------------------------------------------
    mu = jnp.mean(h, axis=-1, keepdims=True)
    var = jnp.mean(jnp.square(h - mu), axis=-1, keepdims=True)
    h = (h - mu) * jax.lax.rsqrt(var + LN_EPS) * g2 + beta2
    h_ref[bt] = h

    # ---- head (last layer): mean over seq(==1) == id; PReLU; predict ---------
    @pl.when(l == pl.num_programs(0) - 1)
    def _():
        bpreds = bpreds_ref[...]
        b_pred, s_pred = bpreds[0:1], bpreds[1:2]
        a = alpha_ref[0]
        act = jnp.where(h > 0, h, a * h)
        o_ref[...] = (
            jnp.dot(act.astype(mxu), _to_mxu(wpred_ref[...]),
                    preferred_element_type=jnp.float32) * s_pred
            + b_pred
        )


# ---------------------------------------------------------------------------
# Parameter construction (deterministic, PyTorch-default-style init)
# ---------------------------------------------------------------------------
def _linear_init(key, fan_in, fan_out):
    bound = 1.0 / math.sqrt(fan_in)
    kw, kb = jax.random.split(key)
    w = jax.random.uniform(kw, (fan_in, fan_out), jnp.float32, -bound, bound)
    b = jax.random.uniform(kb, (1, fan_out), jnp.float32, -bound, bound)
    return w, b


def _quantize_weight(w, fmt):
    """Return (stored_weight, per-output-column scale) with  w ~= stored * scale."""
    if fmt == "int8":
        amax = jnp.max(jnp.abs(w), axis=0, keepdims=True)
        s = jnp.maximum(amax, 1e-12) / 127.0
        q = jnp.clip(jnp.round(w / s), -127.0, 127.0).astype(jnp.int8)
        return q, s
    if fmt == "bf16":
        return w.astype(jnp.bfloat16), jnp.ones((1, w.shape[1]), jnp.float32)
    return w, jnp.ones((1, w.shape[1]), jnp.float32)          # "f32"


def init_params(key, inputs_size, outputs_size, num_layers=NUM_LAYERS,
                weight_format=WEIGHT_FORMAT):
    keys = jax.random.split(key, 2 + num_layers)

    w_up, b_up = _linear_init(keys[0], inputs_size, D_MODEL)
    # PositionalEncoding row 0: sin(0)=0 on even lanes, cos(0)=1 on odd lanes.
    # Reference adds pe[0] with no sqrt(d_model) scaling -> fold into dim_up bias.
    pe0 = jnp.zeros((1, D_MODEL), jnp.float32).at[0, 1::2].set(1.0)
    b_up_pe = b_up + pe0

    w_attn_s, w1_s, w2_s, b1s_s, vecs_s = [], [], [], [], []
    for li in range(num_layers):
        lk = jax.random.split(keys[2 + li], 4)
        # V block of in_proj and out_proj of nn.MultiheadAttention
        wv, bv = _linear_init(lk[0], D_MODEL, D_MODEL)
        wo, bo = _linear_init(lk[1], D_MODEL, D_MODEL)
        w_att = wv @ wo                 # seq_len==1: attention == V @ Wo + bo (exact)
        b_att = bv @ wo + bo
        w1, b1 = _linear_init(lk[2], D_MODEL, D_FF)
        w2, b2 = _linear_init(lk[3], D_FF, D_MODEL)
        g1 = jnp.ones((1, D_MODEL), jnp.float32)
        beta1 = jnp.zeros((1, D_MODEL), jnp.float32)
        g2 = jnp.ones((1, D_MODEL), jnp.float32)
        beta2 = jnp.zeros((1, D_MODEL), jnp.float32)

        qa, sa = _quantize_weight(w_att, weight_format)
        q1, s1 = _quantize_weight(w1, weight_format)
        q2, s2 = _quantize_weight(w2, weight_format)

        w_attn_s.append(qa)
        w1_s.append(q1)
        w2_s.append(q2)
        b1s_s.append(jnp.concatenate([b1, s1], axis=0))                     # (2, D_FF)
        vecs_s.append(jnp.concatenate(
            [b_att, sa, g1, beta1, b2, s2, g2, beta2], axis=0))             # (8, D)

    w_pred, b_pred = _linear_init(keys[1], D_MODEL, outputs_size)
    out_pad = max(128, ((outputs_size + 127) // 128) * 128)
    w_pred_p = jnp.zeros((D_MODEL, out_pad), jnp.float32).at[:, :outputs_size].set(w_pred)
    b_pred_p = jnp.zeros((1, out_pad), jnp.float32).at[:, :outputs_size].set(b_pred)
    qp, sp = _quantize_weight(w_pred_p, weight_format)

    return dict(
        w_up=w_up, b_up_pe=b_up_pe,                        # f32 (per perf feedback)
        w_attn=jnp.stack(w_attn_s),                        # (L, D, D)
        w1=jnp.stack(w1_s),                                # (L, D, D_FF)
        w2=jnp.stack(w2_s),                                # (L, D_FF, D)
        b1s=jnp.stack(b1s_s),                              # (L, 2, D_FF) f32 [b1; s_w1]
        vecs=jnp.stack(vecs_s),                            # (L, 8, D) f32
        w_pred=qp,                                         # (D, out_pad)
        bpreds=jnp.concatenate([b_pred_p, sp], axis=0),    # (2, out_pad) f32 [b; s]
        alpha=jnp.full((1,), 0.25, jnp.float32),           # PReLU default
        out_size=outputs_size,
    )


# ---------------------------------------------------------------------------
# Forward pass: single fused pallas_call, batch-tiled
# ---------------------------------------------------------------------------
def _ceil_to(v, m):
    return ((v + m - 1) // m) * m


def model_forward(x, params, block_b=256, max_rows_per_call=4096):
    B = x.shape[0]
    x2 = x.reshape(B, -1)                                   # inputs.view(B, -1)

    # Bound the resident (B, 512) f32 carry in VMEM; chunk huge batches.
    if B > max_rows_per_call:
        parts = [model_forward(x2[i:i + max_rows_per_call], params,
                               block_b, max_rows_per_call)
                 for i in range(0, B, max_rows_per_call)]
        return jnp.concatenate(parts, axis=0)

    in_size = x2.shape[1]
    L = params["w_attn"].shape[0]
    out_pad = params["w_pred"].shape[1]
    out_size = params["out_size"]

    # Batch tiling: weights are indexed only by the OUTER layer axis, so they
    # are streamed from HBM exactly once per layer regardless of batch size.
    BM = min(block_b, _ceil_to(B, 8))
    B_pad = _ceil_to(B, BM)
    n_bt = B_pad // BM
    if B_pad != B:
        x2 = jnp.pad(x2, ((0, B_pad - B), (0, 0)))

    # Batch tiles are independent -> "parallel" lets v7x's two TensorCores
    # split the streaming work; the layer axis carries state -> "arbitrary".
    dim_sem = ("arbitrary", "parallel") if n_bt > 1 else ("arbitrary", "arbitrary")

    grid_spec = pltpu.PrefetchScalarGridSpec(
        num_scalar_prefetch=0,
        grid=(L, n_bt),
        in_specs=[
            pl.BlockSpec((BM, in_size), lambda l, b: (b, 0)),                 # x
            pl.BlockSpec((in_size, D_MODEL), lambda l, b: (0, 0)),            # w_up (f32)
            pl.BlockSpec((1, D_MODEL), lambda l, b: (0, 0)),                  # b_up + pe0
            pl.BlockSpec((None, D_MODEL, D_MODEL), lambda l, b: (l, 0, 0)),   # w_attn[l]
            pl.BlockSpec((None, D_MODEL, D_FF), lambda l, b: (l, 0, 0)),      # w1[l]
            pl.BlockSpec((None, 2, D_FF), lambda l, b: (l, 0, 0)),            # [b1; s1][l]
            pl.BlockSpec((None, D_FF, D_MODEL), lambda l, b: (l, 0, 0)),      # w2[l]
            pl.BlockSpec((None, 8, D_MODEL), lambda l, b: (l, 0, 0)),         # vecs[l]
            pl.BlockSpec((D_MODEL, out_pad), lambda l, b: (0, 0)),            # w_pred
            pl.BlockSpec((2, out_pad), lambda l, b: (0, 0)),                  # [b_pred; s]
            pl.BlockSpec(memory_space=pltpu.MemorySpace.SMEM),                # alpha
        ],
        out_specs=pl.BlockSpec((BM, out_pad), lambda l, b: (b, 0)),
        scratch_shapes=[pltpu.VMEM((n_bt, BM, D_MODEL), jnp.float32)],        # h carry
    )

    bytes_w = (params["w_attn"].size * params["w_attn"].dtype.itemsize
               + params["w1"].size * params["w1"].dtype.itemsize
               + params["w2"].size * params["w2"].dtype.itemsize
               + params["w_pred"].size * params["w_pred"].dtype.itemsize
               + params["w_up"].size * 4)
    flops = 2 * B_pad * (in_size * D_MODEL
                         + L * (D_MODEL * D_MODEL + 2 * D_MODEL * D_FF)
                         + D_MODEL * out_pad)
    cost = pl.CostEstimate(
        flops=flops,
        transcendentals=0,
        bytes_accessed=int(bytes_w + x2.size * 4 + B_pad * out_pad * 4),
    )

    out = pl.pallas_call(
        fused_kernel,
        out_shape=jax.ShapeDtypeStruct((B_pad, out_pad), jnp.float32),
        grid_spec=grid_spec,
        compiler_params=pltpu.CompilerParams(
            dimension_semantics=dim_sem,
            # Live VMEM is ~8-20 MiB depending on batch; 32 MiB leaves headroom
            # and stays <= half of v7x's 64 MiB physical VMEM.
            vmem_limit_bytes=32 * 1024 * 1024,
        ),
        cost_estimate=cost,
    )(
        x2,
        params["w_up"], params["b_up_pe"],
        params["w_attn"], params["w1"], params["b1s"], params["w2"], params["vecs"],
        params["w_pred"], params["bpreds"], params["alpha"],
    )
    return out[:B, :out_size]


# ---------------------------------------------------------------------------
# Pure-jnp f32 reference (same dequantized weights) to verify kernel plumbing
# ---------------------------------------------------------------------------
def reference_forward(x, params):
    def deq(q, s):
        return q.astype(jnp.float32) * s

    B = x.shape[0]
    h = x.reshape(B, -1) @ params["w_up"] + params["b_up_pe"]
    L = params["w_attn"].shape[0]
    for l in range(L):
        vecs = params["vecs"][l]
        b_attn, s_attn = vecs[0:1], vecs[1:2]
        g1, beta1 = vecs[2:3], vecs[3:4]
        b2, s_w2 = vecs[4:5], vecs[5:6]
        g2, beta2 = vecs[6:7], vecs[7:8]
        b1, s_w1 = params["b1s"][l, 0:1], params["b1s"][l, 1:2]

        h = h + (h @ deq(params["w_attn"][l], s_attn) + b_attn)
        mu = h.mean(-1, keepdims=True)
        var = ((h - mu) ** 2).mean(-1, keepdims=True)
        h = (h - mu) / jnp.sqrt(var + LN_EPS) * g1 + beta1

        z = jnp.maximum(h @ deq(params["w1"][l], s_w1) + b1, 0.0)
        h = h + (z @ deq(params["w2"][l], s_w2) + b2)
        mu = h.mean(-1, keepdims=True)
        var = ((h - mu) ** 2).mean(-1, keepdims=True)
        h = (h - mu) / jnp.sqrt(var + LN_EPS) * g2 + beta2

    a = params["alpha"][0]
    h = jnp.where(h > 0, h, a * h)
    b_pred, s_pred = params["bpreds"][0:1], params["bpreds"][1:2]
    out = h @ deq(params["w_pred"], s_pred) + b_pred
    return out[:, :params["out_size"]]


# ---------------------------------------------------------------------------
if __name__ == "__main__":
    BATCH, INPUTS_SIZE, OUTPUTS_SIZE = 8, 32, 8

    key = jax.random.PRNGKey(0)
    k_params, k_x = jax.random.split(key)
    params = init_params(k_params, INPUTS_SIZE, OUTPUTS_SIZE, num_layers=NUM_LAYERS)
    x = jax.random.normal(k_x, (BATCH, INPUTS_SIZE), jnp.float32)

    fwd = jax.jit(lambda inp: model_forward(inp, params))
    y = fwd(x)
    jax.block_until_ready(y)

    y_ref = reference_forward(x, params)
    assert y.shape == (BATCH, OUTPUTS_SIZE)
    assert jnp.all(jnp.isfinite(y))
    # Tolerance absorbs bf16 MXU rounding only (reference uses the same
    # dequantized weights); catches any plumbing / folding / LN bugs.
    assert jnp.allclose(y, y_ref, rtol=5e-2, atol=1e-1), float(
        jnp.max(jnp.abs(y - y_ref)))
    print("KERNEL_OK")
</pallas_src>

<mosaic_0001>
module attributes {stable_mosaic.version = 11 : i64} {
  func.func @fused_kernel(%arg0: i32, %arg1: i32, %arg2: memref<8x32xf32, #tpu.memory_space<vmem>>, %arg3: memref<32x512xf32, #tpu.memory_space<vmem>>, %arg4: memref<1x512xf32, #tpu.memory_space<vmem>>, %arg5: memref<1x512x512xi8, #tpu.memory_space<vmem>>, %arg6: memref<1x512x2048xi8, #tpu.memory_space<vmem>>, %arg7: memref<1x2x2048xf32, #tpu.memory_space<vmem>>, %arg8: memref<1x2048x512xi8, #tpu.memory_space<vmem>>, %arg9: memref<1x8x512xf32, #tpu.memory_space<vmem>>, %arg10: memref<512x128xi8, #tpu.memory_space<vmem>>, %arg11: memref<2x128xf32, #tpu.memory_space<vmem>>, %arg12: memref<1xf32, #tpu.memory_space<smem>>, %arg13: memref<8x128xf32, #tpu.memory_space<vmem>>, %arg14: memref<1x8x512xf32, #tpu.memory_space<vmem>>) attributes {dimension_semantics = [#tpu.dimension_semantics<arbitrary>, #tpu.dimension_semantics<arbitrary>], iteration_bounds = array<i64: 2, 1>, scalar_prefetch = 0 : i64, scratch_operands = 1 : i64, tpu.core_type = #tpu.core_type<tc>, window_params = [{transform_indices = @transform_0, window_bounds = array<i64: 8, 32>}, {pipeline_mode = #tpu.pipeline_mode<synchronous>, transform_indices = @transform_1, window_bounds = array<i64: 32, 512>}, {pipeline_mode = #tpu.pipeline_mode<synchronous>, transform_indices = @transform_2, window_bounds = array<i64: 1, 512>}, {transform_indices = @transform_3, window_bounds = array<i64: 1, 512, 512>}, {transform_indices = @transform_4, window_bounds = array<i64: 1, 512, 2048>}, {transform_indices = @transform_5, window_bounds = array<i64: 1, 2, 2048>}, {transform_indices = @transform_6, window_bounds = array<i64: 1, 2048, 512>}, {transform_indices = @transform_7, window_bounds = array<i64: 1, 8, 512>}, {pipeline_mode = #tpu.pipeline_mode<synchronous>, transform_indices = @transform_8, window_bounds = array<i64: 512, 128>}, {pipeline_mode = #tpu.pipeline_mode<synchronous>, transform_indices = @transform_9, window_bounds = array<i64: 2, 128>}, {transform_indices = @transform_10, window_bounds = array<i64: 1>}, {transform_indices = @transform_11, window_bounds = array<i64: 8, 128>}]} {
    %c0_i32 = arith.constant 0 : i32
    %0 = arith.cmpi eq, %arg0, %c0_i32 : i32
    %1 = arith.extui %0 : i1 to i32
    %c0_i32_0 = arith.constant 0 : i32
    %2 = arith.cmpi ne, %1, %c0_i32_0 : i32
    scf.if %2 {
      %c0_33 = arith.constant 0 : index
      %c0_34 = arith.constant 0 : index
      %105 = vector.load %arg2[%c0_33, %c0_34] : memref<8x32xf32, #tpu.memory_space<vmem>>, vector<8x32xf32>
      %c0_35 = arith.constant 0 : index
      %c0_36 = arith.constant 0 : index
      %106 = vector.load %arg3[%c0_35, %c0_36] : memref<32x512xf32, #tpu.memory_space<vmem>>, vector<32x512xf32>
      %cst_37 = arith.constant dense<0.000000e+00> : vector<8x512xf32>
      %107 = tpu.matmul %105, %106, %cst_37 {dimension_numbers = #tpu.dot_dimension_numbers<[1], [0], [0], [1], [0, 0, 1, 1], [], []>} : vector<8x32xf32>, vector<32x512xf32>, vector<8x512xf32> -> vector<8x512xf32>
      %c0_38 = arith.constant 0 : index
      %c0_39 = arith.constant 0 : index
      %108 = vector.load %arg4[%c0_38, %c0_39] : memref<1x512xf32, #tpu.memory_space<vmem>>, vector<1x512xf32>
      %109 = vector.broadcast %108 : vector<1x512xf32> to vector<8x512xf32>
      %110 = arith.addf %107, %109 : vector<8x512xf32>
      %111 = arith.index_cast %arg1 : i32 to index
      %c0_40 = arith.constant 0 : index
      %c0_41 = arith.constant 0 : index
      %112 = vector.load %arg14[%111, %c0_40, %c0_41] : memref<1x8x512xf32, #tpu.memory_space<vmem>>, vector<1x8x512xf32>
      %113 = vector.shape_cast %112 : vector<1x8x512xf32> to vector<8x512xf32>
      %114 = vector.shape_cast %110 : vector<8x512xf32> to vector<1x8x512xf32>
      tpu.vector_store %arg14[%111, %c0_40, %c0_41], %114 {strides = array<i32>} : memref<1x8x512xf32, #tpu.memory_space<vmem>>, vector<1x8x512xf32>,
    } else {
    }
    %3 = arith.index_cast %arg1 : i32 to index
    %c0 = arith.constant 0 : index
    %c0_1 = arith.constant 0 : index
    %4 = vector.load %arg14[%3, %c0, %c0_1] : memref<1x8x512xf32, #tpu.memory_space<vmem>>, vector<1x8x512xf32>
    %5 = vector.shape_cast %4 : vector<1x8x512xf32> to vector<8x512xf32>
    %c0_2 = arith.constant 0 : index
    %c0_3 = arith.constant 0 : index
    %c0_4 = arith.constant 0 : index
    %6 = vector.load %arg9[%c0_2, %c0_3, %c0_4] : memref<1x8x512xf32, #tpu.memory_space<vmem>>, vector<1x8x512xf32>
    %7 = vector.shape_cast %6 : vector<1x8x512xf32> to vector<8x512xf32>
    %8 = vector.extract_strided_slice %7 {offsets = [0, 0], sizes = [1, 512], strides = [1, 1]} : vector<8x512xf32> to vector<1x512xf32>
    %9 = vector.extract_strided_slice %7 {offsets = [1, 0], sizes = [1, 512], strides = [1, 1]} : vector<8x512xf32> to vector<1x512xf32>
    %10 = vector.extract_strided_slice %7 {offsets = [2, 0], sizes = [1, 512], strides = [1, 1]} : vector<8x512xf32> to vector<1x512xf32>
    %11 = vector.extract_strided_slice %7 {offsets = [3, 0], sizes = [1, 512], strides = [1, 1]} : vector<8x512xf32> to vector<1x512xf32>
    %12 = vector.extract_strided_slice %7 {offsets = [4, 0], sizes = [1, 512], strides = [1, 1]} : vector<8x512xf32> to vector<1x512xf32>
    %13 = vector.extract_strided_slice %7 {offsets = [5, 0], sizes = [1, 512], strides = [1, 1]} : vector<8x512xf32> to vector<1x512xf32>
    %14 = vector.extract_strided_slice %7 {offsets = [6, 0], sizes = [1, 512], strides = [1, 1]} : vector<8x512xf32> to vector<1x512xf32>
    %15 = vector.extract_strided_slice %7 {offsets = [7, 0], sizes = [1, 512], strides = [1, 1]} : vector<8x512xf32> to vector<1x512xf32>
    %c0_5 = arith.constant 0 : index
    %c0_6 = arith.constant 0 : index
    %c0_7 = arith.constant 0 : index
    %16 = vector.load %arg7[%c0_5, %c0_6, %c0_7] : memref<1x2x2048xf32, #tpu.memory_space<vmem>>, vector<1x2x2048xf32>
    %17 = vector.shape_cast %16 : vector<1x2x2048xf32> to vector<2x2048xf32>
    %18 = vector.extract_strided_slice %17 {offsets = [0, 0], sizes = [1, 2048], strides = [1, 1]} : vector<2x2048xf32> to vector<1x2048xf32>
    %19 = vector.extract_strided_slice %17 {offsets = [1, 0], sizes = [1, 2048], strides = [1, 1]} : vector<2x2048xf32> to vector<1x2048xf32>
    %20 = arith.truncf %5 : vector<8x512xf32> to vector<8x512xbf16>
    %c0_8 = arith.constant 0 : index
    %c0_9 = arith.constant 0 : index
    %c0_10 = arith.constant 0 : index
    %21 = vector.load %arg5[%c0_8, %c0_9, %c0_10] : memref<1x512x512xi8, #tpu.memory_space<vmem>>, vector<1x512x512xi8>
    %22 = vector.shape_cast %21 : vector<1x512x512xi8> to vector<512x512xi8>
    %23 = arith.sitofp %22 : vector<512x512xi8> to vector<512x512xf32>
    %24 = arith.truncf %23 : vector<512x512xf32> to vector<512x512xbf16>
    %cst = arith.constant dense<0.000000e+00> : vector<8x512xf32>
    %25 = tpu.matmul %20, %24, %cst {dimension_numbers = #tpu.dot_dimension_numbers<[1], [0], [0], [1], [0, 0, 1, 1], [], []>} : vector<8x512xbf16>, vector<512x512xbf16>, vector<8x512xf32> -> vector<8x512xf32>
    %26 = vector.broadcast %9 : vector<1x512xf32> to vector<8x512xf32>
    %27 = arith.mulf %25, %26 : vector<8x512xf32>
    %28 = vector.broadcast %8 : vector<1x512xf32> to vector<8x512xf32>
    %29 = arith.addf %27, %28 : vector<8x512xf32>
    %30 = arith.addf %5, %29 : vector<8x512xf32>
    %cst_11 = arith.constant dense<0.000000e+00> : vector<8xf32>
    %31 = vector.multi_reduction <add>, %30, %cst_11 [1] : vector<8x512xf32> to vector<8xf32>
    %32 = vector.shape_cast %31 : vector<8xf32> to vector<8x1xf32>
    %cst_12 = arith.constant 5.120000e+02 : f32
    %33 = vector.broadcast %cst_12 : f32 to vector<8x1xf32>
    %34 = arith.divf %32, %33 : vector<8x1xf32>
    %35 = vector.broadcast %34 : vector<8x1xf32> to vector<8x512xf32>
    %36 = arith.subf %30, %35 : vector<8x512xf32>
    %37 = arith.mulf %36, %36 : vector<8x512xf32>
    %cst_13 = arith.constant dense<0.000000e+00> : vector<8xf32>
    %38 = vector.multi_reduction <add>, %37, %cst_13 [1] : vector<8x512xf32> to vector<8xf32>
    %39 = vector.shape_cast %38 : vector<8xf32> to vector<8x1xf32>
    %cst_14 = arith.constant 5.120000e+02 : f32
    %40 = vector.broadcast %cst_14 : f32 to vector<8x1xf32>
    %41 = arith.divf %39, %40 : vector<8x1xf32>
    %42 = vector.broadcast %34 : vector<8x1xf32> to vector<8x512xf32>
    %43 = arith.subf %30, %42 : vector<8x512xf32>
    %cst_15 = arith.constant 9.99999974E-6 : f32
    %44 = vector.broadcast %cst_15 : f32 to vector<8x1xf32>
    %45 = arith.addf %41, %44 : vector<8x1xf32>
    %46 = math.rsqrt %45 : vector<8x1xf32>
    %47 = vector.broadcast %46 : vector<8x1xf32> to vector<8x512xf32>
    %48 = arith.mulf %43, %47 : vector<8x512xf32>
    %49 = vector.broadcast %10 : vector<1x512xf32> to vector<8x512xf32>
    %50 = arith.mulf %48, %49 : vector<8x512xf32>
    %51 = vector.broadcast %11 : vector<1x512xf32> to vector<8x512xf32>
    %52 = arith.addf %50, %51 : vector<8x512xf32>
    %53 = arith.truncf %52 : vector<8x512xf32> to vector<8x512xbf16>
    %c0_16 = arith.constant 0 : index
    %c0_17 = arith.constant 0 : index
    %c0_18 = arith.constant 0 : index
    %54 = vector.load %arg6[%c0_16, %c0_17, %c0_18] : memref<1x512x2048xi8, #tpu.memory_space<vmem>>, vector<1x512x2048xi8>
    %55 = vector.shape_cast %54 : vector<1x512x2048xi8> to vector<512x2048xi8>
    %56 = arith.sitofp %55 : vector<512x2048xi8> to vector<512x2048xf32>
    %57 = arith.truncf %56 : vector<512x2048xf32> to vector<512x2048xbf16>
    %cst_19 = arith.constant dense<0.000000e+00> : vector<8x2048xf32>
    %58 = tpu.matmul %53, %57, %cst_19 {dimension_numbers = #tpu.dot_dimension_numbers<[1], [0], [0], [1], [0, 0, 1, 1], [], []>} : vector<8x512xbf16>, vector<512x2048xbf16>, vector<8x2048xf32> -> vector<8x2048xf32>
    %59 = vector.broadcast %19 : vector<1x2048xf32> to vector<8x2048xf32>
    %60 = arith.mulf %58, %59 : vector<8x2048xf32>
    %61 = vector.broadcast %18 : vector<1x2048xf32> to vector<8x2048xf32>
    %62 = arith.addf %60, %61 : vector<8x2048xf32>
    %cst_20 = arith.constant 0.000000e+00 : f32
    %63 = vector.broadcast %cst_20 : f32 to vector<8x2048xf32>
    %64 = arith.maximumf %62, %63 : vector<8x2048xf32>
    %65 = arith.truncf %64 : vector<8x2048xf32> to vector<8x2048xbf16>
    %c0_21 = arith.constant 0 : index
    %c0_22 = arith.constant 0 : index
    %c0_23 = arith.constant 0 : index
    %66 = vector.load %arg8[%c0_21, %c0_22, %c0_23] : memref<1x2048x512xi8, #tpu.memory_space<vmem>>, vector<1x2048x512xi8>
    %67 = vector.shape_cast %66 : vector<1x2048x512xi8> to vector<2048x512xi8>
    %68 = arith.sitofp %67 : vector<2048x512xi8> to vector<2048x512xf32>
    %69 = arith.truncf %68 : vector<2048x512xf32> to vector<2048x512xbf16>
    %cst_24 = arith.constant dense<0.000000e+00> : vector<8x512xf32>
    %70 = tpu.matmul %65, %69, %cst_24 {dimension_numbers = #tpu.dot_dimension_numbers<[1], [0], [0], [1], [0, 0, 1, 1], [], []>} : vector<8x2048xbf16>, vector<2048x512xbf16>, vector<8x512xf32> -> vector<8x512xf32>
    %71 = vector.broadcast %13 : vector<1x512xf32> to vector<8x512xf32>
    %72 = arith.mulf %70, %71 : vector<8x512xf32>
    %73 = vector.broadcast %12 : vector<1x512xf32> to vector<8x512xf32>
    %74 = arith.addf %72, %73 : vector<8x512xf32>
    %75 = arith.addf %52, %74 : vector<8x512xf32>
    %cst_25 = arith.constant dense<0.000000e+00> : vector<8xf32>
    %76 = vector.multi_reduction <add>, %75, %cst_25 [1] : vector<8x512xf32> to vector<8xf32>
    %77 = vector.shape_cast %76 : vector<8xf32> to vector<8x1xf32>
    %cst_26 = arith.constant 5.120000e+02 : f32
    %78 = vector.broadcast %cst_26 : f32 to vector<8x1xf32>
    %79 = arith.divf %77, %78 : vector<8x1xf32>
    %80 = vector.broadcast %79 : vector<8x1xf32> to vector<8x512xf32>
    %81 = arith.subf %75, %80 : vector<8x512xf32>
    %82 = arith.mulf %81, %81 : vector<8x512xf32>
    %cst_27 = arith.constant dense<0.000000e+00> : vector<8xf32>
    %83 = vector.multi_reduction <add>, %82, %cst_27 [1] : vector<8x512xf32> to vector<8xf32>
    %84 = vector.shape_cast %83 : vector<8xf32> to vector<8x1xf32>
    %cst_28 = arith.constant 5.120000e+02 : f32
    %85 = vector.broadcast %cst_28 : f32 to vector<8x1xf32>
    %86 = arith.divf %84, %85 : vector<8x1xf32>
    %87 = vector.broadcast %79 : vector<8x1xf32> to vector<8x512xf32>
    %88 = arith.subf %75, %87 : vector<8x512xf32>
    %cst_29 = arith.constant 9.99999974E-6 : f32
    %89 = vector.broadcast %cst_29 : f32 to vector<8x1xf32>
    %90 = arith.addf %86, %89 : vector<8x1xf32>
    %91 = math.rsqrt %90 : vector<8x1xf32>
    %92 = vector.broadcast %91 : vector<8x1xf32> to vector<8x512xf32>
    %93 = arith.mulf %88, %92 : vector<8x512xf32>
    %94 = vector.broadcast %14 : vector<1x512xf32> to vector<8x512xf32>
    %95 = arith.mulf %93, %94 : vector<8x512xf32>
    %96 = vector.broadcast %15 : vector<1x512xf32> to vector<8x512xf32>
    %97 = arith.addf %95, %96 : vector<8x512xf32>
    %98 = arith.index_cast %arg1 : i32 to index
    %c0_30 = arith.constant 0 : index
    %c0_31 = arith.constant 0 : index
    %99 = vector.load %arg14[%98, %c0_30, %c0_31] : memref<1x8x512xf32, #tpu.memory_space<vmem>>, vector<1x8x512xf32>
    %100 = vector.shape_cast %99 : vector<1x8x512xf32> to vector<8x512xf32>
    %101 = vector.shape_cast %97 : vector<8x512xf32> to vector<1x8x512xf32>
    tpu.vector_store %arg14[%98, %c0_30, %c0_31], %101 {strides = array<i32>} : memref<1x8x512xf32, #tpu.memory_space<vmem>>, vector<1x8x512xf32>,
    %c1_i32 = arith.constant 1 : i32
    %102 = arith.cmpi eq, %arg0, %c1_i32 : i32
    %103 = arith.extui %102 : i1 to i32
    %c0_i32_32 = arith.constant 0 : i32
    %104 = arith.cmpi ne, %103, %c0_i32_32 : i32
    scf.if %104 {
      %c0_33 = arith.constant 0 : index
      %c0_34 = arith.constant 0 : index
      %105 = vector.load %arg11[%c0_33, %c0_34] : memref<2x128xf32, #tpu.memory_space<vmem>>, vector<2x128xf32>
      %106 = vector.extract_strided_slice %105 {offsets = [0, 0], sizes = [1, 128], strides = [1, 1]} : vector<2x128xf32> to vector<1x128xf32>
      %107 = vector.extract_strided_slice %105 {offsets = [1, 0], sizes = [1, 128], strides = [1, 1]} : vector<2x128xf32> to vector<1x128xf32>
      %c0_35 = arith.constant 0 : index
      %108 = memref.load %arg12[%c0_35] : memref<1xf32, #tpu.memory_space<smem>>
      %cst_36 = arith.constant 0.000000e+00 : f32
      %109 = vector.broadcast %cst_36 : f32 to vector<8x512xf32>
      %110 = arith.cmpf ogt, %97, %109 : vector<8x512xf32>
      %111 = vector.broadcast %108 : f32 to vector<8x512xf32>
      %112 = arith.mulf %111, %97 : vector<8x512xf32>
      %113 = arith.select %110, %97, %112 : vector<8x512xi1>, vector<8x512xf32>
      %114 = arith.truncf %113 : vector<8x512xf32> to vector<8x512xbf16>
      %c0_37 = arith.constant 0 : index
      %c0_38 = arith.constant 0 : index
      %115 = vector.load %arg10[%c0_37, %c0_38] : memref<512x128xi8, #tpu.memory_space<vmem>>, vector<512x128xi8>
      %116 = arith.sitofp %115 : vector<512x128xi8> to vector<512x128xf32>
      %117 = arith.truncf %116 : vector<512x128xf32> to vector<512x128xbf16>
      %cst_39 = arith.constant dense<0.000000e+00> : vector<8x128xf32>
      %118 = tpu.matmul %114, %117, %cst_39 {dimension_numbers = #tpu.dot_dimension_numbers<[1], [0], [0], [1], [0, 0, 1, 1], [], []>} : vector<8x512xbf16>, vector<512x128xbf16>, vector<8x128xf32> -> vector<8x128xf32>
      %119 = vector.broadcast %107 : vector<1x128xf32> to vector<8x128xf32>
      %120 = arith.mulf %118, %119 : vector<8x128xf32>
      %121 = vector.broadcast %106 : vector<1x128xf32> to vector<8x128xf32>
      %122 = arith.addf %120, %121 : vector<8x128xf32>
      %c0_40 = arith.constant 0 : index
      %c0_41 = arith.constant 0 : index
      %123 = vector.load %arg13[%c0_40, %c0_41] : memref<8x128xf32, #tpu.memory_space<vmem>>, vector<8x128xf32>
      tpu.vector_store %arg13[%c0_40, %c0_41], %122 {strides = array<i32>} : memref<8x128xf32, #tpu.memory_space<vmem>>, vector<8x128xf32>,
    } else {
    }
    return
  }
  func.func @transform_0(%arg0: i32, %arg1: i32) -> (i32, i32) {
    %c0_i32 = arith.constant 0 : i32
    %c0_i32_0 = arith.constant 0 : i32
    return %arg1, %c0_i32 : i32, i32
  }
  func.func @transform_1(%arg0: i32, %arg1: i32) -> (i32, i32) {
    %c0_i32 = arith.constant 0 : i32
    %c0_i32_0 = arith.constant 0 : i32
    %c0_i32_1 = arith.constant 0 : i32
    return %c0_i32, %c0_i32_0 : i32, i32
  }
  func.func @transform_2(%arg0: i32, %arg1: i32) -> (i32, i32) {
    %c0_i32 = arith.constant 0 : i32
    %c0_i32_0 = arith.constant 0 : i32
    %c0_i32_1 = arith.constant 0 : i32
    return %c0_i32, %c0_i32_0 : i32, i32
  }
  func.func @transform_3(%arg0: i32, %arg1: i32) -> (i32, i32, i32) {
    %c0_i32 = arith.constant 0 : i32
    %c0_i32_0 = arith.constant 0 : i32
    %c0_i32_1 = arith.constant 0 : i32
    return %arg0, %c0_i32, %c0_i32_0 : i32, i32, i32
  }
  func.func @transform_4(%arg0: i32, %arg1: i32) -> (i32, i32, i32) {
    %c0_i32 = arith.constant 0 : i32
    %c0_i32_0 = arith.constant 0 : i32
    %c0_i32_1 = arith.constant 0 : i32
    return %arg0, %c0_i32, %c0_i32_0 : i32, i32, i32
  }
  func.func @transform_5(%arg0: i32, %arg1: i32) -> (i32, i32, i32) {
    %c0_i32 = arith.constant 0 : i32
    %c0_i32_0 = arith.constant 0 : i32
    %c0_i32_1 = arith.constant 0 : i32
    return %arg0, %c0_i32, %c0_i32_0 : i32, i32, i32
  }
  func.func @transform_6(%arg0: i32, %arg1: i32) -> (i32, i32, i32) {
    %c0_i32 = arith.constant 0 : i32
    %c0_i32_0 = arith.constant 0 : i32
    %c0_i32_1 = arith.constant 0 : i32
    return %arg0, %c0_i32, %c0_i32_0 : i32, i32, i32
  }
  func.func @transform_7(%arg0: i32, %arg1: i32) -> (i32, i32, i32) {
    %c0_i32 = arith.constant 0 : i32
    %c0_i32_0 = arith.constant 0 : i32
    %c0_i32_1 = arith.constant 0 : i32
    return %arg0, %c0_i32, %c0_i32_0 : i32, i32, i32
  }
  func.func @transform_8(%arg0: i32, %arg1: i32) -> (i32, i32) {
    %c0_i32 = arith.constant 0 : i32
    %c0_i32_0 = arith.constant 0 : i32
    %c0_i32_1 = arith.constant 0 : i32
    return %c0_i32, %c0_i32_0 : i32, i32
  }
  func.func @transform_9(%arg0: i32, %arg1: i32) -> (i32, i32) {
    %c0_i32 = arith.constant 0 : i32
    %c0_i32_0 = arith.constant 0 : i32
    %c0_i32_1 = arith.constant 0 : i32
    return %c0_i32, %c0_i32_0 : i32, i32
  }
  func.func @transform_10(%arg0: i32, %arg1: i32) -> i32 {
    %c0_i32 = arith.constant 0 : i32
    %c0_i32_0 = arith.constant 0 : i32
    return %c0_i32 : i32
  }
  func.func @transform_11(%arg0: i32, %arg1: i32) -> (i32, i32) {
    %c0_i32 = arith.constant 0 : i32
    %c0_i32_0 = arith.constant 0 : i32
    return %arg1, %c0_i32 : i32, i32
  }
}

</mosaic_0001>

<bundles_post_ra>
// kernel: _lambda_.1
= control target key start
LH: loop header
LB: loop body
LE: loop exit
PB: predicated region body
PF: predicated region fallthrough
CT: control target
= control target key end

     0   :  { %s7276_s0 = inlined_call_operand.hbm [shape: f32[8,32], index: 0, kind: input, shape index: {}]   ;;  %s7277_s1 = inlined_call_operand.hbm [shape: f32[32,512], index: 1, kind: input, shape index: {}]   ;;  %s7278_s2 = inlined_call_operand.hbm [shape: f32[1,512], index: 2, kind: input, shape index: {}]   ;;  %s7279_s3 = inlined_call_operand.hbm [shape: s8[2,512,512], index: 3, kind: input, shape index: {}]   ;;  %s7280_s4 = inlined_call_operand.hbm [shape: s8[2,512,2048], index: 4, kind: input, shape index: {}]   ;;  %s7281_s5 = inlined_call_operand.hbm [shape: f32[2,2,2048], index: 5, kind: input, shape index: {}]   ;;  %s7282_s6 = inlined_call_operand.hbm [shape: s8[2,2048,512], index: 6, kind: input, shape index: {}]   ;;  %s7283_s7 = inlined_call_operand.hbm [shape: f32[2,8,512], index: 7, kind: input, shape index: {}]   ;;  %s7284_s8 = inlined_call_operand.hbm [shape: s8[512,128], index: 8, kind: input, shape index: {}]   ;;  %s7285_s9 = inlined_call_operand.hbm [shape: f32[2,128], index: 9, kind: input, shape index: {}]   ;;  %s7286_s10 = inlined_call_operand.<no memory space> [shape: f32[1], index: 10, kind: input, shape index: {}]   ;;  %s7287_s11 = inlined_call_operand.hbm [shape: f32[8,128], index: 11, kind: output, shape index: {}]  }
   0x1   :  { %7318 = sst [smem:[#allocation39_spill]] %s7277_s1 }
   0x2   :  { %7319 = sst [smem:[#allocation40_spill]] %s7279_s3 }
   0x3   :  { %7320 = sst [smem:[#allocation41_spill]] %s7281_s5 }
   0x4   :  { %7321 = sst [smem:[#allocation42_spill]] %s7284_s8 }
   0x5   :  { %7322 = sst [smem:[#allocation43_spill]] %s7287_s11 }
   0x6   :  { %16 = sst [smem:[#allocation3]] %s7286_s10 }
   0x7   :  { %17 = vsyncpa [#allocation5], 0 }
   0x8   :  { %18 = vsyncpa [#allocation8], 0 }
   0x9   :  { %19 = vsyncpa [#allocation11], 0 }
   0xa   :  { %21 = vsyncpa [#allocation11 + $0x1], 0 }
   0xb   :  { %22 = vsyncpa [#allocation14], 0 }
   0xc   :  { %24 = vsyncpa [#allocation14 + $0x1], 0 }
   0xd   :  { %25 = vsyncpa [#allocation17], 0 }
   0xe   :  { %27 = vsyncpa [#allocation17 + $0x1], 0 }
   0xf   :  { %28 = vsyncpa [#allocation20], 0 }
  0x10   :  { %29 = vsyncpa [#allocation6], 0  ;;  %s5840_s19 = smov 0   ;;  %s5842_s20 = smov 0  }
  0x11   :  { %s5844_s21 = smov 0   ;;  %s5846_s22 = smov 0  }
  0x12   :  { %s5848_s23 = smov 0   ;;  %s5850_s10 = smov 0  }
  0x13 LB: > { %7323 = sst [smem:[#allocation30_spill]] %s5742_s20  ;;  %s5760_s24 = smov [#allocation7]   ;;  %s5758_s10 = sphi %s5850_s10, %s35_s10   ;;  %s5754_s23 = sphi %s5848_s23, %s7380_s23   ;;  %s5750_s22 = sphi %s5846_s22, %s7379_s22   ;;  %s5746_s21 = sphi %s5844_s21, %s7377_s21   ;;  %s5742_s20 = sphi %s5842_s20, %s7376_s20   ;;  %s5738_s19 = sphi %s5840_s19, %s7375_s19  }
  0x14   : > { %7324 = sst [smem:[#allocation31_spill]] %s5746_s21  ;;  %s364_s25 = sshll.u32 %s5760_s24, 4  ;;  %s5876_s25 = int_to_ptr.vmem [resolvable:$true] %s364_s25 }
  0x15   : > { %7325 = sst [smem:[#allocation32_spill]] %s5750_s22  ;;  %s5871_s26 = sadd.s32 4294967295, %s5758_s10  }
  0x16   : > { %7326 = sst [smem:[#allocation33_spill]] %s5758_s10  ;;  %p5015_p0 = scmp.ge.s32.totalorder %s5758_s10, 1 }
  0x17   : > { %7327 = sst [smem:[#allocation34_spill]] %s5871_s26  ;;  %p7296_p1 = scmp.eq.s32.totalorder %s5871_s26, 0 }
  0x18   : > { %p339_p2 = scmp.lt.s32.totalorder %s5758_s10, 3  ;;  %s5761_s28 = smov [#allocation18]  }
  0x19   : > { %s388_s29 = sshll.u32 %s5761_s28, 4  ;;  %s7331_s1 = sld [smem:[#allocation39_spill]]  ;;  %s5890_s29 = int_to_ptr.vmem [resolvable:$true] %s388_s29 }
  0x1a   : > { %p5878_p3 = pnand %p5015_p0, %p339_p2 }
  0x1c   : > { %s7328_s27 = scalar_select %p5878_p3, 1, 0 }
  0x1d   : > { %p5251_p4 = pneg %p5878_p3 }
  0x1e   : > { %7329 = sst [smem:[#allocation35_spill]] %s7328_s27 }
  0x1f   : > { %p5886_p5 = pnand %p5251_p4, %p7296_p1  ;;  %s5364_s14 = scalar_lea.hbm %s7331_s1, 2048 }
  0x20   : > { %p5365_p6 = scmp.ne.s32.totalorder %s7331_s1, %s5364_s14  ;;  %p5371_p10 = scmp.lt.u32.totalorder %s5364_s14, %s7331_s1 }
  0x21   : > { %s7330_s30 = scalar_select %p5886_p5, 1, 0 }
  0x22   : > { %p5900_p7 = pneg %p5886_p5 }
  0x24   : > { %s7332_s17 = scalar_select %p5900_p7, 1, 0 }
  0x25   : > { %p5367_p8 = pnand %p5900_p7, %p5365_p6 }
  0x27   : > { %p5368_p9 = pneg %p5367_p8 }
  0x29   : > { %p5373_p11 = pnand %p5371_p10, %p5368_p9 }
  0x2b   : > { %5376 = shalt.err (!%p5373_p11)
}
  0x2c   : > { %s5377_s28 = scalar_lea.vmem %s5876_s25, 2048  ;;  %p5385_p2 = scmp.lt.s32.totalorder %s5876_s25, %s5876_s25 }
  0x2d   : > { %p5378_p12 = scmp.ne.s32.totalorder %s5876_s25, %s5377_s28  ;;  %p5386_p4 = scmp.lt.s32.totalorder %s5377_s28, %s5377_s28 }
  0x2f   : > { %p5380_p13 = pnand %p5378_p12, %p5900_p7  ;;  %p5387_p6 = por %p5386_p4, %p5385_p2 }
  0x31   : > { %p5381_p0 = pneg %p5380_p13 }
  0x33   : > { %p5388_p8 = pnand %p5387_p6, %p5381_p0 }
  0x35   : > { %5391 = shalt.err (!%p5388_p8)
}
  0x36   : > { %s7291_s12 = smov 512   ;;  %s7293_s13 = smov 32  }
  0x37   : > { %5257 = dma.hbm_to_vmem [thread:$0]  (!%p5886_p5), %s7331_s1, 2048, %s5876_s25, [#allocation8], %s7291_s12, %s7291_s12, %s7293_s13  }
  0x38   : > { %s7333_s8 = sld [smem:[#allocation42_spill]] }
  0x3e   : > { %s5392_s24 = scalar_lea.hbm %s7333_s8, 2048 }
  0x3f   : > { %p5393_p9 = scmp.ne.s32.totalorder %s7333_s8, %s5392_s24  ;;  %p5399_p12 = scmp.lt.u32.totalorder %s5392_s24, %s7333_s8 }
  0x41   : > { %p5395_p10 = pnand %p5393_p9, %p5900_p7 }
  0x43   : > { %p5396_p11 = pneg %p5395_p10 }
  0x45   : > { %p5401_p13 = pnand %p5399_p12, %p5396_p11 }
  0x47   : > { %5404 = shalt.err (!%p5401_p13)
}
  0x48   : > { %s5405_s25 = scalar_lea.vmem %s5890_s29, 2048  ;;  %p5413_p6 = scmp.lt.s32.totalorder %s5890_s29, %s5890_s29 }
  0x49   : > { %p5406_p0 = scmp.ne.s32.totalorder %s5890_s29, %s5405_s25  ;;  %p5414_p8 = scmp.lt.s32.totalorder %s5405_s25, %s5405_s25 }
  0x4b   : > { %p5408_p2 = pnand %p5406_p0, %p5900_p7  ;;  %p5415_p9 = por %p5414_p8, %p5413_p6 }
  0x4d   : > { %p5409_p4 = pneg %p5408_p2 }
  0x4f   : > { %p5416_p10 = pnand %p5415_p9, %p5409_p4 }
  0x51   : > { %5419 = shalt.err (!%p5416_p10)
}
  0x52   : > { %s7290_s11 = smov 128   ;;  %s5765_s22 = smov 8  }
  0x53   : > { %5263 = dma.hbm_to_vmem [thread:$0]  (!%p5886_p5), %s7333_s8, 2048, %s5890_s29, [#allocation17], %s7290_s11, %s7290_s11, %s5765_s22  }
  0x54   : > { %s47_s15 = sadd.s32 1, %s5754_s23  ;;  %s122_s16 = sadd.s32 1, %s5746_s21 }
  0x55   : > { %p49_p11 = scmp.ge.s32.totalorder %s47_s15, 2  ;;  %p129_p12 = scmp.ne.s32.totalorder %s5746_s21, %s5742_s20 }
  0x56   : > { %p130_p13 = scmp.eq.s32.totalorder %s5758_s10, 0  ;;  %p135_p0 = scmp.ne.s32.totalorder %s5742_s20, %s5738_s19 }
  0x57   : > { %s7382_s15 = smov (%p49_p11, %s47_s15), 0  ;;  %p5288_p6 = scmp.lt.s32.totalorder %s5758_s10, 2 }
  0x58   : > { %7334 = sst [smem:[#allocation36_spill]] %s7382_s15  ;;  %p5958_p2 = por %p130_p13, %p129_p12 }
  0x59   : > { %p5964_p4 = por %p7296_p1, %p135_p0  ;;  %s119_s29 = ssub.s32 %s5754_s23, %s7382_s15 }
  0x5a   : > { %p120_p8 = scmp.eq.s32.totalorder %s119_s29, 0  ;;  %s5972_s28 = sand.u32 1, %s5758_s10  }
  0x5b   : > { %s7336_s24 = scalar_select %p5964_p4, 1, 0 }
  0x5c   : > { %s5975_s19 = sand.u32 1, %s5746_s21   ;;  %s5056_s27 = sshll.u32 %s5754_s23, 13 }
  0x5d   : > { %7337 = sst [smem:[#allocation37_spill]] %s7336_s24  ;;  %s5022_s22 = sshll.u32 %s5975_s19, 9 }
  0x5e   : > { %s5978_s25 = scalar_select %p120_p8, %s5746_s21, %s122_s16  }
  0x5f   : > { %s7339_s3 = sld [smem:[#allocation40_spill]]  ;;  %s420_s29 = scalar_lea.vmem [#allocation10], %s5022_s22 }
  0x60   : > { %7338 = sst [smem:[#allocation38_spill]] %s5978_s25  ;;  %s427_s13 = sshll.u32 %s420_s29, 4  ;;  %s5993_s13 = int_to_ptr.vmem [resolvable:$true] %s427_s13 }
  0x61   : > { %p5989_p9 = pnand %p5288_p6, %p5958_p2  ;;  %s7305_s8 = scalar_lea.sflag [#allocation11], %s5972_s28 }
  0x63   : > { %s7340_s1 = scalar_select %p5989_p9, 1, 0 }
  0x64   : > { %p6001_p11 = pneg %p5989_p9 }
  0x65   : > { %s5985_s12 = scalar_lea.hbm %s7339_s3, %s5056_s27  ;;  %s5425_s27 = scalar_lea.hbm %s7339_s3, 16384 }
  0x66   : > { %s5420_s15 = scalar_lea.hbm %s5985_s12, 8192  ;;  %p5426_p0 = scmp.lt.u32.totalorder %s5985_s12, %s7339_s3 }
  0x67   : > { %p5421_p10 = scmp.ne.s32.totalorder %s5985_s12, %s5420_s15  ;;  %p5427_p2 = scmp.lt.u32.totalorder %s5425_s27, %s5420_s15 }
  0x68   : > { %s7341_s11 = scalar_select %p6001_p11, 1, 0 }
  0x69   : > { %p5423_p12 = pnand %p6001_p11, %p5421_p10  ;;  %p5428_p6 = por %p5427_p2, %p5426_p0 }
  0x6a   : > { %p5429_p8 = scmp.lt.u32.totalorder %s5420_s15, %s5985_s12 }
  0x6b   : > { %p5424_p13 = pneg %p5423_p12 }
  0x6c   : > { %p5430_p1 = por %p5429_p8, %p5428_p6 }
  0x6e   : > { %p5431_p4 = pnand %p5430_p1, %p5424_p13 }
  0x70   : > { %5434 = shalt.err (!%p5431_p4)
}
  0x71   : > { %s5435_s16 = scalar_lea.vmem %s5993_s13, 8192  ;;  %s5766_s18 = smov [#allocation10]  }
  0x72   : > { %p5436_p10 = scmp.ne.s32.totalorder %s5993_s13, %s5435_s16  ;;  %s5440_s22 = sshll.u32 %s5766_s18, 4  ;;  %s5441_s22 = int_to_ptr.vmem [resolvable:$false] %s5440_s22 }
  0x73   : > { %s5442_s14 = scalar_lea.vmem %s5441_s22, 16384  ;;  %p5443_p5 = scmp.lt.s32.totalorder %s5993_s13, %s5441_s22 }
  0x74   : > { %p5438_p12 = pnand %p5436_p10, %p6001_p11  ;;  %p5444_p7 = scmp.lt.s32.totalorder %s5442_s14, %s5435_s16 }
  0x76   : > { %p5439_p3 = pneg %p5438_p12  ;;  %p5445_p0 = por %p5444_p7, %p5443_p5 }
  0x78   : > { %p5446_p2 = pnand %p5445_p0, %p5439_p3 }
  0x7a   : > { %5449 = shalt.err (!%p5446_p2)
}
  0x7b   : > { %s7342_s15 = smov 32   ;;  %s7343_s27 = smov 512  }
  0x7c   : > { %5270 = dma.hbm_to_vmem [thread:$0]  (!%p5989_p9), %s5985_s12, 8192, %s5993_s13, %s7305_s8, %s7343_s27, %s7343_s27, %s7342_s15  }
  0x7d   : > { %s7306_s29 = sshll.u32 %s5754_s23, 9  ;;  %s7344_s5 = sld [smem:[#allocation41_spill]] }
  0x7e   : > { %s7345_s14 = sshll.u32 %s5975_s19, 5  ;;  %s459_s21 = scalar_lea.sflag [#allocation14], %s5972_s28 }
  0x7f   : > { %s462_s3 = scalar_lea.vmem [#allocation13], %s7345_s14 }
  0x80   : > { %s470_s25 = sshll.u32 %s462_s3, 4  ;;  %s471_s25 = int_to_ptr.vmem [resolvable:$true] %s470_s25 }
  0x83   : > { %s6035_s22 = scalar_lea.hbm %s7344_s5, %s7306_s29  ;;  %s5455_s16 = scalar_lea.hbm %s7344_s5, 1024 }
  0x84   : > { %s5450_s10 = scalar_lea.hbm %s6035_s22, 512  ;;  %p5456_p7 = scmp.lt.u32.totalorder %s6035_s22, %s7344_s5 }
  0x85   : > { %p5451_p1 = scmp.ne.s32.totalorder %s6035_s22, %s5450_s10  ;;  %p5457_p4 = scmp.lt.u32.totalorder %s5455_s16, %s5450_s10 }
  0x86   : > { %p5459_p6 = scmp.lt.u32.totalorder %s5450_s10, %s6035_s22 }
  0x87   : > { %p5453_p3 = pnand %p5451_p1, %p6001_p11  ;;  %p5458_p13 = por %p5457_p4, %p5456_p7 }
  0x89   : > { %p5454_p5 = pneg %p5453_p3  ;;  %p5460_p8 = por %p5459_p6, %p5458_p13 }
  0x8b   : > { %p5461_p10 = pnand %p5460_p8, %p5454_p5 }
  0x8d   : > { %5464 = shalt.err (!%p5461_p10)
}
  0x8e   : > { %s5465_s3 = scalar_lea.vmem %s471_s25, 512  ;;  %s5767_s14 = smov [#allocation13]  }
  0x8f   : > { %p5466_p12 = scmp.ne.s32.totalorder %s471_s25, %s5465_s3  ;;  %s5470_s29 = sshll.u32 %s5767_s14, 4  ;;  %s5471_s29 = int_to_ptr.vmem [resolvable:$false] %s5470_s29 }
  0x90   : > { %s5472_s12 = scalar_lea.vmem %s5471_s29, 1024  ;;  %p5473_p1 = scmp.lt.s32.totalorder %s471_s25, %s5471_s29 }
  0x91   : > { %p5468_p0 = pnand %p5466_p12, %p6001_p11  ;;  %p5474_p3 = scmp.lt.s32.totalorder %s5472_s12, %s5465_s3 }
  0x93   : > { %p5469_p2 = pneg %p5468_p0  ;;  %p5475_p9 = por %p5474_p3, %p5473_p1 }
  0x95   : > { %p5476_p4 = pnand %p5475_p9, %p5469_p2 }
  0x97   : > { %5479 = shalt.err (!%p5476_p4)
}
  0x98   : > { %p7346_p7 = scmp.ne.s32.totalorder %s7340_s1, 0  ;;  %s7347_s8 = sshll.u32 %s5754_s23, 9 }
  0x99   : > { %s6064_s16 = scalar_lea.hbm %s7283_s7, %s7347_s8  ;;  %s5768_s18 = smov [#allocation4]  }
  0x9a   : > { %5276 = dma.hbm_to_vmem [thread:$0]  (!%p7346_p7), %s6035_s22, 512, %s471_s25, %s459_s21  }
  0x9b   : > { %s354_s29 = sshll.u32 %s5768_s18, 4  ;;  %s5769_s3 = smov [#allocation9]   ;;  %s355_s29 = int_to_ptr.vmem [resolvable:$true] %s354_s29 }
  0x9c   : > { %s378_s14 = sshll.u32 %s5769_s3, 4  ;;  %s5480_s24 = scalar_lea.hbm %s7276_s0, 128  ;;  %s379_s14 = int_to_ptr.vmem [resolvable:$true] %s378_s14 }
  0x9d   : > { %p5481_p9 = scmp.ne.s32.totalorder %s7276_s0, %s5480_s24  ;;  %p7348_p5 = scmp.ne.s32.totalorder %s7332_s17, 0 }
  0x9e   : > { %p5487_p8 = scmp.lt.u32.totalorder %s5480_s24, %s7276_s0 }
  0x9f   : > { %p5483_p13 = pnand %p5481_p9, %p7348_p5 }
  0xa1   : > { %p5484_p6 = pneg %p5483_p13 }
  0xa3   : > { %p5489_p10 = pnand %p5487_p8, %p5484_p6 }
  0xa5   : > { %5492 = shalt.err (!%p5489_p10)
}
  0xa6   : > { %s5493_s8 = scalar_lea.vmem %s355_s29, 128  ;;  %p5501_p1 = scmp.lt.s32.totalorder %s355_s29, %s355_s29 }
  0xa7   : > { %p5494_p12 = scmp.ne.s32.totalorder %s355_s29, %s5493_s8  ;;  %p5502_p3 = scmp.lt.s32.totalorder %s5493_s8, %s5493_s8 }
  0xa9   : > { %p5496_p0 = pnand %p5494_p12, %p7348_p5  ;;  %p5503_p4 = por %p5502_p3, %p5501_p1 }
  0xab   : > { %p5497_p2 = pneg %p5496_p0 }
  0xad   : > { %p5504_p7 = pnand %p5503_p4, %p5497_p2 }
  0xaf   : > { %5507 = shalt.err (!%p5504_p7)
}
  0xb0   : > { %p7349_p9 = scmp.ne.s32.totalorder %s7330_s30, 0  ;;  %s5508_s10 = scalar_lea.hbm %s7278_s2, 64 }
  0xb1   : > { %p5509_p13 = scmp.ne.s32.totalorder %s7278_s2, %s5508_s10  ;;  %p5515_p7 = scmp.lt.u32.totalorder %s5508_s10, %s7278_s2 }
  0xb2   : > { %5254 = dma.hbm_to_vmem [thread:$0]  (!%p7349_p9), %s7276_s0, 128, %s355_s29, [#allocation5]  }
  0xb3   : > { %p5511_p6 = pnand %p5509_p13, %p7348_p5 }
  0xb5   : > { %p5512_p8 = pneg %p5511_p6 }
  0xb7   : > { %p5517_p10 = pnand %p5515_p7, %p5512_p8 }
  0xb9   : > { %5520 = shalt.err (!%p5517_p10)
}
  0xba   : > { %s5521_s25 = scalar_lea.vmem %s379_s14, 64  ;;  %p5529_p1 = scmp.lt.s32.totalorder %s379_s14, %s379_s14 }
  0xbb   : > { %p5522_p12 = scmp.ne.s32.totalorder %s379_s14, %s5521_s25  ;;  %p5530_p3 = scmp.lt.s32.totalorder %s5521_s25, %s5521_s25 }
  0xbd   : > { %p5524_p0 = pnand %p5522_p12, %p7348_p5  ;;  %p5531_p4 = por %p5530_p3, %p5529_p1 }
  0xbf   : > { %p5525_p2 = pneg %p5524_p0 }
  0xc1   : > { %p5532_p11 = pnand %p5531_p4, %p5525_p2 }
  0xc3   : > { %5535 = shalt.err (!%p5532_p11)
}
  0xc4   : > { %5260 = dma.hbm_to_vmem [thread:$0]  (!%p7349_p9), %s7278_s2, 64, %s379_s14, [#allocation8]  }
  0xc5   : > { %s5770_s8 = smov [#allocation19]   ;;  %s5025_s20 = sshll.u32 %s5975_s19, 11 }
  0xc6   : > { %s402_s5 = sshll.u32 %s5770_s8, 4  ;;  %s5536_s10 = scalar_lea.hbm %s7285_s9, 32  ;;  %s403_s5 = int_to_ptr.vmem [resolvable:$true] %s402_s5 }
  0xc7   : > { %p5537_p11 = scmp.ne.s32.totalorder %s7285_s9, %s5536_s10  ;;  %p5543_p8 = scmp.lt.u32.totalorder %s5536_s10, %s7285_s9 }
  0xc9   : > { %p5539_p13 = pnand %p5537_p11, %p7348_p5 }
  0xcb   : > { %p5540_p6 = pneg %p5539_p13 }
  0xcd   : > { %p5545_p7 = pnand %p5543_p8, %p5540_p6 }
  0xcf   : > { %5548 = shalt.err (!%p5545_p7)
}
  0xd0   : > { %s5549_s14 = scalar_lea.vmem %s403_s5, 32  ;;  %p5557_p2 = scmp.lt.s32.totalorder %s403_s5, %s403_s5 }
  0xd1   : > { %p5550_p10 = scmp.ne.s32.totalorder %s403_s5, %s5549_s14  ;;  %p5558_p1 = scmp.lt.s32.totalorder %s5549_s14, %s5549_s14 }
  0xd3   : > { %p5552_p12 = pnand %p5550_p10, %p7348_p5  ;;  %p5559_p3 = por %p5558_p1, %p5557_p2 }
  0xd5   : > { %p5553_p0 = pneg %p5552_p12 }
  0xd7   : > { %p5560_p4 = pnand %p5559_p3, %p5553_p0 }
  0xd9   : > { %5563 = shalt.err (!%p5560_p4)
}
  0xda   : > { %5266 = dma.hbm_to_vmem [thread:$0]  (!%p7349_p9), %s7285_s9, 32, %s403_s5, [#allocation20]  }
  0xdb   : > { %s5057_s22 = sshll.u32 %s5754_s23, 15  ;;  %s441_s17 = scalar_lea.vmem [#allocation12], %s5025_s20 }
  0xdc   : > { %s448_s8 = sshll.u32 %s441_s17, 4  ;;  %s6129_s10 = scalar_lea.hbm %s7280_s4, %s5057_s22  ;;  %s6131_s8 = int_to_ptr.vmem [resolvable:$true] %s448_s8 }
  0xdd   : > { %s5564_s30 = scalar_lea.hbm %s6129_s10, 32768  ;;  %p7350_p11 = scmp.ne.s32.totalorder %s7341_s11, 0 }
  0xde   : > { %p5565_p5 = scmp.ne.s32.totalorder %s6129_s10, %s5564_s30  ;;  %s5569_s18 = scalar_lea.hbm %s7280_s4, 65536 }
  0xdf   : > { %p5570_p6 = scmp.lt.u32.totalorder %s6129_s10, %s7280_s4  ;;  %p5571_p8 = scmp.lt.u32.totalorder %s5569_s18, %s5564_s30 }
  0xe0   : > { %p5567_p9 = pnand %p5565_p5, %p7350_p11  ;;  %p5573_p10 = scmp.lt.u32.totalorder %s5564_s30, %s6129_s10 }
  0xe1   : > { %p5572_p7 = por %p5571_p8, %p5570_p6 }
  0xe2   : > { %p5568_p13 = pneg %p5567_p9 }
  0xe3   : > { %p5574_p12 = por %p5573_p10, %p5572_p7 }
  0xe5   : > { %p5575_p0 = pnand %p5574_p12, %p5568_p13 }
  0xe7   : > { %5578 = shalt.err (!%p5575_p0)
}
  0xe8   : > { %s5579_s14 = scalar_lea.vmem %s6131_s8, 32768  ;;  %s5771_s25 = smov [#allocation12]  }
  0xe9   : > { %p5580_p2 = scmp.ne.s32.totalorder %s6131_s8, %s5579_s14  ;;  %s5584_s29 = sshll.u32 %s5771_s25, 4  ;;  %s5585_s29 = int_to_ptr.vmem [resolvable:$false] %s5584_s29 }
  0xea   : > { %s5586_s17 = scalar_lea.vmem %s5585_s29, 65536  ;;  %p5587_p4 = scmp.lt.s32.totalorder %s6131_s8, %s5585_s29 }
  0xeb   : > { %p5582_p1 = pnand %p5580_p2, %p7350_p11  ;;  %p5588_p5 = scmp.lt.s32.totalorder %s5586_s17, %s5579_s14 }
  0xed   : > { %p5583_p3 = pneg %p5582_p1  ;;  %p5589_p9 = por %p5588_p5, %p5587_p4 }
  0xef   : > { %p5590_p6 = pnand %p5589_p9, %p5583_p3 }
  0xf1   : > { %5593 = shalt.err (!%p5590_p6)
}
  0xf2   : > { %s5772_s26 = smov 2048   ;;  %p7351_p13 = scmp.ne.s32.totalorder %s7340_s1, 0 }
  0xf3   : > { %s7352_s24 = smov 128   ;;  %s7353_s30 = scalar_lea.sflag [#allocation11], %s5972_s28 }
  0xf4   : > { %5273 = dma.hbm_to_vmem [thread:$0]  (!%p7351_p13), %s6129_s10, 32768, %s6131_s8, %s7353_s30, %s5772_s26, %s5772_s26, %s7352_s24  }
  0xf5   : > { %s6162_s18 = scalar_lea.hbm %s7282_s6, %s5057_s22  ;;  %s481_s3 = scalar_lea.vmem [#allocation15], %s5025_s20 }
  0xf6   : > { %s488_s12 = sshll.u32 %s481_s3, 4  ;;  %s5594_s14 = scalar_lea.hbm %s6162_s18, 32768  ;;  %s6166_s12 = int_to_ptr.vmem [resolvable:$true] %s488_s12 }
  0xf7   : > { %p5595_p8 = scmp.ne.s32.totalorder %s6162_s18, %s5594_s14  ;;  %s5599_s25 = scalar_lea.hbm %s7282_s6, 65536 }
  0xf8   : > { %p5600_p12 = scmp.lt.u32.totalorder %s6162_s18, %s7282_s6  ;;  %p5601_p0 = scmp.lt.u32.totalorder %s5599_s25, %s5594_s14 }
  0xf9   : > { %p5597_p7 = pnand %p5595_p8, %p7350_p11  ;;  %p5603_p1 = scmp.lt.u32.totalorder %s5594_s14, %s6162_s18 }
  0xfa   : > { %p5602_p2 = por %p5601_p0, %p5600_p12 }
  0xfb   : > { %p5598_p10 = pneg %p5597_p7 }
  0xfc   : > { %p5604_p3 = por %p5603_p1, %p5602_p2 }
  0xfe   : > { %p5605_p4 = pnand %p5604_p3, %p5598_p10 }
 0x100   : > { %5608 = shalt.err (!%p5605_p4)
}
 0x101   : > { %s5609_s20 = scalar_lea.vmem %s6166_s12, 32768  ;;  %s5773_s17 = smov [#allocation15]  }
 0x102   : > { %p5610_p5 = scmp.ne.s32.totalorder %s6166_s12, %s5609_s20  ;;  %s5614_s26 = sshll.u32 %s5773_s17, 4  ;;  %s5615_s26 = int_to_ptr.vmem [resolvable:$false] %s5614_s26 }
 0x103   : > { %s5616_s24 = scalar_lea.vmem %s5615_s26, 65536  ;;  %p5617_p8 = scmp.lt.s32.totalorder %s6166_s12, %s5615_s26 }
 0x104   : > { %p5612_p9 = pnand %p5610_p5, %p7350_p11  ;;  %p5618_p7 = scmp.lt.s32.totalorder %s5616_s24, %s5609_s20 }
 0x106   : > { %p5613_p6 = pneg %p5612_p9  ;;  %p5619_p12 = por %p5618_p7, %p5617_p8 }
 0x108   : > { %p5620_p0 = pnand %p5619_p12, %p5613_p6 }
 0x10a   : > { %5623 = shalt.err (!%p5620_p0)
}
 0x10b   : > { %5279 = dma.hbm_to_vmem [thread:$0]  (!%p7351_p13), %s6162_s18, 32768, %s6166_s12, %s459_s21, %s7343_s27, %s7343_s27, %s7342_s15  }
 0x10c   : > { %s7354_s30 = sshll.u32 %s5975_s19, 5  ;;  %s499_s3 = scalar_lea.sflag [#allocation17], %s5972_s28 }
 0x10d   : > { %s502_s5 = scalar_lea.vmem [#allocation16], %s7354_s30  ;;  %s5624_s14 = scalar_lea.hbm %s6064_s16, 512 }
 0x10e   : > { %s510_s13 = sshll.u32 %s502_s5, 4  ;;  %p5625_p10 = scmp.ne.s32.totalorder %s6064_s16, %s5624_s14  ;;  %s511_s13 = int_to_ptr.vmem [resolvable:$true] %s510_s13 }
 0x10f   : > { %s5629_s25 = scalar_lea.hbm %s7283_s7, 1024  ;;  %p5630_p3 = scmp.lt.u32.totalorder %s6064_s16, %s7283_s7 }
 0x110   : > { %p5627_p2 = pnand %p5625_p10, %p7350_p11  ;;  %p5631_p4 = scmp.lt.u32.totalorder %s5629_s25, %s5624_s14 }
 0x111   : > { %p5633_p9 = scmp.lt.u32.totalorder %s5624_s14, %s6064_s16 }
 0x112   : > { %p5628_p1 = pneg %p5627_p2  ;;  %p5632_p5 = por %p5631_p4, %p5630_p3 }
 0x114   : > { %p5634_p6 = por %p5633_p9, %p5632_p5 }
 0x116   : > { %p5635_p8 = pnand %p5634_p6, %p5628_p1 }
 0x118   : > { %5638 = shalt.err (!%p5635_p8)
}
 0x119   : > { %s5639_s21 = scalar_lea.vmem %s511_s13, 512  ;;  %s5774_s28 = smov [#allocation16]  }
 0x11a   : > { %p5640_p7 = scmp.ne.s32.totalorder %s511_s13, %s5639_s21  ;;  %s5644_s19 = sshll.u32 %s5774_s28, 4  ;;  %s5645_s19 = int_to_ptr.vmem [resolvable:$false] %s5644_s19 }
 0x11b   : > { %s5646_s15 = scalar_lea.vmem %s5645_s19, 1024  ;;  %p5647_p10 = scmp.lt.s32.totalorder %s511_s13, %s5645_s19 }
 0x11c   : > { %p5642_p12 = pnand %p5640_p7, %p7350_p11  ;;  %p5648_p2 = scmp.lt.s32.totalorder %s5646_s15, %s5639_s21 }
 0x11e   : > { %p5643_p0 = pneg %p5642_p12  ;;  %p5649_p13 = por %p5648_p2, %p5647_p10 }
 0x120   : > { %p5650_p3 = pnand %p5649_p13, %p5643_p0 }
 0x122   : > { %5653 = shalt.err (!%p5650_p3)
}
 0x123   : > { %p7355_p4 = scmp.ne.s32.totalorder %s7340_s1, 0  ;;  %s7356_s27 = sld [smem:[#allocation35_spill]] }
 0x125   : > { %5282 = dma.hbm_to_vmem [thread:$0]  (!%p7355_p4), %s6064_s16, 512, %s511_s13, %s499_s3  }
 0x129   : > { %p7357_p1 = scmp.ne.s32.totalorder %s7356_s27, 0 }
 0x12a   : > { %s7358_s18 = sld [smem:[#allocation34_spill]] (!%p7357_p1) }
 0x12b   : > { %519 = sbr.rel (%p7357_p1) target bundleno = 3020 (0xbcc), region = 64 }
 0x130   : > { %p7359_p5 = scmp.eq.s32.totalorder (!%p7357_p1), %s7358_s18, 0 }
 0x132   : > { %5705 = dma.done.wait (%p7359_p5), [#allocation5], 128   ;;  %p7360_p11 = pmov %p7359_p5 }
 0x133   : > { %p7361_p9 = pmov %p7359_p5 }
 0x134   : > { %5707 = vsyncadd (%p7360_p11), [#allocation5], 4294967168 }
 0x135   : > { %5709 = dma.done.wait (%p7361_p9), [#allocation8], 2112   ;;  %p7362_p6 = pmov %p7359_p5 }
 0x136   : > { %s7363_s11 = sld [smem:[#allocation30_spill]]  ;;  %s533_s12 = sand.u32 1, %s7358_s18  }
 0x137   : > { %5711 = vsyncadd (%p7362_p6), [#allocation8], 4294965184  ;;  %s7364_s1 = sld [smem:[#allocation37_spill]]  ;;  %s534_s17 = scalar_lea.sflag [#allocation11], %s533_s12 }
 0x13c   : > { %s535_s16 = sand.u32 1, %s7363_s11  }
 0x13d   : > { %s5041_s20 = sshll.u32 %s535_s16, 9  ;;  %p7365_p13 = scmp.ne.s32.totalorder %s7364_s1, 0 }
 0x13e   : > { %s6226_s26 = scalar_lea.vmem [#allocation10], %s5041_s20 }
 0x13f   : > { %5713 = dma.done.wait (%p7365_p13), %s534_s17, 40960  }
 0x140   : > { %5715 = vsyncadd (%p7365_p13), %s534_s17, 4294926336  ;;  %s5042_s24 = sshll.u32 %s535_s16, 11  ;;  %s5043_s30 = sshll.u32 %s535_s16, 5 }
 0x141   : > { %s6232_s5 = scalar_lea.vmem [#allocation12], %s5042_s24  ;;  %s552_s13 = scalar_lea.sflag [#allocation14], %s533_s12 }
 0x142   : > { %s6234_s3 = scalar_lea.vmem [#allocation13], %s5043_s30 }
 0x143   : > { %5717 = dma.done.wait (%p7365_p13), %s552_s13, 33280  }
 0x144   : > { %5719 = vsyncadd (%p7365_p13), %s552_s13, 4294934016  ;;  %s6240_s14 = scalar_lea.vmem [#allocation15], %s5042_s24  ;;  %s570_s8 = scalar_lea.sflag [#allocation17], %s533_s12 }
 0x145   : > { %s6242_s10 = scalar_lea.vmem [#allocation16], %s5043_s30 }
 0x146   : > { %5721 = dma.done.wait (%p7365_p13), %s570_s8, 512  }
 0x147   : > { %5723 = vsyncadd (%p7365_p13), %s570_s8, 4294966784  ;;  %p7366_p8 = pmov %p7359_p5 }
 0x148   : > { %p7367_p7 = pmov %p7359_p5 }
 0x149   : > { %5725 = dma.done.wait (%p7366_p8), [#allocation17], 2048  }
 0x14a   : > { %5727 = vsyncadd (%p7367_p7), [#allocation17], 4294965248  ;;  %p7368_p12 = pmov %p7359_p5 }
 0x14b   : > { %p7369_p0 = pmov %p7359_p5 }
 0x14c   : > { %5729 = dma.done.wait (%p7368_p12), [#allocation20], 32  }
 0x14d   : > { %5731 = vsyncadd (%p7369_p0), [#allocation20], 4294967264  ;;  %s7370_s25 = sld [smem:[#allocation32_spill]] }
 0x153   : > { %p5048_p10 = scmp.ne.s32.totalorder %s7370_s25, 0 }
 0x154   : > { %v642_v0 = vld [vmem:[#allocation7 + $0x8] sm:$0xff] (!%p5048_p10)  ;;  %v644_v2 = vld [vmem:[#allocation7 + $0x18] sm:$0xff] (!%p5048_p10)  ;;  %v641_v5 = vld [vmem:[#allocation7] sm:$0xff] (!%p5048_p10)  ;;  %v5775_v7 = vmov (!%p5048_p10), 0.0   ;;  %vm679_vm0 = vcmask (!%p5048_p10), 261120   ;;  %v659_v26 = vlaneseq (!%p5048_p10) }
 0x155   : > { %639 = sbr.rel (%p5048_p10) target bundleno = 569 (0x239), region = 108  ;;  %v646_v1 = vld [vmem:[#allocation7 + $0x28] sm:$0xff] (!%p5048_p10)  ;;  %v648_v4 = vld [vmem:[#allocation7 + $0x38] sm:$0xff] (!%p5048_p10)  ;;  %v645_v6 = vld [vmem:[#allocation7 + $0x20] sm:$0xff] (!%p5048_p10)  ;;  %747 = vmatprep.mubr.f32.mxu0 (!%p5048_p10), %v5775_v7  ;;  %818 = vmatprep.mubr.f32.mxu1 (!%p5048_p10), %v5775_v7 }
 0x156   : > { %v5105_v3 = vpack.c.bf16 (!%p5048_p10), %v646_v1, %v642_v0  ;;  %v5113_v8 = vpack.c.bf16 (!%p5048_p10), %v648_v4, %v644_v2  ;;  %v5107_v9 = vpack.c.bf16 (!%p5048_p10), %v645_v6, %v641_v5  ;;  %v643_v10 = vld [vmem:[#allocation7 + $0x10] sm:$0xff] (!%p5048_p10)  ;;  %v650_v12 = vld [vmem:[#allocation7 + $0x48] sm:$0xff] (!%p5048_p10)  ;;  %v652_v15 = vld [vmem:[#allocation7 + $0x58] sm:$0xff] (!%p5048_p10)  ;;  %v660_v27 = vshrl.u32 (!%p5048_p10), %v659_v26, 7 }
 0x157   : > { %v647_v11 = vld [vmem:[#allocation7 + $0x30] sm:$0xff] (!%p5048_p10)  ;;  %v654_v14 = vld [vmem:[#allocation7 + $0x68] sm:$0xff] (!%p5048_p10)  ;;  %v656_v16 = vld [vmem:[#allocation7 + $0x78] sm:$0xff] (!%p5048_p10) }
 0x158   : > { %5106 = vmatprep.subr.bf16.mxu0 (!%p5048_p10), %v5105_v3  ;;  %v5115_v13 = vpack.c.bf16 (!%p5048_p10), %v647_v11, %v643_v10  ;;  %5114 = vmatprep.subr.bf16.mxu1 (!%p5048_p10), %v5113_v8  ;;  %v5109_v17 = vpack.c.bf16 (!%p5048_p10), %v654_v14, %v650_v12  ;;  %v5117_v18 = vpack.c.bf16 (!%p5048_p10), %v656_v16, %v652_v15  ;;  %v649_v19 = vld [vmem:[#allocation7 + $0x40] sm:$0xff] (!%p5048_p10)  ;;  %v651_v21 = vld [vmem:[#allocation7 + $0x50] sm:$0xff] (!%p5048_p10)  ;;  %v640_v25 = vld [vmem:[#allocation4] sm:$0xff] (!%p5048_p10)  ;;  %v661_v28 = vsub.s32 (!%p5048_p10), 0, %v660_v27 }
 0x159   : > { %5108 = vmatpush1.bf16.msra.mxu0 (!%p5048_p10), %v5107_v9  ;;  %v653_v20 = vld [vmem:[#allocation7 + $0x60] sm:$0xff] (!%p5048_p10)  ;;  %v655_v23 = vld [vmem:[#allocation7 + $0x70] sm:$0xff] (!%p5048_p10)  ;;  %v669_v30 = vsub.s32 (!%p5048_p10), 2, %v660_v27  ;;  %v665_v31 = vsub.s32 (!%p5048_p10), 1, %v660_v27  ;;  %v673_v32 = vsub.s32 (!%p5048_p10), 3, %v660_v27 }
 0x15a   : > { %5116 = vmatpush1.bf16.msra.mxu1 (!%p5048_p10), %v5115_v13  ;;  %v5111_v22 = vpack.c.bf16 (!%p5048_p10), %v653_v20, %v649_v19  ;;  %5110 = vmatprep.subr.bf16.mxu0 (!%p5048_p10), %v5109_v17  ;;  %v5119_v24 = vpack.c.bf16 (!%p5048_p10), %v655_v23, %v651_v21  ;;  %v657_v29 = vld [vmem:[#allocation9] sm:$0xf] (!%p5048_p10) }
 0x15b   : > { %5118 = vmatprep.subr.bf16.mxu1 (!%p5048_p10), %v5117_v18  ;;  %v662_v33 = vrot.slane (!%p5048_p10), %v657_v29, %v661_v28  ;;  %v670_v34 = vrot.slane (!%p5048_p10), %v657_v29, %v669_v30  ;;  %v666_v35 = vrot.slane (!%p5048_p10), %v657_v29, %v665_v31  ;;  %v674_v36 = vrot.slane (!%p5048_p10), %v657_v29, %v673_v32 }
 0x15d   : > { %5112 = vmatpush1.bf16.msra.mxu0 %v5111_v22 }
 0x15e   : > { %5120 = vmatpush1.bf16.msra.mxu1 %v5119_v24 }
 0x160   : > { %5049 = vmatmul.mubr.msk.f32.vlgmr.msra.gmra.mrb[0].mxu0 %vm679_vm0, %v640_v25 }
 0x161   : > { %5050 = vmatmul.mubr.msk.f32.vlgmr.msra.gmra.mrb[0].mxu1 %vm679_vm0, %v640_v25 }
 0x233   : > { %v749_v37 = vpop.f32.mrb[0].mxu0 }
 0x234   : > { %v750_v38 = vadd.f32 %v749_v37, %v662_v33  ;;  %v820_v39 = vpop.f32.mrb[0].mxu1  ;;  %v751_v40 = vpop.f32.mrb[1].mxu0 }
 0x235   : > { %v821_v41 = vadd.f32 %v820_v39, %v670_v34  ;;  %v752_v42 = vadd.f32 %v751_v40, %v666_v35  ;;  %v822_v43 = vpop.f32.mrb[1].mxu1 }
 0x236   : > { %828 = vst [vmem:[#allocation2] sm:$0xff] %v750_v38  ;;  %v823_v44 = vadd.f32 %v822_v43, %v674_v36 }
 0x237   : > { %830 = vst [vmem:[#allocation2 + $0x10] sm:$0xff] %v821_v41  ;;  %829 = vst [vmem:[#allocation2 + $0x8] sm:$0xff] %v752_v42 }
 0x238   : > { %831 = vst [vmem:[#allocation2 + $0x18] sm:$0xff] %v823_v44 }
 0x239 PF: > { %v852_v45 = vld [vmem:[%s6226_s26 + $0x8] sm:$0xff]  ;;  %v854_v46 = vld [vmem:[%s6226_s26 + $0x18] sm:$0xff]  ;;  %v851_v47 = vld [vmem:[%s6226_s26] sm:$0xff]  ;;  %s7371_s22 = sld [smem:[#allocation32_spill]] }
 0x23a   : > { %v916_v48 = vunpack.c.l.s8.bf16 %v852_v45  ;;  %v920_v49 = vunpack.c.h.s8.bf16 %v852_v45  ;;  %v918_v50 = vunpack.c.l.s8.bf16 %v854_v46  ;;  %v922_v51 = vunpack.c.h.s8.bf16 %v854_v46  ;;  %v853_v52 = vld [vmem:[%s6226_s26 + $0x10] sm:$0xff]  ;;  %v856_v55 = vld [vmem:[%s6226_s26 + $0x28] sm:$0xff]  ;;  %v858_v56 = vld [vmem:[%s6226_s26 + $0x38] sm:$0xff] }
 0x23b   : > { %v915_v53 = vunpack.c.l.s8.bf16 %v851_v47  ;;  %v917_v54 = vunpack.c.l.s8.bf16 %v853_v52  ;;  %v919_v57 = vunpack.c.h.s8.bf16 %v851_v47  ;;  %v921_v58 = vunpack.c.h.s8.bf16 %v853_v52  ;;  %v855_v61 = vld [vmem:[%s6226_s26 + $0x20] sm:$0xff]  ;;  %v857_v62 = vld [vmem:[%s6226_s26 + $0x30] sm:$0xff]  ;;  %v860_v3 = vld [vmem:[%s6226_s26 + $0x48] sm:$0xff] }
 0x23c   : > { %1043 = vmatprep.subr.bf16.mxu0 %v916_v48  ;;  %1125 = vmatprep.subr.bf16.mxu1 %v918_v50  ;;  %v924_v59 = vunpack.c.l.s8.bf16 %v856_v55  ;;  %v926_v60 = vunpack.c.l.s8.bf16 %v858_v56  ;;  %v923_v63 = vunpack.c.l.s8.bf16 %v855_v61  ;;  %v925_v0 = vunpack.c.l.s8.bf16 %v857_v62  ;;  %v862_v4 = vld [vmem:[%s6226_s26 + $0x58] sm:$0xff]  ;;  %v859_v9 = vld [vmem:[%s6226_s26 + $0x40] sm:$0xff]  ;;  %v861_v10 = vld [vmem:[%s6226_s26 + $0x50] sm:$0xff] }
 0x23d   : > { %1044 = vmatpush1.bf16.msra.mxu0 %v915_v53  ;;  %1126 = vmatpush1.bf16.msra.mxu1 %v917_v54  ;;  %v928_v1 = vunpack.c.h.s8.bf16 %v856_v55  ;;  %v930_v2 = vunpack.c.h.s8.bf16 %v858_v56  ;;  %v927_v5 = vunpack.c.h.s8.bf16 %v855_v61  ;;  %v929_v6 = vunpack.c.h.s8.bf16 %v857_v62  ;;  %v864_v17 = vld [vmem:[%s6226_s26 + $0x68] sm:$0xff]  ;;  %v866_v18 = vld [vmem:[%s6226_s26 + $0x78] sm:$0xff]  ;;  %v863_v23 = vld [vmem:[%s6226_s26 + $0x60] sm:$0xff] }
 0x23e   : > { %1045 = vmatprep.subr.bf16.mxu0 %v920_v49  ;;  %1127 = vmatprep.subr.bf16.mxu1 %v922_v51  ;;  %v932_v7 = vunpack.c.l.s8.bf16 %v860_v3  ;;  %v934_v8 = vunpack.c.l.s8.bf16 %v862_v4  ;;  %v6269_v11 = vld [vmem:[#allocation2 + $0x8] sm:$0xff]  ;;  %v931_v12 = vunpack.c.l.s8.bf16 %v859_v9  ;;  %v933_v13 = vunpack.c.l.s8.bf16 %v861_v10  ;;  %v865_v24 = vld [vmem:[%s6226_s26 + $0x70] sm:$0xff]  ;;  %v868_v29 = vld [vmem:[%s6226_s26 + $0x88] sm:$0xff] }
 0x23f   : > { %v936_v14 = vunpack.c.h.s8.bf16 %v860_v3  ;;  %v938_v15 = vunpack.c.h.s8.bf16 %v862_v4  ;;  %v848_v16 = vpack.c.bf16 %v6269_v11, %v6269_v11  ;;  %v935_v19 = vunpack.c.h.s8.bf16 %v859_v9  ;;  %v870_v30 = vld [vmem:[%s6226_s26 + $0x98] sm:$0xff]  ;;  %v867_v35 = vld [vmem:[%s6226_s26 + $0x80] sm:$0xff]  ;;  %v869_v36 = vld [vmem:[%s6226_s26 + $0x90] sm:$0xff]  ;;  %p5051_p2 = scmp.ne.s32.totalorder %s7371_s22, 1 }
 0x240   : > { %v937_v20 = vunpack.c.h.s8.bf16 %v861_v10  ;;  %v940_v21 = vunpack.c.l.s8.bf16 %v864_v17  ;;  %v942_v22 = vunpack.c.l.s8.bf16 %v866_v18  ;;  %v939_v25 = vunpack.c.l.s8.bf16 %v863_v23  ;;  %v872_v41 = vld [vmem:[%s6226_s26 + $0xa8] sm:$0xff]  ;;  %v874_v42 = vld [vmem:[%s6226_s26 + $0xb8] sm:$0xff]  ;;  %v871_v47 = vld [vmem:[%s6226_s26 + $0xa0] sm:$0xff]  ;;  %s4645_s29 = sld [smem:[#allocation3]] (!%p5051_p2) }
 0x241   : > { %1046 = vmatpush1.bf16.msra.mxu0 %v919_v57  ;;  %1128 = vmatpush1.bf16.msra.mxu1 %v921_v58  ;;  %v941_v26 = vunpack.c.l.s8.bf16 %v865_v24  ;;  %v944_v27 = vunpack.c.h.s8.bf16 %v864_v17  ;;  %v946_v28 = vunpack.c.h.s8.bf16 %v866_v18  ;;  %v943_v31 = vunpack.c.h.s8.bf16 %v863_v23  ;;  %v873_v48 = vld [vmem:[%s6226_s26 + $0xb0] sm:$0xff]  ;;  %v876_v53 = vld [vmem:[%s6226_s26 + $0xc8] sm:$0xff]  ;;  %v878_v54 = vld [vmem:[%s6226_s26 + $0xd8] sm:$0xff] }
 0x242   : > { %1047 = vmatprep.subr.bf16.mxu0 %v924_v59  ;;  %1129 = vmatprep.subr.bf16.mxu1 %v926_v60  ;;  %v945_v32 = vunpack.c.h.s8.bf16 %v865_v24  ;;  %v948_v33 = vunpack.c.l.s8.bf16 %v868_v29  ;;  %v950_v34 = vunpack.c.l.s8.bf16 %v870_v30  ;;  %v947_v37 = vunpack.c.l.s8.bf16 %v867_v35  ;;  %v875_v59 = vld [vmem:[%s6226_s26 + $0xc0] sm:$0xff]  ;;  %v877_v60 = vld [vmem:[%s6226_s26 + $0xd0] sm:$0xff] }
 0x243   : > { %1075 = vmatprep.mubr.bf16.mxu0 %v848_v16  ;;  %1157 = vmatprep.mubr.bf16.mxu1 %v848_v16  ;;  %v949_v38 = vunpack.c.l.s8.bf16 %v869_v36  ;;  %v952_v39 = vunpack.c.h.s8.bf16 %v868_v29  ;;  %v954_v40 = vunpack.c.h.s8.bf16 %v870_v30  ;;  %v951_v43 = vunpack.c.h.s8.bf16 %v867_v35  ;;  %v6295_v18 = vld [vmem:[#allocation2] sm:$0xff]  ;;  %v6301_v24 = vld [vmem:[#allocation2 + $0x18] sm:$0xff] }
 0x244   : > { %v953_v44 = vunpack.c.h.s8.bf16 %v869_v36  ;;  %v956_v45 = vunpack.c.l.s8.bf16 %v872_v41  ;;  %v958_v46 = vunpack.c.l.s8.bf16 %v874_v42  ;;  %v955_v49 = vunpack.c.l.s8.bf16 %v871_v47  ;;  %v888_v29 = vld [vmem:[%s6226_s26 + $0x128] sm:$0xff]  ;;  %v890_v30 = vld [vmem:[%s6226_s26 + $0x138] sm:$0xff]  ;;  %v887_v36 = vld [vmem:[%s6226_s26 + $0x120] sm:$0xff] }
 0x245   : > { %1048 = vmatpush1.bf16.msra.mxu0 %v923_v63  ;;  %1130 = vmatpush1.bf16.msra.mxu1 %v925_v0  ;;  %v957_v50 = vunpack.c.l.s8.bf16 %v873_v48  ;;  %v960_v51 = vunpack.c.h.s8.bf16 %v872_v41  ;;  %v962_v52 = vunpack.c.h.s8.bf16 %v874_v42  ;;  %v959_v55 = vunpack.c.h.s8.bf16 %v871_v47  ;;  %v892_v42 = vld [vmem:[%s6226_s26 + $0x148] sm:$0xff] }
 0x246   : > { %1049 = vmatprep.subr.bf16.mxu0 %v928_v1  ;;  %1131 = vmatprep.subr.bf16.mxu1 %v930_v2  ;;  %v961_v56 = vunpack.c.h.s8.bf16 %v873_v48  ;;  %v964_v57 = vunpack.c.l.s8.bf16 %v876_v53  ;;  %v966_v58 = vunpack.c.l.s8.bf16 %v878_v54  ;;  %v963_v61 = vunpack.c.l.s8.bf16 %v875_v59  ;;  %v880_v1 = vld [vmem:[%s6226_s26 + $0xe8] sm:$0xff]  ;;  %v882_v2 = vld [vmem:[%s6226_s26 + $0xf8] sm:$0xff]  ;;  %v891_v48 = vld [vmem:[%s6226_s26 + $0x140] sm:$0xff] }
 0x247   : > { %v965_v62 = vunpack.c.l.s8.bf16 %v877_v60  ;;  %v968_v63 = vunpack.c.h.s8.bf16 %v876_v53  ;;  %v970_v0 = vunpack.c.h.s8.bf16 %v878_v54  ;;  %v967_v3 = vunpack.c.h.s8.bf16 %v875_v59  ;;  %v896_v54 = vld [vmem:[%s6226_s26 + $0x168] sm:$0xff] }
 0x248   : > { %v969_v4 = vunpack.c.h.s8.bf16 %v877_v60  ;;  %v847_v23 = vpack.c.bf16 %v6295_v18, %v6295_v18  ;;  %v990_v35 = vunpack.c.l.s8.bf16 %v890_v30  ;;  %v994_v41 = vunpack.c.h.s8.bf16 %v890_v30  ;;  %v895_v60 = vld [vmem:[%s6226_s26 + $0x160] sm:$0xff]  ;;  %v910_v30 = vld [vmem:[%s6226_s26 + $0x1d8] sm:$0xff] }
 0x249   : > { %1050 = vmatpush1.bf16.msra.mxu0 %v927_v5  ;;  %1132 = vmatpush1.bf16.msra.mxu1 %v929_v6  ;;  %v972_v5 = vunpack.c.l.s8.bf16 %v880_v1  ;;  %v974_v6 = vunpack.c.l.s8.bf16 %v882_v2 }
 0x24a   : > { %1051 = vmatprep.subr.bf16.mxu0 %v932_v7  ;;  %1133 = vmatprep.subr.bf16.mxu1 %v934_v8  ;;  %v879_v7 = vld [vmem:[%s6226_s26 + $0xe0] sm:$0xff]  ;;  %v881_v8 = vld [vmem:[%s6226_s26 + $0xf0] sm:$0xff] }
 0x24b   : > { %v971_v9 = vunpack.c.l.s8.bf16 %v879_v7  ;;  %v973_v10 = vunpack.c.l.s8.bf16 %v881_v8  ;;  %v975_v16 = vunpack.c.h.s8.bf16 %v879_v7  ;;  %v977_v17 = vunpack.c.h.s8.bf16 %v881_v8  ;;  %v899_v8 = vld [vmem:[%s6226_s26 + $0x180] sm:$0xff] }
 0x24d   : > { %1052 = vmatpush1.bf16.msra.mxu0 %v931_v12  ;;  %1134 = vmatpush1.bf16.msra.mxu1 %v933_v13  ;;  %v976_v12 = vunpack.c.h.s8.bf16 %v880_v1  ;;  %v978_v13 = vunpack.c.h.s8.bf16 %v882_v2  ;;  %v900_v2 = vld [vmem:[%s6226_s26 + $0x188] sm:$0xff] }
 0x24e   : > { %1053 = vmatprep.subr.bf16.mxu0 %v936_v14  ;;  %1135 = vmatprep.subr.bf16.mxu1 %v938_v15  ;;  %v884_v14 = vld [vmem:[%s6226_s26 + $0x108] sm:$0xff]  ;;  %v886_v15 = vld [vmem:[%s6226_s26 + $0x118] sm:$0xff] }
 0x251   : > { %1054 = vmatpush1.bf16.msra.mxu0 %v935_v19  ;;  %1136 = vmatpush1.bf16.msra.mxu1 %v937_v20  ;;  %v980_v19 = vunpack.c.l.s8.bf16 %v884_v14  ;;  %v982_v20 = vunpack.c.l.s8.bf16 %v886_v15 }
 0x252   : > { %1055 = vmatprep.subr.bf16.mxu0 %v940_v21  ;;  %1137 = vmatprep.subr.bf16.mxu1 %v942_v22  ;;  %v883_v21 = vld [vmem:[%s6226_s26 + $0x100] sm:$0xff]  ;;  %v885_v22 = vld [vmem:[%s6226_s26 + $0x110] sm:$0xff] }
 0x255   : > { %1056 = vmatpush1.bf16.msra.mxu0 %v939_v25  ;;  %1138 = vmatpush1.bf16.msra.mxu1 %v941_v26  ;;  %v979_v25 = vunpack.c.l.s8.bf16 %v883_v21  ;;  %v981_v26 = vunpack.c.l.s8.bf16 %v885_v22 }
 0x256   : > { %1057 = vmatprep.subr.bf16.mxu0 %v944_v27  ;;  %1139 = vmatprep.subr.bf16.mxu1 %v946_v28  ;;  %v984_v27 = vunpack.c.h.s8.bf16 %v884_v14  ;;  %v986_v28 = vunpack.c.h.s8.bf16 %v886_v15  ;;  %v904_v15 = vld [vmem:[%s6226_s26 + $0x1a8] sm:$0xff] }
 0x259   : > { %1058 = vmatpush1.bf16.msra.mxu0 %v943_v31  ;;  %1140 = vmatpush1.bf16.msra.mxu1 %v945_v32  ;;  %v850_v31 = vpack.c.bf16 %v6301_v24, %v6301_v24  ;;  %v983_v32 = vunpack.c.h.s8.bf16 %v883_v21 }
 0x25a   : > { %1059 = vmatprep.subr.bf16.mxu0 %v948_v33  ;;  %1141 = vmatprep.subr.bf16.mxu1 %v950_v34  ;;  %v985_v33 = vunpack.c.h.s8.bf16 %v885_v22  ;;  %v988_v34 = vunpack.c.l.s8.bf16 %v888_v29  ;;  %v903_v22 = vld [vmem:[%s6226_s26 + $0x1a0] sm:$0xff] }
 0x25d   : > { %1060 = vmatpush1.bf16.msra.mxu0 %v947_v37  ;;  %1142 = vmatpush1.bf16.msra.mxu1 %v949_v38  ;;  %v889_v37 = vld [vmem:[%s6226_s26 + $0x130] sm:$0xff]  ;;  %v987_v38 = vunpack.c.l.s8.bf16 %v887_v36 }
 0x25e   : > { %1061 = vmatprep.subr.bf16.mxu0 %v952_v39  ;;  %1143 = vmatprep.subr.bf16.mxu1 %v954_v40  ;;  %v989_v39 = vunpack.c.l.s8.bf16 %v889_v37  ;;  %v992_v40 = vunpack.c.h.s8.bf16 %v888_v29  ;;  %v908_v29 = vld [vmem:[%s6226_s26 + $0x1c8] sm:$0xff] }
 0x261   : > { %1062 = vmatpush1.bf16.msra.mxu0 %v951_v43  ;;  %1144 = vmatpush1.bf16.msra.mxu1 %v953_v44  ;;  %v894_v43 = vld [vmem:[%s6226_s26 + $0x158] sm:$0xff]  ;;  %v991_v44 = vunpack.c.h.s8.bf16 %v887_v36  ;;  %v909_v36 = vld [vmem:[%s6226_s26 + $0x1d0] sm:$0xff] }
 0x262   : > { %1063 = vmatprep.subr.bf16.mxu0 %v956_v45  ;;  %1145 = vmatprep.subr.bf16.mxu1 %v958_v46  ;;  %v993_v45 = vunpack.c.h.s8.bf16 %v889_v37  ;;  %v996_v46 = vunpack.c.l.s8.bf16 %v892_v42  ;;  %v998_v47 = vunpack.c.l.s8.bf16 %v894_v43  ;;  %v1002_v53 = vunpack.c.h.s8.bf16 %v894_v43 }
 0x265   : > { %1064 = vmatpush1.bf16.msra.mxu0 %v955_v49  ;;  %1146 = vmatpush1.bf16.msra.mxu1 %v957_v50  ;;  %v893_v49 = vld [vmem:[%s6226_s26 + $0x150] sm:$0xff]  ;;  %v995_v50 = vunpack.c.l.s8.bf16 %v891_v48 }
 0x266   : > { %1065 = vmatprep.subr.bf16.mxu0 %v960_v51  ;;  %1147 = vmatprep.subr.bf16.mxu1 %v962_v52  ;;  %v997_v51 = vunpack.c.l.s8.bf16 %v893_v49  ;;  %v1000_v52 = vunpack.c.h.s8.bf16 %v892_v42  ;;  %v914_v42 = vld [vmem:[%s6226_s26 + $0x1f8] sm:$0xff] }
 0x269   : > { %1066 = vmatpush1.bf16.msra.mxu0 %v959_v55  ;;  %1148 = vmatpush1.bf16.msra.mxu1 %v961_v56  ;;  %v898_v55 = vld [vmem:[%s6226_s26 + $0x178] sm:$0xff]  ;;  %v999_v56 = vunpack.c.h.s8.bf16 %v891_v48  ;;  %v913_v48 = vld [vmem:[%s6226_s26 + $0x1f0] sm:$0xff] }
 0x26a   : > { %1067 = vmatprep.subr.bf16.mxu0 %v964_v57  ;;  %1149 = vmatprep.subr.bf16.mxu1 %v966_v58  ;;  %v1001_v57 = vunpack.c.h.s8.bf16 %v893_v49  ;;  %v1004_v58 = vunpack.c.l.s8.bf16 %v896_v54  ;;  %v1006_v59 = vunpack.c.l.s8.bf16 %v898_v55  ;;  %v1010_v1 = vunpack.c.h.s8.bf16 %v898_v55  ;;  %v837_v55 = vld [vmem:[#allocation2 + $0x10] sm:$0xff] }
 0x26d   : > { %1068 = vmatpush1.bf16.msra.mxu0 %v963_v61  ;;  %1150 = vmatpush1.bf16.msra.mxu1 %v965_v62  ;;  %v897_v61 = vld [vmem:[%s6226_s26 + $0x170] sm:$0xff]  ;;  %v1003_v62 = vunpack.c.l.s8.bf16 %v895_v60 }
 0x26e   : > { %1069 = vmatprep.subr.bf16.mxu0 %v968_v63  ;;  %1151 = vmatprep.subr.bf16.mxu1 %v970_v0  ;;  %v1005_v63 = vunpack.c.l.s8.bf16 %v897_v61  ;;  %v1008_v0 = vunpack.c.h.s8.bf16 %v896_v54  ;;  %v1041_v54 = vunpack.c.h.s8.bf16 %v913_v48 }
 0x271   : > { %1070 = vmatpush1.bf16.msra.mxu0 %v967_v3  ;;  %1152 = vmatpush1.bf16.msra.mxu1 %v969_v4  ;;  %v902_v3 = vld [vmem:[%s6226_s26 + $0x198] sm:$0xff]  ;;  %v1007_v4 = vunpack.c.h.s8.bf16 %v895_v60  ;;  %v6339_v60 = vld [vmem:[%s6242_s10] sm:$0xff] }
 0x272   : > { %1071 = vmatprep.subr.bf16.mxu0 %v972_v5  ;;  %1153 = vmatprep.subr.bf16.mxu1 %v974_v6  ;;  %v1009_v5 = vunpack.c.h.s8.bf16 %v897_v61  ;;  %v1012_v6 = vunpack.c.l.s8.bf16 %v900_v2  ;;  %v1014_v7 = vunpack.c.l.s8.bf16 %v902_v3  ;;  %v1018_v14 = vunpack.c.h.s8.bf16 %v902_v3  ;;  %v6342_v61 = vld [vmem:[%s6242_s10 + $0x10] sm:$0xff] }
 0x275   : > { %1072 = vmatpush1.bf16.msra.mxu0 %v971_v9  ;;  %1154 = vmatpush1.bf16.msra.mxu1 %v973_v10  ;;  %v901_v9 = vld [vmem:[%s6226_s26 + $0x190] sm:$0xff]  ;;  %v1011_v10 = vunpack.c.l.s8.bf16 %v899_v8 }
 0x276   : > { %1073 = vmatprep.subr.bf16.mxu0 %v976_v12  ;;  %1155 = vmatprep.subr.bf16.mxu1 %v978_v13  ;;  %v1013_v12 = vunpack.c.l.s8.bf16 %v901_v9  ;;  %v1016_v13 = vunpack.c.h.s8.bf16 %v900_v2 }
 0x279   : > { %1074 = vmatpush1.bf16.msra.mxu0 %v975_v16  ;;  %1156 = vmatpush1.bf16.msra.mxu1 %v977_v17  ;;  %v906_v16 = vld [vmem:[%s6226_s26 + $0x1b8] sm:$0xff]  ;;  %v1015_v17 = vunpack.c.h.s8.bf16 %v899_v8 }
 0x27a   : > { %1084 = vmatprep.subr.bf16.mxu0 %v980_v19  ;;  %1166 = vmatprep.subr.bf16.mxu1 %v982_v20  ;;  %v1017_v19 = vunpack.c.h.s8.bf16 %v901_v9  ;;  %v1020_v20 = vunpack.c.l.s8.bf16 %v904_v15  ;;  %v1022_v21 = vunpack.c.l.s8.bf16 %v906_v16 }
 0x27c   : > { %1076 = vmatmul.mubr.bf16.vlgmr.msra.gmra.mrb[0].mxu0 %v847_v23  ;;  %1158 = vmatmul.mubr.bf16.vlgmr.msra.gmra.mrb[0].mxu1 %v847_v23  ;;  %v905_v23 = vld [vmem:[%s6226_s26 + $0x1b0] sm:$0xff] }
 0x27d   : > { %1085 = vmatpush1.bf16.msra.mxu0 %v979_v25  ;;  %1167 = vmatpush1.bf16.msra.mxu1 %v981_v26  ;;  %v1019_v25 = vunpack.c.l.s8.bf16 %v903_v22  ;;  %v1021_v26 = vunpack.c.l.s8.bf16 %v905_v23 }
 0x27e   : > { %1086 = vmatprep.subr.bf16.mxu0 %v984_v27  ;;  %1168 = vmatprep.subr.bf16.mxu1 %v986_v28  ;;  %v1024_v27 = vunpack.c.h.s8.bf16 %v904_v15  ;;  %v1026_v28 = vunpack.c.h.s8.bf16 %v906_v16 }
 0x27f   : > { %1116 = vmatprep.mubr.bf16.mxu0 %v850_v31  ;;  %1198 = vmatprep.mubr.bf16.mxu1 %v850_v31  ;;  %v1023_v31 = vunpack.c.h.s8.bf16 %v903_v22 }
 0x281   : > { %1087 = vmatpush1.bf16.msra.mxu0 %v983_v32  ;;  %1169 = vmatpush1.bf16.msra.mxu1 %v985_v33  ;;  %v1025_v32 = vunpack.c.h.s8.bf16 %v905_v23  ;;  %v1028_v33 = vunpack.c.l.s8.bf16 %v908_v29 }
 0x282   : > { %1088 = vmatprep.subr.bf16.mxu0 %v988_v34  ;;  %1170 = vmatprep.subr.bf16.mxu1 %v990_v35  ;;  %v1030_v34 = vunpack.c.l.s8.bf16 %v910_v30  ;;  %v907_v35 = vld [vmem:[%s6226_s26 + $0x1c0] sm:$0xff] }
 0x283   : > { %v1027_v37 = vunpack.c.l.s8.bf16 %v907_v35  ;;  %v1031_v43 = vunpack.c.h.s8.bf16 %v907_v35  ;;  %v1325_v35 = vld [vmem:[%s6232_s5 + $0x18] sm:$0xff] }
 0x285   : > { %1089 = vmatpush1.bf16.msra.mxu0 %v987_v38  ;;  %1171 = vmatpush1.bf16.msra.mxu1 %v989_v39  ;;  %v1029_v38 = vunpack.c.l.s8.bf16 %v909_v36  ;;  %v1032_v39 = vunpack.c.h.s8.bf16 %v908_v29 }
 0x286   : > { %1090 = vmatprep.subr.bf16.mxu0 %v992_v40  ;;  %1172 = vmatprep.subr.bf16.mxu1 %v994_v41  ;;  %v1034_v40 = vunpack.c.h.s8.bf16 %v910_v30  ;;  %v912_v41 = vld [vmem:[%s6226_s26 + $0x1e8] sm:$0xff] }
 0x289   : > { %1091 = vmatpush1.bf16.msra.mxu0 %v991_v44  ;;  %1173 = vmatpush1.bf16.msra.mxu1 %v993_v45  ;;  %v1033_v44 = vunpack.c.h.s8.bf16 %v909_v36  ;;  %v1036_v45 = vunpack.c.l.s8.bf16 %v912_v41 }
 0x28a   : > { %1092 = vmatprep.subr.bf16.mxu0 %v996_v46  ;;  %1174 = vmatprep.subr.bf16.mxu1 %v998_v47  ;;  %v1038_v46 = vunpack.c.l.s8.bf16 %v914_v42  ;;  %v911_v47 = vld [vmem:[%s6226_s26 + $0x1e0] sm:$0xff] }
 0x28b   : > { %v1035_v49 = vunpack.c.l.s8.bf16 %v911_v47 }
 0x28d   : > { %1093 = vmatpush1.bf16.msra.mxu0 %v995_v50  ;;  %1175 = vmatpush1.bf16.msra.mxu1 %v997_v51  ;;  %v1037_v50 = vunpack.c.l.s8.bf16 %v913_v48  ;;  %v1040_v51 = vunpack.c.h.s8.bf16 %v912_v41  ;;  %v1338_v48 = vld [vmem:[%s6232_s5 + $0x80] sm:$0xff] }
 0x28e   : > { %1094 = vmatprep.subr.bf16.mxu0 %v1000_v52  ;;  %1176 = vmatprep.subr.bf16.mxu1 %v1002_v53  ;;  %v1042_v52 = vunpack.c.h.s8.bf16 %v914_v42  ;;  %v1039_v53 = vunpack.c.h.s8.bf16 %v911_v47  ;;  %v1597_v42 = vunpack.c.h.s8.bf16 %v1325_v35 }
 0x291   : > { %1095 = vmatpush1.bf16.msra.mxu0 %v999_v56  ;;  %1177 = vmatpush1.bf16.msra.mxu1 %v1001_v57  ;;  %v849_v56 = vpack.c.bf16 %v837_v55, %v837_v55  ;;  %v1207_v57 = vlaneseq }
 0x292   : > { %1096 = vmatprep.subr.bf16.mxu0 %v1004_v58  ;;  %1178 = vmatprep.subr.bf16.mxu1 %v1006_v59 }
 0x293   : > { %v6333_v58 = vshrl.u32 %v1207_v57, 7 }
 0x295   : > { %1097 = vmatpush1.bf16.msra.mxu0 %v1003_v62  ;;  %1179 = vmatpush1.bf16.msra.mxu1 %v1005_v63  ;;  %v6336_v59 = vsub.s32 1, %v6333_v58  ;;  %v6345_v62 = vsub.s32 0, %v6333_v58  ;;  %v6348_v63 = vld [vmem:[%s6242_s10 + $0x8] sm:$0xff] }
 0x296   : > { %1098 = vmatprep.subr.bf16.mxu0 %v1008_v0  ;;  %1180 = vmatprep.subr.bf16.mxu1 %v1010_v1  ;;  %v6351_v0 = vld [vmem:[%s6242_s10 + $0x18] sm:$0xff] }
 0x297   : > { %v1210_v1 = vrot.slane %v6339_v60, %v6336_v59  ;;  %v1218_v2 = vrot.slane %v6342_v61, %v6336_v59  ;;  %v1214_v3 = vrot.slane %v6348_v63, %v6336_v59  ;;  %v1238_v8 = vrot.slane %v6342_v61, %v6345_v62 }
 0x298   : > { %v1234_v9 = vrot.slane %v6348_v63, %v6345_v62 }
 0x299   : > { %1099 = vmatpush1.bf16.msra.mxu0 %v1007_v4  ;;  %1181 = vmatpush1.bf16.msra.mxu1 %v1009_v5  ;;  %v1222_v4 = vrot.slane %v6351_v0, %v6336_v59  ;;  %v1230_v5 = vrot.slane %v6339_v60, %v6345_v62 }
 0x29a   : > { %1100 = vmatprep.subr.bf16.mxu0 %v1012_v6  ;;  %1182 = vmatprep.subr.bf16.mxu1 %v1014_v7 }
 0x29d   : > { %1101 = vmatpush1.bf16.msra.mxu0 %v1011_v10  ;;  %1183 = vmatpush1.bf16.msra.mxu1 %v1013_v12 }
 0x29e   : > { %1102 = vmatprep.subr.bf16.mxu0 %v1016_v13  ;;  %1184 = vmatprep.subr.bf16.mxu1 %v1018_v14 }
 0x2a1   : > { %1103 = vmatpush1.bf16.msra.mxu0 %v1015_v17  ;;  %1185 = vmatpush1.bf16.msra.mxu1 %v1017_v19  ;;  %v1242_v17 = vrot.slane %v6351_v0, %v6345_v62 }
 0x2a2   : > { %1104 = vmatprep.subr.bf16.mxu0 %v1020_v20  ;;  %1186 = vmatprep.subr.bf16.mxu1 %v1022_v21 }
 0x2a5   : > { %1105 = vmatpush1.bf16.msra.mxu0 %v1019_v25  ;;  %1187 = vmatpush1.bf16.msra.mxu1 %v1021_v26 }
 0x2a6   : > { %1106 = vmatprep.subr.bf16.mxu0 %v1024_v27  ;;  %1188 = vmatprep.subr.bf16.mxu1 %v1026_v28 }
 0x2a9   : > { %1107 = vmatpush1.bf16.msra.mxu0 %v1023_v31  ;;  %1189 = vmatpush1.bf16.msra.mxu1 %v1025_v32 }
 0x2aa   : > { %1108 = vmatprep.subr.bf16.mxu0 %v1028_v33  ;;  %1190 = vmatprep.subr.bf16.mxu1 %v1030_v34 }
 0x2ad   : > { %1109 = vmatpush1.bf16.msra.mxu0 %v1027_v37  ;;  %1191 = vmatpush1.bf16.msra.mxu1 %v1029_v38  ;;  %v1581_v37 = vunpack.c.l.s8.bf16 %v1325_v35 }
 0x2ae   : > { %1110 = vmatprep.subr.bf16.mxu0 %v1032_v39  ;;  %1192 = vmatprep.subr.bf16.mxu1 %v1034_v40  ;;  %v1324_v39 = vld [vmem:[%s6232_s5 + $0x10] sm:$0xff] }
 0x2af   : > { %v1580_v41 = vunpack.c.l.s8.bf16 %v1324_v39 }
 0x2b1   : > { %1111 = vmatpush1.bf16.msra.mxu0 %v1031_v43  ;;  %1193 = vmatpush1.bf16.msra.mxu1 %v1033_v44  ;;  %v1339_v43 = vld [vmem:[%s6232_s5 + $0x88] sm:$0xff] }
 0x2b2   : > { %1112 = vmatprep.subr.bf16.mxu0 %v1036_v45  ;;  %1194 = vmatprep.subr.bf16.mxu1 %v1038_v46  ;;  %v1596_v45 = vunpack.c.h.s8.bf16 %v1324_v39  ;;  %v1611_v46 = vunpack.c.l.s8.bf16 %v1339_v43  ;;  %v1405_v39 = vld [vmem:[%s6232_s5 + $0x298] sm:$0xff] }
 0x2b5   : > { %1113 = vmatpush1.bf16.msra.mxu0 %v1035_v49  ;;  %1195 = vmatpush1.bf16.msra.mxu1 %v1037_v50  ;;  %v1340_v49 = vld [vmem:[%s6232_s5 + $0x90] sm:$0xff]  ;;  %v1610_v50 = vunpack.c.l.s8.bf16 %v1338_v48 }
 0x2b6   : > { %1114 = vmatprep.subr.bf16.mxu0 %v1040_v51  ;;  %1196 = vmatprep.subr.bf16.mxu1 %v1042_v52  ;;  %v1612_v51 = vunpack.c.l.s8.bf16 %v1340_v49  ;;  %v1627_v52 = vunpack.c.h.s8.bf16 %v1339_v43  ;;  %v1628_v57 = vunpack.c.h.s8.bf16 %v1340_v49  ;;  %v1741_v43 = vunpack.c.l.s8.bf16 %v1405_v39 }
 0x2b9   : > { %1115 = vmatpush1.bf16.msra.mxu0 %v1039_v53  ;;  %1197 = vmatpush1.bf16.msra.mxu1 %v1041_v54  ;;  %v1355_v54 = vld [vmem:[%s6232_s5 + $0x108] sm:$0xff] }
 0x2ba   : > { %2172 = vmatprep.subr.bf16.mxu1 %v1581_v37 }
 0x2bc   : > { %1117 = vmatmul.mubr.bf16.vlgmr.msra.gmra.mrb[0].mxu0 %v849_v56  ;;  %1199 = vmatmul.mubr.bf16.vlgmr.msra.gmra.mrb[0].mxu1 %v849_v56  ;;  %v1626_v56 = vunpack.c.h.s8.bf16 %v1338_v48 }
 0x2bd   : > { %2173 = vmatpush1.bf16.msra.mxu1 %v1580_v41 }
 0x2be   : > { %2174 = vmatprep.subr.bf16.mxu1 %v1597_v42 }
 0x2c1   : > { %2175 = vmatpush1.bf16.msra.mxu1 %v1596_v45 }
 0x38f   : > { %v1118_v6 = vpop.f32.mrb[0].mxu0  ;;  %v1200_v7 = vpop.f32.mrb[0].mxu1 }
 0x390   : > { %v1223_v10 = vmul.f32 %v1210_v1, %v1118_v6  ;;  %v1225_v12 = vmul.f32 %v1218_v2, %v1200_v7  ;;  %v1120_v13 = vpop.f32.mrb[1].mxu0  ;;  %v1202_v14 = vpop.f32.mrb[1].mxu1  ;;  %v1643_v1 = vunpack.c.l.s8.bf16 %v1355_v54  ;;  %v1659_v7 = vunpack.c.h.s8.bf16 %v1355_v54 }
 0x391   : > { %v1224_v15 = vmul.f32 %v1214_v3, %v1120_v13  ;;  %v1226_v16 = vmul.f32 %v1222_v4, %v1202_v14  ;;  %v1122_v19 = vpop.f32.mrb[2].mxu0  ;;  %v1204_v20 = vpop.f32.mrb[2].mxu1  ;;  %v1354_v3 = vld [vmem:[%s6232_s5 + $0x100] sm:$0xff]  ;;  %v1356_v4 = vld [vmem:[%s6232_s5 + $0x110] sm:$0xff] }
 0x392   : > { %v1243_v21 = vadd.f32 %v1230_v5, %v1223_v10  ;;  %v1123_v22 = vpop.f32.mrb[3].mxu0  ;;  %v1205_v23 = vpop.f32.mrb[3].mxu1  ;;  %v1245_v25 = vadd.f32 %v1238_v8, %v1225_v12  ;;  %v1642_v5 = vunpack.c.l.s8.bf16 %v1354_v3  ;;  %v1644_v6 = vunpack.c.l.s8.bf16 %v1356_v4  ;;  %v1373_v10 = vld [vmem:[%s6232_s5 + $0x198] sm:$0xff] }
 0x393   : > { %v1244_v26 = vadd.f32 %v1234_v9, %v1224_v15  ;;  %v1246_v29 = vadd.f32 %v1242_v17, %v1226_v16  ;;  %v1371_v9 = vld [vmem:[%s6232_s5 + $0x188] sm:$0xff]  ;;  %v1658_v12 = vunpack.c.h.s8.bf16 %v1354_v3  ;;  %v1660_v13 = vunpack.c.h.s8.bf16 %v1356_v4  ;;  %v1370_v16 = vld [vmem:[%s6232_s5 + $0x180] sm:$0xff]  ;;  %v1372_v17 = vld [vmem:[%s6232_s5 + $0x190] sm:$0xff] }
 0x394   : > { %v6370_v27 = vadd.f32 %v1243_v21, %v6295_v18  ;;  %v6375_v30 = vadd.f32 %v1245_v25, %v837_v55  ;;  %v1323_v18 = vld [vmem:[%s6232_s5 + $0x8] sm:$0xff]  ;;  %v1357_v55 = vld [vmem:[%s6232_s5 + $0x118] sm:$0xff]  ;;  %v1675_v14 = vunpack.c.l.s8.bf16 %v1371_v9  ;;  %v1677_v15 = vunpack.c.l.s8.bf16 %v1373_v10 }
 0x395   : > { %v6373_v28 = vadd.f32 %v1244_v26, %v6269_v11  ;;  %v6380_v32 = vadd.f32 %v1246_v29, %v6301_v24  ;;  %v1322_v11 = vld [vmem:[%s6232_s5] sm:$0xff]  ;;  %v1579_v36 = vunpack.c.l.s8.bf16 %v1323_v18  ;;  %v1595_v40 = vunpack.c.h.s8.bf16 %v1323_v18  ;;  %v1341_v24 = vld [vmem:[%s6232_s5 + $0x98] sm:$0xff]  ;;  %v1387_v23 = vld [vmem:[%s6232_s5 + $0x208] sm:$0xff] }
 0x396   : > { %v1578_v38 = vunpack.c.l.s8.bf16 %v1322_v11  ;;  %v1594_v44 = vunpack.c.h.s8.bf16 %v1322_v11  ;;  %v1613_v47 = vunpack.c.l.s8.bf16 %v1341_v24  ;;  %v1629_v53 = vunpack.c.h.s8.bf16 %v1341_v24  ;;  %v1389_v25 = vld [vmem:[%s6232_s5 + $0x218] sm:$0xff]  ;;  %v1388_v18 = vld [vmem:[%s6232_s5 + $0x210] sm:$0xff]  ;;  %v1419_v3 = vld [vmem:[%s6232_s5 + $0x308] sm:$0xff] }
 0x397   : > { %v1251_v31 = vadd.f32 %v6373_v28, %v6370_v27  ;;  %2090 = vmatprep.subr.bf16.mxu0 %v1579_v36  ;;  %v1645_v2 = vunpack.c.l.s8.bf16 %v1357_v55  ;;  %v1661_v8 = vunpack.c.h.s8.bf16 %v1357_v55  ;;  %v1674_v19 = vunpack.c.l.s8.bf16 %v1370_v16  ;;  %v1421_v4 = vld [vmem:[%s6232_s5 + $0x318] sm:$0xff] }
 0x398   : > { %2091 = vmatpush1.bf16.msra.mxu0 %v1578_v38  ;;  %2176 = vmatprep.subr.bf16.mxu1 %v1613_v47  ;;  %v1676_v20 = vunpack.c.l.s8.bf16 %v1372_v17  ;;  %v1691_v21 = vunpack.c.h.s8.bf16 %v1371_v9  ;;  %v1693_v22 = vunpack.c.h.s8.bf16 %v1373_v10  ;;  %v1690_v26 = vunpack.c.h.s8.bf16 %v1370_v16  ;;  %v1403_v38 = vld [vmem:[%s6232_s5 + $0x288] sm:$0xff]  ;;  %v1420_v9 = vld [vmem:[%s6232_s5 + $0x310] sm:$0xff] }
 0x399   : > { %v1252_v33 = vadd.f32 %v1251_v31, %v6375_v30  ;;  %2092 = vmatprep.subr.bf16.mxu0 %v1595_v40  ;;  %2177 = vmatpush1.bf16.msra.mxu1 %v1612_v51  ;;  %v1692_v29 = vunpack.c.h.s8.bf16 %v1372_v17  ;;  %v1707_v31 = vunpack.c.l.s8.bf16 %v1387_v23  ;;  %v1708_v11 = vunpack.c.l.s8.bf16 %v1388_v18 }
 0x39a   : > { %2178 = vmatprep.subr.bf16.mxu1 %v1629_v53  ;;  %v1723_v36 = vunpack.c.h.s8.bf16 %v1387_v23  ;;  %v1725_v37 = vunpack.c.h.s8.bf16 %v1389_v25  ;;  %v1724_v41 = vunpack.c.h.s8.bf16 %v1388_v18  ;;  %v1739_v42 = vunpack.c.l.s8.bf16 %v1403_v38  ;;  %v1453_v18 = vld [vmem:[%s6232_s5 + $0x418] sm:$0xff] }
 0x39b   : > { %v1253_v34 = vadd.f32 %v1252_v33, %v6380_v32  ;;  %v1709_v33 = vunpack.c.l.s8.bf16 %v1389_v25  ;;  %v1787_v10 = vunpack.c.h.s8.bf16 %v1419_v3  ;;  %v1788_v17 = vunpack.c.h.s8.bf16 %v1420_v9 }
 0x39c   : > { %2093 = vmatpush1.bf16.msra.mxu0 %v1594_v44 }
 0x39d   : > { %1254 = vadd.xlane.f32.xlu0 %v1253_v34  ;;  %2094 = vmatprep.subr.bf16.mxu0 %v1611_v46  ;;  %v1386_v34 = vld [vmem:[%s6232_s5 + $0x200] sm:$0xff] }
 0x39e   : > { %2179 = vmatpush1.bf16.msra.mxu1 %v1628_v57  ;;  %v1706_v35 = vunpack.c.l.s8.bf16 %v1386_v34  ;;  %v1722_v40 = vunpack.c.h.s8.bf16 %v1386_v34  ;;  %v1757_v57 = vunpack.c.h.s8.bf16 %v1405_v39  ;;  %v1451_v34 = vld [vmem:[%s6232_s5 + $0x408] sm:$0xff]  ;;  %v6439_v39 = vsub.s32 2, %v6333_v58 }
 0x39f   : > { %2180 = vmatprep.subr.bf16.mxu1 %v1645_v2 }
 0x3a0   : > { %2095 = vmatpush1.bf16.msra.mxu0 %v1610_v50 }
 0x3a1   : > { %2096 = vmatprep.subr.bf16.mxu0 %v1627_v52 }
 0x3a2   : > { %2181 = vmatpush1.bf16.msra.mxu1 %v1644_v6  ;;  %v1771_v6 = vunpack.c.l.s8.bf16 %v1419_v3 }
 0x3a3   : > { %2182 = vmatprep.subr.bf16.mxu1 %v1661_v8 }
 0x3a4   : > { %2097 = vmatpush1.bf16.msra.mxu0 %v1626_v56  ;;  %v1755_v56 = vunpack.c.h.s8.bf16 %v1403_v38 }
 0x3a5   : > { %2098 = vmatprep.subr.bf16.mxu0 %v1643_v1 }
 0x3a6   : > { %2183 = vmatpush1.bf16.msra.mxu1 %v1660_v13  ;;  %v1789_v13 = vunpack.c.h.s8.bf16 %v1421_v4 }
 0x3a7   : > { %2184 = vmatprep.subr.bf16.mxu1 %v1677_v15  ;;  %v1437_v15 = vld [vmem:[%s6232_s5 + $0x398] sm:$0xff] }
 0x3a8   : > { %2099 = vmatpush1.bf16.msra.mxu0 %v1642_v5  ;;  %v1418_v5 = vld [vmem:[%s6232_s5 + $0x300] sm:$0xff] }
 0x3a9   : > { %2100 = vmatprep.subr.bf16.mxu0 %v1659_v7  ;;  %v1773_v7 = vunpack.c.l.s8.bf16 %v1421_v4  ;;  %v1770_v8 = vunpack.c.l.s8.bf16 %v1418_v5  ;;  %v1786_v16 = vunpack.c.h.s8.bf16 %v1418_v5 }
 0x3aa   : > { %2185 = vmatpush1.bf16.msra.mxu1 %v1676_v20  ;;  %v1805_v20 = vunpack.c.l.s8.bf16 %v1437_v15 }
 0x3ab   : > { %2186 = vmatprep.subr.bf16.mxu1 %v1693_v22  ;;  %v1436_v22 = vld [vmem:[%s6232_s5 + $0x390] sm:$0xff] }
 0x3ac   : > { %2101 = vmatpush1.bf16.msra.mxu0 %v1658_v12  ;;  %v1772_v12 = vunpack.c.l.s8.bf16 %v1420_v9  ;;  %v1804_v25 = vunpack.c.l.s8.bf16 %v1436_v22  ;;  %v1468_v9 = vld [vmem:[%s6232_s5 + $0x490] sm:$0xff] }
 0x3ad   : > { %2102 = vmatprep.subr.bf16.mxu0 %v1675_v14  ;;  %v1435_v14 = vld [vmem:[%s6232_s5 + $0x388] sm:$0xff] }
 0x3ae   : > { %2187 = vmatpush1.bf16.msra.mxu1 %v1692_v29  ;;  %v1821_v29 = vunpack.c.h.s8.bf16 %v1437_v15  ;;  %v1483_v15 = vld [vmem:[%s6232_s5 + $0x508] sm:$0xff] }
 0x3af   : > { %2188 = vmatprep.subr.bf16.mxu1 %v1709_v33  ;;  %v1820_v33 = vunpack.c.h.s8.bf16 %v1436_v22  ;;  %v1482_v22 = vld [vmem:[%s6232_s5 + $0x500] sm:$0xff] }
 0x3b0   : > { %2103 = vmatpush1.bf16.msra.mxu0 %v1674_v19  ;;  %v1803_v19 = vunpack.c.l.s8.bf16 %v1435_v14 }
 0x3b1   : > { %2104 = vmatprep.subr.bf16.mxu0 %v1691_v21  ;;  %v1434_v21 = vld [vmem:[%s6232_s5 + $0x380] sm:$0xff] }
 0x3b2   : > { %2189 = vmatpush1.bf16.msra.mxu1 %v1708_v11  ;;  %v1802_v23 = vunpack.c.l.s8.bf16 %v1434_v21  ;;  %v1837_v11 = vunpack.c.l.s8.bf16 %v1453_v18 }
 0x3b3   : > { %2190 = vmatprep.subr.bf16.mxu1 %v1725_v37 }
 0x3b4   : > { %2105 = vmatpush1.bf16.msra.mxu0 %v1690_v26  ;;  %v1819_v26 = vunpack.c.h.s8.bf16 %v1435_v14 }
 0x3b5   : > { %2106 = vmatprep.subr.bf16.mxu0 %v1707_v31  ;;  %v1818_v31 = vunpack.c.h.s8.bf16 %v1434_v21 }
 0x3b6   : > { %2191 = vmatpush1.bf16.msra.mxu1 %v1724_v41  ;;  %v1281_v41 = vrot.slane %v6339_v60, %v6439_v39 }
 0x3b7   : > { %2192 = vmatprep.subr.bf16.mxu1 %v1741_v43  ;;  %v1293_v43 = vrot.slane %v6351_v0, %v6439_v39 }
 0x3b8   : > { %2107 = vmatpush1.bf16.msra.mxu0 %v1706_v35  ;;  %v1835_v35 = vunpack.c.l.s8.bf16 %v1451_v34 }
 0x3b9   : > { %2108 = vmatprep.subr.bf16.mxu0 %v1723_v36 }
 0x3bc   : > { %2109 = vmatpush1.bf16.msra.mxu0 %v1722_v40  ;;  %v6442_v40 = vsub.s32 3, %v6333_v58 }
 0x3bd   : > { %2110 = vmatprep.subr.bf16.mxu0 %v1739_v42  ;;  %v1285_v42 = vrot.slane %v6348_v63, %v6439_v39 }
 0x42a   : > { %v1255_v24 = vpop.xlane.xlu0 %1254 }
 0x42b   : > { %v1257_v44 = vmul.f32 0.001953125, %v1255_v24 }
 0x42d   : > { %v6407_v45 = vsub.f32 %v6370_v27, %v1257_v44  ;;  %v6410_v46 = vsub.f32 %v6373_v28, %v1257_v44  ;;  %v6413_v47 = vsub.f32 %v6375_v30, %v1257_v44  ;;  %v6416_v48 = vsub.f32 %v6380_v32, %v1257_v44  ;;  %v1402_v30 = vld [vmem:[%s6232_s5 + $0x280] sm:$0xff]  ;;  %v1404_v32 = vld [vmem:[%s6232_s5 + $0x290] sm:$0xff] }
 0x42e   : > { %v1738_v54 = vunpack.c.l.s8.bf16 %v1402_v30  ;;  %v1740_v55 = vunpack.c.l.s8.bf16 %v1404_v32  ;;  %v1754_v1 = vunpack.c.h.s8.bf16 %v1402_v30  ;;  %v1756_v2 = vunpack.c.h.s8.bf16 %v1404_v32  ;;  %v1450_v30 = vld [vmem:[%s6232_s5 + $0x400] sm:$0xff]  ;;  %v1452_v32 = vld [vmem:[%s6232_s5 + $0x410] sm:$0xff] }
 0x42f   : > { %v1262_v49 = vmul.f32 %v6407_v45, %v6407_v45  ;;  %v1263_v50 = vmul.f32 %v6410_v46, %v6410_v46  ;;  %v1264_v51 = vmul.f32 %v6413_v47, %v6413_v47  ;;  %v1265_v28 = vmul.f32 %v6416_v48, %v6416_v48 }
 0x430   : > { %2111 = vmatpush1.bf16.msra.mxu0 %v1738_v54  ;;  %2193 = vmatpush1.bf16.msra.mxu1 %v1740_v55  ;;  %v1301_v44 = vrot.slane %v6339_v60, %v6442_v40  ;;  %v1836_v55 = vunpack.c.l.s8.bf16 %v1452_v32  ;;  %v1850_v4 = vunpack.c.h.s8.bf16 %v1450_v30  ;;  %v1852_v5 = vunpack.c.h.s8.bf16 %v1452_v32 }
 0x431   : > { %v1266_v27 = vadd.f32 %v1263_v50, %v1262_v49  ;;  %2112 = vmatprep.subr.bf16.mxu0 %v1755_v56  ;;  %2194 = vmatprep.subr.bf16.mxu1 %v1757_v57  ;;  %v1305_v49 = vrot.slane %v6348_v63, %v6442_v40  ;;  %v1851_v56 = vunpack.c.h.s8.bf16 %v1451_v34  ;;  %v1853_v57 = vunpack.c.h.s8.bf16 %v1453_v18  ;;  %v1501_v34 = vld [vmem:[%s6232_s5 + $0x598] sm:$0xff] }
 0x432   : > { %v1914_v18 = vunpack.c.h.s8.bf16 %v1482_v22 }
 0x433   : > { %v1267_v52 = vadd.f32 %v1266_v27, %v1264_v51 }
 0x434   : > { %2113 = vmatpush1.bf16.msra.mxu0 %v1754_v1  ;;  %2195 = vmatpush1.bf16.msra.mxu1 %v1756_v2  ;;  %v1467_v1 = vld [vmem:[%s6232_s5 + $0x488] sm:$0xff]  ;;  %v1469_v2 = vld [vmem:[%s6232_s5 + $0x498] sm:$0xff] }
 0x435   : > { %v1268_v53 = vadd.f32 %v1267_v52, %v1265_v28  ;;  %2114 = vmatprep.subr.bf16.mxu0 %v1771_v6  ;;  %2196 = vmatprep.subr.bf16.mxu1 %v1773_v7  ;;  %v1313_v28 = vrot.slane %v6351_v0, %v6442_v40  ;;  %v1867_v6 = vunpack.c.l.s8.bf16 %v1467_v1  ;;  %v1869_v7 = vunpack.c.l.s8.bf16 %v1469_v2 }
 0x436   : > { %v1885_v14 = vunpack.c.h.s8.bf16 %v1469_v2 }
 0x437   : > { %1269 = vadd.xlane.f32.xlu0 %v1268_v53 }
 0x438   : > { %2115 = vmatpush1.bf16.msra.mxu0 %v1770_v8  ;;  %2197 = vmatpush1.bf16.msra.mxu1 %v1772_v12  ;;  %v1466_v8 = vld [vmem:[%s6232_s5 + $0x480] sm:$0xff]  ;;  %v1868_v12 = vunpack.c.l.s8.bf16 %v1468_v9 }
 0x439   : > { %2116 = vmatprep.subr.bf16.mxu0 %v1787_v10  ;;  %2198 = vmatprep.subr.bf16.mxu1 %v1789_v13  ;;  %v1866_v10 = vunpack.c.l.s8.bf16 %v1466_v8  ;;  %v1883_v13 = vunpack.c.h.s8.bf16 %v1467_v1 }
 0x43c   : > { %2117 = vmatpush1.bf16.msra.mxu0 %v1786_v16  ;;  %2199 = vmatpush1.bf16.msra.mxu1 %v1788_v17  ;;  %v1485_v16 = vld [vmem:[%s6232_s5 + $0x518] sm:$0xff]  ;;  %v1882_v17 = vunpack.c.h.s8.bf16 %v1466_v8 }
 0x43d   : > { %2118 = vmatprep.subr.bf16.mxu0 %v1803_v19  ;;  %2200 = vmatprep.subr.bf16.mxu1 %v1805_v20  ;;  %v1884_v19 = vunpack.c.h.s8.bf16 %v1468_v9  ;;  %v1899_v20 = vunpack.c.l.s8.bf16 %v1483_v15  ;;  %v1901_v21 = vunpack.c.l.s8.bf16 %v1485_v16 }
 0x440   : > { %2119 = vmatpush1.bf16.msra.mxu0 %v1802_v23  ;;  %2201 = vmatpush1.bf16.msra.mxu1 %v1804_v25  ;;  %v1484_v23 = vld [vmem:[%s6232_s5 + $0x510] sm:$0xff]  ;;  %v1898_v25 = vunpack.c.l.s8.bf16 %v1482_v22 }
 0x441   : > { %2120 = vmatprep.subr.bf16.mxu0 %v1819_v26  ;;  %2202 = vmatprep.subr.bf16.mxu1 %v1821_v29  ;;  %v1900_v26 = vunpack.c.l.s8.bf16 %v1484_v23  ;;  %v1915_v29 = vunpack.c.h.s8.bf16 %v1483_v15 }
 0x444   : > { %2121 = vmatpush1.bf16.msra.mxu0 %v1818_v31  ;;  %2203 = vmatpush1.bf16.msra.mxu1 %v1820_v33  ;;  %v1917_v31 = vunpack.c.h.s8.bf16 %v1485_v16  ;;  %v1499_v33 = vld [vmem:[%s6232_s5 + $0x588] sm:$0xff] }
 0x445   : > { %2131 = vmatprep.subr.bf16.mxu0 %v1835_v35  ;;  %2213 = vmatprep.subr.bf16.mxu1 %v1837_v11  ;;  %v1916_v35 = vunpack.c.h.s8.bf16 %v1484_v23  ;;  %v1931_v11 = vunpack.c.l.s8.bf16 %v1499_v33 }
 0x4c4   : > { %v1270_v36 = vpop.xlane.xlu0 %1269 }
 0x4c5   : > { %v1271_v37 = vmul.f32 0.001953125, %v1270_v36  ;;  %v1933_v36 = vunpack.c.l.s8.bf16 %v1501_v34 }
 0x4c7   : > { %v1272_v38 = vadd.f32 1e-05, %v1271_v37  ;;  %v1498_v37 = vld [vmem:[%s6232_s5 + $0x580] sm:$0xff] }
 0x4c9   : > { %5356 = vrsqrt.f32 %v1272_v38  ;;  %v1500_v38 = vld [vmem:[%s6232_s5 + $0x590] sm:$0xff] }
 0x4d3   : > { %v6450_v24 = vpop.eup %5356 }
 0x4d4   : > { %v1275_v50 = vmul.f32 %v6450_v24, %v6410_v46  ;;  %v1274_v51 = vmul.f32 %v6450_v24, %v6407_v45  ;;  %v1277_v27 = vmul.f32 %v6450_v24, %v6416_v48  ;;  %v1834_v48 = vunpack.c.l.s8.bf16 %v1450_v30 }
 0x4d6   : > { %v1295_v52 = vmul.f32 %v1285_v42, %v1275_v50  ;;  %v1294_v53 = vmul.f32 %v1281_v41, %v1274_v51  ;;  %v1297_v60 = vmul.f32 %v1293_v43, %v1277_v27  ;;  %v1930_v41 = vunpack.c.l.s8.bf16 %v1498_v37  ;;  %v1517_v50 = vld [vmem:[%s6232_s5 + $0x618] sm:$0xff] }
 0x4d7   : > { %v1932_v42 = vunpack.c.l.s8.bf16 %v1500_v38  ;;  %v1947_v43 = vunpack.c.h.s8.bf16 %v1499_v33  ;;  %v1946_v51 = vunpack.c.h.s8.bf16 %v1498_v37  ;;  %v1948_v27 = vunpack.c.h.s8.bf16 %v1500_v38  ;;  %v1564_v37 = vld [vmem:[%s6232_s5 + $0x790] sm:$0xff] }
 0x4d8   : > { %v6466_v63 = vadd.f32 %v1305_v49, %v1295_v52  ;;  %v6468_v54 = vadd.f32 %v1301_v44, %v1294_v53  ;;  %v6470_v46 = vadd.f32 %v1313_v28, %v1297_v60  ;;  %v1949_v44 = vunpack.c.h.s8.bf16 %v1501_v34  ;;  %v1515_v49 = vld [vmem:[%s6232_s5 + $0x608] sm:$0xff]  ;;  %v1514_v53 = vld [vmem:[%s6232_s5 + $0x600] sm:$0xff]  ;;  %v1516_v60 = vld [vmem:[%s6232_s5 + $0x610] sm:$0xff] }
 0x4d9   : > { %v1963_v28 = vunpack.c.l.s8.bf16 %v1515_v49  ;;  %v1965_v52 = vunpack.c.l.s8.bf16 %v1517_v50  ;;  %v1962_v30 = vunpack.c.l.s8.bf16 %v1514_v53  ;;  %v1964_v32 = vunpack.c.l.s8.bf16 %v1516_v60 }
 0x4da   : > { %v6474_v45 = vpack.c.bf16 %v6466_v63, %v6466_v63  ;;  %v6478_v0 = vpack.c.bf16 %v6468_v54, %v6468_v54  ;;  %v6488_v3 = vpack.c.bf16 %v6470_v46, %v6470_v46  ;;  %v1978_v1 = vunpack.c.h.s8.bf16 %v1514_v53  ;;  %v1326_v53 = vld [vmem:[%s6232_s5 + $0x20] sm:$0xff] }
 0x4db   : > { %v1980_v2 = vunpack.c.h.s8.bf16 %v1516_v60  ;;  %v1276_v38 = vmul.f32 %v6450_v24, %v6413_v47  ;;  %v2076_v47 = vunpack.c.h.s8.bf16 %v1564_v37  ;;  %v1328_v60 = vld [vmem:[%s6232_s5 + $0x30] sm:$0xff] }
 0x4dc   : > { %2122 = vmatprep.mubr.bf16.mxu0 %v6474_v45  ;;  %2204 = vmatprep.mubr.bf16.mxu1 %v6474_v45 }
 0x4dd   : > { %2123 = vmatmul.mubr.bf16.vlgmr.msra.gmra.mrb[4].mxu0 %v6478_v0  ;;  %2205 = vmatmul.mubr.bf16.vlgmr.msra.gmra.mrb[4].mxu1 %v6478_v0 }
 0x4de   : > { %2132 = vmatpush1.bf16.msra.mxu0 %v1834_v48  ;;  %2214 = vmatpush1.bf16.msra.mxu1 %v1836_v55  ;;  %v1979_v48 = vunpack.c.h.s8.bf16 %v1515_v49  ;;  %v1981_v55 = vunpack.c.h.s8.bf16 %v1517_v50 }
 0x4df   : > { %2163 = vmatprep.mubr.bf16.mxu0 %v6488_v3  ;;  %2245 = vmatprep.mubr.bf16.mxu1 %v6488_v3 }
 0x4e0   : > { %2133 = vmatprep.subr.bf16.mxu0 %v1851_v56  ;;  %2215 = vmatprep.subr.bf16.mxu1 %v1853_v57  ;;  %v1531_v56 = vld [vmem:[%s6232_s5 + $0x688] sm:$0xff]  ;;  %v1533_v57 = vld [vmem:[%s6232_s5 + $0x698] sm:$0xff] }
 0x4e2   : > { %2134 = vmatpush1.bf16.msra.mxu0 %v1850_v4  ;;  %2216 = vmatpush1.bf16.msra.mxu1 %v1852_v5  ;;  %v1995_v4 = vunpack.c.l.s8.bf16 %v1531_v56  ;;  %v1997_v5 = vunpack.c.l.s8.bf16 %v1533_v57 }
 0x4e3   : > { %2135 = vmatprep.subr.bf16.mxu0 %v1867_v6  ;;  %2217 = vmatprep.subr.bf16.mxu1 %v1869_v7  ;;  %v1530_v6 = vld [vmem:[%s6232_s5 + $0x680] sm:$0xff]  ;;  %v1532_v7 = vld [vmem:[%s6232_s5 + $0x690] sm:$0xff] }
 0x4e4   : > { %v1994_v8 = vunpack.c.l.s8.bf16 %v1530_v6  ;;  %v1996_v9 = vunpack.c.l.s8.bf16 %v1532_v7  ;;  %v2010_v15 = vunpack.c.h.s8.bf16 %v1530_v6  ;;  %v2012_v16 = vunpack.c.h.s8.bf16 %v1532_v7  ;;  %v1342_v6 = vld [vmem:[%s6232_s5 + $0xa0] sm:$0xff] }
 0x4e6   : > { %2136 = vmatpush1.bf16.msra.mxu0 %v1866_v10  ;;  %2218 = vmatpush1.bf16.msra.mxu1 %v1868_v12  ;;  %v2011_v10 = vunpack.c.h.s8.bf16 %v1531_v56  ;;  %v2013_v12 = vunpack.c.h.s8.bf16 %v1533_v57  ;;  %v1343_v57 = vld [vmem:[%s6232_s5 + $0xa8] sm:$0xff] }
 0x4e7   : > { %2137 = vmatprep.subr.bf16.mxu0 %v1883_v13  ;;  %2219 = vmatprep.subr.bf16.mxu1 %v1885_v14  ;;  %v1547_v13 = vld [vmem:[%s6232_s5 + $0x708] sm:$0xff]  ;;  %v1549_v14 = vld [vmem:[%s6232_s5 + $0x718] sm:$0xff] }
 0x4ea   : > { %2138 = vmatpush1.bf16.msra.mxu0 %v1882_v17  ;;  %2220 = vmatpush1.bf16.msra.mxu1 %v1884_v19  ;;  %v2027_v17 = vunpack.c.l.s8.bf16 %v1547_v13  ;;  %v2029_v19 = vunpack.c.l.s8.bf16 %v1549_v14 }
 0x4eb   : > { %2139 = vmatprep.subr.bf16.mxu0 %v1899_v20  ;;  %2221 = vmatprep.subr.bf16.mxu1 %v1901_v21  ;;  %v1546_v20 = vld [vmem:[%s6232_s5 + $0x700] sm:$0xff]  ;;  %v1548_v21 = vld [vmem:[%s6232_s5 + $0x710] sm:$0xff] }
 0x4ec   : > { %v2026_v22 = vunpack.c.l.s8.bf16 %v1546_v20  ;;  %v2028_v23 = vunpack.c.l.s8.bf16 %v1548_v21  ;;  %v2042_v33 = vunpack.c.h.s8.bf16 %v1546_v20  ;;  %v2044_v34 = vunpack.c.h.s8.bf16 %v1548_v21  ;;  %v1358_v20 = vld [vmem:[%s6232_s5 + $0x120] sm:$0xff] }
 0x4ee   : > { %2140 = vmatpush1.bf16.msra.mxu0 %v1898_v25  ;;  %2222 = vmatpush1.bf16.msra.mxu1 %v1900_v26  ;;  %v2043_v25 = vunpack.c.h.s8.bf16 %v1547_v13  ;;  %v2045_v26 = vunpack.c.h.s8.bf16 %v1549_v14  ;;  %v1359_v14 = vld [vmem:[%s6232_s5 + $0x128] sm:$0xff] }
 0x4ef   : > { %2141 = vmatprep.subr.bf16.mxu0 %v1915_v29  ;;  %2223 = vmatprep.subr.bf16.mxu1 %v1917_v31  ;;  %v1563_v29 = vld [vmem:[%s6232_s5 + $0x788] sm:$0xff]  ;;  %v1565_v31 = vld [vmem:[%s6232_s5 + $0x798] sm:$0xff] }
 0x4f0   : > { %v2077_v49 = vunpack.c.h.s8.bf16 %v1565_v31 }
 0x4f2   : > { %2142 = vmatpush1.bf16.msra.mxu0 %v1914_v18  ;;  %2224 = vmatpush1.bf16.msra.mxu1 %v1916_v35  ;;  %v1289_v18 = vrot.slane %v6342_v61, %v6439_v39  ;;  %v2059_v35 = vunpack.c.l.s8.bf16 %v1563_v29 }
 0x4f3   : > { %2143 = vmatprep.subr.bf16.mxu0 %v1931_v11  ;;  %2225 = vmatprep.subr.bf16.mxu1 %v1933_v36  ;;  %v2061_v11 = vunpack.c.l.s8.bf16 %v1565_v31  ;;  %v1562_v36 = vld [vmem:[%s6232_s5 + $0x780] sm:$0xff]  ;;  %v1375_v31 = vld [vmem:[%s6232_s5 + $0x1a8] sm:$0xff] }
 0x4f4   : > { %v1296_v50 = vmul.f32 %v1289_v18, %v1276_v38 }
 0x4f6   : > { %2144 = vmatpush1.bf16.msra.mxu0 %v1930_v41  ;;  %2226 = vmatpush1.bf16.msra.mxu1 %v1932_v42  ;;  %v2058_v41 = vunpack.c.l.s8.bf16 %v1562_v36  ;;  %v2060_v42 = vunpack.c.l.s8.bf16 %v1564_v37  ;;  %v1376_v37 = vld [vmem:[%s6232_s5 + $0x1b0] sm:$0xff] }
 0x4f7   : > { %2145 = vmatprep.subr.bf16.mxu0 %v1947_v43  ;;  %2227 = vmatprep.subr.bf16.mxu1 %v1949_v44  ;;  %v1309_v43 = vrot.slane %v6342_v61, %v6442_v40  ;;  %v2075_v44 = vunpack.c.h.s8.bf16 %v1563_v29 }
 0x4f9   : > { %v6526_v24 = vadd.f32 %v1309_v43, %v1296_v50 }
 0x4fa   : > { %2146 = vmatpush1.bf16.msra.mxu0 %v1946_v51  ;;  %2228 = vmatpush1.bf16.msra.mxu1 %v1948_v27  ;;  %v1327_v51 = vld [vmem:[%s6232_s5 + $0x28] sm:$0xff]  ;;  %v1329_v27 = vld [vmem:[%s6232_s5 + $0x38] sm:$0xff] }
 0x4fb   : > { %2147 = vmatprep.subr.bf16.mxu0 %v1963_v28  ;;  %2229 = vmatprep.subr.bf16.mxu1 %v1965_v52  ;;  %v2074_v28 = vunpack.c.h.s8.bf16 %v1562_v36  ;;  %v1583_v52 = vunpack.c.l.s8.bf16 %v1327_v51  ;;  %v1585_v61 = vunpack.c.l.s8.bf16 %v1329_v27  ;;  %v1601_v56 = vunpack.c.h.s8.bf16 %v1329_v27 }
 0x4fe   : > { %2148 = vmatpush1.bf16.msra.mxu0 %v1962_v30  ;;  %2230 = vmatpush1.bf16.msra.mxu1 %v1964_v32  ;;  %v1582_v30 = vunpack.c.l.s8.bf16 %v1326_v53  ;;  %v6532_v32 = vpack.c.bf16 %v6526_v24, %v6526_v24 }
 0x4ff   : > { %2149 = vmatprep.subr.bf16.mxu0 %v1979_v48  ;;  %2231 = vmatprep.subr.bf16.mxu1 %v1981_v55  ;;  %v1584_v48 = vunpack.c.l.s8.bf16 %v1328_v60  ;;  %v1599_v55 = vunpack.c.h.s8.bf16 %v1327_v51  ;;  %v1696_v51 = vunpack.c.h.s8.bf16 %v1376_v37 }
 0x502   : > { %2150 = vmatpush1.bf16.msra.mxu0 %v1978_v1  ;;  %2232 = vmatpush1.bf16.msra.mxu1 %v1980_v2  ;;  %v1345_v1 = vld [vmem:[%s6232_s5 + $0xb8] sm:$0xff]  ;;  %v1598_v2 = vunpack.c.h.s8.bf16 %v1326_v53 }
 0x503   : > { %2151 = vmatprep.subr.bf16.mxu0 %v1995_v4  ;;  %2233 = vmatprep.subr.bf16.mxu1 %v1997_v5  ;;  %v1600_v4 = vunpack.c.h.s8.bf16 %v1328_v60  ;;  %v1615_v5 = vunpack.c.l.s8.bf16 %v1343_v57  ;;  %v1617_v7 = vunpack.c.l.s8.bf16 %v1345_v1  ;;  %v1633_v13 = vunpack.c.h.s8.bf16 %v1345_v1 }
 0x506   : > { %2152 = vmatpush1.bf16.msra.mxu0 %v1994_v8  ;;  %2234 = vmatpush1.bf16.msra.mxu1 %v1996_v9  ;;  %v1344_v8 = vld [vmem:[%s6232_s5 + $0xb0] sm:$0xff]  ;;  %v1614_v9 = vunpack.c.l.s8.bf16 %v1342_v6 }
 0x507   : > { %2153 = vmatprep.subr.bf16.mxu0 %v2011_v10  ;;  %2235 = vmatprep.subr.bf16.mxu1 %v2013_v12  ;;  %v1616_v10 = vunpack.c.l.s8.bf16 %v1344_v8  ;;  %v1631_v12 = vunpack.c.h.s8.bf16 %v1343_v57 }
 0x50a   : > { %2154 = vmatpush1.bf16.msra.mxu0 %v2010_v15  ;;  %2236 = vmatpush1.bf16.msra.mxu1 %v2012_v16  ;;  %v1361_v15 = vld [vmem:[%s6232_s5 + $0x138] sm:$0xff]  ;;  %v1630_v16 = vunpack.c.h.s8.bf16 %v1342_v6 }
 0x50b   : > { %2155 = vmatprep.subr.bf16.mxu0 %v2027_v17  ;;  %2237 = vmatprep.subr.bf16.mxu1 %v2029_v19  ;;  %v1632_v17 = vunpack.c.h.s8.bf16 %v1344_v8  ;;  %v1647_v19 = vunpack.c.l.s8.bf16 %v1359_v14  ;;  %v1649_v21 = vunpack.c.l.s8.bf16 %v1361_v15  ;;  %v1665_v29 = vunpack.c.h.s8.bf16 %v1361_v15 }
 0x50e   : > { %2156 = vmatpush1.bf16.msra.mxu0 %v2026_v22  ;;  %2238 = vmatpush1.bf16.msra.mxu1 %v2028_v23  ;;  %v1360_v22 = vld [vmem:[%s6232_s5 + $0x130] sm:$0xff]  ;;  %v1646_v23 = vunpack.c.l.s8.bf16 %v1358_v20 }
 0x50f   : > { %2157 = vmatprep.subr.bf16.mxu0 %v2043_v25  ;;  %2239 = vmatprep.subr.bf16.mxu1 %v2045_v26  ;;  %v1648_v25 = vunpack.c.l.s8.bf16 %v1360_v22  ;;  %v1663_v26 = vunpack.c.h.s8.bf16 %v1359_v14  ;;  %v1664_v18 = vunpack.c.h.s8.bf16 %v1360_v22 }
 0x512   : > { %2158 = vmatpush1.bf16.msra.mxu0 %v2042_v33  ;;  %2240 = vmatpush1.bf16.msra.mxu1 %v2044_v34  ;;  %v1377_v33 = vld [vmem:[%s6232_s5 + $0x1b8] sm:$0xff]  ;;  %v1662_v34 = vunpack.c.h.s8.bf16 %v1358_v20 }
 0x513   : > { %2159 = vmatprep.subr.bf16.mxu0 %v2059_v35  ;;  %2241 = vmatprep.subr.bf16.mxu1 %v2061_v11  ;;  %v1679_v35 = vunpack.c.l.s8.bf16 %v1375_v31  ;;  %v1374_v11 = vld [vmem:[%s6232_s5 + $0x1a0] sm:$0xff]  ;;  %v1681_v36 = vunpack.c.l.s8.bf16 %v1377_v33  ;;  %v1697_v43 = vunpack.c.h.s8.bf16 %v1377_v33 }
 0x514   : > { %v1678_v38 = vunpack.c.l.s8.bf16 %v1374_v11  ;;  %v1694_v50 = vunpack.c.h.s8.bf16 %v1374_v11 }
 0x516   : > { %2160 = vmatpush1.bf16.msra.mxu0 %v2058_v41  ;;  %2242 = vmatpush1.bf16.msra.mxu1 %v2060_v42  ;;  %v1680_v41 = vunpack.c.l.s8.bf16 %v1376_v37  ;;  %v1695_v42 = vunpack.c.h.s8.bf16 %v1375_v31 }
 0x517   : > { %2161 = vmatprep.subr.bf16.mxu0 %v2075_v44  ;;  %2243 = vmatprep.subr.bf16.mxu1 %v2077_v49  ;;  %v1391_v44 = vld [vmem:[%s6232_s5 + $0x228] sm:$0xff]  ;;  %v1393_v49 = vld [vmem:[%s6232_s5 + $0x238] sm:$0xff] }
 0x518   : > { %v1711_v27 = vunpack.c.l.s8.bf16 %v1391_v44  ;;  %v1727_v60 = vunpack.c.h.s8.bf16 %v1391_v44 }
 0x51a   : > { %2162 = vmatpush1.bf16.msra.mxu0 %v2074_v28  ;;  %2244 = vmatpush1.bf16.msra.mxu1 %v2076_v47  ;;  %v1390_v28 = vld [vmem:[%s6232_s5 + $0x220] sm:$0xff]  ;;  %v1713_v47 = vunpack.c.l.s8.bf16 %v1393_v49 }
 0x51b   : > { %2254 = vmatprep.subr.bf16.mxu0 %v1583_v52  ;;  %2336 = vmatprep.subr.bf16.mxu1 %v1585_v61  ;;  %v1392_v52 = vld [vmem:[%s6232_s5 + $0x230] sm:$0xff]  ;;  %v1710_v61 = vunpack.c.l.s8.bf16 %v1390_v28 }
 0x51c   : > { %v1712_v53 = vunpack.c.l.s8.bf16 %v1392_v52  ;;  %v1728_v57 = vunpack.c.h.s8.bf16 %v1392_v52 }
 0x51d   : > { %2164 = vmatmul.mubr.bf16.vlgmr.msra.gmra.mrb[4].mxu0 %v6532_v32  ;;  %2246 = vmatmul.mubr.bf16.vlgmr.msra.gmra.mrb[4].mxu1 %v6532_v32 }
 0x51e   : > { %2255 = vmatpush1.bf16.msra.mxu0 %v1582_v30  ;;  %2286 = vmatprep.mubr.bf16.mxu0 %v6474_v45  ;;  %v1729_v30 = vunpack.c.h.s8.bf16 %v1393_v49 }
 0x51f   : > { %2337 = vmatpush1.bf16.msra.mxu1 %v1584_v48  ;;  %2368 = vmatprep.mubr.bf16.mxu1 %v6474_v45  ;;  %v1407_v48 = vld [vmem:[%s6232_s5 + $0x2a8] sm:$0xff] }
 0x520   : > { %2256 = vmatprep.subr.bf16.mxu0 %v1599_v55  ;;  %2338 = vmatprep.subr.bf16.mxu1 %v1601_v56  ;;  %v1409_v55 = vld [vmem:[%s6232_s5 + $0x2b8] sm:$0xff]  ;;  %v1726_v56 = vunpack.c.h.s8.bf16 %v1390_v28  ;;  %v1743_v1 = vunpack.c.l.s8.bf16 %v1407_v48  ;;  %v1759_v8 = vunpack.c.h.s8.bf16 %v1407_v48 }
 0x522   : > { %2257 = vmatpush1.bf16.msra.mxu0 %v1598_v2  ;;  %v1406_v2 = vld [vmem:[%s6232_s5 + $0x2a0] sm:$0xff] }
 0x523   : > { %2339 = vmatpush1.bf16.msra.mxu1 %v1600_v4  ;;  %2258 = vmatprep.subr.bf16.mxu0 %v1615_v5  ;;  %v1745_v4 = vunpack.c.l.s8.bf16 %v1409_v55  ;;  %v1408_v5 = vld [vmem:[%s6232_s5 + $0x2b0] sm:$0xff]  ;;  %v1742_v6 = vunpack.c.l.s8.bf16 %v1406_v2 }
 0x524   : > { %2340 = vmatprep.subr.bf16.mxu1 %v1617_v7  ;;  %v1744_v7 = vunpack.c.l.s8.bf16 %v1408_v5  ;;  %v1760_v14 = vunpack.c.h.s8.bf16 %v1408_v5 }
 0x526   : > { %2259 = vmatpush1.bf16.msra.mxu0 %v1614_v9  ;;  %v1761_v9 = vunpack.c.h.s8.bf16 %v1409_v55 }
 0x527   : > { %2341 = vmatpush1.bf16.msra.mxu1 %v1616_v10  ;;  %2260 = vmatprep.subr.bf16.mxu0 %v1631_v12  ;;  %v1423_v10 = vld [vmem:[%s6232_s5 + $0x328] sm:$0xff]  ;;  %v1425_v12 = vld [vmem:[%s6232_s5 + $0x338] sm:$0xff] }
 0x528   : > { %2342 = vmatprep.subr.bf16.mxu1 %v1633_v13  ;;  %v1758_v13 = vunpack.c.h.s8.bf16 %v1406_v2  ;;  %v1775_v15 = vunpack.c.l.s8.bf16 %v1423_v10  ;;  %v1791_v22 = vunpack.c.h.s8.bf16 %v1423_v10 }
 0x52a   : > { %2261 = vmatpush1.bf16.msra.mxu0 %v1630_v16  ;;  %v1422_v16 = vld [vmem:[%s6232_s5 + $0x320] sm:$0xff] }
 0x52b   : > { %2343 = vmatpush1.bf16.msra.mxu1 %v1632_v17  ;;  %2262 = vmatprep.subr.bf16.mxu0 %v1647_v19  ;;  %v1777_v17 = vunpack.c.l.s8.bf16 %v1425_v12  ;;  %v1424_v19 = vld [vmem:[%s6232_s5 + $0x330] sm:$0xff]  ;;  %v1774_v20 = vunpack.c.l.s8.bf16 %v1422_v16 }
 0x52c   : > { %2344 = vmatprep.subr.bf16.mxu1 %v1649_v21  ;;  %v1776_v21 = vunpack.c.l.s8.bf16 %v1424_v19  ;;  %v1792_v31 = vunpack.c.h.s8.bf16 %v1424_v19 }
 0x52e   : > { %2263 = vmatpush1.bf16.msra.mxu0 %v1646_v23  ;;  %v1793_v23 = vunpack.c.h.s8.bf16 %v1425_v12 }
 0x52f   : > { %2345 = vmatpush1.bf16.msra.mxu1 %v1648_v25  ;;  %2264 = vmatprep.subr.bf16.mxu0 %v1663_v26  ;;  %v1439_v25 = vld [vmem:[%s6232_s5 + $0x3a8] sm:$0xff]  ;;  %v1441_v26 = vld [vmem:[%s6232_s5 + $0x3b8] sm:$0xff] }
 0x530   : > { %2346 = vmatprep.subr.bf16.mxu1 %v1665_v29  ;;  %v1790_v29 = vunpack.c.h.s8.bf16 %v1422_v16  ;;  %v1807_v33 = vunpack.c.l.s8.bf16 %v1439_v25  ;;  %v1823_v37 = vunpack.c.h.s8.bf16 %v1439_v25 }
 0x532   : > { %2265 = vmatpush1.bf16.msra.mxu0 %v1662_v34  ;;  %v1438_v34 = vld [vmem:[%s6232_s5 + $0x3a0] sm:$0xff] }
 0x533   : > { %2347 = vmatpush1.bf16.msra.mxu1 %v1664_v18  ;;  %2266 = vmatprep.subr.bf16.mxu0 %v1679_v35  ;;  %v1809_v18 = vunpack.c.l.s8.bf16 %v1441_v26  ;;  %v1440_v35 = vld [vmem:[%s6232_s5 + $0x3b0] sm:$0xff]  ;;  %v1806_v11 = vunpack.c.l.s8.bf16 %v1438_v34 }
 0x534   : > { %2348 = vmatprep.subr.bf16.mxu1 %v1681_v36  ;;  %v1808_v36 = vunpack.c.l.s8.bf16 %v1440_v35  ;;  %v1824_v44 = vunpack.c.h.s8.bf16 %v1440_v35 }
 0x536   : > { %2267 = vmatpush1.bf16.msra.mxu0 %v1678_v38  ;;  %v1825_v38 = vunpack.c.h.s8.bf16 %v1441_v26 }
 0x537   : > { %2349 = vmatpush1.bf16.msra.mxu1 %v1680_v41  ;;  %2268 = vmatprep.subr.bf16.mxu0 %v1695_v42  ;;  %v1455_v41 = vld [vmem:[%s6232_s5 + $0x428] sm:$0xff]  ;;  %v1457_v42 = vld [vmem:[%s6232_s5 + $0x438] sm:$0xff] }
 0x538   : > { %2350 = vmatprep.subr.bf16.mxu1 %v1697_v43  ;;  %v1822_v43 = vunpack.c.h.s8.bf16 %v1438_v34  ;;  %v1839_v49 = vunpack.c.l.s8.bf16 %v1455_v41  ;;  %v1855_v52 = vunpack.c.h.s8.bf16 %v1455_v41 }
 0x53a   : > { %2269 = vmatpush1.bf16.msra.mxu0 %v1694_v50  ;;  %v1454_v50 = vld [vmem:[%s6232_s5 + $0x420] sm:$0xff] }
 0x53b   : > { %2351 = vmatpush1.bf16.msra.mxu1 %v1696_v51  ;;  %2270 = vmatprep.subr.bf16.mxu0 %v1711_v27  ;;  %v1841_v51 = vunpack.c.l.s8.bf16 %v1457_v42  ;;  %v1456_v27 = vld [vmem:[%s6232_s5 + $0x430] sm:$0xff]  ;;  %v1838_v28 = vunpack.c.l.s8.bf16 %v1454_v50 }
 0x53c   : > { %2352 = vmatprep.subr.bf16.mxu1 %v1713_v47  ;;  %v1840_v47 = vunpack.c.l.s8.bf16 %v1456_v27  ;;  %v1856_v48 = vunpack.c.h.s8.bf16 %v1456_v27 }
 0x53e   : > { %2271 = vmatpush1.bf16.msra.mxu0 %v1710_v61  ;;  %v1471_v61 = vld [vmem:[%s6232_s5 + $0x4a8] sm:$0xff] }
 0x53f   : > { %2353 = vmatpush1.bf16.msra.mxu1 %v1712_v53  ;;  %2272 = vmatprep.subr.bf16.mxu0 %v1727_v60  ;;  %v1857_v53 = vunpack.c.h.s8.bf16 %v1457_v42  ;;  %v1473_v60 = vld [vmem:[%s6232_s5 + $0x4b8] sm:$0xff]  ;;  %v1871_v55 = vunpack.c.l.s8.bf16 %v1471_v61  ;;  %v1887_v5 = vunpack.c.h.s8.bf16 %v1471_v61 }
 0x540   : > { %2354 = vmatprep.subr.bf16.mxu1 %v1729_v30  ;;  %v1854_v30 = vunpack.c.h.s8.bf16 %v1454_v50 }
 0x542   : > { %2273 = vmatpush1.bf16.msra.mxu0 %v1726_v56  ;;  %v1470_v56 = vld [vmem:[%s6232_s5 + $0x4a0] sm:$0xff] }
 0x543   : > { %2355 = vmatpush1.bf16.msra.mxu1 %v1728_v57  ;;  %2274 = vmatprep.subr.bf16.mxu0 %v1743_v1  ;;  %v1873_v57 = vunpack.c.l.s8.bf16 %v1473_v60  ;;  %v1472_v1 = vld [vmem:[%s6232_s5 + $0x4b0] sm:$0xff]  ;;  %v1870_v2 = vunpack.c.l.s8.bf16 %v1470_v56 }
 0x544   : > { %2356 = vmatprep.subr.bf16.mxu1 %v1745_v4  ;;  %v1872_v4 = vunpack.c.l.s8.bf16 %v1472_v1  ;;  %v1888_v10 = vunpack.c.h.s8.bf16 %v1472_v1 }
 0x546   : > { %2275 = vmatpush1.bf16.msra.mxu0 %v1742_v6  ;;  %v1889_v6 = vunpack.c.h.s8.bf16 %v1473_v60 }
 0x547   : > { %2357 = vmatpush1.bf16.msra.mxu1 %v1744_v7  ;;  %2276 = vmatprep.subr.bf16.mxu0 %v1759_v8  ;;  %v1487_v7 = vld [vmem:[%s6232_s5 + $0x528] sm:$0xff]  ;;  %v1489_v8 = vld [vmem:[%s6232_s5 + $0x538] sm:$0xff] }
 0x548   : > { %2358 = vmatprep.subr.bf16.mxu1 %v1761_v9  ;;  %v1886_v9 = vunpack.c.h.s8.bf16 %v1470_v56  ;;  %v1903_v12 = vunpack.c.l.s8.bf16 %v1487_v7  ;;  %v1919_v19 = vunpack.c.h.s8.bf16 %v1487_v7 }
 0x54a   : > { %2277 = vmatpush1.bf16.msra.mxu0 %v1758_v13  ;;  %v1486_v13 = vld [vmem:[%s6232_s5 + $0x520] sm:$0xff] }
 0x54b   : > { %2359 = vmatpush1.bf16.msra.mxu1 %v1760_v14  ;;  %2278 = vmatprep.subr.bf16.mxu0 %v1775_v15  ;;  %v1905_v14 = vunpack.c.l.s8.bf16 %v1489_v8  ;;  %v1488_v15 = vld [vmem:[%s6232_s5 + $0x530] sm:$0xff]  ;;  %v1902_v16 = vunpack.c.l.s8.bf16 %v1486_v13 }
 0x54c   : > { %2360 = vmatprep.subr.bf16.mxu1 %v1777_v17  ;;  %v1904_v17 = vunpack.c.l.s8.bf16 %v1488_v15  ;;  %v1920_v25 = vunpack.c.h.s8.bf16 %v1488_v15 }
 0x54e   : > { %2279 = vmatpush1.bf16.msra.mxu0 %v1774_v20  ;;  %v1921_v20 = vunpack.c.h.s8.bf16 %v1489_v8 }
 0x54f   : > { %2361 = vmatpush1.bf16.msra.mxu1 %v1776_v21  ;;  %2280 = vmatprep.subr.bf16.mxu0 %v1791_v22  ;;  %v1503_v21 = vld [vmem:[%s6232_s5 + $0x5a8] sm:$0xff]  ;;  %v1505_v22 = vld [vmem:[%s6232_s5 + $0x5b8] sm:$0xff] }
 0x550   : > { %2362 = vmatprep.subr.bf16.mxu1 %v1793_v23  ;;  %v1918_v23 = vunpack.c.h.s8.bf16 %v1486_v13  ;;  %v1935_v26 = vunpack.c.l.s8.bf16 %v1503_v21  ;;  %v1951_v35 = vunpack.c.h.s8.bf16 %v1503_v21 }
 0x552   : > { %2281 = vmatpush1.bf16.msra.mxu0 %v1790_v29  ;;  %v1502_v29 = vld [vmem:[%s6232_s5 + $0x5a0] sm:$0xff] }
 0x553   : > { %2363 = vmatpush1.bf16.msra.mxu1 %v1792_v31  ;;  %2282 = vmatprep.subr.bf16.mxu0 %v1807_v33  ;;  %v1937_v31 = vunpack.c.l.s8.bf16 %v1505_v22  ;;  %v1504_v33 = vld [vmem:[%s6232_s5 + $0x5b0] sm:$0xff]  ;;  %v1934_v34 = vunpack.c.l.s8.bf16 %v1502_v29 }
 0x554   : > { %2364 = vmatprep.subr.bf16.mxu1 %v1809_v18  ;;  %v1936_v18 = vunpack.c.l.s8.bf16 %v1504_v33  ;;  %v1952_v41 = vunpack.c.h.s8.bf16 %v1504_v33 }
 0x556   : > { %2283 = vmatpush1.bf16.msra.mxu0 %v1806_v11  ;;  %v1953_v11 = vunpack.c.h.s8.bf16 %v1505_v22 }
 0x557   : > { %2365 = vmatpush1.bf16.msra.mxu1 %v1808_v36  ;;  %2284 = vmatprep.subr.bf16.mxu0 %v1823_v37  ;;  %v1519_v36 = vld [vmem:[%s6232_s5 + $0x628] sm:$0xff]  ;;  %v1521_v37 = vld [vmem:[%s6232_s5 + $0x638] sm:$0xff] }
 0x558   : > { %2366 = vmatprep.subr.bf16.mxu1 %v1825_v38  ;;  %v1950_v38 = vunpack.c.h.s8.bf16 %v1502_v29  ;;  %v1967_v42 = vunpack.c.l.s8.bf16 %v1519_v36  ;;  %v1983_v27 = vunpack.c.h.s8.bf16 %v1519_v36 }
 0x55a   : > { %2285 = vmatpush1.bf16.msra.mxu0 %v1822_v43  ;;  %v1518_v43 = vld [vmem:[%s6232_s5 + $0x620] sm:$0xff] }
 0x55b   : > { %2367 = vmatpush1.bf16.msra.mxu1 %v1824_v44  ;;  %2295 = vmatprep.subr.bf16.mxu0 %v1839_v49  ;;  %v1969_v44 = vunpack.c.l.s8.bf16 %v1521_v37  ;;  %v1520_v49 = vld [vmem:[%s6232_s5 + $0x630] sm:$0xff]  ;;  %v1966_v50 = vunpack.c.l.s8.bf16 %v1518_v43  ;;  %v1982_v61 = vunpack.c.h.s8.bf16 %v1518_v43 }
 0x55c   : > { %2377 = vmatprep.subr.bf16.mxu1 %v1841_v51  ;;  %v1968_v51 = vunpack.c.l.s8.bf16 %v1520_v49 }
 0x55d   : > { %2287 = vmatmul.mubr.bf16.vlgmr.msra.gmra.mrb[8].mxu0 %v6478_v0 }
 0x55e   : > { %2369 = vmatmul.mubr.bf16.vlgmr.msra.gmra.mrb[8].mxu1 %v6478_v0  ;;  %2296 = vmatpush1.bf16.msra.mxu0 %v1838_v28  ;;  %v1985_v28 = vunpack.c.h.s8.bf16 %v1521_v37 }
 0x55f   : > { %2327 = vmatprep.mubr.bf16.mxu0 %v6488_v3  ;;  %2378 = vmatpush1.bf16.msra.mxu1 %v1840_v47  ;;  %v1535_v47 = vld [vmem:[%s6232_s5 + $0x6a8] sm:$0xff] }
 0x560   : > { %2409 = vmatprep.mubr.bf16.mxu1 %v6488_v3  ;;  %2297 = vmatprep.subr.bf16.mxu0 %v1855_v52  ;;  %v1537_v52 = vld [vmem:[%s6232_s5 + $0x6b8] sm:$0xff]  ;;  %v1999_v60 = vunpack.c.l.s8.bf16 %v1535_v47  ;;  %v2015_v1 = vunpack.c.h.s8.bf16 %v1535_v47 }
 0x561   : > { %2379 = vmatprep.subr.bf16.mxu1 %v1857_v53  ;;  %v1984_v53 = vunpack.c.h.s8.bf16 %v1520_v49 }
 0x562   : > { %2298 = vmatpush1.bf16.msra.mxu0 %v1854_v30  ;;  %v1534_v30 = vld [vmem:[%s6232_s5 + $0x6a0] sm:$0xff] }
 0x563   : > { %2380 = vmatpush1.bf16.msra.mxu1 %v1856_v48  ;;  %2299 = vmatprep.subr.bf16.mxu0 %v1871_v55  ;;  %v2001_v48 = vunpack.c.l.s8.bf16 %v1537_v52  ;;  %v1536_v55 = vld [vmem:[%s6232_s5 + $0x6b0] sm:$0xff]  ;;  %v1998_v56 = vunpack.c.l.s8.bf16 %v1534_v30 }
 0x564   : > { %2381 = vmatprep.subr.bf16.mxu1 %v1873_v57  ;;  %v2000_v57 = vunpack.c.l.s8.bf16 %v1536_v55  ;;  %v2016_v7 = vunpack.c.h.s8.bf16 %v1536_v55 }
 0x566   : > { %2300 = vmatpush1.bf16.msra.mxu0 %v1870_v2  ;;  %v2017_v2 = vunpack.c.h.s8.bf16 %v1537_v52 }
 0x567   : > { %2382 = vmatpush1.bf16.msra.mxu1 %v1872_v4  ;;  %2301 = vmatprep.subr.bf16.mxu0 %v1887_v5  ;;  %v1551_v4 = vld [vmem:[%s6232_s5 + $0x728] sm:$0xff]  ;;  %v1553_v5 = vld [vmem:[%s6232_s5 + $0x738] sm:$0xff] }
 0x568   : > { %2383 = vmatprep.subr.bf16.mxu1 %v1889_v6  ;;  %v2014_v6 = vunpack.c.h.s8.bf16 %v1534_v30  ;;  %v2031_v8 = vunpack.c.l.s8.bf16 %v1551_v4  ;;  %v2047_v15 = vunpack.c.h.s8.bf16 %v1551_v4 }
 0x56a   : > { %2302 = vmatpush1.bf16.msra.mxu0 %v1886_v9  ;;  %v1550_v9 = vld [vmem:[%s6232_s5 + $0x720] sm:$0xff] }
 0x56b   : > { %2384 = vmatpush1.bf16.msra.mxu1 %v1888_v10  ;;  %2303 = vmatprep.subr.bf16.mxu0 %v1903_v12  ;;  %v2033_v10 = vunpack.c.l.s8.bf16 %v1553_v5  ;;  %v1552_v12 = vld [vmem:[%s6232_s5 + $0x730] sm:$0xff]  ;;  %v2030_v13 = vunpack.c.l.s8.bf16 %v1550_v9 }
 0x56c   : > { %2385 = vmatprep.subr.bf16.mxu1 %v1905_v14  ;;  %v2032_v14 = vunpack.c.l.s8.bf16 %v1552_v12  ;;  %v2048_v21 = vunpack.c.h.s8.bf16 %v1552_v12 }
 0x56e   : > { %2304 = vmatpush1.bf16.msra.mxu0 %v1902_v16  ;;  %v2049_v16 = vunpack.c.h.s8.bf16 %v1553_v5 }
 0x56f   : > { %2386 = vmatpush1.bf16.msra.mxu1 %v1904_v17  ;;  %2305 = vmatprep.subr.bf16.mxu0 %v1919_v19  ;;  %v1567_v17 = vld [vmem:[%s6232_s5 + $0x7a8] sm:$0xff]  ;;  %v1569_v19 = vld [vmem:[%s6232_s5 + $0x7b8] sm:$0xff] }
 0x570   : > { %2387 = vmatprep.subr.bf16.mxu1 %v1921_v20  ;;  %v2046_v20 = vunpack.c.h.s8.bf16 %v1550_v9  ;;  %v2063_v22 = vunpack.c.l.s8.bf16 %v1567_v17  ;;  %v2079_v33 = vunpack.c.h.s8.bf16 %v1567_v17 }
 0x572   : > { %2306 = vmatpush1.bf16.msra.mxu0 %v1918_v23  ;;  %v1566_v23 = vld [vmem:[%s6232_s5 + $0x7a0] sm:$0xff] }
 0x573   : > { %2388 = vmatpush1.bf16.msra.mxu1 %v1920_v25  ;;  %2307 = vmatprep.subr.bf16.mxu0 %v1935_v26  ;;  %v2065_v25 = vunpack.c.l.s8.bf16 %v1569_v19  ;;  %v1568_v26 = vld [vmem:[%s6232_s5 + $0x7b0] sm:$0xff]  ;;  %v2062_v29 = vunpack.c.l.s8.bf16 %v1566_v23 }
 0x574   : > { %2389 = vmatprep.subr.bf16.mxu1 %v1937_v31  ;;  %v2064_v31 = vunpack.c.l.s8.bf16 %v1568_v26  ;;  %v2080_v36 = vunpack.c.h.s8.bf16 %v1568_v26 }
 0x576   : > { %2308 = vmatpush1.bf16.msra.mxu0 %v1934_v34  ;;  %v2081_v34 = vunpack.c.h.s8.bf16 %v1569_v19 }
 0x577   : > { %2390 = vmatpush1.bf16.msra.mxu1 %v1936_v18  ;;  %2309 = vmatprep.subr.bf16.mxu0 %v1951_v35  ;;  %v1331_v18 = vld [vmem:[%s6232_s5 + $0x48] sm:$0xff]  ;;  %v1333_v35 = vld [vmem:[%s6232_s5 + $0x58] sm:$0xff] }
 0x578   : > { %2391 = vmatprep.subr.bf16.mxu1 %v1953_v11  ;;  %v2078_v11 = vunpack.c.h.s8.bf16 %v1566_v23  ;;  %v1587_v37 = vunpack.c.l.s8.bf16 %v1331_v18  ;;  %v1603_v49 = vunpack.c.h.s8.bf16 %v1331_v18 }
 0x57a   : > { %2310 = vmatpush1.bf16.msra.mxu0 %v1950_v38  ;;  %v1330_v38 = vld [vmem:[%s6232_s5 + $0x40] sm:$0xff] }
 0x57b   : > { %2392 = vmatpush1.bf16.msra.mxu1 %v1952_v41  ;;  %2311 = vmatprep.subr.bf16.mxu0 %v1967_v42  ;;  %v1589_v41 = vunpack.c.l.s8.bf16 %v1333_v35  ;;  %v1332_v42 = vld [vmem:[%s6232_s5 + $0x50] sm:$0xff]  ;;  %v1586_v43 = vunpack.c.l.s8.bf16 %v1330_v38 }
 0x57c   : > { %2393 = vmatprep.subr.bf16.mxu1 %v1969_v44  ;;  %v1588_v44 = vunpack.c.l.s8.bf16 %v1332_v42  ;;  %v1604_v47 = vunpack.c.h.s8.bf16 %v1332_v42 }
 0x57e   : > { %2312 = vmatpush1.bf16.msra.mxu0 %v1966_v50  ;;  %v1347_v50 = vld [vmem:[%s6232_s5 + $0xc8] sm:$0xff] }
 0x57f   : > { %2394 = vmatpush1.bf16.msra.mxu1 %v1968_v51  ;;  %2313 = vmatprep.subr.bf16.mxu0 %v1983_v27  ;;  %v1605_v51 = vunpack.c.h.s8.bf16 %v1333_v35  ;;  %v1349_v27 = vld [vmem:[%s6232_s5 + $0xd8] sm:$0xff]  ;;  %v1619_v52 = vunpack.c.l.s8.bf16 %v1347_v50  ;;  %v1635_v55 = vunpack.c.h.s8.bf16 %v1347_v50 }
 0x580   : > { %2395 = vmatprep.subr.bf16.mxu1 %v1985_v28  ;;  %v1602_v28 = vunpack.c.h.s8.bf16 %v1330_v38 }
 0x582   : > { %2314 = vmatpush1.bf16.msra.mxu0 %v1982_v61  ;;  %v1346_v61 = vld [vmem:[%s6232_s5 + $0xc0] sm:$0xff] }
 0x583   : > { %2396 = vmatpush1.bf16.msra.mxu1 %v1984_v53  ;;  %2315 = vmatprep.subr.bf16.mxu0 %v1999_v60  ;;  %v1621_v53 = vunpack.c.l.s8.bf16 %v1349_v27  ;;  %v1348_v60 = vld [vmem:[%s6232_s5 + $0xd0] sm:$0xff]  ;;  %v1618_v30 = vunpack.c.l.s8.bf16 %v1346_v61 }
 0x584   : > { %2397 = vmatprep.subr.bf16.mxu1 %v2001_v48  ;;  %v1620_v48 = vunpack.c.l.s8.bf16 %v1348_v60  ;;  %v1636_v4 = vunpack.c.h.s8.bf16 %v1348_v60 }
 0x586   : > { %2316 = vmatpush1.bf16.msra.mxu0 %v1998_v56  ;;  %v1637_v56 = vunpack.c.h.s8.bf16 %v1349_v27 }
 0x587   : > { %2398 = vmatpush1.bf16.msra.mxu1 %v2000_v57  ;;  %2317 = vmatprep.subr.bf16.mxu0 %v2015_v1  ;;  %v1363_v57 = vld [vmem:[%s6232_s5 + $0x148] sm:$0xff]  ;;  %v1365_v1 = vld [vmem:[%s6232_s5 + $0x158] sm:$0xff] }
 0x588   : > { %2399 = vmatprep.subr.bf16.mxu1 %v2017_v2  ;;  %v1634_v2 = vunpack.c.h.s8.bf16 %v1346_v61  ;;  %v1651_v5 = vunpack.c.l.s8.bf16 %v1363_v57  ;;  %v1667_v12 = vunpack.c.h.s8.bf16 %v1363_v57 }
 0x58a   : > { %2318 = vmatpush1.bf16.msra.mxu0 %v2014_v6  ;;  %v1362_v6 = vld [vmem:[%s6232_s5 + $0x140] sm:$0xff] }
 0x58b   : > { %2400 = vmatpush1.bf16.msra.mxu1 %v2016_v7  ;;  %2319 = vmatprep.subr.bf16.mxu0 %v2031_v8  ;;  %v1653_v7 = vunpack.c.l.s8.bf16 %v1365_v1  ;;  %v1364_v8 = vld [vmem:[%s6232_s5 + $0x150] sm:$0xff]  ;;  %v1650_v9 = vunpack.c.l.s8.bf16 %v1362_v6 }
 0x58c   : > { %2401 = vmatprep.subr.bf16.mxu1 %v2033_v10  ;;  %v1652_v10 = vunpack.c.l.s8.bf16 %v1364_v8  ;;  %v1668_v17 = vunpack.c.h.s8.bf16 %v1364_v8 }
 0x58e   : > { %2320 = vmatpush1.bf16.msra.mxu0 %v2030_v13  ;;  %v1669_v13 = vunpack.c.h.s8.bf16 %v1365_v1 }
 0x58f   : > { %2402 = vmatpush1.bf16.msra.mxu1 %v2032_v14  ;;  %2321 = vmatprep.subr.bf16.mxu0 %v2047_v15  ;;  %v1379_v14 = vld [vmem:[%s6232_s5 + $0x1c8] sm:$0xff]  ;;  %v1381_v15 = vld [vmem:[%s6232_s5 + $0x1d8] sm:$0xff] }
 0x590   : > { %2403 = vmatprep.subr.bf16.mxu1 %v2049_v16  ;;  %v1666_v16 = vunpack.c.h.s8.bf16 %v1362_v6  ;;  %v1683_v19 = vunpack.c.l.s8.bf16 %v1379_v14  ;;  %v1699_v26 = vunpack.c.h.s8.bf16 %v1379_v14 }
 0x592   : > { %2322 = vmatpush1.bf16.msra.mxu0 %v2046_v20  ;;  %v1378_v20 = vld [vmem:[%s6232_s5 + $0x1c0] sm:$0xff] }
 0x593   : > { %2404 = vmatpush1.bf16.msra.mxu1 %v2048_v21  ;;  %2323 = vmatprep.subr.bf16.mxu0 %v2063_v22  ;;  %v1685_v21 = vunpack.c.l.s8.bf16 %v1381_v15  ;;  %v1380_v22 = vld [vmem:[%s6232_s5 + $0x1d0] sm:$0xff]  ;;  %v1682_v23 = vunpack.c.l.s8.bf16 %v1378_v20 }
 0x594   : > { %2405 = vmatprep.subr.bf16.mxu1 %v2065_v25  ;;  %v1684_v25 = vunpack.c.l.s8.bf16 %v1380_v22  ;;  %v1700_v18 = vunpack.c.h.s8.bf16 %v1380_v22 }
 0x596   : > { %2324 = vmatpush1.bf16.msra.mxu0 %v2062_v29  ;;  %v1701_v29 = vunpack.c.h.s8.bf16 %v1381_v15 }
 0x597   : > { %2406 = vmatpush1.bf16.msra.mxu1 %v2064_v31  ;;  %2325 = vmatprep.subr.bf16.mxu0 %v2079_v33  ;;  %v1395_v31 = vld [vmem:[%s6232_s5 + $0x248] sm:$0xff]  ;;  %v1397_v33 = vld [vmem:[%s6232_s5 + $0x258] sm:$0xff] }
 0x598   : > { %2407 = vmatprep.subr.bf16.mxu1 %v2081_v34  ;;  %v1698_v34 = vunpack.c.h.s8.bf16 %v1378_v20  ;;  %v1715_v35 = vunpack.c.l.s8.bf16 %v1395_v31  ;;  %v1731_v42 = vunpack.c.h.s8.bf16 %v1395_v31 }
 0x59a   : > { %2326 = vmatpush1.bf16.msra.mxu0 %v2078_v11  ;;  %v1394_v11 = vld [vmem:[%s6232_s5 + $0x240] sm:$0xff] }
 0x59b   : > { %2408 = vmatpush1.bf16.msra.mxu1 %v2080_v36  ;;  %2418 = vmatprep.subr.bf16.mxu0 %v1587_v37  ;;  %v1717_v36 = vunpack.c.l.s8.bf16 %v1397_v33  ;;  %v1396_v37 = vld [vmem:[%s6232_s5 + $0x250] sm:$0xff]  ;;  %v1714_v38 = vunpack.c.l.s8.bf16 %v1394_v11  ;;  %v1730_v50 = vunpack.c.h.s8.bf16 %v1394_v11 }
 0x59c   : > { %2500 = vmatprep.subr.bf16.mxu1 %v1589_v41  ;;  %v1716_v41 = vunpack.c.l.s8.bf16 %v1396_v37 }
 0x59d   : > { %2328 = vmatmul.mubr.bf16.vlgmr.msra.gmra.mrb[8].mxu0 %v6532_v32 }
 0x59e   : > { %2410 = vmatmul.mubr.bf16.vlgmr.msra.gmra.mrb[8].mxu1 %v6532_v32  ;;  %2419 = vmatpush1.bf16.msra.mxu0 %v1586_v43  ;;  %v1733_v43 = vunpack.c.h.s8.bf16 %v1397_v33 }
 0x59f   : > { %2450 = vmatprep.mubr.bf16.mxu0 %v6474_v45  ;;  %2501 = vmatpush1.bf16.msra.mxu1 %v1588_v44  ;;  %v1411_v44 = vld [vmem:[%s6232_s5 + $0x2c8] sm:$0xff] }
 0x5a0   : > { %2532 = vmatprep.mubr.bf16.mxu1 %v6474_v45  ;;  %2420 = vmatprep.subr.bf16.mxu0 %v1603_v49  ;;  %v1413_v49 = vld [vmem:[%s6232_s5 + $0x2d8] sm:$0xff]  ;;  %v1747_v27 = vunpack.c.l.s8.bf16 %v1411_v44  ;;  %v1763_v60 = vunpack.c.h.s8.bf16 %v1411_v44 }
 0x5a1   : > { %2502 = vmatprep.subr.bf16.mxu1 %v1605_v51  ;;  %v1732_v51 = vunpack.c.h.s8.bf16 %v1396_v37 }
 0x5a2   : > { %2421 = vmatpush1.bf16.msra.mxu0 %v1602_v28  ;;  %v1410_v28 = vld [vmem:[%s6232_s5 + $0x2c0] sm:$0xff] }
 0x5a3   : > { %2503 = vmatpush1.bf16.msra.mxu1 %v1604_v47  ;;  %2422 = vmatprep.subr.bf16.mxu0 %v1619_v52  ;;  %v1749_v47 = vunpack.c.l.s8.bf16 %v1413_v49  ;;  %v1412_v52 = vld [vmem:[%s6232_s5 + $0x2d0] sm:$0xff]  ;;  %v1746_v61 = vunpack.c.l.s8.bf16 %v1410_v28 }
 0x5a4   : > { %2504 = vmatprep.subr.bf16.mxu1 %v1621_v53  ;;  %v1748_v53 = vunpack.c.l.s8.bf16 %v1412_v52  ;;  %v1764_v57 = vunpack.c.h.s8.bf16 %v1412_v52 }
 0x5a6   : > { %2423 = vmatpush1.bf16.msra.mxu0 %v1618_v30  ;;  %v1765_v30 = vunpack.c.h.s8.bf16 %v1413_v49 }
 0x5a7   : > { %2505 = vmatpush1.bf16.msra.mxu1 %v1620_v48  ;;  %2424 = vmatprep.subr.bf16.mxu0 %v1635_v55  ;;  %v1427_v48 = vld [vmem:[%s6232_s5 + $0x348] sm:$0xff]  ;;  %v1429_v55 = vld [vmem:[%s6232_s5 + $0x358] sm:$0xff] }
 0x5a8   : > { %2506 = vmatprep.subr.bf16.mxu1 %v1637_v56  ;;  %v1762_v56 = vunpack.c.h.s8.bf16 %v1410_v28  ;;  %v1779_v1 = vunpack.c.l.s8.bf16 %v1427_v48  ;;  %v1795_v8 = vunpack.c.h.s8.bf16 %v1427_v48  ;;  %v6656_v48 = vsub.s32 7, %v6333_v58 }
 0x5aa   : > { %2425 = vmatpush1.bf16.msra.mxu0 %v1634_v2  ;;  %v1426_v2 = vld [vmem:[%s6232_s5 + $0x340] sm:$0xff] }
 0x5ab   : > { %2507 = vmatpush1.bf16.msra.mxu1 %v1636_v4  ;;  %2426 = vmatprep.subr.bf16.mxu0 %v1651_v5  ;;  %v1781_v4 = vunpack.c.l.s8.bf16 %v1429_v55  ;;  %v1428_v5 = vld [vmem:[%s6232_s5 + $0x350] sm:$0xff]  ;;  %v1778_v6 = vunpack.c.l.s8.bf16 %v1426_v2 }
 0x5ac   : > { %2508 = vmatprep.subr.bf16.mxu1 %v1653_v7  ;;  %v1780_v7 = vunpack.c.l.s8.bf16 %v1428_v5  ;;  %v1796_v14 = vunpack.c.h.s8.bf16 %v1428_v5  ;;  %v6666_v5 = vsub.s32 6, %v6333_v58 }
 0x5ae   : > { %2427 = vmatpush1.bf16.msra.mxu0 %v1650_v9  ;;  %v1797_v9 = vunpack.c.h.s8.bf16 %v1429_v55 }
 0x5af   : > { %2509 = vmatpush1.bf16.msra.mxu1 %v1652_v10  ;;  %2428 = vmatprep.subr.bf16.mxu0 %v1667_v12  ;;  %v1443_v10 = vld [vmem:[%s6232_s5 + $0x3c8] sm:$0xff]  ;;  %v1445_v12 = vld [vmem:[%s6232_s5 + $0x3d8] sm:$0xff] }
 0x5b0   : > { %2510 = vmatprep.subr.bf16.mxu1 %v1669_v13  ;;  %v1794_v13 = vunpack.c.h.s8.bf16 %v1426_v2  ;;  %v1811_v15 = vunpack.c.l.s8.bf16 %v1443_v10  ;;  %v1827_v22 = vunpack.c.h.s8.bf16 %v1443_v10  ;;  %v1490_v2 = vld [vmem:[%s6232_s5 + $0x540] sm:$0xff] }
 0x5b1   : > { %v1906_v10 = vunpack.c.l.s8.bf16 %v1490_v2 }
 0x5b2   : > { %2429 = vmatpush1.bf16.msra.mxu0 %v1666_v16  ;;  %v1442_v16 = vld [vmem:[%s6232_s5 + $0x3c0] sm:$0xff] }
 0x5b3   : > { %2511 = vmatpush1.bf16.msra.mxu1 %v1668_v17  ;;  %2430 = vmatprep.subr.bf16.mxu0 %v1683_v19  ;;  %v1813_v17 = vunpack.c.l.s8.bf16 %v1445_v12  ;;  %v1444_v19 = vld [vmem:[%s6232_s5 + $0x3d0] sm:$0xff]  ;;  %v1810_v20 = vunpack.c.l.s8.bf16 %v1442_v16 }
 0x5b4   : > { %2512 = vmatprep.subr.bf16.mxu1 %v1685_v21  ;;  %v1812_v21 = vunpack.c.l.s8.bf16 %v1444_v19  ;;  %v1828_v31 = vunpack.c.h.s8.bf16 %v1444_v19  ;;  %v1507_v19 = vld [vmem:[%s6232_s5 + $0x5c8] sm:$0xff] }
 0x5b6   : > { %2431 = vmatpush1.bf16.msra.mxu0 %v1682_v23  ;;  %v1829_v23 = vunpack.c.h.s8.bf16 %v1445_v12 }
 0x5b7   : > { %2513 = vmatpush1.bf16.msra.mxu1 %v1684_v25  ;;  %2432 = vmatprep.subr.bf16.mxu0 %v1699_v26  ;;  %v1459_v25 = vld [vmem:[%s6232_s5 + $0x448] sm:$0xff]  ;;  %v1461_v26 = vld [vmem:[%s6232_s5 + $0x458] sm:$0xff] }
 0x5b8   : > { %2514 = vmatprep.subr.bf16.mxu1 %v1701_v29  ;;  %v1826_v29 = vunpack.c.h.s8.bf16 %v1442_v16  ;;  %v1843_v33 = vunpack.c.l.s8.bf16 %v1459_v25  ;;  %v1859_v37 = vunpack.c.h.s8.bf16 %v1459_v25  ;;  %v1922_v25 = vunpack.c.h.s8.bf16 %v1490_v2 }
 0x5ba   : > { %2433 = vmatpush1.bf16.msra.mxu0 %v1698_v34  ;;  %v1458_v34 = vld [vmem:[%s6232_s5 + $0x440] sm:$0xff] }
 0x5bb   : > { %2515 = vmatpush1.bf16.msra.mxu1 %v1700_v18  ;;  %2434 = vmatprep.subr.bf16.mxu0 %v1715_v35  ;;  %v1845_v18 = vunpack.c.l.s8.bf16 %v1461_v26  ;;  %v1460_v35 = vld [vmem:[%s6232_s5 + $0x450] sm:$0xff]  ;;  %v1842_v11 = vunpack.c.l.s8.bf16 %v1458_v34 }
 0x5bc   : > { %2516 = vmatprep.subr.bf16.mxu1 %v1717_v36  ;;  %v1844_v36 = vunpack.c.l.s8.bf16 %v1460_v35  ;;  %v1860_v44 = vunpack.c.h.s8.bf16 %v1460_v35 }
 0x5be   : > { %2435 = vmatpush1.bf16.msra.mxu0 %v1714_v38  ;;  %v1475_v38 = vld [vmem:[%s6232_s5 + $0x4c8] sm:$0xff] }
 0x5bf   : > { %2517 = vmatpush1.bf16.msra.mxu1 %v1716_v41  ;;  %2436 = vmatprep.subr.bf16.mxu0 %v1731_v42  ;;  %v1861_v41 = vunpack.c.h.s8.bf16 %v1461_v26  ;;  %v1477_v42 = vld [vmem:[%s6232_s5 + $0x4d8] sm:$0xff]  ;;  %v1875_v49 = vunpack.c.l.s8.bf16 %v1475_v38  ;;  %v1891_v52 = vunpack.c.h.s8.bf16 %v1475_v38 }
 0x5c0   : > { %2518 = vmatprep.subr.bf16.mxu1 %v1733_v43  ;;  %v1858_v43 = vunpack.c.h.s8.bf16 %v1458_v34  ;;  %v1506_v34 = vld [vmem:[%s6232_s5 + $0x5c0] sm:$0xff] }
 0x5c1   : > { %v1954_v2 = vunpack.c.h.s8.bf16 %v1506_v34 }
 0x5c2   : > { %2437 = vmatpush1.bf16.msra.mxu0 %v1730_v50  ;;  %v1474_v50 = vld [vmem:[%s6232_s5 + $0x4c0] sm:$0xff] }
 0x5c3   : > { %2519 = vmatpush1.bf16.msra.mxu1 %v1732_v51  ;;  %2438 = vmatprep.subr.bf16.mxu0 %v1747_v27  ;;  %v1877_v51 = vunpack.c.l.s8.bf16 %v1477_v42  ;;  %v1476_v27 = vld [vmem:[%s6232_s5 + $0x4d0] sm:$0xff]  ;;  %v1874_v28 = vunpack.c.l.s8.bf16 %v1474_v50  ;;  %v1890_v55 = vunpack.c.h.s8.bf16 %v1474_v50 }
 0x5c4   : > { %2520 = vmatprep.subr.bf16.mxu1 %v1749_v47  ;;  %v1876_v47 = vunpack.c.l.s8.bf16 %v1476_v27 }
 0x5c6   : > { %2439 = vmatpush1.bf16.msra.mxu0 %v1746_v61  ;;  %v1893_v61 = vunpack.c.h.s8.bf16 %v1477_v42 }
 0x5c7   : > { %2521 = vmatpush1.bf16.msra.mxu1 %v1748_v53  ;;  %2440 = vmatprep.subr.bf16.mxu0 %v1763_v60  ;;  %v1491_v53 = vld [vmem:[%s6232_s5 + $0x548] sm:$0xff]  ;;  %v1493_v60 = vld [vmem:[%s6232_s5 + $0x558] sm:$0xff] }
 0x5c8   : > { %2522 = vmatprep.subr.bf16.mxu1 %v1765_v30  ;;  %v6653_v30 = vsub.s32 5, %v6333_v58 }
 0x5ca   : > { %2441 = vmatpush1.bf16.msra.mxu0 %v1762_v56  ;;  %v6659_v56 = vld [vmem:[%s6234_s3] sm:$0xff] }
 0x5cb   : > { %2523 = vmatpush1.bf16.msra.mxu1 %v1764_v57  ;;  %2442 = vmatprep.subr.bf16.mxu0 %v1779_v1  ;;  %v1892_v57 = vunpack.c.h.s8.bf16 %v1476_v27  ;;  %v1907_v1 = vunpack.c.l.s8.bf16 %v1491_v53  ;;  %v2765_v12 = vrot.slane %v6659_v56, %v6656_v48  ;;  %v2925_v16 = vrot.slane %v6659_v56, %v6666_v5 }
 0x5cc   : > { %2524 = vmatprep.subr.bf16.mxu1 %v1781_v4  ;;  %v6663_v4 = vsub.s32 4, %v6333_v58 }
 0x5ce   : > { %2443 = vmatpush1.bf16.msra.mxu0 %v1778_v6  ;;  %v1909_v6 = vunpack.c.l.s8.bf16 %v1493_v60 }
 0x5cf   : > { %2525 = vmatpush1.bf16.msra.mxu1 %v1780_v7  ;;  %2444 = vmatprep.subr.bf16.mxu0 %v1795_v8  ;;  %v1492_v7 = vld [vmem:[%s6232_s5 + $0x550] sm:$0xff]  ;;  %v2753_v8 = vrot.slane %v6659_v56, %v6336_v59 }
 0x5d0   : > { %2526 = vmatprep.subr.bf16.mxu1 %v1797_v9  ;;  %v2761_v9 = vrot.slane %v6659_v56, %v6653_v30  ;;  %v1908_v58 = vunpack.c.l.s8.bf16 %v1492_v7 }
 0x5d2   : > { %2445 = vmatpush1.bf16.msra.mxu0 %v1794_v13  ;;  %v2913_v13 = vrot.slane %v6659_v56, %v6345_v62 }
 0x5d3   : > { %2527 = vmatpush1.bf16.msra.mxu1 %v1796_v14  ;;  %2446 = vmatprep.subr.bf16.mxu0 %v1811_v15  ;;  %v2921_v14 = vrot.slane %v6659_v56, %v6663_v4  ;;  %v1923_v15 = vunpack.c.h.s8.bf16 %v1491_v53  ;;  %v1955_v53 = vunpack.c.h.s8.bf16 %v1507_v19 }
 0x5d4   : > { %2528 = vmatprep.subr.bf16.mxu1 %v1813_v17  ;;  %v1925_v17 = vunpack.c.h.s8.bf16 %v1493_v60  ;;  %v2993_v26 = vrot.slane %v2913_v13, %v6345_v62 }
 0x5d6   : > { %2447 = vmatpush1.bf16.msra.mxu0 %v1810_v20  ;;  %v2833_v20 = vrot.slane %v2753_v8, %v6336_v59  ;;  %v1522_v8 = vld [vmem:[%s6232_s5 + $0x640] sm:$0xff] }
 0x5d7   : > { %2529 = vmatpush1.bf16.msra.mxu1 %v1812_v21  ;;  %2448 = vmatprep.subr.bf16.mxu0 %v1827_v22  ;;  %v2841_v21 = vrot.slane %v2761_v9, %v6336_v59  ;;  %v1509_v22 = vld [vmem:[%s6232_s5 + $0x5d8] sm:$0xff] }
 0x5d8   : > { %2530 = vmatprep.subr.bf16.mxu1 %v1829_v23  ;;  %v2845_v23 = vrot.slane %v2765_v12, %v6336_v59  ;;  %v1970_v12 = vunpack.c.l.s8.bf16 %v1522_v8 }
 0x5da   : > { %2449 = vmatpush1.bf16.msra.mxu0 %v1826_v29  ;;  %v3001_v29 = vrot.slane %v2921_v14, %v6345_v62 }
 0x5db   : > { %2531 = vmatpush1.bf16.msra.mxu1 %v1828_v31  ;;  %2459 = vmatprep.subr.bf16.mxu0 %v1843_v33  ;;  %v1924_v31 = vunpack.c.h.s8.bf16 %v1492_v7  ;;  %v1939_v33 = vunpack.c.l.s8.bf16 %v1507_v19 }
 0x5dc   : > { %2541 = vmatprep.subr.bf16.mxu1 %v1845_v18 }
 0x5dd   : > { %2451 = vmatmul.mubr.bf16.vlgmr.msra.gmra.mrb[12].mxu0 %v6478_v0 }
 0x5de   : > { %2533 = vmatmul.mubr.bf16.vlgmr.msra.gmra.mrb[12].mxu1 %v6478_v0  ;;  %2460 = vmatpush1.bf16.msra.mxu0 %v1842_v11  ;;  %v3005_v11 = vrot.slane %v2925_v16, %v6345_v62  ;;  %v1541_v16 = vld [vmem:[%s6232_s5 + $0x6d8] sm:$0xff] }
 0x5df   : > { %2491 = vmatprep.mubr.bf16.mxu0 %v6488_v3  ;;  %2542 = vmatpush1.bf16.msra.mxu1 %v1844_v36  ;;  %v1941_v36 = vunpack.c.l.s8.bf16 %v1509_v22 }
 0x5e0   : > { %2573 = vmatprep.mubr.bf16.mxu1 %v6488_v3  ;;  %2461 = vmatprep.subr.bf16.mxu0 %v1859_v37  ;;  %v1508_v37 = vld [vmem:[%s6232_s5 + $0x5d0] sm:$0xff] }
 0x5e1   : > { %2543 = vmatprep.subr.bf16.mxu1 %v1861_v41 }
 0x5e2   : > { %2462 = vmatpush1.bf16.msra.mxu0 %v1858_v43 }
 0x5e3   : > { %2544 = vmatpush1.bf16.msra.mxu1 %v1860_v44  ;;  %2463 = vmatprep.subr.bf16.mxu0 %v1875_v49 }
 0x5e4   : > { %2545 = vmatprep.subr.bf16.mxu1 %v1877_v51  ;;  %v1938_v51 = vunpack.c.l.s8.bf16 %v1506_v34  ;;  %v1557_v34 = vld [vmem:[%s6232_s5 + $0x758] sm:$0xff] }
 0x5e6   : > { %2464 = vmatpush1.bf16.msra.mxu0 %v1874_v28 }
 0x5e7   : > { %2546 = vmatpush1.bf16.msra.mxu1 %v1876_v47  ;;  %2465 = vmatprep.subr.bf16.mxu0 %v1891_v52 }
 0x5e8   : > { %2547 = vmatprep.subr.bf16.mxu1 %v1893_v61  ;;  %v1940_v61 = vunpack.c.l.s8.bf16 %v1508_v37 }
 0x5ea   : > { %2466 = vmatpush1.bf16.msra.mxu0 %v1890_v55  ;;  %v1957_v55 = vunpack.c.h.s8.bf16 %v1509_v22  ;;  %v2005_v22 = vunpack.c.l.s8.bf16 %v1541_v16 }
 0x5eb   : > { %2548 = vmatpush1.bf16.msra.mxu1 %v1892_v57  ;;  %2467 = vmatprep.subr.bf16.mxu0 %v1907_v1  ;;  %v1523_v57 = vld [vmem:[%s6232_s5 + $0x648] sm:$0xff]  ;;  %v1525_v1 = vld [vmem:[%s6232_s5 + $0x658] sm:$0xff] }
 0x5ec   : > { %2549 = vmatprep.subr.bf16.mxu1 %v1909_v6  ;;  %v1956_v6 = vunpack.c.h.s8.bf16 %v1508_v37  ;;  %v1971_v7 = vunpack.c.l.s8.bf16 %v1523_v57  ;;  %v1973_v9 = vunpack.c.l.s8.bf16 %v1525_v1  ;;  %v1987_v13 = vunpack.c.h.s8.bf16 %v1523_v57  ;;  %v1572_v57 = vld [vmem:[%s6232_s5 + $0x7d0] sm:$0xff] }
 0x5ed   : > { %v1989_v14 = vunpack.c.h.s8.bf16 %v1525_v1  ;;  %v2037_v37 = vunpack.c.l.s8.bf16 %v1557_v34 }
 0x5ee   : > { %2468 = vmatpush1.bf16.msra.mxu0 %v1906_v10  ;;  %v1524_v10 = vld [vmem:[%s6232_s5 + $0x650] sm:$0xff] }
 0x5ef   : > { %2550 = vmatpush1.bf16.msra.mxu1 %v1908_v58  ;;  %2469 = vmatprep.subr.bf16.mxu0 %v1923_v15  ;;  %v1972_v58 = vunpack.c.l.s8.bf16 %v1524_v10  ;;  %v1539_v15 = vld [vmem:[%s6232_s5 + $0x6c8] sm:$0xff]  ;;  %v1988_v19 = vunpack.c.h.s8.bf16 %v1524_v10 }
 0x5f0   : > { %v2165_v18 = vpop.f32.mrb[4].mxu0  ;;  %v2247_v35 = vpop.f32.mrb[4].mxu1  ;;  %2551 = vmatprep.subr.bf16.mxu1 %v1925_v17  ;;  %v1986_v17 = vunpack.c.h.s8.bf16 %v1522_v8  ;;  %v1335_v8 = vld [vmem:[%s6232_s5 + $0x68] sm:$0xff] }
 0x5f1   : > { %v2894_v38 = vmul.f32 %v2833_v20, %v2165_v18  ;;  %v2896_v41 = vmul.f32 %v2841_v21, %v2247_v35  ;;  %v6691_v42 = vpop.f32.mrb[5].mxu0  ;;  %v2249_v43 = vpop.f32.mrb[5].mxu1  ;;  %v2003_v20 = vunpack.c.l.s8.bf16 %v1539_v15  ;;  %v1538_v21 = vld [vmem:[%s6232_s5 + $0x6c0] sm:$0xff] }
 0x5f2   : > { %v2897_v44 = vmul.f32 %v2845_v23, %v2249_v43  ;;  %v2169_v49 = vpop.f32.mrb[6].mxu0  ;;  %v2251_v50 = vpop.f32.mrb[6].mxu1  ;;  %2470 = vmatpush1.bf16.msra.mxu0 %v1922_v25  ;;  %v1540_v23 = vld [vmem:[%s6232_s5 + $0x6d0] sm:$0xff]  ;;  %v2002_v25 = vunpack.c.l.s8.bf16 %v1538_v21  ;;  %v2018_v18 = vunpack.c.h.s8.bf16 %v1538_v21 }
 0x5f3   : > { %v6693_v27 = vadd.f32 %v2993_v26, %v2894_v38  ;;  %v6695_v28 = vadd.f32 %v3001_v29, %v2896_v41  ;;  %2552 = vmatpush1.bf16.msra.mxu1 %v1924_v31  ;;  %v2170_v47 = vpop.f32.mrb[7].mxu0  ;;  %v2252_v52 = vpop.f32.mrb[7].mxu1  ;;  %2471 = vmatprep.subr.bf16.mxu0 %v1939_v33  ;;  %v2004_v26 = vunpack.c.l.s8.bf16 %v1540_v23  ;;  %v2019_v29 = vunpack.c.h.s8.bf16 %v1539_v15  ;;  %v1555_v33 = vld [vmem:[%s6232_s5 + $0x748] sm:$0xff]  ;;  %v1556_v38 = vld [vmem:[%s6232_s5 + $0x750] sm:$0xff] }
 0x5f4   : > { %v6697_v60 = vadd.f32 %v3005_v11, %v2897_v44  ;;  %2553 = vmatprep.subr.bf16.mxu1 %v1941_v36  ;;  %v2021_v31 = vunpack.c.h.s8.bf16 %v1541_v16  ;;  %v2020_v35 = vunpack.c.h.s8.bf16 %v1540_v23  ;;  %v2035_v11 = vunpack.c.l.s8.bf16 %v1555_v33  ;;  %v1554_v36 = vld [vmem:[%s6232_s5 + $0x740] sm:$0xff]  ;;  %v1571_v50 = vld [vmem:[%s6232_s5 + $0x7c8] sm:$0xff]  ;;  %v1336_v15 = vld [vmem:[%s6232_s5 + $0x70] sm:$0xff] }
 0x5f5   : > { %v2034_v41 = vunpack.c.l.s8.bf16 %v1554_v36  ;;  %v2036_v43 = vunpack.c.l.s8.bf16 %v1556_v38  ;;  %v2051_v44 = vunpack.c.h.s8.bf16 %v1555_v33  ;;  %v2053_v49 = vunpack.c.h.s8.bf16 %v1557_v34  ;;  %v1352_v33 = vld [vmem:[%s6232_s5 + $0xf0] sm:$0xff] }
 0x5f6   : > { %2472 = vmatpush1.bf16.msra.mxu0 %v1938_v51  ;;  %v1573_v51 = vld [vmem:[%s6232_s5 + $0x7d8] sm:$0xff]  ;;  %v2050_v47 = vunpack.c.h.s8.bf16 %v1554_v36  ;;  %v2052_v52 = vunpack.c.h.s8.bf16 %v1556_v38  ;;  %v1367_v36 = vld [vmem:[%s6232_s5 + $0x168] sm:$0xff] }
 0x5f7   : > { %2554 = vmatpush1.bf16.msra.mxu1 %v1940_v61  ;;  %2473 = vmatprep.subr.bf16.mxu0 %v1955_v53  ;;  %v2067_v61 = vunpack.c.l.s8.bf16 %v1571_v50  ;;  %v1570_v53 = vld [vmem:[%s6232_s5 + $0x7c0] sm:$0xff] }
 0x5f8   : > { %2555 = vmatprep.subr.bf16.mxu1 %v1957_v55  ;;  %v2069_v55 = vunpack.c.l.s8.bf16 %v1573_v51  ;;  %v2066_v1 = vunpack.c.l.s8.bf16 %v1570_v53  ;;  %v2082_v10 = vunpack.c.h.s8.bf16 %v1570_v53  ;;  %v1385_v53 = vld [vmem:[%s6232_s5 + $0x1f8] sm:$0xff] }
 0x5fa   : > { %2474 = vmatpush1.bf16.msra.mxu0 %v1954_v2  ;;  %v2068_v2 = vunpack.c.l.s8.bf16 %v1572_v57 }
 0x5fb   : > { %2556 = vmatpush1.bf16.msra.mxu1 %v1956_v6  ;;  %2475 = vmatprep.subr.bf16.mxu0 %v1971_v7  ;;  %v2083_v6 = vunpack.c.h.s8.bf16 %v1571_v50  ;;  %v2085_v7 = vunpack.c.h.s8.bf16 %v1573_v51 }
 0x5fc   : > { %2557 = vmatprep.subr.bf16.mxu1 %v1973_v9  ;;  %v1337_v9 = vld [vmem:[%s6232_s5 + $0x78] sm:$0xff] }
 0x5fd   : > { %v1609_v21 = vunpack.c.h.s8.bf16 %v1337_v9 }
 0x5fe   : > { %2476 = vmatpush1.bf16.msra.mxu0 %v1970_v12  ;;  %v2084_v12 = vunpack.c.h.s8.bf16 %v1572_v57 }
 0x5ff   : > { %2558 = vmatpush1.bf16.msra.mxu1 %v1972_v58  ;;  %2477 = vmatprep.subr.bf16.mxu0 %v1987_v13  ;;  %v1591_v58 = vunpack.c.l.s8.bf16 %v1335_v8  ;;  %v1334_v13 = vld [vmem:[%s6232_s5 + $0x60] sm:$0xff] }
 0x600   : > { %2559 = vmatprep.subr.bf16.mxu1 %v1989_v14  ;;  %v1593_v14 = vunpack.c.l.s8.bf16 %v1337_v9  ;;  %v1590_v16 = vunpack.c.l.s8.bf16 %v1334_v13  ;;  %v1606_v23 = vunpack.c.h.s8.bf16 %v1334_v13  ;;  %v1401_v13 = vld [vmem:[%s6232_s5 + $0x278] sm:$0xff] }
 0x602   : > { %2478 = vmatpush1.bf16.msra.mxu0 %v1986_v17  ;;  %v1592_v17 = vunpack.c.l.s8.bf16 %v1336_v15 }
 0x603   : > { %2560 = vmatpush1.bf16.msra.mxu1 %v1988_v19  ;;  %2479 = vmatprep.subr.bf16.mxu0 %v2003_v20  ;;  %v1607_v19 = vunpack.c.h.s8.bf16 %v1335_v8  ;;  %v1351_v20 = vld [vmem:[%s6232_s5 + $0xe8] sm:$0xff] }
 0x604   : > { %2561 = vmatprep.subr.bf16.mxu1 %v2005_v22  ;;  %v1353_v22 = vld [vmem:[%s6232_s5 + $0xf8] sm:$0xff] }
 0x606   : > { %2480 = vmatpush1.bf16.msra.mxu0 %v2002_v25  ;;  %v1608_v25 = vunpack.c.h.s8.bf16 %v1336_v15 }
 0x607   : > { %2562 = vmatpush1.bf16.msra.mxu1 %v2004_v26  ;;  %2481 = vmatprep.subr.bf16.mxu0 %v2019_v29  ;;  %v1623_v26 = vunpack.c.l.s8.bf16 %v1351_v20  ;;  %v1350_v29 = vld [vmem:[%s6232_s5 + $0xe0] sm:$0xff] }
 0x608   : > { %2563 = vmatprep.subr.bf16.mxu1 %v2021_v31  ;;  %v1625_v31 = vunpack.c.l.s8.bf16 %v1353_v22  ;;  %v1622_v34 = vunpack.c.l.s8.bf16 %v1350_v29  ;;  %v1638_v38 = vunpack.c.h.s8.bf16 %v1350_v29  ;;  %v1417_v29 = vld [vmem:[%s6232_s5 + $0x2f8] sm:$0xff] }
 0x60a   : > { %2482 = vmatpush1.bf16.msra.mxu0 %v2018_v18  ;;  %v1624_v18 = vunpack.c.l.s8.bf16 %v1352_v33 }
 0x60b   : > { %2564 = vmatpush1.bf16.msra.mxu1 %v2020_v35  ;;  %2483 = vmatprep.subr.bf16.mxu0 %v2035_v11  ;;  %v1639_v35 = vunpack.c.h.s8.bf16 %v1351_v20  ;;  %v1641_v11 = vunpack.c.h.s8.bf16 %v1353_v22  ;;  %v1400_v20 = vld [vmem:[%s6232_s5 + $0x270] sm:$0xff] }
 0x60c   : > { %2565 = vmatprep.subr.bf16.mxu1 %v2037_v37  ;;  %v1369_v37 = vld [vmem:[%s6232_s5 + $0x178] sm:$0xff]  ;;  %v1720_v22 = vunpack.c.l.s8.bf16 %v1400_v20 }
 0x60e   : > { %2484 = vmatpush1.bf16.msra.mxu0 %v2034_v41  ;;  %v1655_v41 = vunpack.c.l.s8.bf16 %v1367_v36 }
 0x60f   : > { %2566 = vmatpush1.bf16.msra.mxu1 %v2036_v43  ;;  %2485 = vmatprep.subr.bf16.mxu0 %v2051_v44  ;;  %v1366_v43 = vld [vmem:[%s6232_s5 + $0x160] sm:$0xff]  ;;  %v1657_v44 = vunpack.c.l.s8.bf16 %v1369_v37 }
 0x610   : > { %2567 = vmatprep.subr.bf16.mxu1 %v2053_v49  ;;  %v1368_v49 = vld [vmem:[%s6232_s5 + $0x170] sm:$0xff]  ;;  %v1654_v50 = vunpack.c.l.s8.bf16 %v1366_v43 }
 0x611   : > { %v1656_v51 = vunpack.c.l.s8.bf16 %v1368_v49  ;;  %v1672_v57 = vunpack.c.h.s8.bf16 %v1368_v49 }
 0x612   : > { %2486 = vmatpush1.bf16.msra.mxu0 %v2050_v47  ;;  %v1671_v47 = vunpack.c.h.s8.bf16 %v1367_v36 }
 0x613   : > { %2568 = vmatpush1.bf16.msra.mxu1 %v2052_v52  ;;  %2487 = vmatprep.subr.bf16.mxu0 %v2067_v61  ;;  %v1673_v52 = vunpack.c.h.s8.bf16 %v1369_v37  ;;  %v1383_v61 = vld [vmem:[%s6232_s5 + $0x1e8] sm:$0xff] }
 0x614   : > { %2569 = vmatprep.subr.bf16.mxu1 %v2069_v55  ;;  %v1670_v55 = vunpack.c.h.s8.bf16 %v1366_v43  ;;  %v1433_v43 = vld [vmem:[%s6232_s5 + $0x378] sm:$0xff] }
 0x616   : > { %2488 = vmatpush1.bf16.msra.mxu0 %v2066_v1  ;;  %v1687_v1 = vunpack.c.l.s8.bf16 %v1383_v61 }
 0x617   : > { %2570 = vmatpush1.bf16.msra.mxu1 %v2068_v2  ;;  %2489 = vmatprep.subr.bf16.mxu0 %v2083_v6  ;;  %v1382_v2 = vld [vmem:[%s6232_s5 + $0x1e0] sm:$0xff]  ;;  %v1689_v6 = vunpack.c.l.s8.bf16 %v1385_v53 }
 0x618   : > { %2571 = vmatprep.subr.bf16.mxu1 %v2085_v7  ;;  %v1384_v7 = vld [vmem:[%s6232_s5 + $0x1f0] sm:$0xff]  ;;  %v1686_v8 = vunpack.c.l.s8.bf16 %v1382_v2 }
 0x619   : > { %v1688_v9 = vunpack.c.l.s8.bf16 %v1384_v7  ;;  %v1704_v15 = vunpack.c.h.s8.bf16 %v1384_v7 }
 0x61a   : > { %2490 = vmatpush1.bf16.msra.mxu0 %v2082_v10  ;;  %v1703_v10 = vunpack.c.h.s8.bf16 %v1383_v61 }
 0x61b   : > { %2572 = vmatpush1.bf16.msra.mxu1 %v2084_v12  ;;  %2582 = vmatprep.subr.bf16.mxu0 %v1591_v58  ;;  %v1705_v12 = vunpack.c.h.s8.bf16 %v1385_v53  ;;  %v1399_v58 = vld [vmem:[%s6232_s5 + $0x268] sm:$0xff] }
 0x61c   : > { %2664 = vmatprep.subr.bf16.mxu1 %v1593_v14  ;;  %v1702_v14 = vunpack.c.h.s8.bf16 %v1382_v2  ;;  %v1449_v2 = vld [vmem:[%s6232_s5 + $0x3f8] sm:$0xff] }
 0x61d   : > { %2492 = vmatmul.mubr.bf16.vlgmr.msra.gmra.mrb[12].mxu0 %v6532_v32 }
 0x61e   : > { %2574 = vmatmul.mubr.bf16.vlgmr.msra.gmra.mrb[12].mxu1 %v6532_v32  ;;  %2583 = vmatpush1.bf16.msra.mxu0 %v1590_v16  ;;  %v1719_v16 = vunpack.c.l.s8.bf16 %v1399_v58 }
 0x61f   : > { %2614 = vmatprep.mubr.bf16.mxu0 %v6474_v45  ;;  %2665 = vmatpush1.bf16.msra.mxu1 %v1592_v17  ;;  %v1398_v17 = vld [vmem:[%s6232_s5 + $0x260] sm:$0xff] }
 0x620   : > { %2696 = vmatprep.mubr.bf16.mxu1 %v6474_v45  ;;  %2584 = vmatprep.subr.bf16.mxu0 %v1607_v19  ;;  %v1640_v45 = vunpack.c.h.s8.bf16 %v1352_v33  ;;  %v1721_v19 = vunpack.c.l.s8.bf16 %v1401_v13  ;;  %v1736_v33 = vunpack.c.h.s8.bf16 %v1400_v20 }
 0x621   : > { %2666 = vmatprep.subr.bf16.mxu1 %v1609_v21  ;;  %v1718_v21 = vunpack.c.l.s8.bf16 %v1398_v17 }
 0x622   : > { %2585 = vmatpush1.bf16.msra.mxu0 %v1606_v23  ;;  %v1735_v23 = vunpack.c.h.s8.bf16 %v1399_v58 }
 0x623   : > { %2667 = vmatpush1.bf16.msra.mxu1 %v1608_v25  ;;  %2586 = vmatprep.subr.bf16.mxu0 %v1623_v26  ;;  %v1737_v25 = vunpack.c.h.s8.bf16 %v1401_v13  ;;  %v1415_v26 = vld [vmem:[%s6232_s5 + $0x2e8] sm:$0xff] }
 0x624   : > { %2668 = vmatprep.subr.bf16.mxu1 %v1625_v31  ;;  %v1734_v31 = vunpack.c.h.s8.bf16 %v1398_v17  ;;  %v1465_v17 = vld [vmem:[%s6232_s5 + $0x478] sm:$0xff] }
 0x626   : > { %2587 = vmatpush1.bf16.msra.mxu0 %v1622_v34  ;;  %v1751_v34 = vunpack.c.l.s8.bf16 %v1415_v26 }
 0x627   : > { %2669 = vmatpush1.bf16.msra.mxu1 %v1624_v18  ;;  %2588 = vmatprep.subr.bf16.mxu0 %v1639_v35  ;;  %v1414_v18 = vld [vmem:[%s6232_s5 + $0x2e0] sm:$0xff]  ;;  %v1753_v35 = vunpack.c.l.s8.bf16 %v1417_v29 }
 0x628   : > { %2670 = vmatprep.subr.bf16.mxu1 %v1641_v11  ;;  %v1416_v11 = vld [vmem:[%s6232_s5 + $0x2f0] sm:$0xff]  ;;  %v1750_v36 = vunpack.c.l.s8.bf16 %v1414_v18 }
 0x629   : > { %v1752_v37 = vunpack.c.l.s8.bf16 %v1416_v11  ;;  %v1768_v49 = vunpack.c.h.s8.bf16 %v1416_v11 }
 0x62a   : > { %2589 = vmatpush1.bf16.msra.mxu0 %v1638_v38  ;;  %v1767_v38 = vunpack.c.h.s8.bf16 %v1415_v26 }
 0x62b   : > { %2671 = vmatpush1.bf16.msra.mxu1 %v1640_v45  ;;  %2590 = vmatprep.subr.bf16.mxu0 %v1655_v41  ;;  %v1769_v45 = vunpack.c.h.s8.bf16 %v1417_v29  ;;  %v1431_v41 = vld [vmem:[%s6232_s5 + $0x368] sm:$0xff] }
 0x62c   : > { %2672 = vmatprep.subr.bf16.mxu1 %v1657_v44  ;;  %v1766_v44 = vunpack.c.h.s8.bf16 %v1414_v18  ;;  %v1481_v18 = vld [vmem:[%s6232_s5 + $0x4f8] sm:$0xff] }
 0x62e   : > { %2591 = vmatpush1.bf16.msra.mxu0 %v1654_v50  ;;  %v1783_v50 = vunpack.c.l.s8.bf16 %v1431_v41 }
 0x62f   : > { %2673 = vmatpush1.bf16.msra.mxu1 %v1656_v51  ;;  %2592 = vmatprep.subr.bf16.mxu0 %v1671_v47  ;;  %v1430_v51 = vld [vmem:[%s6232_s5 + $0x360] sm:$0xff]  ;;  %v1785_v47 = vunpack.c.l.s8.bf16 %v1433_v43 }
 0x630   : > { %2674 = vmatprep.subr.bf16.mxu1 %v1673_v52  ;;  %v1432_v52 = vld [vmem:[%s6232_s5 + $0x370] sm:$0xff]  ;;  %v1782_v61 = vunpack.c.l.s8.bf16 %v1430_v51 }
 0x631   : > { %v1784_v53 = vunpack.c.l.s8.bf16 %v1432_v52  ;;  %v1800_v7 = vunpack.c.h.s8.bf16 %v1432_v52 }
 0x632   : > { %2593 = vmatpush1.bf16.msra.mxu0 %v1670_v55  ;;  %v1799_v55 = vunpack.c.h.s8.bf16 %v1431_v41 }
 0x633   : > { %2675 = vmatpush1.bf16.msra.mxu1 %v1672_v57  ;;  %2594 = vmatprep.subr.bf16.mxu0 %v1687_v1  ;;  %v1801_v57 = vunpack.c.h.s8.bf16 %v1433_v43  ;;  %v1447_v1 = vld [vmem:[%s6232_s5 + $0x3e8] sm:$0xff] }
 0x634   : > { %2676 = vmatprep.subr.bf16.mxu1 %v1689_v6  ;;  %v1798_v6 = vunpack.c.h.s8.bf16 %v1430_v51 }
 0x636   : > { %2595 = vmatpush1.bf16.msra.mxu0 %v1686_v8  ;;  %v1815_v8 = vunpack.c.l.s8.bf16 %v1447_v1 }
 0x637   : > { %2677 = vmatpush1.bf16.msra.mxu1 %v1688_v9  ;;  %2596 = vmatprep.subr.bf16.mxu0 %v1703_v10  ;;  %v1446_v9 = vld [vmem:[%s6232_s5 + $0x3e0] sm:$0xff]  ;;  %v1817_v10 = vunpack.c.l.s8.bf16 %v1449_v2 }
 0x638   : > { %2678 = vmatprep.subr.bf16.mxu1 %v1705_v12  ;;  %v1448_v12 = vld [vmem:[%s6232_s5 + $0x3f0] sm:$0xff]  ;;  %v1814_v58 = vunpack.c.l.s8.bf16 %v1446_v9 }
 0x639   : > { %v1816_v13 = vunpack.c.l.s8.bf16 %v1448_v12  ;;  %v1832_v20 = vunpack.c.h.s8.bf16 %v1448_v12 }
 0x63a   : > { %2597 = vmatpush1.bf16.msra.mxu0 %v1702_v14  ;;  %v1831_v14 = vunpack.c.h.s8.bf16 %v1447_v1 }
 0x63b   : > { %2679 = vmatpush1.bf16.msra.mxu1 %v1704_v15  ;;  %2598 = vmatprep.subr.bf16.mxu0 %v1719_v16  ;;  %v1833_v15 = vunpack.c.h.s8.bf16 %v1449_v2  ;;  %v1463_v16 = vld [vmem:[%s6232_s5 + $0x468] sm:$0xff] }
 0x63c   : > { %2680 = vmatprep.subr.bf16.mxu1 %v1721_v19  ;;  %v1830_v19 = vunpack.c.h.s8.bf16 %v1446_v9 }
 0x63e   : > { %2599 = vmatpush1.bf16.msra.mxu0 %v1718_v21  ;;  %v1847_v21 = vunpack.c.l.s8.bf16 %v1463_v16 }
 0x63f   : > { %2681 = vmatpush1.bf16.msra.mxu1 %v1720_v22  ;;  %2600 = vmatprep.subr.bf16.mxu0 %v1735_v23  ;;  %v1462_v22 = vld [vmem:[%s6232_s5 + $0x460] sm:$0xff]  ;;  %v1849_v23 = vunpack.c.l.s8.bf16 %v1465_v17 }
 0x640   : > { %2682 = vmatprep.subr.bf16.mxu1 %v1737_v25  ;;  %v1464_v25 = vld [vmem:[%s6232_s5 + $0x470] sm:$0xff]  ;;  %v1846_v26 = vunpack.c.l.s8.bf16 %v1462_v22 }
 0x641   : > { %v1848_v29 = vunpack.c.l.s8.bf16 %v1464_v25  ;;  %v1864_v11 = vunpack.c.h.s8.bf16 %v1464_v25 }
 0x642   : > { %2601 = vmatpush1.bf16.msra.mxu0 %v1734_v31  ;;  %v1863_v31 = vunpack.c.h.s8.bf16 %v1463_v16 }
 0x643   : > { %2683 = vmatpush1.bf16.msra.mxu1 %v1736_v33  ;;  %2602 = vmatprep.subr.bf16.mxu0 %v1751_v34  ;;  %v1479_v33 = vld [vmem:[%s6232_s5 + $0x4e8] sm:$0xff]  ;;  %v1865_v34 = vunpack.c.h.s8.bf16 %v1465_v17 }
 0x644   : > { %2684 = vmatprep.subr.bf16.mxu1 %v1753_v35  ;;  %v1862_v35 = vunpack.c.h.s8.bf16 %v1462_v22  ;;  %v1895_v43 = vunpack.c.h.s8.bf16 %v1479_v33 }
 0x646   : > { %2603 = vmatpush1.bf16.msra.mxu0 %v1750_v36  ;;  %v1879_v36 = vunpack.c.l.s8.bf16 %v1479_v33 }
 0x647   : > { %2685 = vmatpush1.bf16.msra.mxu1 %v1752_v37  ;;  %2604 = vmatprep.subr.bf16.mxu0 %v1767_v38  ;;  %v1478_v37 = vld [vmem:[%s6232_s5 + $0x4e0] sm:$0xff]  ;;  %v1881_v38 = vunpack.c.l.s8.bf16 %v1481_v18 }
 0x648   : > { %2686 = vmatprep.subr.bf16.mxu1 %v1769_v45  ;;  %v1480_v45 = vld [vmem:[%s6232_s5 + $0x4f0] sm:$0xff]  ;;  %v1878_v41 = vunpack.c.l.s8.bf16 %v1478_v37  ;;  %v1894_v51 = vunpack.c.h.s8.bf16 %v1478_v37 }
 0x64a   : > { %2605 = vmatpush1.bf16.msra.mxu0 %v1766_v44  ;;  %v1897_v44 = vunpack.c.h.s8.bf16 %v1481_v18 }
 0x64b   : > { %2687 = vmatpush1.bf16.msra.mxu1 %v1768_v49  ;;  %2606 = vmatprep.subr.bf16.mxu0 %v1783_v50  ;;  %v1495_v49 = vld [vmem:[%s6232_s5 + $0x568] sm:$0xff]  ;;  %v1497_v50 = vld [vmem:[%s6232_s5 + $0x578] sm:$0xff] }
 0x64c   : > { %2688 = vmatprep.subr.bf16.mxu1 %v1785_v47  ;;  %v1896_v47 = vunpack.c.h.s8.bf16 %v1480_v45  ;;  %v1911_v52 = vunpack.c.l.s8.bf16 %v1495_v49  ;;  %v1927_v9 = vunpack.c.h.s8.bf16 %v1495_v49  ;;  %v1929_v12 = vunpack.c.h.s8.bf16 %v1497_v50 }
 0x64e   : > { %2607 = vmatpush1.bf16.msra.mxu0 %v1782_v61  ;;  %v1494_v61 = vld [vmem:[%s6232_s5 + $0x560] sm:$0xff] }
 0x64f   : > { %2689 = vmatpush1.bf16.msra.mxu1 %v1784_v53  ;;  %2608 = vmatprep.subr.bf16.mxu0 %v1799_v55  ;;  %v1913_v53 = vunpack.c.l.s8.bf16 %v1497_v50  ;;  %v1496_v55 = vld [vmem:[%s6232_s5 + $0x570] sm:$0xff]  ;;  %v1910_v1 = vunpack.c.l.s8.bf16 %v1494_v61  ;;  %v1926_v17 = vunpack.c.h.s8.bf16 %v1494_v61 }
 0x650   : > { %2690 = vmatprep.subr.bf16.mxu1 %v1801_v57 }
 0x652   : > { %2609 = vmatpush1.bf16.msra.mxu0 %v1798_v6  ;;  %v1912_v6 = vunpack.c.l.s8.bf16 %v1496_v55 }
 0x653   : > { %2691 = vmatpush1.bf16.msra.mxu1 %v1800_v7  ;;  %2610 = vmatprep.subr.bf16.mxu0 %v1815_v8 }
 0x654   : > { %2692 = vmatprep.subr.bf16.mxu1 %v1817_v10 }
 0x656   : > { %2611 = vmatpush1.bf16.msra.mxu0 %v1814_v58  ;;  %v1511_v58 = vld [vmem:[%s6232_s5 + $0x5e8] sm:$0xff] }
 0x657   : > { %2693 = vmatpush1.bf16.msra.mxu1 %v1816_v13  ;;  %2612 = vmatprep.subr.bf16.mxu0 %v1831_v14  ;;  %v1943_v22 = vunpack.c.l.s8.bf16 %v1511_v58  ;;  %v1959_v49 = vunpack.c.h.s8.bf16 %v1511_v58  ;;  %v1543_v58 = vld [vmem:[%s6232_s5 + $0x6e8] sm:$0xff] }
 0x658   : > { %2694 = vmatprep.subr.bf16.mxu1 %v1833_v15  ;;  %v1513_v15 = vld [vmem:[%s6232_s5 + $0x5f8] sm:$0xff] }
 0x65a   : > { %2613 = vmatpush1.bf16.msra.mxu0 %v1830_v19 }
 0x65b   : > { %2695 = vmatpush1.bf16.msra.mxu1 %v1832_v20  ;;  %2623 = vmatprep.subr.bf16.mxu0 %v1847_v21  ;;  %v1928_v21 = vunpack.c.h.s8.bf16 %v1496_v55 }
 0x65c   : > { %2705 = vmatprep.subr.bf16.mxu1 %v1849_v23  ;;  %v1510_v23 = vld [vmem:[%s6232_s5 + $0x5e0] sm:$0xff] }
 0x65d   : > { %2615 = vmatmul.mubr.bf16.vlgmr.msra.gmra.mrb[16].mxu0 %v6478_v0  ;;  %v1958_v55 = vunpack.c.h.s8.bf16 %v1510_v23 }
 0x65e   : > { %2697 = vmatmul.mubr.bf16.vlgmr.msra.gmra.mrb[16].mxu1 %v6478_v0  ;;  %2624 = vmatpush1.bf16.msra.mxu0 %v1846_v26  ;;  %v1880_v0 = vunpack.c.l.s8.bf16 %v1480_v45 }
 0x65f   : > { %2655 = vmatprep.mubr.bf16.mxu0 %v6488_v3  ;;  %2706 = vmatpush1.bf16.msra.mxu1 %v1848_v29  ;;  %v1945_v29 = vunpack.c.l.s8.bf16 %v1513_v15 }
 0x660   : > { %2737 = vmatprep.mubr.bf16.mxu1 %v6488_v3  ;;  %2625 = vmatprep.subr.bf16.mxu0 %v1863_v31  ;;  %v6766_v3 = vld [vmem:[%s6234_s3 + $0x8] sm:$0xff]  ;;  %v1512_v31 = vld [vmem:[%s6232_s5 + $0x5f0] sm:$0xff] }
 0x661   : > { %2707 = vmatprep.subr.bf16.mxu1 %v1865_v34  ;;  %v2769_v57 = vrot.slane %v6766_v3, %v6336_v59  ;;  %v2777_v2 = vrot.slane %v6766_v3, %v6653_v30  ;;  %v2929_v7 = vrot.slane %v6766_v3, %v6345_v62  ;;  %v2781_v8 = vrot.slane %v6766_v3, %v6656_v48 }
 0x662   : > { %2626 = vmatpush1.bf16.msra.mxu0 %v1862_v35  ;;  %v2937_v10 = vrot.slane %v6766_v3, %v6663_v4  ;;  %v2941_v14 = vrot.slane %v6766_v3, %v6666_v5 }
 0x663   : > { %2708 = vmatpush1.bf16.msra.mxu1 %v1864_v11  ;;  %2627 = vmatprep.subr.bf16.mxu0 %v1879_v36  ;;  %v2849_v13 = vrot.slane %v2769_v57, %v6336_v59  ;;  %v2857_v16 = vrot.slane %v2777_v2, %v6336_v59  ;;  %v3009_v19 = vrot.slane %v2929_v7, %v6345_v62  ;;  %v1960_v57 = vunpack.c.h.s8.bf16 %v1512_v31  ;;  %v1526_v2 = vld [vmem:[%s6232_s5 + $0x660] sm:$0xff]  ;;  %v1528_v7 = vld [vmem:[%s6232_s5 + $0x670] sm:$0xff] }
 0x664   : > { %2709 = vmatprep.subr.bf16.mxu1 %v1881_v38  ;;  %v2861_v20 = vrot.slane %v2781_v8, %v6336_v59  ;;  %v3017_v26 = vrot.slane %v2937_v10, %v6345_v62  ;;  %v3021_v35 = vrot.slane %v2941_v14, %v6345_v62  ;;  %v1942_v38 = vunpack.c.l.s8.bf16 %v1510_v23 }
 0x665   : > { %v1974_v8 = vunpack.c.l.s8.bf16 %v1526_v2  ;;  %v1990_v14 = vunpack.c.h.s8.bf16 %v1526_v2  ;;  %v2023_v23 = vunpack.c.h.s8.bf16 %v1543_v58  ;;  %v1576_v2 = vld [vmem:[%s6232_s5 + $0x7f0] sm:$0xff] }
 0x666   : > { %2628 = vmatpush1.bf16.msra.mxu0 %v1878_v41 }
 0x667   : > { %2710 = vmatpush1.bf16.msra.mxu1 %v1880_v0  ;;  %2629 = vmatprep.subr.bf16.mxu0 %v1895_v43 }
 0x668   : > { %2711 = vmatprep.subr.bf16.mxu1 %v1897_v44  ;;  %v1944_v44 = vunpack.c.l.s8.bf16 %v1512_v31 }
 0x66a   : > { %2630 = vmatpush1.bf16.msra.mxu0 %v1894_v51 }
 0x66b   : > { %2712 = vmatpush1.bf16.msra.mxu1 %v1896_v47  ;;  %2631 = vmatprep.subr.bf16.mxu0 %v1911_v52  ;;  %v1961_v47 = vunpack.c.h.s8.bf16 %v1513_v15  ;;  %v1527_v52 = vld [vmem:[%s6232_s5 + $0x668] sm:$0xff]  ;;  %v1992_v15 = vunpack.c.h.s8.bf16 %v1528_v7 }
 0x66c   : > { %2713 = vmatprep.subr.bf16.mxu1 %v1913_v53  ;;  %v1529_v53 = vld [vmem:[%s6232_s5 + $0x678] sm:$0xff]  ;;  %v1991_v10 = vunpack.c.h.s8.bf16 %v1527_v52 }
 0x66e   : > { %2632 = vmatpush1.bf16.msra.mxu0 %v1910_v1  ;;  %v1975_v1 = vunpack.c.l.s8.bf16 %v1527_v52 }
 0x66f   : > { %2714 = vmatpush1.bf16.msra.mxu1 %v1912_v6  ;;  %2633 = vmatprep.subr.bf16.mxu0 %v1927_v9  ;;  %v1977_v6 = vunpack.c.l.s8.bf16 %v1529_v53  ;;  %v1976_v9 = vunpack.c.l.s8.bf16 %v1528_v7 }
 0x670   : > { %v2329_v25 = vpop.f32.mrb[8].mxu0  ;;  %2715 = vmatprep.subr.bf16.mxu1 %v1929_v12  ;;  %v1993_v12 = vunpack.c.h.s8.bf16 %v1529_v53 }
 0x671   : > { %v2898_v33 = vmul.f32 %v2849_v13, %v2329_v25  ;;  %v2411_v34 = vpop.f32.mrb[8].mxu1  ;;  %v6791_v18 = vpop.f32.mrb[9].mxu0  ;;  %v1545_v13 = vld [vmem:[%s6232_s5 + $0x6f8] sm:$0xff] }
 0x672   : > { %v2900_v11 = vmul.f32 %v2857_v16, %v2411_v34  ;;  %v2413_v36 = vpop.f32.mrb[9].mxu1  ;;  %v2333_v37 = vpop.f32.mrb[10].mxu0  ;;  %2634 = vmatpush1.bf16.msra.mxu0 %v1926_v17  ;;  %v2007_v16 = vunpack.c.l.s8.bf16 %v1543_v58  ;;  %v1542_v17 = vld [vmem:[%s6232_s5 + $0x6e0] sm:$0xff]  ;;  %v2025_v25 = vunpack.c.h.s8.bf16 %v1545_v13 }
 0x673   : > { %v6794_v45 = vadd.f32 %v3009_v19, %v2898_v33  ;;  %v2901_v41 = vmul.f32 %v2861_v20, %v2413_v36  ;;  %v2415_v0 = vpop.f32.mrb[10].mxu1  ;;  %2716 = vmatpush1.bf16.msra.mxu1 %v1928_v21  ;;  %v2334_v43 = vpop.f32.mrb[11].mxu0  ;;  %2635 = vmatprep.subr.bf16.mxu0 %v1943_v22  ;;  %v2009_v19 = vunpack.c.l.s8.bf16 %v1545_v13  ;;  %v1544_v20 = vld [vmem:[%s6232_s5 + $0x6f0] sm:$0xff]  ;;  %v2006_v21 = vunpack.c.l.s8.bf16 %v1542_v17  ;;  %v3105_v13 = vld [vmem:[%s6240_s14 + $0x18] sm:$0xff] }
 0x674   : > { %v6796_v50 = vadd.f32 %v3017_v26, %v2900_v11  ;;  %v2416_v51 = vpop.f32.mrb[11].mxu1  ;;  %2717 = vmatprep.subr.bf16.mxu1 %v1945_v29  ;;  %v2008_v22 = vunpack.c.l.s8.bf16 %v1544_v20  ;;  %v1559_v26 = vld [vmem:[%s6232_s5 + $0x768] sm:$0xff]  ;;  %v1561_v29 = vld [vmem:[%s6232_s5 + $0x778] sm:$0xff]  ;;  %v2022_v31 = vunpack.c.h.s8.bf16 %v1542_v17  ;;  %v2024_v33 = vunpack.c.h.s8.bf16 %v1544_v20  ;;  %v1560_v36 = vld [vmem:[%s6232_s5 + $0x770] sm:$0xff] }
 0x675   : > { %v6799_v61 = vadd.f32 %v3021_v35, %v2901_v41  ;;  %v2039_v34 = vunpack.c.l.s8.bf16 %v1559_v26  ;;  %v1558_v35 = vld [vmem:[%s6232_s5 + $0x760] sm:$0xff]  ;;  %v2041_v11 = vunpack.c.l.s8.bf16 %v1561_v29  ;;  %v2757_v37 = vrot.slane %v6659_v56, %v6442_v40 }
 0x676   : > { %2636 = vmatpush1.bf16.msra.mxu0 %v1942_v38  ;;  %v2038_v38 = vunpack.c.l.s8.bf16 %v1558_v35  ;;  %v2040_v41 = vunpack.c.l.s8.bf16 %v1560_v36  ;;  %v2055_v0 = vunpack.c.h.s8.bf16 %v1559_v26  ;;  %v2057_v43 = vunpack.c.h.s8.bf16 %v1561_v29 }
 0x677   : > { %2718 = vmatpush1.bf16.msra.mxu1 %v1944_v44  ;;  %2637 = vmatprep.subr.bf16.mxu0 %v1959_v49  ;;  %v1575_v44 = vld [vmem:[%s6232_s5 + $0x7e8] sm:$0xff]  ;;  %v2837_v49 = vrot.slane %v2757_v37, %v6336_v59  ;;  %v2917_v51 = vrot.slane %v6659_v56, %v6439_v39  ;;  %v2054_v52 = vunpack.c.h.s8.bf16 %v1558_v35  ;;  %v2056_v53 = vunpack.c.h.s8.bf16 %v1560_v36  ;;  %v3108_v37 = vld [vmem:[%s6240_s14 + $0x30] sm:$0xff] }
 0x678   : > { %2719 = vmatprep.subr.bf16.mxu1 %v1961_v47  ;;  %v1577_v47 = vld [vmem:[%s6232_s5 + $0x7f8] sm:$0xff]  ;;  %v2072_v56 = vunpack.c.l.s8.bf16 %v1576_v2  ;;  %v3361_v17 = vunpack.c.l.s8.bf16 %v3105_v13  ;;  %v3365_v29 = vunpack.c.h.s8.bf16 %v3105_v13  ;;  %v3116_v13 = vld [vmem:[%s6240_s14 + $0x70] sm:$0xff] }
 0x679   : > { %v2997_v7 = vrot.slane %v2917_v51, %v6345_v62  ;;  %v3372_v51 = vunpack.c.h.s8.bf16 %v3108_v37 }
 0x67a   : > { %2638 = vmatpush1.bf16.msra.mxu0 %v1958_v55  ;;  %v2071_v55 = vunpack.c.l.s8.bf16 %v1575_v44 }
 0x67b   : > { %2720 = vmatpush1.bf16.msra.mxu1 %v1960_v57  ;;  %2639 = vmatprep.subr.bf16.mxu0 %v1975_v1  ;;  %v1574_v57 = vld [vmem:[%s6232_s5 + $0x7e0] sm:$0xff]  ;;  %v2073_v1 = vunpack.c.l.s8.bf16 %v1577_v47 }
 0x67c   : > { %2721 = vmatprep.subr.bf16.mxu1 %v1977_v6  ;;  %v2895_v6 = vmul.f32 %v2837_v49, %v6691_v42  ;;  %v2088_v42 = vunpack.c.h.s8.bf16 %v1576_v2 }
 0x67e   : > { %2640 = vmatpush1.bf16.msra.mxu0 %v1974_v8  ;;  %v2070_v8 = vunpack.c.l.s8.bf16 %v1574_v57  ;;  %v3055_v58 = vadd.f32 %v2997_v7, %v2895_v6  ;;  %v3115_v7 = vld [vmem:[%s6240_s14 + $0x68] sm:$0xff] }
 0x67f   : > { %2722 = vmatpush1.bf16.msra.mxu1 %v1976_v9  ;;  %2641 = vmatprep.subr.bf16.mxu0 %v1991_v10  ;;  %v2087_v9 = vunpack.c.h.s8.bf16 %v1575_v44  ;;  %v2089_v10 = vunpack.c.h.s8.bf16 %v1577_v47  ;;  %v3113_v44 = vld [vmem:[%s6240_s14 + $0x58] sm:$0xff] }
 0x680   : > { %2723 = vmatprep.subr.bf16.mxu1 %v1993_v12  ;;  %v3103_v12 = vld [vmem:[%s6240_s14 + $0x8] sm:$0xff]  ;;  %v3071_v20 = vmax.f32 %v3055_v58, 0.0  ;;  %v3381_v6 = vunpack.c.h.s8.bf16 %v3113_v44 }
 0x682   : > { %2642 = vmatpush1.bf16.msra.mxu0 %v1990_v14  ;;  %v2086_v14 = vunpack.c.h.s8.bf16 %v1574_v57  ;;  %v3087_v26 = vpack.c.bf16 %v3071_v20, %v3071_v20 }
 0x683   : > { %2724 = vmatpush1.bf16.msra.mxu1 %v1992_v15  ;;  %2643 = vmatprep.subr.bf16.mxu0 %v2007_v16  ;;  %v3359_v15 = vunpack.c.l.s8.bf16 %v3103_v12  ;;  %v3102_v16 = vld [vmem:[%s6240_s14] sm:$0xff] }
 0x684   : > { %2725 = vmatprep.subr.bf16.mxu1 %v2009_v19  ;;  %v3104_v19 = vld [vmem:[%s6240_s14 + $0x10] sm:$0xff] }
 0x686   : > { %2644 = vmatpush1.bf16.msra.mxu0 %v2006_v21  ;;  %v3358_v21 = vunpack.c.l.s8.bf16 %v3102_v16 }
 0x687   : > { %2726 = vmatpush1.bf16.msra.mxu1 %v2008_v22  ;;  %2645 = vmatprep.subr.bf16.mxu0 %v2023_v23  ;;  %v3360_v22 = vunpack.c.l.s8.bf16 %v3104_v19  ;;  %v3363_v23 = vunpack.c.h.s8.bf16 %v3103_v12  ;;  %v3114_v12 = vld [vmem:[%s6240_s14 + $0x60] sm:$0xff] }
 0x688   : > { %2727 = vmatprep.subr.bf16.mxu1 %v2025_v25  ;;  %v3107_v25 = vld [vmem:[%s6240_s14 + $0x28] sm:$0xff]  ;;  %v3386_v20 = vunpack.c.h.s8.bf16 %v3114_v12 }
 0x689   : > { %v3367_v35 = vunpack.c.l.s8.bf16 %v3107_v25 }
 0x68a   : > { %2646 = vmatpush1.bf16.msra.mxu0 %v2022_v31  ;;  %v3109_v31 = vld [vmem:[%s6240_s14 + $0x38] sm:$0xff] }
 0x68b   : > { %2728 = vmatpush1.bf16.msra.mxu1 %v2024_v33  ;;  %2647 = vmatprep.subr.bf16.mxu0 %v2039_v34  ;;  %v3362_v33 = vunpack.c.h.s8.bf16 %v3102_v16  ;;  %v3364_v34 = vunpack.c.h.s8.bf16 %v3104_v19  ;;  %v3369_v36 = vunpack.c.l.s8.bf16 %v3109_v31  ;;  %v3121_v19 = vld [vmem:[%s6240_s14 + $0x98] sm:$0xff] }
 0x68c   : > { %2729 = vmatprep.subr.bf16.mxu1 %v2041_v11  ;;  %v3106_v11 = vld [vmem:[%s6240_s14 + $0x20] sm:$0xff] }
 0x68d   : > { %v3370_v49 = vunpack.c.h.s8.bf16 %v3106_v11 }
 0x68e   : > { %2648 = vmatpush1.bf16.msra.mxu0 %v2038_v38  ;;  %v3366_v38 = vunpack.c.l.s8.bf16 %v3106_v11  ;;  %v3125_v11 = vld [vmem:[%s6240_s14 + $0xb8] sm:$0xff] }
 0x68f   : > { %2730 = vmatpush1.bf16.msra.mxu1 %v2040_v41  ;;  %2649 = vmatprep.subr.bf16.mxu0 %v2055_v0  ;;  %v3371_v41 = vunpack.c.h.s8.bf16 %v3107_v25  ;;  %v3373_v0 = vunpack.c.h.s8.bf16 %v3109_v31  ;;  %v3393_v25 = vunpack.c.l.s8.bf16 %v3121_v19 }
 0x690   : > { %2731 = vmatprep.subr.bf16.mxu1 %v2057_v43  ;;  %v3111_v43 = vld [vmem:[%s6240_s14 + $0x48] sm:$0xff] }
 0x691   : > { %v3375_v47 = vunpack.c.l.s8.bf16 %v3111_v43  ;;  %v3379_v2 = vunpack.c.h.s8.bf16 %v3111_v43 }
 0x692   : > { %2650 = vmatpush1.bf16.msra.mxu0 %v2054_v52  ;;  %v3110_v52 = vld [vmem:[%s6240_s14 + $0x40] sm:$0xff] }
 0x693   : > { %2732 = vmatpush1.bf16.msra.mxu1 %v2056_v53  ;;  %2651 = vmatprep.subr.bf16.mxu0 %v2071_v55  ;;  %v3377_v53 = vunpack.c.l.s8.bf16 %v3113_v44  ;;  %v3112_v55 = vld [vmem:[%s6240_s14 + $0x50] sm:$0xff]  ;;  %v3374_v57 = vunpack.c.l.s8.bf16 %v3110_v52 }
 0x694   : > { %2733 = vmatprep.subr.bf16.mxu1 %v2073_v1  ;;  %v3376_v1 = vunpack.c.l.s8.bf16 %v3112_v55 }
 0x696   : > { %2652 = vmatpush1.bf16.msra.mxu0 %v2070_v8  ;;  %v3117_v8 = vld [vmem:[%s6240_s14 + $0x78] sm:$0xff] }
 0x697   : > { %2734 = vmatpush1.bf16.msra.mxu1 %v2072_v56  ;;  %2653 = vmatprep.subr.bf16.mxu0 %v2087_v9  ;;  %v3378_v56 = vunpack.c.h.s8.bf16 %v3110_v52  ;;  %v3380_v9 = vunpack.c.h.s8.bf16 %v3112_v55  ;;  %v3385_v58 = vunpack.c.l.s8.bf16 %v3117_v8  ;;  %v3389_v16 = vunpack.c.h.s8.bf16 %v3117_v8  ;;  %v3129_v52 = vld [vmem:[%s6240_s14 + $0xd8] sm:$0xff] }
 0x698   : > { %2735 = vmatprep.subr.bf16.mxu1 %v2089_v10  ;;  %v3383_v10 = vunpack.c.l.s8.bf16 %v3115_v7 }
 0x69a   : > { %2654 = vmatpush1.bf16.msra.mxu0 %v2086_v14  ;;  %v3382_v14 = vunpack.c.l.s8.bf16 %v3114_v12  ;;  %v3133_v12 = vld [vmem:[%s6240_s14 + $0xf8] sm:$0xff] }
 0x69b   : > { %2736 = vmatpush1.bf16.msra.mxu1 %v2088_v42  ;;  %3870 = vmatprep.subr.bf16.mxu0 %v3359_v15  ;;  %v3384_v42 = vunpack.c.l.s8.bf16 %v3116_v13  ;;  %v3387_v15 = vunpack.c.h.s8.bf16 %v3115_v7 }
 0x69c   : > { %4198 = vmatprep.subr.bf16.mxu1 %v3361_v17  ;;  %v3119_v17 = vld [vmem:[%s6240_s14 + $0x88] sm:$0xff] }
 0x69d   : > { %2656 = vmatmul.mubr.bf16.vlgmr.msra.gmra.mrb[16].mxu0 %v6532_v32 }
 0x69e   : > { %2738 = vmatmul.mubr.bf16.vlgmr.msra.gmra.mrb[16].mxu1 %v6532_v32  ;;  %3871 = vmatpush1.bf16.msra.mxu0 %v3358_v21  ;;  %v3368_v32 = vunpack.c.l.s8.bf16 %v3108_v37  ;;  %v3388_v21 = vunpack.c.h.s8.bf16 %v3116_v13 }
 0x69f   : > { %3902 = vmatprep.mubr.bf16.mxu0 %v3087_v26  ;;  %4199 = vmatpush1.bf16.msra.mxu1 %v3360_v22  ;;  %v3391_v22 = vunpack.c.l.s8.bf16 %v3119_v17 }
 0x6a0   : > { %4230 = vmatprep.mubr.bf16.mxu1 %v3087_v26  ;;  %3872 = vmatprep.subr.bf16.mxu0 %v3363_v23  ;;  %v3118_v23 = vld [vmem:[%s6240_s14 + $0x80] sm:$0xff]  ;;  %v3120_v26 = vld [vmem:[%s6240_s14 + $0x90] sm:$0xff] }
 0x6a1   : > { %4200 = vmatprep.subr.bf16.mxu1 %v3365_v29  ;;  %v3390_v29 = vunpack.c.l.s8.bf16 %v3118_v23  ;;  %v3392_v31 = vunpack.c.l.s8.bf16 %v3120_v26  ;;  %v3396_v37 = vunpack.c.h.s8.bf16 %v3120_v26  ;;  %v3070_v26 = vmax.f32 %v6693_v27, 0.0 }
 0x6a2   : > { %3873 = vmatpush1.bf16.msra.mxu0 %v3362_v33  ;;  %v3395_v33 = vunpack.c.h.s8.bf16 %v3119_v17 }
 0x6a3   : > { %4201 = vmatpush1.bf16.msra.mxu1 %v3364_v34  ;;  %3874 = vmatprep.subr.bf16.mxu0 %v3367_v35  ;;  %v3397_v34 = vunpack.c.h.s8.bf16 %v3121_v19  ;;  %v3123_v35 = vld [vmem:[%s6240_s14 + $0xa8] sm:$0xff] }
 0x6a4   : > { %4202 = vmatprep.subr.bf16.mxu1 %v3369_v36  ;;  %v3394_v36 = vunpack.c.h.s8.bf16 %v3118_v23  ;;  %v3137_v23 = vld [vmem:[%s6240_s14 + $0x118] sm:$0xff] }
 0x6a6   : > { %3875 = vmatpush1.bf16.msra.mxu0 %v3366_v38  ;;  %v3399_v38 = vunpack.c.l.s8.bf16 %v3123_v35 }
 0x6a7   : > { %4203 = vmatpush1.bf16.msra.mxu1 %v3368_v32  ;;  %3876 = vmatprep.subr.bf16.mxu0 %v3371_v41  ;;  %v3122_v32 = vld [vmem:[%s6240_s14 + $0xa0] sm:$0xff]  ;;  %v3401_v41 = vunpack.c.l.s8.bf16 %v3125_v11 }
 0x6a8   : > { %4204 = vmatprep.subr.bf16.mxu1 %v3373_v0  ;;  %v3124_v0 = vld [vmem:[%s6240_s14 + $0xb0] sm:$0xff]  ;;  %v3398_v43 = vunpack.c.l.s8.bf16 %v3122_v32 }
 0x6a9   : > { %v3400_v44 = vunpack.c.l.s8.bf16 %v3124_v0  ;;  %v3404_v55 = vunpack.c.h.s8.bf16 %v3124_v0  ;;  %v3429_v0 = vunpack.c.h.s8.bf16 %v3137_v23 }
 0x6aa   : > { %3877 = vmatpush1.bf16.msra.mxu0 %v3370_v49  ;;  %v3403_v49 = vunpack.c.h.s8.bf16 %v3123_v35  ;;  %v3136_v35 = vld [vmem:[%s6240_s14 + $0x110] sm:$0xff] }
 0x6ab   : > { %4205 = vmatpush1.bf16.msra.mxu1 %v3372_v51  ;;  %3878 = vmatprep.subr.bf16.mxu0 %v3375_v47  ;;  %v3405_v51 = vunpack.c.h.s8.bf16 %v3125_v11  ;;  %v3127_v47 = vld [vmem:[%s6240_s14 + $0xc8] sm:$0xff]  ;;  %v3073_v11 = vmax.f32 %v6697_v60, 0.0  ;;  %v3428_v60 = vunpack.c.h.s8.bf16 %v3136_v35 }
 0x6ac   : > { %4206 = vmatprep.subr.bf16.mxu1 %v3377_v53  ;;  %v3402_v53 = vunpack.c.h.s8.bf16 %v3122_v32  ;;  %v3139_v32 = vld [vmem:[%s6240_s14 + $0x128] sm:$0xff] }
 0x6ae   : > { %3879 = vmatpush1.bf16.msra.mxu0 %v3374_v57  ;;  %v3407_v57 = vunpack.c.l.s8.bf16 %v3127_v47 }
 0x6af   : > { %4207 = vmatpush1.bf16.msra.mxu1 %v3376_v1  ;;  %3880 = vmatprep.subr.bf16.mxu0 %v3379_v2  ;;  %v3126_v1 = vld [vmem:[%s6240_s14 + $0xc0] sm:$0xff]  ;;  %v3409_v2 = vunpack.c.l.s8.bf16 %v3129_v52 }
 0x6b0   : > { %4208 = vmatprep.subr.bf16.mxu1 %v3381_v6  ;;  %v3128_v6 = vld [vmem:[%s6240_s14 + $0xd0] sm:$0xff]  ;;  %v3406_v7 = vunpack.c.l.s8.bf16 %v3126_v1 }
 0x6b1   : > { %v3408_v8 = vunpack.c.l.s8.bf16 %v3128_v6  ;;  %v3412_v13 = vunpack.c.h.s8.bf16 %v3128_v6  ;;  %v3145_v6 = vld [vmem:[%s6240_s14 + $0x158] sm:$0xff] }
 0x6b2   : > { %3881 = vmatpush1.bf16.msra.mxu0 %v3378_v56  ;;  %v3411_v56 = vunpack.c.h.s8.bf16 %v3127_v47 }
 0x6b3   : > { %4209 = vmatpush1.bf16.msra.mxu1 %v3380_v9  ;;  %3882 = vmatprep.subr.bf16.mxu0 %v3383_v10  ;;  %v3413_v9 = vunpack.c.h.s8.bf16 %v3129_v52  ;;  %v3131_v10 = vld [vmem:[%s6240_s14 + $0xe8] sm:$0xff]  ;;  %v3140_v52 = vld [vmem:[%s6240_s14 + $0x130] sm:$0xff] }
 0x6b4   : > { %4210 = vmatprep.subr.bf16.mxu1 %v3385_v58  ;;  %v3410_v58 = vunpack.c.h.s8.bf16 %v3126_v1 }
 0x6b6   : > { %3883 = vmatpush1.bf16.msra.mxu0 %v3382_v14  ;;  %v3415_v14 = vunpack.c.l.s8.bf16 %v3131_v10 }
 0x6b7   : > { %4211 = vmatpush1.bf16.msra.mxu1 %v3384_v42  ;;  %3884 = vmatprep.subr.bf16.mxu0 %v3387_v15  ;;  %v3130_v42 = vld [vmem:[%s6240_s14 + $0xe0] sm:$0xff]  ;;  %v3417_v15 = vunpack.c.l.s8.bf16 %v3133_v12 }
 0x6b8   : > { %4212 = vmatprep.subr.bf16.mxu1 %v3389_v16  ;;  %v3132_v16 = vld [vmem:[%s6240_s14 + $0xf0] sm:$0xff]  ;;  %v3414_v17 = vunpack.c.l.s8.bf16 %v3130_v42 }
 0x6b9   : > { %v3416_v19 = vunpack.c.l.s8.bf16 %v3132_v16 }
 0x6ba   : > { %3885 = vmatpush1.bf16.msra.mxu0 %v3386_v20  ;;  %v3419_v20 = vunpack.c.h.s8.bf16 %v3131_v10  ;;  %v3142_v10 = vld [vmem:[%s6240_s14 + $0x140] sm:$0xff] }
 0x6bb   : > { %4213 = vmatpush1.bf16.msra.mxu1 %v3388_v21  ;;  %3886 = vmatprep.subr.bf16.mxu0 %v3391_v22  ;;  %v3421_v21 = vunpack.c.h.s8.bf16 %v3133_v12  ;;  %v3135_v22 = vld [vmem:[%s6240_s14 + $0x108] sm:$0xff]  ;;  %v3441_v12 = vunpack.c.l.s8.bf16 %v3145_v6 }
 0x6bc   : > { %4214 = vmatprep.subr.bf16.mxu1 %v3393_v25  ;;  %v3418_v25 = vunpack.c.h.s8.bf16 %v3130_v42  ;;  %v3427_v27 = vunpack.c.h.s8.bf16 %v3135_v22 }
 0x6be   : > { %3887 = vmatpush1.bf16.msra.mxu0 %v3390_v29  ;;  %v3420_v29 = vunpack.c.h.s8.bf16 %v3132_v16 }
 0x6bf   : > { %4215 = vmatpush1.bf16.msra.mxu1 %v3392_v31  ;;  %3888 = vmatprep.subr.bf16.mxu0 %v3395_v33  ;;  %v3423_v31 = vunpack.c.l.s8.bf16 %v3135_v22  ;;  %v3134_v33 = vld [vmem:[%s6240_s14 + $0x100] sm:$0xff]  ;;  %v3147_v22 = vld [vmem:[%s6240_s14 + $0x168] sm:$0xff] }
 0x6c0   : > { %4216 = vmatprep.subr.bf16.mxu1 %v3397_v34  ;;  %v3425_v34 = vunpack.c.l.s8.bf16 %v3137_v23 }
 0x6c2   : > { %3889 = vmatpush1.bf16.msra.mxu0 %v3394_v36  ;;  %v3422_v36 = vunpack.c.l.s8.bf16 %v3134_v33 }
 0x6c3   : > { %4217 = vmatpush1.bf16.msra.mxu1 %v3396_v37  ;;  %3890 = vmatprep.subr.bf16.mxu0 %v3399_v38  ;;  %v3086_v37 = vpack.c.bf16 %v3070_v26, %v3070_v26  ;;  %v3424_v38 = vunpack.c.l.s8.bf16 %v3136_v35  ;;  %v3149_v26 = vld [vmem:[%s6240_s14 + $0x178] sm:$0xff] }
 0x6c4   : > { %4218 = vmatprep.subr.bf16.mxu1 %v3401_v41  ;;  %v3089_v41 = vpack.c.bf16 %v3073_v11, %v3073_v11  ;;  %v3447_v11 = vunpack.c.l.s8.bf16 %v3147_v22 }
 0x6c6   : > { %3891 = vmatpush1.bf16.msra.mxu0 %v3398_v43  ;;  %v3141_v43 = vld [vmem:[%s6240_s14 + $0x138] sm:$0xff] }
 0x6c7   : > { %4219 = vmatpush1.bf16.msra.mxu1 %v3400_v44  ;;  %3892 = vmatprep.subr.bf16.mxu0 %v3403_v49  ;;  %v3426_v44 = vunpack.c.h.s8.bf16 %v3134_v33  ;;  %v3431_v49 = vunpack.c.l.s8.bf16 %v3139_v32  ;;  %v3433_v47 = vunpack.c.l.s8.bf16 %v3141_v43  ;;  %v3437_v1 = vunpack.c.h.s8.bf16 %v3141_v43 }
 0x6c8   : > { %4220 = vmatprep.subr.bf16.mxu1 %v3405_v51  ;;  %v3138_v51 = vld [vmem:[%s6240_s14 + $0x120] sm:$0xff] }
 0x6ca   : > { %3893 = vmatpush1.bf16.msra.mxu0 %v3402_v53  ;;  %v3430_v53 = vunpack.c.l.s8.bf16 %v3138_v51 }
 0x6cb   : > { %4221 = vmatpush1.bf16.msra.mxu1 %v3404_v55  ;;  %3894 = vmatprep.subr.bf16.mxu0 %v3407_v57  ;;  %v3432_v55 = vunpack.c.l.s8.bf16 %v3140_v52  ;;  %v3435_v57 = vunpack.c.h.s8.bf16 %v3139_v32  ;;  %v3148_v32 = vld [vmem:[%s6240_s14 + $0x170] sm:$0xff] }
 0x6cc   : > { %4222 = vmatprep.subr.bf16.mxu1 %v3409_v2  ;;  %v3143_v2 = vld [vmem:[%s6240_s14 + $0x148] sm:$0xff] }
 0x6ce   : > { %3895 = vmatpush1.bf16.msra.mxu0 %v3406_v7  ;;  %v3434_v7 = vunpack.c.h.s8.bf16 %v3138_v51 }
 0x6cf   : > { %4223 = vmatpush1.bf16.msra.mxu1 %v3408_v8  ;;  %3896 = vmatprep.subr.bf16.mxu0 %v3411_v56  ;;  %v6870_v8 = vld [vmem:[%s6234_s3 + $0x10] sm:$0xff]  ;;  %v3436_v56 = vunpack.c.h.s8.bf16 %v3140_v52 }
 0x6d0   : > { %4224 = vmatprep.subr.bf16.mxu1 %v3413_v9  ;;  %v3439_v9 = vunpack.c.l.s8.bf16 %v3143_v2  ;;  %v2793_v42 = vrot.slane %v6870_v8, %v6653_v30  ;;  %v2945_v16 = vrot.slane %v6870_v8, %v6345_v62 }
 0x6d2   : > { %3897 = vmatpush1.bf16.msra.mxu0 %v3410_v58  ;;  %v3144_v58 = vld [vmem:[%s6240_s14 + $0x150] sm:$0xff]  ;;  %v3025_v33 = vrot.slane %v2945_v16, %v6345_v62 }
 0x6d3   : > { %4225 = vmatpush1.bf16.msra.mxu1 %v3412_v13  ;;  %3898 = vmatprep.subr.bf16.mxu0 %v3415_v14  ;;  %v2785_v13 = vrot.slane %v6870_v8, %v6336_v59  ;;  %v3438_v14 = vunpack.c.l.s8.bf16 %v3142_v10  ;;  %v3444_v35 = vunpack.c.h.s8.bf16 %v3144_v58  ;;  %v3152_v16 = vld [vmem:[%s6240_s14 + $0x190] sm:$0xff] }
 0x6d4   : > { %4226 = vmatprep.subr.bf16.mxu1 %v3417_v15  ;;  %v3440_v15 = vunpack.c.l.s8.bf16 %v3144_v58 }
 0x6d5   : > { %v2865_v23 = vrot.slane %v2785_v13, %v6336_v59  ;;  %v3452_v13 = vunpack.c.h.s8.bf16 %v3148_v32 }
 0x6d6   : > { %3899 = vmatpush1.bf16.msra.mxu0 %v3414_v17  ;;  %v2797_v17 = vrot.slane %v6870_v8, %v6656_v48 }
 0x6d7   : > { %4227 = vmatpush1.bf16.msra.mxu1 %v3416_v19  ;;  %3900 = vmatprep.subr.bf16.mxu0 %v3419_v20  ;;  %v3443_v19 = vunpack.c.h.s8.bf16 %v3143_v2  ;;  %v2953_v20 = vrot.slane %v6870_v8, %v6663_v4  ;;  %v3451_v2 = vunpack.c.h.s8.bf16 %v3147_v22  ;;  %v3155_v22 = vld [vmem:[%s6240_s14 + $0x1a8] sm:$0xff] }
 0x6d8   : > { %4228 = vmatprep.subr.bf16.mxu1 %v3421_v21  ;;  %v3445_v21 = vunpack.c.h.s8.bf16 %v3145_v6 }
 0x6da   : > { %3901 = vmatpush1.bf16.msra.mxu0 %v3418_v25  ;;  %v2957_v25 = vrot.slane %v6870_v8, %v6666_v5 }
 0x6db   : > { %4229 = vmatpush1.bf16.msra.mxu1 %v3420_v29  ;;  %3911 = vmatprep.subr.bf16.mxu0 %v3423_v31  ;;  %v2873_v29 = vrot.slane %v2793_v42, %v6336_v59  ;;  %v3442_v31 = vunpack.c.h.s8.bf16 %v3142_v10  ;;  %v3150_v42 = vld [vmem:[%s6240_s14 + $0x180] sm:$0xff] }
 0x6dc   : > { %4239 = vmatprep.subr.bf16.mxu1 %v3425_v34  ;;  %v2877_v34 = vrot.slane %v2797_v17, %v6336_v59  ;;  %v3454_v17 = vunpack.c.l.s8.bf16 %v3150_v42 }
 0x6dd   : > { %3903 = vmatmul.mubr.bf16.vlgmr.msra.gmra.mrb[20].mxu0 %v3086_v37 }
 0x6de   : > { %4231 = vmatmul.mubr.bf16.vlgmr.msra.gmra.mrb[20].mxu1 %v3086_v37  ;;  %3912 = vmatpush1.bf16.msra.mxu0 %v3422_v36  ;;  %v3146_v36 = vld [vmem:[%s6240_s14 + $0x160] sm:$0xff] }
 0x6df   : > { %3943 = vmatprep.mubr.bf16.mxu0 %v3089_v41  ;;  %4240 = vmatpush1.bf16.msra.mxu1 %v3424_v38  ;;  %v3033_v38 = vrot.slane %v2953_v20, %v6345_v62  ;;  %v3450_v58 = vunpack.c.h.s8.bf16 %v3146_v36 }
 0x6e0   : > { %4271 = vmatprep.mubr.bf16.mxu1 %v3089_v41  ;;  %3913 = vmatprep.subr.bf16.mxu0 %v3427_v27  ;;  %v3449_v27 = vunpack.c.l.s8.bf16 %v3149_v26 }
 0x6e1   : > { %4241 = vmatprep.subr.bf16.mxu1 %v3429_v0 }
 0x6e2   : > { %3914 = vmatpush1.bf16.msra.mxu0 %v3426_v44  ;;  %v3037_v44 = vrot.slane %v2957_v25, %v6345_v62  ;;  %v3458_v25 = vunpack.c.h.s8.bf16 %v3150_v42  ;;  %v3164_v42 = vld [vmem:[%s6240_s14 + $0x1f0] sm:$0xff] }
 0x6e3   : > { %4242 = vmatpush1.bf16.msra.mxu1 %v3428_v60  ;;  %3915 = vmatprep.subr.bf16.mxu0 %v3431_v49 }
 0x6e4   : > { %4243 = vmatprep.subr.bf16.mxu1 %v3433_v47  ;;  %v3446_v47 = vunpack.c.l.s8.bf16 %v3146_v36  ;;  %v3467_v36 = vunpack.c.h.s8.bf16 %v3155_v22 }
 0x6e6   : > { %3916 = vmatpush1.bf16.msra.mxu0 %v3430_v53 }
 0x6e7   : > { %4244 = vmatpush1.bf16.msra.mxu1 %v3432_v55  ;;  %3917 = vmatprep.subr.bf16.mxu0 %v3435_v57 }
 0x6e8   : > { %4245 = vmatprep.subr.bf16.mxu1 %v3437_v1  ;;  %v3448_v1 = vunpack.c.l.s8.bf16 %v3148_v32 }
 0x6ea   : > { %3918 = vmatpush1.bf16.msra.mxu0 %v3434_v7 }
 0x6eb   : > { %4246 = vmatpush1.bf16.msra.mxu1 %v3436_v56  ;;  %3919 = vmatprep.subr.bf16.mxu0 %v3439_v9  ;;  %v3453_v56 = vunpack.c.h.s8.bf16 %v3149_v26  ;;  %v3151_v9 = vld [vmem:[%s6240_s14 + $0x188] sm:$0xff]  ;;  %v3460_v26 = vunpack.c.h.s8.bf16 %v3152_v16 }
 0x6ec   : > { %4247 = vmatprep.subr.bf16.mxu1 %v3441_v12  ;;  %v3153_v12 = vld [vmem:[%s6240_s14 + $0x198] sm:$0xff]  ;;  %v3459_v20 = vunpack.c.h.s8.bf16 %v3151_v9 }
 0x6ee   : > { %3920 = vmatpush1.bf16.msra.mxu0 %v3438_v14  ;;  %v3455_v14 = vunpack.c.l.s8.bf16 %v3151_v9 }
 0x6ef   : > { %4248 = vmatpush1.bf16.msra.mxu1 %v3440_v15  ;;  %3921 = vmatprep.subr.bf16.mxu0 %v3443_v19  ;;  %v3457_v15 = vunpack.c.l.s8.bf16 %v3153_v12  ;;  %v3456_v19 = vunpack.c.l.s8.bf16 %v3152_v16 }
 0x6f0   : > { %v2493_v37 = vpop.f32.mrb[12].mxu0  ;;  %4249 = vmatprep.subr.bf16.mxu1 %v3445_v21  ;;  %v3461_v21 = vunpack.c.h.s8.bf16 %v3153_v12 }
 0x6f1   : > { %v2902_v41 = vmul.f32 %v2865_v23, %v2493_v37  ;;  %v2575_v0 = vpop.f32.mrb[12].mxu1  ;;  %v6895_v43 = vpop.f32.mrb[13].mxu0  ;;  %v3157_v23 = vld [vmem:[%s6240_s14 + $0x1b8] sm:$0xff] }
 0x6f2   : > { %v2904_v60 = vmul.f32 %v2873_v29, %v2575_v0  ;;  %v2577_v49 = vpop.f32.mrb[13].mxu1  ;;  %v2497_v51 = vpop.f32.mrb[14].mxu0  ;;  %3922 = vmatpush1.bf16.msra.mxu0 %v3442_v31  ;;  %v3463_v29 = vunpack.c.l.s8.bf16 %v3155_v22  ;;  %v3154_v31 = vld [vmem:[%s6240_s14 + $0x1a0] sm:$0xff]  ;;  %v3469_v37 = vunpack.c.h.s8.bf16 %v3157_v23 }
 0x6f3   : > { %v6898_v52 = vadd.f32 %v3025_v33, %v2902_v41  ;;  %v2905_v53 = vmul.f32 %v2877_v34, %v2577_v49  ;;  %v2579_v55 = vpop.f32.mrb[14].mxu1  ;;  %4250 = vmatpush1.bf16.msra.mxu1 %v3444_v35  ;;  %v2498_v57 = vpop.f32.mrb[15].mxu0  ;;  %3923 = vmatprep.subr.bf16.mxu0 %v3447_v11  ;;  %v3465_v33 = vunpack.c.l.s8.bf16 %v3157_v23  ;;  %v3156_v34 = vld [vmem:[%s6240_s14 + $0x1b0] sm:$0xff]  ;;  %v3462_v35 = vunpack.c.l.s8.bf16 %v3154_v31  ;;  %v3169_v23 = vld [vmem:[%s6240_s14 + $0x218] sm:$0xff] }
 0x6f4   : > { %v6900_v6 = vadd.f32 %v3033_v38, %v2904_v60  ;;  %v2580_v7 = vpop.f32.mrb[15].mxu1  ;;  %4251 = vmatprep.subr.bf16.mxu1 %v3449_v27  ;;  %v3464_v11 = vunpack.c.l.s8.bf16 %v3156_v34  ;;  %v3159_v38 = vld [vmem:[%s6240_s14 + $0x1c8] sm:$0xff]  ;;  %v3161_v27 = vld [vmem:[%s6240_s14 + $0x1d8] sm:$0xff]  ;;  %v3466_v32 = vunpack.c.h.s8.bf16 %v3154_v31  ;;  %v3468_v41 = vunpack.c.h.s8.bf16 %v3156_v34  ;;  %v3160_v49 = vld [vmem:[%s6240_s14 + $0x1d0] sm:$0xff] }
 0x6f5   : > { %v6903_v10 = vadd.f32 %v3037_v44, %v2905_v53  ;;  %v3471_v0 = vunpack.c.l.s8.bf16 %v3159_v38  ;;  %v3158_v44 = vld [vmem:[%s6240_s14 + $0x1c0] sm:$0xff]  ;;  %v3473_v60 = vunpack.c.l.s8.bf16 %v3161_v27  ;;  %v2773_v51 = vrot.slane %v6766_v3, %v6442_v40  ;;  %v3168_v34 = vld [vmem:[%s6240_s14 + $0x210] sm:$0xff] }
 0x6f6   : > { %3924 = vmatpush1.bf16.msra.mxu0 %v3446_v47  ;;  %v3470_v47 = vunpack.c.l.s8.bf16 %v3158_v44  ;;  %v3472_v53 = vunpack.c.l.s8.bf16 %v3160_v49  ;;  %v3475_v55 = vunpack.c.h.s8.bf16 %v3159_v38  ;;  %v3477_v57 = vunpack.c.h.s8.bf16 %v3161_v27  ;;  %v3166_v31 = vld [vmem:[%s6240_s14 + $0x200] sm:$0xff]  ;;  %v3171_v38 = vld [vmem:[%s6240_s14 + $0x228] sm:$0xff] }
 0x6f7   : > { %4252 = vmatpush1.bf16.msra.mxu1 %v3448_v1  ;;  %3925 = vmatprep.subr.bf16.mxu0 %v3451_v2  ;;  %v3163_v1 = vld [vmem:[%s6240_s14 + $0x1e8] sm:$0xff]  ;;  %v2853_v2 = vrot.slane %v2773_v51, %v6336_v59  ;;  %v2933_v7 = vrot.slane %v6766_v3, %v6439_v39  ;;  %v3474_v9 = vunpack.c.h.s8.bf16 %v3158_v44  ;;  %v3476_v12 = vunpack.c.h.s8.bf16 %v3160_v49  ;;  %v3170_v49 = vld [vmem:[%s6240_s14 + $0x220] sm:$0xff] }
 0x6f8   : > { %4253 = vmatprep.subr.bf16.mxu1 %v3453_v56  ;;  %v3165_v56 = vld [vmem:[%s6240_s14 + $0x1f8] sm:$0xff]  ;;  %v3480_v3 = vunpack.c.l.s8.bf16 %v3164_v42  ;;  %v3492_v44 = vunpack.c.h.s8.bf16 %v3168_v34 }
 0x6f9   : > { %v3013_v16 = vrot.slane %v2933_v7, %v6345_v62  ;;  %v3177_v7 = vld [vmem:[%s6240_s14 + $0x258] sm:$0xff] }
 0x6fa   : > { %3926 = vmatpush1.bf16.msra.mxu0 %v3450_v58  ;;  %v3479_v58 = vunpack.c.l.s8.bf16 %v3163_v1 }
 0x6fb   : > { %4254 = vmatpush1.bf16.msra.mxu1 %v3452_v13  ;;  %3927 = vmatprep.subr.bf16.mxu0 %v3455_v14  ;;  %v3162_v13 = vld [vmem:[%s6240_s14 + $0x1e0] sm:$0xff]  ;;  %v3481_v14 = vunpack.c.l.s8.bf16 %v3165_v56 }
 0x6fc   : > { %4255 = vmatprep.subr.bf16.mxu1 %v3457_v15  ;;  %v2899_v15 = vmul.f32 %v2853_v2, %v6791_v18  ;;  %v3484_v18 = vunpack.c.h.s8.bf16 %v3164_v42  ;;  %v3175_v2 = vld [vmem:[%s6240_s14 + $0x248] sm:$0xff] }
 0x6fe   : > { %3928 = vmatpush1.bf16.msra.mxu0 %v3454_v17  ;;  %v3478_v17 = vunpack.c.l.s8.bf16 %v3162_v13  ;;  %v3059_v22 = vadd.f32 %v3013_v16, %v2899_v15  ;;  %v3507_v16 = vunpack.c.h.s8.bf16 %v3175_v2 }
 0x6ff   : > { %4256 = vmatpush1.bf16.msra.mxu1 %v3456_v19  ;;  %3929 = vmatprep.subr.bf16.mxu0 %v3459_v20  ;;  %v3483_v19 = vunpack.c.h.s8.bf16 %v3163_v1  ;;  %v3485_v20 = vunpack.c.h.s8.bf16 %v3165_v56  ;;  %v3498_v56 = vunpack.c.h.s8.bf16 %v3170_v49 }
 0x700   : > { %4257 = vmatprep.subr.bf16.mxu1 %v3461_v21  ;;  %v3167_v21 = vld [vmem:[%s6240_s14 + $0x208] sm:$0xff] }
 0x702   : > { %3930 = vmatpush1.bf16.msra.mxu0 %v3458_v25  ;;  %v3482_v25 = vunpack.c.h.s8.bf16 %v3162_v13  ;;  %v3505_v13 = vunpack.c.l.s8.bf16 %v3177_v7 }
 0x703   : > { %4258 = vmatpush1.bf16.msra.mxu1 %v3460_v26  ;;  %3931 = vmatprep.subr.bf16.mxu0 %v3463_v29  ;;  %v3072_v26 = vmax.f32 %v6695_v28, 0.0  ;;  %v3487_v29 = vunpack.c.l.s8.bf16 %v3167_v21  ;;  %v3491_v28 = vunpack.c.h.s8.bf16 %v3167_v21 }
 0x704   : > { %4259 = vmatprep.subr.bf16.mxu1 %v3465_v33  ;;  %v3489_v33 = vunpack.c.l.s8.bf16 %v3169_v23 }
 0x706   : > { %3932 = vmatpush1.bf16.msra.mxu0 %v3462_v35  ;;  %v3075_v35 = vmax.f32 %v3059_v22, 0.0 }
 0x707   : > { %4260 = vmatpush1.bf16.msra.mxu1 %v3464_v11  ;;  %3933 = vmatprep.subr.bf16.mxu0 %v3467_v36  ;;  %v3486_v11 = vunpack.c.l.s8.bf16 %v3166_v31  ;;  %v3088_v36 = vpack.c.bf16 %v3072_v26, %v3072_v26  ;;  %v3180_v26 = vld [vmem:[%s6240_s14 + $0x270] sm:$0xff] }
 0x708   : > { %4261 = vmatprep.subr.bf16.mxu1 %v3469_v37  ;;  %v3488_v37 = vunpack.c.l.s8.bf16 %v3168_v34  ;;  %v3091_v27 = vpack.c.bf16 %v3075_v35, %v3075_v35  ;;  %v3183_v34 = vld [vmem:[%s6240_s14 + $0x288] sm:$0xff]  ;;  %v3185_v35 = vld [vmem:[%s6240_s14 + $0x298] sm:$0xff] }
 0x70a   : > { %3934 = vmatpush1.bf16.msra.mxu0 %v3466_v32  ;;  %v3493_v32 = vunpack.c.h.s8.bf16 %v3169_v23  ;;  %v3178_v23 = vld [vmem:[%s6240_s14 + $0x260] sm:$0xff] }
 0x70b   : > { %4262 = vmatpush1.bf16.msra.mxu1 %v3468_v41  ;;  %3935 = vmatprep.subr.bf16.mxu0 %v3471_v0  ;;  %v3173_v41 = vld [vmem:[%s6240_s14 + $0x238] sm:$0xff]  ;;  %v3490_v0 = vunpack.c.h.s8.bf16 %v3166_v31 }
 0x70c   : > { %4263 = vmatprep.subr.bf16.mxu1 %v3473_v60  ;;  %v3495_v60 = vunpack.c.l.s8.bf16 %v3171_v38  ;;  %v3497_v51 = vunpack.c.l.s8.bf16 %v3173_v41  ;;  %v3501_v1 = vunpack.c.h.s8.bf16 %v3173_v41 }
 0x70e   : > { %3936 = vmatpush1.bf16.msra.mxu0 %v3470_v47  ;;  %v3172_v47 = vld [vmem:[%s6240_s14 + $0x230] sm:$0xff] }
 0x70f   : > { %4264 = vmatpush1.bf16.msra.mxu1 %v3472_v53  ;;  %3937 = vmatprep.subr.bf16.mxu0 %v3475_v55  ;;  %v3494_v53 = vunpack.c.l.s8.bf16 %v3170_v49  ;;  %v3496_v55 = vunpack.c.l.s8.bf16 %v3172_v47  ;;  %v3189_v49 = vld [vmem:[%s6240_s14 + $0x2b8] sm:$0xff] }
 0x710   : > { %4265 = vmatprep.subr.bf16.mxu1 %v3477_v57  ;;  %v3499_v57 = vunpack.c.h.s8.bf16 %v3171_v38  ;;  %v3521_v38 = vunpack.c.l.s8.bf16 %v3185_v35 }
 0x712   : > { %3938 = vmatpush1.bf16.msra.mxu0 %v3474_v9  ;;  %v3500_v9 = vunpack.c.h.s8.bf16 %v3172_v47 }
 0x713   : > { %4266 = vmatpush1.bf16.msra.mxu1 %v3476_v12  ;;  %3939 = vmatprep.subr.bf16.mxu0 %v3479_v58  ;;  %v3503_v12 = vunpack.c.l.s8.bf16 %v3175_v2  ;;  %v3174_v58 = vld [vmem:[%s6240_s14 + $0x240] sm:$0xff] }
 0x714   : > { %4267 = vmatprep.subr.bf16.mxu1 %v3481_v14  ;;  %v3176_v14 = vld [vmem:[%s6240_s14 + $0x250] sm:$0xff]  ;;  %v3502_v42 = vunpack.c.l.s8.bf16 %v3174_v58 }
 0x715   : > { %v3504_v15 = vunpack.c.l.s8.bf16 %v3176_v14  ;;  %v3508_v21 = vunpack.c.h.s8.bf16 %v3176_v14 }
 0x716   : > { %3940 = vmatpush1.bf16.msra.mxu0 %v3478_v17  ;;  %v3509_v17 = vunpack.c.h.s8.bf16 %v3177_v7 }
 0x717   : > { %4268 = vmatpush1.bf16.msra.mxu1 %v3480_v3  ;;  %3941 = vmatprep.subr.bf16.mxu0 %v3483_v19  ;;  %v3179_v3 = vld [vmem:[%s6240_s14 + $0x268] sm:$0xff]  ;;  %v3181_v19 = vld [vmem:[%s6240_s14 + $0x278] sm:$0xff] }
 0x718   : > { %4269 = vmatprep.subr.bf16.mxu1 %v3485_v20  ;;  %v3506_v20 = vunpack.c.h.s8.bf16 %v3174_v58  ;;  %v3511_v22 = vunpack.c.l.s8.bf16 %v3179_v3  ;;  %v3515_v31 = vunpack.c.h.s8.bf16 %v3179_v3  ;;  %v3193_v58 = vld [vmem:[%s6240_s14 + $0x2d8] sm:$0xff] }
 0x71a   : > { %3942 = vmatpush1.bf16.msra.mxu0 %v3482_v25  ;;  %v3513_v25 = vunpack.c.l.s8.bf16 %v3181_v19 }
 0x71b   : > { %4270 = vmatpush1.bf16.msra.mxu1 %v3484_v18  ;;  %3952 = vmatprep.subr.bf16.mxu0 %v3487_v29  ;;  %v3510_v18 = vunpack.c.l.s8.bf16 %v3178_v23  ;;  %v3512_v29 = vunpack.c.l.s8.bf16 %v3180_v26 }
 0x71c   : > { %4280 = vmatprep.subr.bf16.mxu1 %v3489_v33  ;;  %v3517_v33 = vunpack.c.h.s8.bf16 %v3181_v19 }
 0x71d   : > { %3944 = vmatmul.mubr.bf16.vlgmr.msra.gmra.mrb[20].mxu0 %v3088_v36 }
 0x71e   : > { %4272 = vmatmul.mubr.bf16.vlgmr.msra.gmra.mrb[20].mxu1 %v3088_v36  ;;  %3953 = vmatpush1.bf16.msra.mxu0 %v3486_v11  ;;  %v3514_v11 = vunpack.c.h.s8.bf16 %v3178_v23  ;;  %v3516_v36 = vunpack.c.h.s8.bf16 %v3180_v26  ;;  %v3197_v23 = vld [vmem:[%s6240_s14 + $0x2f8] sm:$0xff] }
 0x71f   : > { %3984 = vmatprep.mubr.bf16.mxu0 %v3091_v27  ;;  %4281 = vmatpush1.bf16.msra.mxu1 %v3488_v37  ;;  %v3519_v37 = vunpack.c.l.s8.bf16 %v3183_v34 }
 0x720   : > { %4312 = vmatprep.mubr.bf16.mxu1 %v3091_v27  ;;  %3954 = vmatprep.subr.bf16.mxu0 %v3491_v28  ;;  %v3182_v28 = vld [vmem:[%s6240_s14 + $0x280] sm:$0xff]  ;;  %v3184_v27 = vld [vmem:[%s6240_s14 + $0x290] sm:$0xff] }
 0x721   : > { %4282 = vmatprep.subr.bf16.mxu1 %v3493_v32  ;;  %v3518_v32 = vunpack.c.l.s8.bf16 %v3182_v28  ;;  %v3520_v41 = vunpack.c.l.s8.bf16 %v3184_v27  ;;  %v3524_v47 = vunpack.c.h.s8.bf16 %v3184_v27  ;;  %v3074_v27 = vmax.f32 %v6794_v45, 0.0 }
 0x722   : > { %3955 = vmatpush1.bf16.msra.mxu0 %v3490_v0  ;;  %v3523_v0 = vunpack.c.h.s8.bf16 %v3183_v34 }
 0x723   : > { %4283 = vmatpush1.bf16.msra.mxu1 %v3492_v44  ;;  %3956 = vmatprep.subr.bf16.mxu0 %v3495_v60  ;;  %v3525_v44 = vunpack.c.h.s8.bf16 %v3185_v35  ;;  %v3187_v60 = vld [vmem:[%s6240_s14 + $0x2a8] sm:$0xff] }
 0x724   : > { %4284 = vmatprep.subr.bf16.mxu1 %v3497_v51  ;;  %v3522_v51 = vunpack.c.h.s8.bf16 %v3182_v28  ;;  %v3201_v28 = vld [vmem:[%s6240_s14 + $0x318] sm:$0xff] }
 0x726   : > { %3957 = vmatpush1.bf16.msra.mxu0 %v3494_v53  ;;  %v3527_v53 = vunpack.c.l.s8.bf16 %v3187_v60 }
 0x727   : > { %4285 = vmatpush1.bf16.msra.mxu1 %v3496_v55  ;;  %3958 = vmatprep.subr.bf16.mxu0 %v3499_v57  ;;  %v3186_v55 = vld [vmem:[%s6240_s14 + $0x2a0] sm:$0xff]  ;;  %v3529_v57 = vunpack.c.l.s8.bf16 %v3189_v49 }
 0x728   : > { %4286 = vmatprep.subr.bf16.mxu1 %v3501_v1  ;;  %v3188_v1 = vld [vmem:[%s6240_s14 + $0x2b0] sm:$0xff]  ;;  %v3526_v2 = vunpack.c.l.s8.bf16 %v3186_v55 }
 0x729   : > { %v3528_v7 = vunpack.c.l.s8.bf16 %v3188_v1  ;;  %v3532_v14 = vunpack.c.h.s8.bf16 %v3188_v1  ;;  %v3557_v1 = vunpack.c.h.s8.bf16 %v3201_v28 }
 0x72a   : > { %3959 = vmatpush1.bf16.msra.mxu0 %v3498_v56  ;;  %v3531_v56 = vunpack.c.h.s8.bf16 %v3187_v60  ;;  %v3200_v60 = vld [vmem:[%s6240_s14 + $0x310] sm:$0xff] }
 0x72b   : > { %4287 = vmatpush1.bf16.msra.mxu1 %v3500_v9  ;;  %3960 = vmatprep.subr.bf16.mxu0 %v3503_v12  ;;  %v3533_v9 = vunpack.c.h.s8.bf16 %v3189_v49  ;;  %v3191_v12 = vld [vmem:[%s6240_s14 + $0x2c8] sm:$0xff]  ;;  %v3077_v49 = vmax.f32 %v6799_v61, 0.0  ;;  %v3556_v61 = vunpack.c.h.s8.bf16 %v3200_v60 }
 0x72c   : > { %4288 = vmatprep.subr.bf16.mxu1 %v3505_v13  ;;  %v3530_v13 = vunpack.c.h.s8.bf16 %v3186_v55  ;;  %v3203_v55 = vld [vmem:[%s6240_s14 + $0x328] sm:$0xff] }
 0x72e   : > { %3961 = vmatpush1.bf16.msra.mxu0 %v3502_v42  ;;  %v3535_v42 = vunpack.c.l.s8.bf16 %v3191_v12 }
 0x72f   : > { %4289 = vmatpush1.bf16.msra.mxu1 %v3504_v15  ;;  %3962 = vmatprep.subr.bf16.mxu0 %v3507_v16  ;;  %v3190_v15 = vld [vmem:[%s6240_s14 + $0x2c0] sm:$0xff]  ;;  %v3537_v16 = vunpack.c.l.s8.bf16 %v3193_v58 }
 0x730   : > { %4290 = vmatprep.subr.bf16.mxu1 %v3509_v17  ;;  %v3192_v17 = vld [vmem:[%s6240_s14 + $0x2d0] sm:$0xff]  ;;  %v3534_v3 = vunpack.c.l.s8.bf16 %v3190_v15 }
 0x731   : > { %v3536_v19 = vunpack.c.l.s8.bf16 %v3192_v17  ;;  %v3540_v26 = vunpack.c.h.s8.bf16 %v3192_v17  ;;  %v3209_v17 = vld [vmem:[%s6240_s14 + $0x358] sm:$0xff] }
 0x732   : > { %3963 = vmatpush1.bf16.msra.mxu0 %v3506_v20  ;;  %v3539_v20 = vunpack.c.h.s8.bf16 %v3191_v12 }
 0x733   : > { %4291 = vmatpush1.bf16.msra.mxu1 %v3508_v21  ;;  %3964 = vmatprep.subr.bf16.mxu0 %v3511_v22  ;;  %v3541_v21 = vunpack.c.h.s8.bf16 %v3193_v58  ;;  %v3195_v22 = vld [vmem:[%s6240_s14 + $0x2e8] sm:$0xff]  ;;  %v3204_v58 = vld [vmem:[%s6240_s14 + $0x330] sm:$0xff] }
 0x734   : > { %4292 = vmatprep.subr.bf16.mxu1 %v3513_v25  ;;  %v3538_v25 = vunpack.c.h.s8.bf16 %v3190_v15 }
 0x736   : > { %3965 = vmatpush1.bf16.msra.mxu0 %v3510_v18  ;;  %v3543_v18 = vunpack.c.l.s8.bf16 %v3195_v22 }
 0x737   : > { %4293 = vmatpush1.bf16.msra.mxu1 %v3512_v29  ;;  %3966 = vmatprep.subr.bf16.mxu0 %v3515_v31  ;;  %v3194_v29 = vld [vmem:[%s6240_s14 + $0x2e0] sm:$0xff]  ;;  %v3545_v31 = vunpack.c.l.s8.bf16 %v3197_v23 }
 0x738   : > { %4294 = vmatprep.subr.bf16.mxu1 %v3517_v33  ;;  %v3196_v33 = vld [vmem:[%s6240_s14 + $0x2f0] sm:$0xff]  ;;  %v3542_v34 = vunpack.c.l.s8.bf16 %v3194_v29 }
 0x739   : > { %v3544_v35 = vunpack.c.l.s8.bf16 %v3196_v33 }
 0x73a   : > { %3967 = vmatpush1.bf16.msra.mxu0 %v3514_v11  ;;  %v3547_v11 = vunpack.c.h.s8.bf16 %v3195_v22  ;;  %v3206_v22 = vld [vmem:[%s6240_s14 + $0x340] sm:$0xff] }
 0x73b   : > { %4295 = vmatpush1.bf16.msra.mxu1 %v3516_v36  ;;  %3968 = vmatprep.subr.bf16.mxu0 %v3519_v37  ;;  %v3549_v36 = vunpack.c.h.s8.bf16 %v3197_v23  ;;  %v3199_v37 = vld [vmem:[%s6240_s14 + $0x308] sm:$0xff]  ;;  %v3569_v23 = vunpack.c.l.s8.bf16 %v3209_v17 }
 0x73c   : > { %4296 = vmatprep.subr.bf16.mxu1 %v3521_v38  ;;  %v3546_v38 = vunpack.c.h.s8.bf16 %v3194_v29  ;;  %v3555_v45 = vunpack.c.h.s8.bf16 %v3199_v37 }
 0x73e   : > { %3969 = vmatpush1.bf16.msra.mxu0 %v3518_v32  ;;  %v3548_v32 = vunpack.c.h.s8.bf16 %v3196_v33 }
 0x73f   : > { %4297 = vmatpush1.bf16.msra.mxu1 %v3520_v41  ;;  %3970 = vmatprep.subr.bf16.mxu0 %v3523_v0  ;;  %v3551_v41 = vunpack.c.l.s8.bf16 %v3199_v37  ;;  %v3198_v0 = vld [vmem:[%s6240_s14 + $0x300] sm:$0xff]  ;;  %v3211_v37 = vld [vmem:[%s6240_s14 + $0x368] sm:$0xff] }
 0x740   : > { %4298 = vmatprep.subr.bf16.mxu1 %v3525_v44  ;;  %v3553_v44 = vunpack.c.l.s8.bf16 %v3201_v28 }
 0x742   : > { %3971 = vmatpush1.bf16.msra.mxu0 %v3522_v51  ;;  %v3550_v51 = vunpack.c.l.s8.bf16 %v3198_v0 }
 0x743   : > { %4299 = vmatpush1.bf16.msra.mxu1 %v3524_v47  ;;  %3972 = vmatprep.subr.bf16.mxu0 %v3527_v53  ;;  %v3090_v47 = vpack.c.bf16 %v3074_v27, %v3074_v27  ;;  %v3552_v53 = vunpack.c.l.s8.bf16 %v3200_v60  ;;  %v3213_v27 = vld [vmem:[%s6240_s14 + $0x378] sm:$0xff] }
 0x744   : > { %4300 = vmatprep.subr.bf16.mxu1 %v3529_v57  ;;  %v3093_v57 = vpack.c.bf16 %v3077_v49, %v3077_v49  ;;  %v3575_v49 = vunpack.c.l.s8.bf16 %v3211_v37 }
 0x746   : > { %3973 = vmatpush1.bf16.msra.mxu0 %v3526_v2  ;;  %v3205_v2 = vld [vmem:[%s6240_s14 + $0x338] sm:$0xff] }
 0x747   : > { %4301 = vmatpush1.bf16.msra.mxu1 %v3528_v7  ;;  %3974 = vmatprep.subr.bf16.mxu0 %v3531_v56  ;;  %v3554_v7 = vunpack.c.h.s8.bf16 %v3198_v0  ;;  %v3559_v56 = vunpack.c.l.s8.bf16 %v3203_v55  ;;  %v3561_v12 = vunpack.c.l.s8.bf16 %v3205_v2  ;;  %v3565_v15 = vunpack.c.h.s8.bf16 %v3205_v2 }
 0x748   : > { %4302 = vmatprep.subr.bf16.mxu1 %v3533_v9  ;;  %v3202_v9 = vld [vmem:[%s6240_s14 + $0x320] sm:$0xff] }
 0x74a   : > { %3975 = vmatpush1.bf16.msra.mxu0 %v3530_v13  ;;  %v3558_v13 = vunpack.c.l.s8.bf16 %v3202_v9 }
 0x74b   : > { %4303 = vmatpush1.bf16.msra.mxu1 %v3532_v14  ;;  %3976 = vmatprep.subr.bf16.mxu0 %v3535_v42  ;;  %v3560_v14 = vunpack.c.l.s8.bf16 %v3204_v58  ;;  %v3563_v42 = vunpack.c.h.s8.bf16 %v3203_v55  ;;  %v3212_v55 = vld [vmem:[%s6240_s14 + $0x370] sm:$0xff] }
 0x74c   : > { %4304 = vmatprep.subr.bf16.mxu1 %v3537_v16  ;;  %v3207_v16 = vld [vmem:[%s6240_s14 + $0x348] sm:$0xff] }
 0x74e   : > { %3977 = vmatpush1.bf16.msra.mxu0 %v3534_v3  ;;  %v3562_v3 = vunpack.c.h.s8.bf16 %v3202_v9 }
 0x74f   : > { %4305 = vmatpush1.bf16.msra.mxu1 %v3536_v19  ;;  %3978 = vmatprep.subr.bf16.mxu0 %v3539_v20  ;;  %v6973_v19 = vld [vmem:[%s6234_s3 + $0x18] sm:$0xff]  ;;  %v3564_v20 = vunpack.c.h.s8.bf16 %v3204_v58 }
 0x750   : > { %4306 = vmatprep.subr.bf16.mxu1 %v3541_v21  ;;  %v3567_v21 = vunpack.c.l.s8.bf16 %v3207_v16  ;;  %v2809_v29 = vrot.slane %v6973_v19, %v6653_v30  ;;  %v2961_v33 = vrot.slane %v6973_v19, %v6345_v62 }
 0x752   : > { %3979 = vmatpush1.bf16.msra.mxu0 %v3538_v25  ;;  %v3208_v25 = vld [vmem:[%s6240_s14 + $0x350] sm:$0xff]  ;;  %v3041_v0 = vrot.slane %v2961_v33, %v6345_v62 }
 0x753   : > { %4307 = vmatpush1.bf16.msra.mxu1 %v3540_v26  ;;  %3980 = vmatprep.subr.bf16.mxu0 %v3543_v18  ;;  %v2801_v26 = vrot.slane %v6973_v19, %v6336_v59  ;;  %v3566_v18 = vunpack.c.l.s8.bf16 %v3206_v22  ;;  %v3572_v60 = vunpack.c.h.s8.bf16 %v3208_v25  ;;  %v3216_v33 = vld [vmem:[%s6240_s14 + $0x390] sm:$0xff] }
 0x754   : > { %4308 = vmatprep.subr.bf16.mxu1 %v3545_v31  ;;  %v3568_v31 = vunpack.c.l.s8.bf16 %v3208_v25 }
 0x755   : > { %v2881_v28 = vrot.slane %v2801_v26, %v6336_v59  ;;  %v3580_v26 = vunpack.c.h.s8.bf16 %v3212_v55 }
 0x756   : > { %3981 = vmatpush1.bf16.msra.mxu0 %v3542_v34  ;;  %v2813_v34 = vrot.slane %v6973_v19, %v6656_v48 }
 0x757   : > { %4309 = vmatpush1.bf16.msra.mxu1 %v3544_v35  ;;  %3982 = vmatprep.subr.bf16.mxu0 %v3547_v11  ;;  %v3571_v35 = vunpack.c.h.s8.bf16 %v3207_v16  ;;  %v2969_v11 = vrot.slane %v6973_v19, %v6663_v4  ;;  %v3579_v16 = vunpack.c.h.s8.bf16 %v3211_v37  ;;  %v3219_v37 = vld [vmem:[%s6240_s14 + $0x3a8] sm:$0xff] }
 0x758   : > { %4310 = vmatprep.subr.bf16.mxu1 %v3549_v36  ;;  %v3573_v36 = vunpack.c.h.s8.bf16 %v3209_v17 }
 0x75a   : > { %3983 = vmatpush1.bf16.msra.mxu0 %v3546_v38  ;;  %v2973_v38 = vrot.slane %v6973_v19, %v6666_v5 }
 0x75b   : > { %4311 = vmatpush1.bf16.msra.mxu1 %v3548_v32  ;;  %3993 = vmatprep.subr.bf16.mxu0 %v3551_v41  ;;  %v2889_v32 = vrot.slane %v2809_v29, %v6336_v59  ;;  %v3570_v41 = vunpack.c.h.s8.bf16 %v3206_v22  ;;  %v3214_v29 = vld [vmem:[%s6240_s14 + $0x380] sm:$0xff] }
 0x75c   : > { %4321 = vmatprep.subr.bf16.mxu1 %v3553_v44  ;;  %v2893_v44 = vrot.slane %v2813_v34, %v6336_v59  ;;  %v3582_v34 = vunpack.c.l.s8.bf16 %v3214_v29 }
 0x75d   : > { %3985 = vmatmul.mubr.bf16.vlgmr.msra.gmra.mrb[20].mxu0 %v3090_v47 }
 0x75e   : > { %4313 = vmatmul.mubr.bf16.vlgmr.msra.gmra.mrb[20].mxu1 %v3090_v47  ;;  %3994 = vmatpush1.bf16.msra.mxu0 %v3550_v51  ;;  %v3210_v51 = vld [vmem:[%s6240_s14 + $0x360] sm:$0xff] }
 0x75f   : > { %4025 = vmatprep.mubr.bf16.mxu0 %v3093_v57  ;;  %4322 = vmatpush1.bf16.msra.mxu1 %v3552_v53  ;;  %v3049_v53 = vrot.slane %v2969_v11, %v6345_v62  ;;  %v3578_v25 = vunpack.c.h.s8.bf16 %v3210_v51 }
 0x760   : > { %4353 = vmatprep.mubr.bf16.mxu1 %v3093_v57  ;;  %3995 = vmatprep.subr.bf16.mxu0 %v3555_v45  ;;  %v3577_v45 = vunpack.c.l.s8.bf16 %v3213_v27 }
 0x761   : > { %4323 = vmatprep.subr.bf16.mxu1 %v3557_v1 }
 0x762   : > { %3996 = vmatpush1.bf16.msra.mxu0 %v3554_v7  ;;  %v3053_v7 = vrot.slane %v2973_v38, %v6345_v62  ;;  %v3586_v38 = vunpack.c.h.s8.bf16 %v3214_v29  ;;  %v3228_v29 = vld [vmem:[%s6240_s14 + $0x3f0] sm:$0xff] }
 0x763   : > { %4324 = vmatpush1.bf16.msra.mxu1 %v3556_v61  ;;  %3997 = vmatprep.subr.bf16.mxu0 %v3559_v56 }
 0x764   : > { %4325 = vmatprep.subr.bf16.mxu1 %v3561_v12  ;;  %v3574_v12 = vunpack.c.l.s8.bf16 %v3210_v51  ;;  %v3595_v51 = vunpack.c.h.s8.bf16 %v3219_v37 }
 0x766   : > { %3998 = vmatpush1.bf16.msra.mxu0 %v3558_v13 }
 0x767   : > { %4326 = vmatpush1.bf16.msra.mxu1 %v3560_v14  ;;  %3999 = vmatprep.subr.bf16.mxu0 %v3563_v42 }
 0x768   : > { %4327 = vmatprep.subr.bf16.mxu1 %v3565_v15  ;;  %v3576_v15 = vunpack.c.l.s8.bf16 %v3212_v55 }
 0x76a   : > { %4000 = vmatpush1.bf16.msra.mxu0 %v3562_v3 }
 0x76b   : > { %4328 = vmatpush1.bf16.msra.mxu1 %v3564_v20  ;;  %4001 = vmatprep.subr.bf16.mxu0 %v3567_v21  ;;  %v3581_v20 = vunpack.c.h.s8.bf16 %v3213_v27  ;;  %v3215_v21 = vld [vmem:[%s6240_s14 + $0x388] sm:$0xff]  ;;  %v3588_v27 = vunpack.c.h.s8.bf16 %v3216_v33 }
 0x76c   : > { %4329 = vmatprep.subr.bf16.mxu1 %v3569_v23  ;;  %v3217_v23 = vld [vmem:[%s6240_s14 + $0x398] sm:$0xff]  ;;  %v3587_v11 = vunpack.c.h.s8.bf16 %v3215_v21 }
 0x76e   : > { %4002 = vmatpush1.bf16.msra.mxu0 %v3566_v18  ;;  %v3583_v18 = vunpack.c.l.s8.bf16 %v3215_v21 }
 0x76f   : > { %4330 = vmatpush1.bf16.msra.mxu1 %v3568_v31  ;;  %4003 = vmatprep.subr.bf16.mxu0 %v3571_v35  ;;  %v3585_v31 = vunpack.c.l.s8.bf16 %v3217_v23  ;;  %v3584_v35 = vunpack.c.l.s8.bf16 %v3216_v33 }
 0x770   : > { %v2657_v47 = vpop.f32.mrb[16].mxu0  ;;  %4331 = vmatprep.subr.bf16.mxu1 %v3573_v36  ;;  %v3589_v36 = vunpack.c.h.s8.bf16 %v3217_v23 }
 0x771   : > { %v2906_v57 = vmul.f32 %v2881_v28, %v2657_v47  ;;  %v2739_v1 = vpop.f32.mrb[16].mxu1  ;;  %v6998_v2 = vpop.f32.mrb[17].mxu0  ;;  %v3221_v28 = vld [vmem:[%s6240_s14 + $0x3b8] sm:$0xff] }
 0x772   : > { %v2908_v61 = vmul.f32 %v2889_v32, %v2739_v1  ;;  %v2741_v56 = vpop.f32.mrb[17].mxu1  ;;  %v2661_v9 = vpop.f32.mrb[18].mxu0  ;;  %4004 = vmatpush1.bf16.msra.mxu0 %v3570_v41  ;;  %v3591_v32 = vunpack.c.l.s8.bf16 %v3219_v37  ;;  %v3218_v41 = vld [vmem:[%s6240_s14 + $0x3a0] sm:$0xff]  ;;  %v3597_v47 = vunpack.c.h.s8.bf16 %v3221_v28 }
 0x773   : > { %v7001_v58 = vadd.f32 %v3041_v0, %v2906_v57  ;;  %v2909_v13 = vmul.f32 %v2893_v44, %v2741_v56  ;;  %v2743_v14 = vpop.f32.mrb[18].mxu1  ;;  %4332 = vmatpush1.bf16.msra.mxu1 %v3572_v60  ;;  %v2662_v42 = vpop.f32.mrb[19].mxu0  ;;  %4005 = vmatprep.subr.bf16.mxu0 %v3575_v49  ;;  %v3593_v0 = vunpack.c.l.s8.bf16 %v3221_v28  ;;  %v3220_v44 = vld [vmem:[%s6240_s14 + $0x3b0] sm:$0xff]  ;;  %v3590_v60 = vunpack.c.l.s8.bf16 %v3218_v41  ;;  %v3233_v28 = vld [vmem:[%s6240_s14 + $0x418] sm:$0xff] }
 0x774   : > { %v7003_v17 = vadd.f32 %v3049_v53, %v2908_v61  ;;  %v2744_v3 = vpop.f32.mrb[19].mxu1  ;;  %4333 = vmatprep.subr.bf16.mxu1 %v3577_v45  ;;  %v3592_v49 = vunpack.c.l.s8.bf16 %v3220_v44  ;;  %v3223_v53 = vld [vmem:[%s6240_s14 + $0x3c8] sm:$0xff]  ;;  %v3225_v45 = vld [vmem:[%s6240_s14 + $0x3d8] sm:$0xff]  ;;  %v3594_v55 = vunpack.c.h.s8.bf16 %v3218_v41  ;;  %v3596_v57 = vunpack.c.h.s8.bf16 %v3220_v44  ;;  %v3224_v56 = vld [vmem:[%s6240_s14 + $0x3d0] sm:$0xff] }
 0x775   : > { %v7006_v22 = vadd.f32 %v3053_v7, %v2909_v13  ;;  %v3599_v1 = vunpack.c.l.s8.bf16 %v3223_v53  ;;  %v3222_v7 = vld [vmem:[%s6240_s14 + $0x3c0] sm:$0xff]  ;;  %v3601_v61 = vunpack.c.l.s8.bf16 %v3225_v45  ;;  %v2789_v9 = vrot.slane %v6870_v8, %v6442_v40  ;;  %v3232_v44 = vld [vmem:[%s6240_s14 + $0x410] sm:$0xff] }
 0x776   : > { %4006 = vmatpush1.bf16.msra.mxu0 %v3574_v12  ;;  %v3598_v12 = vunpack.c.l.s8.bf16 %v3222_v7  ;;  %v3600_v13 = vunpack.c.l.s8.bf16 %v3224_v56  ;;  %v3603_v14 = vunpack.c.h.s8.bf16 %v3223_v53  ;;  %v3605_v42 = vunpack.c.h.s8.bf16 %v3225_v45  ;;  %v3230_v41 = vld [vmem:[%s6240_s14 + $0x400] sm:$0xff]  ;;  %v3235_v53 = vld [vmem:[%s6240_s14 + $0x428] sm:$0xff] }
 0x777   : > { %4334 = vmatpush1.bf16.msra.mxu1 %v3576_v15  ;;  %4007 = vmatprep.subr.bf16.mxu0 %v3579_v16  ;;  %v3227_v15 = vld [vmem:[%s6240_s14 + $0x3e8] sm:$0xff]  ;;  %v2869_v16 = vrot.slane %v2789_v9, %v6336_v59  ;;  %v2949_v3 = vrot.slane %v6870_v8, %v6439_v39  ;;  %v3602_v21 = vunpack.c.h.s8.bf16 %v3222_v7  ;;  %v3604_v23 = vunpack.c.h.s8.bf16 %v3224_v56  ;;  %v3234_v56 = vld [vmem:[%s6240_s14 + $0x420] sm:$0xff] }
 0x778   : > { %4335 = vmatprep.subr.bf16.mxu1 %v3581_v20  ;;  %v3229_v20 = vld [vmem:[%s6240_s14 + $0x3f8] sm:$0xff]  ;;  %v3608_v8 = vunpack.c.l.s8.bf16 %v3228_v29  ;;  %v3620_v7 = vunpack.c.h.s8.bf16 %v3232_v44 }
 0x779   : > { %v3029_v33 = vrot.slane %v2949_v3, %v6345_v62  ;;  %v3241_v3 = vld [vmem:[%s6240_s14 + $0x458] sm:$0xff] }
 0x77a   : > { %4008 = vmatpush1.bf16.msra.mxu0 %v3578_v25  ;;  %v3607_v25 = vunpack.c.l.s8.bf16 %v3227_v15 }
 0x77b   : > { %4336 = vmatpush1.bf16.msra.mxu1 %v3580_v26  ;;  %4009 = vmatprep.subr.bf16.mxu0 %v3583_v18  ;;  %v3226_v26 = vld [vmem:[%s6240_s14 + $0x3e0] sm:$0xff]  ;;  %v3609_v18 = vunpack.c.l.s8.bf16 %v3229_v20 }
 0x77c   : > { %4337 = vmatprep.subr.bf16.mxu1 %v3585_v31  ;;  %v2903_v31 = vmul.f32 %v2869_v16, %v6895_v43  ;;  %v3612_v43 = vunpack.c.h.s8.bf16 %v3228_v29  ;;  %v3239_v16 = vld [vmem:[%s6240_s14 + $0x448] sm:$0xff] }
 0x77e   : > { %4010 = vmatpush1.bf16.msra.mxu0 %v3582_v34  ;;  %v3606_v34 = vunpack.c.l.s8.bf16 %v3226_v26  ;;  %v3063_v37 = vadd.f32 %v3029_v33, %v2903_v31  ;;  %v3635_v33 = vunpack.c.h.s8.bf16 %v3239_v16 }
 0x77f   : > { %4338 = vmatpush1.bf16.msra.mxu1 %v3584_v35  ;;  %4011 = vmatprep.subr.bf16.mxu0 %v3587_v11  ;;  %v3611_v35 = vunpack.c.h.s8.bf16 %v3227_v15  ;;  %v3613_v11 = vunpack.c.h.s8.bf16 %v3229_v20  ;;  %v3626_v20 = vunpack.c.h.s8.bf16 %v3234_v56 }
 0x780   : > { %4339 = vmatprep.subr.bf16.mxu1 %v3589_v36  ;;  %v3231_v36 = vld [vmem:[%s6240_s14 + $0x408] sm:$0xff] }
 0x782   : > { %4012 = vmatpush1.bf16.msra.mxu0 %v3586_v38  ;;  %v3610_v38 = vunpack.c.h.s8.bf16 %v3226_v26  ;;  %v3633_v26 = vunpack.c.l.s8.bf16 %v3241_v3 }
 0x783   : > { %4340 = vmatpush1.bf16.msra.mxu1 %v3588_v27  ;;  %4013 = vmatprep.subr.bf16.mxu0 %v3591_v32  ;;  %v3076_v27 = vmax.f32 %v6796_v50, 0.0  ;;  %v3615_v32 = vunpack.c.l.s8.bf16 %v3231_v36  ;;  %v3619_v50 = vunpack.c.h.s8.bf16 %v3231_v36 }
 0x784   : > { %4341 = vmatprep.subr.bf16.mxu1 %v3593_v0  ;;  %v3617_v0 = vunpack.c.l.s8.bf16 %v3233_v28 }
 0x786   : > { %4014 = vmatpush1.bf16.msra.mxu0 %v3590_v60  ;;  %v3079_v60 = vmax.f32 %v3063_v37, 0.0 }
 0x787   : > { %4342 = vmatpush1.bf16.msra.mxu1 %v3592_v49  ;;  %4015 = vmatprep.subr.bf16.mxu0 %v3595_v51  ;;  %v3614_v49 = vunpack.c.l.s8.bf16 %v3230_v41  ;;  %v3092_v51 = vpack.c.bf16 %v3076_v27, %v3076_v27  ;;  %v3244_v27 = vld [vmem:[%s6240_s14 + $0x470] sm:$0xff] }
 0x788   : > { %4343 = vmatprep.subr.bf16.mxu1 %v3597_v47  ;;  %v3616_v47 = vunpack.c.l.s8.bf16 %v3232_v44  ;;  %v3095_v45 = vpack.c.bf16 %v3079_v60, %v3079_v60  ;;  %v3247_v44 = vld [vmem:[%s6240_s14 + $0x488] sm:$0xff]  ;;  %v3249_v60 = vld [vmem:[%s6240_s14 + $0x498] sm:$0xff] }
 0x78a   : > { %4016 = vmatpush1.bf16.msra.mxu0 %v3594_v55  ;;  %v3621_v55 = vunpack.c.h.s8.bf16 %v3233_v28  ;;  %v3242_v28 = vld [vmem:[%s6240_s14 + $0x460] sm:$0xff] }
 0x78b   : > { %4344 = vmatpush1.bf16.msra.mxu1 %v3596_v57  ;;  %4017 = vmatprep.subr.bf16.mxu0 %v3599_v1  ;;  %v3237_v57 = vld [vmem:[%s6240_s14 + $0x438] sm:$0xff]  ;;  %v3618_v1 = vunpack.c.h.s8.bf16 %v3230_v41 }
 0x78c   : > { %4345 = vmatprep.subr.bf16.mxu1 %v3601_v61  ;;  %v3623_v61 = vunpack.c.l.s8.bf16 %v3235_v53  ;;  %v3625_v9 = vunpack.c.l.s8.bf16 %v3237_v57  ;;  %v3629_v15 = vunpack.c.h.s8.bf16 %v3237_v57 }
 0x78e   : > { %4018 = vmatpush1.bf16.msra.mxu0 %v3598_v12  ;;  %v3236_v12 = vld [vmem:[%s6240_s14 + $0x430] sm:$0xff] }
 0x78f   : > { %4346 = vmatpush1.bf16.msra.mxu1 %v3600_v13  ;;  %4019 = vmatprep.subr.bf16.mxu0 %v3603_v14  ;;  %v3622_v13 = vunpack.c.l.s8.bf16 %v3234_v56  ;;  %v3624_v14 = vunpack.c.l.s8.bf16 %v3236_v12  ;;  %v3253_v56 = vld [vmem:[%s6240_s14 + $0x4b8] sm:$0xff] }
 0x790   : > { %4347 = vmatprep.subr.bf16.mxu1 %v3605_v42  ;;  %v3627_v42 = vunpack.c.h.s8.bf16 %v3235_v53  ;;  %v3649_v53 = vunpack.c.l.s8.bf16 %v3249_v60 }
 0x792   : > { %4020 = vmatpush1.bf16.msra.mxu0 %v3602_v21  ;;  %v3628_v21 = vunpack.c.h.s8.bf16 %v3236_v12 }
 0x793   : > { %4348 = vmatpush1.bf16.msra.mxu1 %v3604_v23  ;;  %4021 = vmatprep.subr.bf16.mxu0 %v3607_v25  ;;  %v3631_v23 = vunpack.c.l.s8.bf16 %v3239_v16  ;;  %v3238_v25 = vld [vmem:[%s6240_s14 + $0x440] sm:$0xff] }
 0x794   : > { %4349 = vmatprep.subr.bf16.mxu1 %v3609_v18  ;;  %v3240_v18 = vld [vmem:[%s6240_s14 + $0x450] sm:$0xff]  ;;  %v3630_v29 = vunpack.c.l.s8.bf16 %v3238_v25 }
 0x795   : > { %v3632_v31 = vunpack.c.l.s8.bf16 %v3240_v18  ;;  %v3636_v36 = vunpack.c.h.s8.bf16 %v3240_v18 }
 0x796   : > { %4022 = vmatpush1.bf16.msra.mxu0 %v3606_v34  ;;  %v3637_v34 = vunpack.c.h.s8.bf16 %v3241_v3 }
 0x797   : > { %4350 = vmatpush1.bf16.msra.mxu1 %v3608_v8  ;;  %4023 = vmatprep.subr.bf16.mxu0 %v3611_v35  ;;  %v3243_v8 = vld [vmem:[%s6240_s14 + $0x468] sm:$0xff]  ;;  %v3245_v35 = vld [vmem:[%s6240_s14 + $0x478] sm:$0xff] }
 0x798   : > { %4351 = vmatprep.subr.bf16.mxu1 %v3613_v11  ;;  %v3634_v11 = vunpack.c.h.s8.bf16 %v3238_v25  ;;  %v3639_v37 = vunpack.c.l.s8.bf16 %v3243_v8  ;;  %v3643_v41 = vunpack.c.h.s8.bf16 %v3243_v8  ;;  %v3257_v25 = vld [vmem:[%s6240_s14 + $0x4d8] sm:$0xff] }
 0x79a   : > { %4024 = vmatpush1.bf16.msra.mxu0 %v3610_v38  ;;  %v3641_v38 = vunpack.c.l.s8.bf16 %v3245_v35 }
 0x79b   : > { %4352 = vmatpush1.bf16.msra.mxu1 %v3612_v43  ;;  %4034 = vmatprep.subr.bf16.mxu0 %v3615_v32  ;;  %v3638_v43 = vunpack.c.l.s8.bf16 %v3242_v28  ;;  %v3640_v32 = vunpack.c.l.s8.bf16 %v3244_v27 }
 0x79c   : > { %4362 = vmatprep.subr.bf16.mxu1 %v3617_v0  ;;  %v3645_v0 = vunpack.c.h.s8.bf16 %v3245_v35 }
 0x79d   : > { %4026 = vmatmul.mubr.bf16.vlgmr.msra.gmra.mrb[20].mxu0 %v3092_v51 }
 0x79e   : > { %4354 = vmatmul.mubr.bf16.vlgmr.msra.gmra.mrb[20].mxu1 %v3092_v51  ;;  %4035 = vmatpush1.bf16.msra.mxu0 %v3614_v49  ;;  %v3642_v49 = vunpack.c.h.s8.bf16 %v3242_v28  ;;  %v3644_v51 = vunpack.c.h.s8.bf16 %v3244_v27  ;;  %v3261_v28 = vld [vmem:[%s6240_s14 + $0x4f8] sm:$0xff] }
 0x79f   : > { %4066 = vmatprep.mubr.bf16.mxu0 %v3095_v45  ;;  %4363 = vmatpush1.bf16.msra.mxu1 %v3616_v47  ;;  %v3647_v47 = vunpack.c.l.s8.bf16 %v3247_v44 }
 0x7a0   : > { %4394 = vmatprep.mubr.bf16.mxu1 %v3095_v45  ;;  %4036 = vmatprep.subr.bf16.mxu0 %v3619_v50  ;;  %v3246_v50 = vld [vmem:[%s6240_s14 + $0x480] sm:$0xff]  ;;  %v3248_v45 = vld [vmem:[%s6240_s14 + $0x490] sm:$0xff] }
 0x7a1   : > { %4364 = vmatprep.subr.bf16.mxu1 %v3621_v55  ;;  %v3646_v55 = vunpack.c.l.s8.bf16 %v3246_v50  ;;  %v3648_v57 = vunpack.c.l.s8.bf16 %v3248_v45  ;;  %v3652_v12 = vunpack.c.h.s8.bf16 %v3248_v45  ;;  %v3078_v45 = vmax.f32 %v6898_v52, 0.0 }
 0x7a2   : > { %4037 = vmatpush1.bf16.msra.mxu0 %v3618_v1  ;;  %v3651_v1 = vunpack.c.h.s8.bf16 %v3247_v44 }
 0x7a3   : > { %4365 = vmatpush1.bf16.msra.mxu1 %v3620_v7  ;;  %4038 = vmatprep.subr.bf16.mxu0 %v3623_v61  ;;  %v3653_v7 = vunpack.c.h.s8.bf16 %v3249_v60  ;;  %v3251_v61 = vld [vmem:[%s6240_s14 + $0x4a8] sm:$0xff] }
 0x7a4   : > { %4366 = vmatprep.subr.bf16.mxu1 %v3625_v9  ;;  %v3650_v9 = vunpack.c.h.s8.bf16 %v3246_v50  ;;  %v3265_v50 = vld [vmem:[%s6240_s14 + $0x518] sm:$0xff] }
 0x7a6   : > { %4039 = vmatpush1.bf16.msra.mxu0 %v3622_v13  ;;  %v3655_v13 = vunpack.c.l.s8.bf16 %v3251_v61 }
 0x7a7   : > { %4367 = vmatpush1.bf16.msra.mxu1 %v3624_v14  ;;  %4040 = vmatprep.subr.bf16.mxu0 %v3627_v42  ;;  %v3250_v14 = vld [vmem:[%s6240_s14 + $0x4a0] sm:$0xff]  ;;  %v3657_v42 = vunpack.c.l.s8.bf16 %v3253_v56 }
 0x7a8   : > { %4368 = vmatprep.subr.bf16.mxu1 %v3629_v15  ;;  %v3252_v15 = vld [vmem:[%s6240_s14 + $0x4b0] sm:$0xff]  ;;  %v3654_v16 = vunpack.c.l.s8.bf16 %v3250_v14 }
 0x7a9   : > { %v3656_v3 = vunpack.c.l.s8.bf16 %v3252_v15  ;;  %v3660_v18 = vunpack.c.h.s8.bf16 %v3252_v15  ;;  %v3685_v15 = vunpack.c.h.s8.bf16 %v3265_v50 }
 0x7aa   : > { %4041 = vmatpush1.bf16.msra.mxu0 %v3626_v20  ;;  %v3659_v20 = vunpack.c.h.s8.bf16 %v3251_v61  ;;  %v3264_v61 = vld [vmem:[%s6240_s14 + $0x510] sm:$0xff] }
 0x7ab   : > { %4369 = vmatpush1.bf16.msra.mxu1 %v3628_v21  ;;  %4042 = vmatprep.subr.bf16.mxu0 %v3631_v23  ;;  %v3661_v21 = vunpack.c.h.s8.bf16 %v3253_v56  ;;  %v3255_v23 = vld [vmem:[%s6240_s14 + $0x4c8] sm:$0xff]  ;;  %v3081_v56 = vmax.f32 %v6903_v10, 0.0  ;;  %v3684_v10 = vunpack.c.h.s8.bf16 %v3264_v61 }
 0x7ac   : > { %4370 = vmatprep.subr.bf16.mxu1 %v3633_v26  ;;  %v3658_v26 = vunpack.c.h.s8.bf16 %v3250_v14  ;;  %v3267_v14 = vld [vmem:[%s6240_s14 + $0x528] sm:$0xff] }
 0x7ae   : > { %4043 = vmatpush1.bf16.msra.mxu0 %v3630_v29  ;;  %v3663_v29 = vunpack.c.l.s8.bf16 %v3255_v23 }
 0x7af   : > { %4371 = vmatpush1.bf16.msra.mxu1 %v3632_v31  ;;  %4044 = vmatprep.subr.bf16.mxu0 %v3635_v33  ;;  %v3254_v31 = vld [vmem:[%s6240_s14 + $0x4c0] sm:$0xff]  ;;  %v3665_v33 = vunpack.c.l.s8.bf16 %v3257_v25 }
 0x7b0   : > { %4372 = vmatprep.subr.bf16.mxu1 %v3637_v34  ;;  %v3256_v34 = vld [vmem:[%s6240_s14 + $0x4d0] sm:$0xff]  ;;  %v3662_v8 = vunpack.c.l.s8.bf16 %v3254_v31 }
 0x7b1   : > { %v3664_v35 = vunpack.c.l.s8.bf16 %v3256_v34  ;;  %v3668_v27 = vunpack.c.h.s8.bf16 %v3256_v34  ;;  %v3273_v34 = vld [vmem:[%s6240_s14 + $0x558] sm:$0xff] }
 0x7b2   : > { %4045 = vmatpush1.bf16.msra.mxu0 %v3634_v11  ;;  %v3667_v11 = vunpack.c.h.s8.bf16 %v3255_v23 }
 0x7b3   : > { %4373 = vmatpush1.bf16.msra.mxu1 %v3636_v36  ;;  %4046 = vmatprep.subr.bf16.mxu0 %v3639_v37  ;;  %v3669_v36 = vunpack.c.h.s8.bf16 %v3257_v25  ;;  %v3259_v37 = vld [vmem:[%s6240_s14 + $0x4e8] sm:$0xff]  ;;  %v3268_v25 = vld [vmem:[%s6240_s14 + $0x530] sm:$0xff] }
 0x7b4   : > { %4374 = vmatprep.subr.bf16.mxu1 %v3641_v38  ;;  %v3666_v38 = vunpack.c.h.s8.bf16 %v3254_v31 }
 0x7b6   : > { %4047 = vmatpush1.bf16.msra.mxu0 %v3638_v43  ;;  %v3671_v43 = vunpack.c.l.s8.bf16 %v3259_v37 }
 0x7b7   : > { %4375 = vmatpush1.bf16.msra.mxu1 %v3640_v32  ;;  %4048 = vmatprep.subr.bf16.mxu0 %v3643_v41  ;;  %v3258_v32 = vld [vmem:[%s6240_s14 + $0x4e0] sm:$0xff]  ;;  %v3673_v41 = vunpack.c.l.s8.bf16 %v3261_v28 }
 0x7b8   : > { %4376 = vmatprep.subr.bf16.mxu1 %v3645_v0  ;;  %v3260_v0 = vld [vmem:[%s6240_s14 + $0x4f0] sm:$0xff]  ;;  %v3670_v44 = vunpack.c.l.s8.bf16 %v3258_v32 }
 0x7b9   : > { %v3672_v60 = vunpack.c.l.s8.bf16 %v3260_v0 }
 0x7ba   : > { %4049 = vmatpush1.bf16.msra.mxu0 %v3642_v49  ;;  %v3675_v49 = vunpack.c.h.s8.bf16 %v3259_v37  ;;  %v3697_v37 = vunpack.c.l.s8.bf16 %v3273_v34 }
 0x7bb   : > { %4377 = vmatpush1.bf16.msra.mxu1 %v3644_v51  ;;  %4050 = vmatprep.subr.bf16.mxu0 %v3647_v47  ;;  %v3677_v51 = vunpack.c.h.s8.bf16 %v3261_v28  ;;  %v3263_v47 = vld [vmem:[%s6240_s14 + $0x508] sm:$0xff]  ;;  %v3272_v28 = vld [vmem:[%s6240_s14 + $0x550] sm:$0xff] }
 0x7bc   : > { %4378 = vmatprep.subr.bf16.mxu1 %v3649_v53  ;;  %v3674_v53 = vunpack.c.h.s8.bf16 %v3258_v32  ;;  %v3683_v52 = vunpack.c.h.s8.bf16 %v3263_v47  ;;  %v3701_v32 = vunpack.c.h.s8.bf16 %v3273_v34 }
 0x7be   : > { %4051 = vmatpush1.bf16.msra.mxu0 %v3646_v55  ;;  %v3676_v55 = vunpack.c.h.s8.bf16 %v3260_v0  ;;  %v3277_v0 = vld [vmem:[%s6240_s14 + $0x578] sm:$0xff] }
 0x7bf   : > { %4379 = vmatpush1.bf16.msra.mxu1 %v3648_v57  ;;  %4052 = vmatprep.subr.bf16.mxu0 %v3651_v1  ;;  %v3679_v57 = vunpack.c.l.s8.bf16 %v3263_v47  ;;  %v3262_v1 = vld [vmem:[%s6240_s14 + $0x500] sm:$0xff]  ;;  %v3705_v47 = vunpack.c.l.s8.bf16 %v3277_v0 }
 0x7c0   : > { %4380 = vmatprep.subr.bf16.mxu1 %v3653_v7  ;;  %v3681_v7 = vunpack.c.l.s8.bf16 %v3265_v50  ;;  %v3276_v50 = vld [vmem:[%s6240_s14 + $0x570] sm:$0xff] }
 0x7c2   : > { %4053 = vmatpush1.bf16.msra.mxu0 %v3650_v9  ;;  %v3678_v9 = vunpack.c.l.s8.bf16 %v3262_v1 }
 0x7c3   : > { %4381 = vmatpush1.bf16.msra.mxu1 %v3652_v12  ;;  %4054 = vmatprep.subr.bf16.mxu0 %v3655_v13  ;;  %v3094_v12 = vpack.c.bf16 %v3078_v45, %v3078_v45  ;;  %v3680_v13 = vunpack.c.l.s8.bf16 %v3264_v61  ;;  %v3704_v45 = vunpack.c.l.s8.bf16 %v3276_v50 }
 0x7c4   : > { %4382 = vmatprep.subr.bf16.mxu1 %v3657_v42  ;;  %v3097_v42 = vpack.c.bf16 %v3081_v56, %v3081_v56  ;;  %v3708_v56 = vunpack.c.h.s8.bf16 %v3276_v50 }
 0x7c6   : > { %4055 = vmatpush1.bf16.msra.mxu0 %v3654_v16  ;;  %v3269_v16 = vld [vmem:[%s6240_s14 + $0x538] sm:$0xff] }
 0x7c7   : > { %4383 = vmatpush1.bf16.msra.mxu1 %v3656_v3  ;;  %4056 = vmatprep.subr.bf16.mxu0 %v3659_v20  ;;  %v3682_v3 = vunpack.c.h.s8.bf16 %v3262_v1  ;;  %v3687_v20 = vunpack.c.l.s8.bf16 %v3267_v14  ;;  %v3689_v23 = vunpack.c.l.s8.bf16 %v3269_v16  ;;  %v3693_v31 = vunpack.c.h.s8.bf16 %v3269_v16  ;;  %v3279_v1 = vld [vmem:[%s6240_s14 + $0x588] sm:$0xff] }
 0x7c8   : > { %4384 = vmatprep.subr.bf16.mxu1 %v3661_v21  ;;  %v3266_v21 = vld [vmem:[%s6240_s14 + $0x520] sm:$0xff] }
 0x7ca   : > { %4057 = vmatpush1.bf16.msra.mxu0 %v3658_v26  ;;  %v3686_v26 = vunpack.c.l.s8.bf16 %v3266_v21 }
 0x7cb   : > { %4385 = vmatpush1.bf16.msra.mxu1 %v3660_v18  ;;  %4058 = vmatprep.subr.bf16.mxu0 %v3663_v29  ;;  %v3688_v18 = vunpack.c.l.s8.bf16 %v3268_v25  ;;  %v3691_v29 = vunpack.c.h.s8.bf16 %v3267_v14 }
 0x7cc   : > { %4386 = vmatprep.subr.bf16.mxu1 %v3665_v33  ;;  %v3271_v33 = vld [vmem:[%s6240_s14 + $0x548] sm:$0xff] }
 0x7ce   : > { %4059 = vmatpush1.bf16.msra.mxu0 %v3662_v8  ;;  %v3690_v8 = vunpack.c.h.s8.bf16 %v3266_v21 }
 0x7cf   : > { %4387 = vmatpush1.bf16.msra.mxu1 %v3664_v35  ;;  %4060 = vmatprep.subr.bf16.mxu0 %v3667_v11  ;;  %v3692_v35 = vunpack.c.h.s8.bf16 %v3268_v25  ;;  %v3695_v11 = vunpack.c.l.s8.bf16 %v3271_v33  ;;  %v3282_v25 = vld [vmem:[%s6240_s14 + $0x5a0] sm:$0xff] }
 0x7d0   : > { %4388 = vmatprep.subr.bf16.mxu1 %v3669_v36  ;;  %v3270_v36 = vld [vmem:[%s6240_s14 + $0x540] sm:$0xff] }
 0x7d2   : > { %4061 = vmatpush1.bf16.msra.mxu0 %v3666_v38  ;;  %v3694_v38 = vunpack.c.l.s8.bf16 %v3270_v36 }
 0x7d3   : > { %4389 = vmatpush1.bf16.msra.mxu1 %v3668_v27  ;;  %4062 = vmatprep.subr.bf16.mxu0 %v3671_v43  ;;  %v3696_v27 = vunpack.c.l.s8.bf16 %v3272_v28  ;;  %v3699_v43 = vunpack.c.h.s8.bf16 %v3271_v33 }
 0x7d4   : > { %4390 = vmatprep.subr.bf16.mxu1 %v3673_v41  ;;  %v3275_v41 = vld [vmem:[%s6240_s14 + $0x568] sm:$0xff] }
 0x7d6   : > { %4063 = vmatpush1.bf16.msra.mxu0 %v3670_v44  ;;  %v3698_v44 = vunpack.c.h.s8.bf16 %v3270_v36 }
 0x7d7   : > { %4391 = vmatpush1.bf16.msra.mxu1 %v3672_v60  ;;  %4064 = vmatprep.subr.bf16.mxu0 %v3675_v49  ;;  %v3700_v60 = vunpack.c.h.s8.bf16 %v3272_v28  ;;  %v3703_v49 = vunpack.c.l.s8.bf16 %v3275_v41  ;;  %v3286_v28 = vld [vmem:[%s6240_s14 + $0x5c0] sm:$0xff] }
 0x7d8   : > { %4392 = vmatprep.subr.bf16.mxu1 %v3677_v51  ;;  %v3274_v51 = vld [vmem:[%s6240_s14 + $0x560] sm:$0xff]  ;;  %v3730_v50 = vunpack.c.h.s8.bf16 %v3286_v28 }
 0x7d9   : > { %v3706_v61 = vunpack.c.h.s8.bf16 %v3274_v51 }
 0x7da   : > { %4065 = vmatpush1.bf16.msra.mxu0 %v3674_v53  ;;  %v3702_v53 = vunpack.c.l.s8.bf16 %v3274_v51  ;;  %v2965_v51 = vrot.slane %v6973_v19, %v6439_v39 }
 0x7db   : > { %4393 = vmatpush1.bf16.msra.mxu1 %v3676_v55  ;;  %4075 = vmatprep.subr.bf16.mxu0 %v3679_v57  ;;  %v3707_v55 = vunpack.c.h.s8.bf16 %v3275_v41  ;;  %v3709_v57 = vunpack.c.h.s8.bf16 %v3277_v0 }
 0x7dc   : > { %4403 = vmatprep.subr.bf16.mxu1 %v3681_v7  ;;  %v3281_v7 = vld [vmem:[%s6240_s14 + $0x598] sm:$0xff] }
 0x7dd   : > { %4067 = vmatmul.mubr.bf16.vlgmr.msra.gmra.mrb[20].mxu0 %v3094_v12  ;;  %v3717_v16 = vunpack.c.h.s8.bf16 %v3281_v7 }
 0x7de   : > { %4395 = vmatmul.mubr.bf16.vlgmr.msra.gmra.mrb[20].mxu1 %v3094_v12  ;;  %4076 = vmatpush1.bf16.msra.mxu0 %v3678_v9  ;;  %v3711_v9 = vunpack.c.l.s8.bf16 %v3279_v1  ;;  %v3278_v12 = vld [vmem:[%s6240_s14 + $0x580] sm:$0xff] }
 0x7df   : > { %4107 = vmatprep.mubr.bf16.mxu0 %v3097_v42  ;;  %4404 = vmatpush1.bf16.msra.mxu1 %v3680_v13  ;;  %v3713_v13 = vunpack.c.l.s8.bf16 %v3281_v7  ;;  %v3710_v14 = vunpack.c.l.s8.bf16 %v3278_v12  ;;  %v3045_v7 = vrot.slane %v2965_v51, %v6345_v62 }
 0x7e0   : > { %4435 = vmatprep.mubr.bf16.mxu1 %v3097_v42  ;;  %4077 = vmatprep.subr.bf16.mxu0 %v3683_v52  ;;  %v3280_v52 = vld [vmem:[%s6240_s14 + $0x590] sm:$0xff] }
 0x7e1   : > { %4405 = vmatprep.subr.bf16.mxu1 %v3685_v15  ;;  %v3712_v42 = vunpack.c.l.s8.bf16 %v3280_v52  ;;  %v3715_v15 = vunpack.c.h.s8.bf16 %v3279_v1  ;;  %v3716_v21 = vunpack.c.h.s8.bf16 %v3280_v52 }
 0x7e2   : > { %4078 = vmatpush1.bf16.msra.mxu0 %v3682_v3  ;;  %v3283_v3 = vld [vmem:[%s6240_s14 + $0x5a8] sm:$0xff] }
 0x7e3   : > { %4406 = vmatpush1.bf16.msra.mxu1 %v3684_v10  ;;  %4079 = vmatprep.subr.bf16.mxu0 %v3687_v20  ;;  %v3285_v10 = vld [vmem:[%s6240_s14 + $0x5b8] sm:$0xff]  ;;  %v3714_v20 = vunpack.c.h.s8.bf16 %v3278_v12  ;;  %v3723_v33 = vunpack.c.h.s8.bf16 %v3283_v3 }
 0x7e4   : > { %4407 = vmatprep.subr.bf16.mxu1 %v3689_v23  ;;  %v3719_v23 = vunpack.c.l.s8.bf16 %v3283_v3  ;;  %v3725_v34 = vunpack.c.h.s8.bf16 %v3285_v10  ;;  %v3296_v3 = vld [vmem:[%s6240_s14 + $0x610] sm:$0xff] }
 0x7e6   : > { %4080 = vmatpush1.bf16.msra.mxu0 %v3686_v26  ;;  %v3721_v26 = vunpack.c.l.s8.bf16 %v3285_v10 }
 0x7e7   : > { %4408 = vmatpush1.bf16.msra.mxu1 %v3688_v18  ;;  %4081 = vmatprep.subr.bf16.mxu0 %v3691_v29  ;;  %v3284_v18 = vld [vmem:[%s6240_s14 + $0x5b0] sm:$0xff]  ;;  %v3718_v29 = vunpack.c.l.s8.bf16 %v3282_v25 }
 0x7e8   : > { %4409 = vmatprep.subr.bf16.mxu1 %v3693_v31  ;;  %v3720_v31 = vunpack.c.l.s8.bf16 %v3284_v18  ;;  %v3724_v36 = vunpack.c.h.s8.bf16 %v3284_v18 }
 0x7ea   : > { %4082 = vmatpush1.bf16.msra.mxu0 %v3690_v8  ;;  %v3287_v8 = vld [vmem:[%s6240_s14 + $0x5c8] sm:$0xff] }
 0x7eb   : > { %4410 = vmatpush1.bf16.msra.mxu1 %v3692_v35  ;;  %4083 = vmatprep.subr.bf16.mxu0 %v3695_v11  ;;  %v3289_v35 = vld [vmem:[%s6240_s14 + $0x5d8] sm:$0xff]  ;;  %v3722_v11 = vunpack.c.h.s8.bf16 %v3282_v25  ;;  %v3731_v0 = vunpack.c.h.s8.bf16 %v3287_v8  ;;  %v3299_v25 = vld [vmem:[%s6240_s14 + $0x628] sm:$0xff] }
 0x7ec   : > { %4411 = vmatprep.subr.bf16.mxu1 %v3697_v37  ;;  %v3727_v37 = vunpack.c.l.s8.bf16 %v3287_v8  ;;  %v3298_v8 = vld [vmem:[%s6240_s14 + $0x620] sm:$0xff] }
 0x7ee   : > { %4084 = vmatpush1.bf16.msra.mxu0 %v3694_v38  ;;  %v3729_v38 = vunpack.c.l.s8.bf16 %v3289_v35 }
 0x7ef   : > { %4412 = vmatpush1.bf16.msra.mxu1 %v3696_v27  ;;  %4085 = vmatprep.subr.bf16.mxu0 %v3699_v43  ;;  %v3288_v27 = vld [vmem:[%s6240_s14 + $0x5d0] sm:$0xff]  ;;  %v2805_v43 = vrot.slane %v6973_v19, %v6442_v40 }
 0x7f0   : > { %4413 = vmatprep.subr.bf16.mxu1 %v3701_v32  ;;  %v3726_v32 = vunpack.c.l.s8.bf16 %v3286_v28  ;;  %v3728_v41 = vunpack.c.l.s8.bf16 %v3288_v27  ;;  %v3732_v40 = vunpack.c.h.s8.bf16 %v3288_v27  ;;  %v3755_v28 = vunpack.c.h.s8.bf16 %v3299_v25  ;;  %v3303_v27 = vld [vmem:[%s6240_s14 + $0x648] sm:$0xff] }
 0x7f2   : > { %4086 = vmatpush1.bf16.msra.mxu0 %v3698_v44  ;;  %v3733_v44 = vunpack.c.h.s8.bf16 %v3289_v35 }
 0x7f3   : > { %4414 = vmatpush1.bf16.msra.mxu1 %v3700_v60  ;;  %4087 = vmatprep.subr.bf16.mxu0 %v3703_v49  ;;  %v3291_v60 = vld [vmem:[%s6240_s14 + $0x5e8] sm:$0xff]  ;;  %v2885_v49 = vrot.slane %v2805_v43, %v6336_v59  ;;  %v3305_v43 = vld [vmem:[%s6240_s14 + $0x658] sm:$0xff] }
 0x7f4   : > { %4415 = vmatprep.subr.bf16.mxu1 %v3705_v47  ;;  %v3293_v47 = vld [vmem:[%s6240_s14 + $0x5f8] sm:$0xff]  ;;  %v3739_v19 = vunpack.c.h.s8.bf16 %v3291_v60 }
 0x7f5   : > { %v2907_v1 = vmul.f32 %v2885_v49, %v6998_v2  ;;  %v3304_v49 = vld [vmem:[%s6240_s14 + $0x650] sm:$0xff] }
 0x7f6   : > { %4088 = vmatpush1.bf16.msra.mxu0 %v3702_v53  ;;  %v3735_v53 = vunpack.c.l.s8.bf16 %v3291_v60  ;;  %v3761_v60 = vunpack.c.l.s8.bf16 %v3305_v43 }
 0x7f7   : > { %4416 = vmatpush1.bf16.msra.mxu1 %v3704_v45  ;;  %4089 = vmatprep.subr.bf16.mxu0 %v3707_v55  ;;  %v3290_v45 = vld [vmem:[%s6240_s14 + $0x5e0] sm:$0xff]  ;;  %v3737_v55 = vunpack.c.l.s8.bf16 %v3293_v47  ;;  %v3067_v12 = vadd.f32 %v3045_v7, %v2907_v1 }
 0x7f8   : > { %4417 = vmatprep.subr.bf16.mxu1 %v3709_v57  ;;  %v3292_v57 = vld [vmem:[%s6240_s14 + $0x5f0] sm:$0xff]  ;;  %v3738_v52 = vunpack.c.h.s8.bf16 %v3290_v45  ;;  %v3306_v7 = vld [vmem:[%s6240_s14 + $0x660] sm:$0xff] }
 0x7f9   : > { %v3736_v39 = vunpack.c.l.s8.bf16 %v3292_v57  ;;  %v3740_v2 = vunpack.c.h.s8.bf16 %v3292_v57  ;;  %v3083_v10 = vmax.f32 %v3067_v12, 0.0  ;;  %v3764_v57 = vunpack.c.h.s8.bf16 %v3304_v49 }
 0x7fa   : > { %4090 = vmatpush1.bf16.msra.mxu0 %v3706_v61  ;;  %v3734_v61 = vunpack.c.l.s8.bf16 %v3290_v45  ;;  %v3309_v45 = vld [vmem:[%s6240_s14 + $0x678] sm:$0xff] }
 0x7fb   : > { %4418 = vmatpush1.bf16.msra.mxu1 %v3708_v56  ;;  %4091 = vmatprep.subr.bf16.mxu0 %v3711_v9  ;;  %v3741_v56 = vunpack.c.h.s8.bf16 %v3293_v47  ;;  %v3295_v9 = vld [vmem:[%s6240_s14 + $0x608] sm:$0xff]  ;;  %v3760_v47 = vunpack.c.l.s8.bf16 %v3304_v49  ;;  %v3773_v12 = vunpack.c.h.s8.bf16 %v3309_v45 }
 0x7fc   : > { %4419 = vmatprep.subr.bf16.mxu1 %v3713_v13  ;;  %v3297_v13 = vld [vmem:[%s6240_s14 + $0x618] sm:$0xff] }
 0x7fd   : > { %v3749_v18 = vunpack.c.h.s8.bf16 %v3297_v13 }
 0x7fe   : > { %4092 = vmatpush1.bf16.msra.mxu0 %v3710_v14  ;;  %v3080_v14 = vmax.f32 %v6900_v6, 0.0  ;;  %v3747_v6 = vunpack.c.h.s8.bf16 %v3295_v9 }
 0x7ff   : > { %4420 = vmatpush1.bf16.msra.mxu1 %v3712_v42  ;;  %4093 = vmatprep.subr.bf16.mxu0 %v3715_v15  ;;  %v3743_v42 = vunpack.c.l.s8.bf16 %v3295_v9  ;;  %v3294_v15 = vld [vmem:[%s6240_s14 + $0x600] sm:$0xff] }
 0x800   : > { %4421 = vmatprep.subr.bf16.mxu1 %v3717_v16  ;;  %v3745_v16 = vunpack.c.l.s8.bf16 %v3297_v13  ;;  %v3311_v13 = vld [vmem:[%s6240_s14 + $0x688] sm:$0xff] }
 0x802   : > { %4094 = vmatpush1.bf16.msra.mxu0 %v3714_v20  ;;  %v3742_v20 = vunpack.c.l.s8.bf16 %v3294_v15 }
 0x803   : > { %4422 = vmatpush1.bf16.msra.mxu1 %v3716_v21  ;;  %4095 = vmatprep.subr.bf16.mxu0 %v3719_v23  ;;  %v3096_v21 = vpack.c.bf16 %v3080_v14, %v3080_v14  ;;  %v3744_v23 = vunpack.c.l.s8.bf16 %v3296_v3  ;;  %v3770_v14 = vunpack.c.h.s8.bf16 %v3306_v7 }
 0x804   : > { %4423 = vmatprep.subr.bf16.mxu1 %v3721_v26  ;;  %v3099_v26 = vpack.c.bf16 %v3083_v10, %v3083_v10 }
 0x806   : > { %4096 = vmatpush1.bf16.msra.mxu0 %v3718_v29  ;;  %v3301_v29 = vld [vmem:[%s6240_s14 + $0x638] sm:$0xff] }
 0x807   : > { %4424 = vmatpush1.bf16.msra.mxu1 %v3720_v31  ;;  %4097 = vmatprep.subr.bf16.mxu0 %v3723_v33  ;;  %v3746_v31 = vunpack.c.h.s8.bf16 %v3294_v15  ;;  %v3748_v33 = vunpack.c.h.s8.bf16 %v3296_v3  ;;  %v3753_v35 = vunpack.c.l.s8.bf16 %v3301_v29  ;;  %v3310_v15 = vld [vmem:[%s6240_s14 + $0x680] sm:$0xff]  ;;  %v3312_v3 = vld [vmem:[%s6240_s14 + $0x690] sm:$0xff] }
 0x808   : > { %4425 = vmatprep.subr.bf16.mxu1 %v3725_v34  ;;  %v3751_v34 = vunpack.c.l.s8.bf16 %v3299_v25  ;;  %v3774_v10 = vunpack.c.l.s8.bf16 %v3310_v15  ;;  %v3317_v25 = vld [vmem:[%s6240_s14 + $0x6b8] sm:$0xff] }
 0x80a   : > { %4098 = vmatpush1.bf16.msra.mxu0 %v3722_v11  ;;  %v3300_v11 = vld [vmem:[%s6240_s14 + $0x630] sm:$0xff] }
 0x80b   : > { %4426 = vmatpush1.bf16.msra.mxu1 %v3724_v36  ;;  %4099 = vmatprep.subr.bf16.mxu0 %v3727_v37  ;;  %v3750_v36 = vunpack.c.l.s8.bf16 %v3298_v8  ;;  %v3752_v37 = vunpack.c.l.s8.bf16 %v3300_v11 }
 0x80c   : > { %4427 = vmatprep.subr.bf16.mxu1 %v3729_v38  ;;  %v3757_v38 = vunpack.c.h.s8.bf16 %v3301_v29 }
 0x80e   : > { %4100 = vmatpush1.bf16.msra.mxu0 %v3726_v32  ;;  %v3754_v32 = vunpack.c.h.s8.bf16 %v3298_v8 }
 0x80f   : > { %4428 = vmatpush1.bf16.msra.mxu1 %v3728_v41  ;;  %4101 = vmatprep.subr.bf16.mxu0 %v3731_v0  ;;  %v3756_v41 = vunpack.c.h.s8.bf16 %v3300_v11  ;;  %v3759_v0 = vunpack.c.l.s8.bf16 %v3303_v27 }
 0x810   : > { %4429 = vmatprep.subr.bf16.mxu1 %v3733_v44  ;;  %v3302_v44 = vld [vmem:[%s6240_s14 + $0x640] sm:$0xff] }
 0x811   : > { %v3758_v51 = vunpack.c.l.s8.bf16 %v3302_v44 }
 0x812   : > { %4102 = vmatpush1.bf16.msra.mxu0 %v3730_v50  ;;  %v3763_v50 = vunpack.c.h.s8.bf16 %v3303_v27 }
 0x813   : > { %4430 = vmatpush1.bf16.msra.mxu1 %v3732_v40  ;;  %4103 = vmatprep.subr.bf16.mxu0 %v3735_v53  ;;  %v3765_v40 = vunpack.c.h.s8.bf16 %v3305_v43  ;;  %v3307_v53 = vld [vmem:[%s6240_s14 + $0x668] sm:$0xff] }
 0x814   : > { %4431 = vmatprep.subr.bf16.mxu1 %v3737_v55  ;;  %v3762_v55 = vunpack.c.h.s8.bf16 %v3302_v44  ;;  %v3767_v1 = vunpack.c.l.s8.bf16 %v3307_v53  ;;  %v3771_v9 = vunpack.c.h.s8.bf16 %v3307_v53 }
 0x816   : > { %4104 = vmatpush1.bf16.msra.mxu0 %v3734_v61  ;;  %v3769_v61 = vunpack.c.l.s8.bf16 %v3309_v45 }
 0x817   : > { %4432 = vmatpush1.bf16.msra.mxu1 %v3736_v39  ;;  %4105 = vmatprep.subr.bf16.mxu0 %v3739_v19  ;;  %v3308_v39 = vld [vmem:[%s6240_s14 + $0x670] sm:$0xff]  ;;  %v3766_v19 = vunpack.c.l.s8.bf16 %v3306_v7 }
 0x818   : > { %4433 = vmatprep.subr.bf16.mxu1 %v3741_v56  ;;  %v3768_v56 = vunpack.c.l.s8.bf16 %v3308_v39 }
 0x81a   : > { %4106 = vmatpush1.bf16.msra.mxu0 %v3738_v52  ;;  %v3313_v52 = vld [vmem:[%s6240_s14 + $0x698] sm:$0xff] }
 0x81b   : > { %4434 = vmatpush1.bf16.msra.mxu1 %v3740_v2  ;;  %4116 = vmatprep.subr.bf16.mxu0 %v3743_v42  ;;  %v3772_v2 = vunpack.c.h.s8.bf16 %v3308_v39  ;;  %v3775_v42 = vunpack.c.l.s8.bf16 %v3311_v13 }
 0x81c   : > { %4444 = vmatprep.subr.bf16.mxu1 %v3745_v16  ;;  %v3777_v16 = vunpack.c.l.s8.bf16 %v3313_v52 }
 0x81d   : > { %4108 = vmatmul.mubr.bf16.vlgmr.msra.gmra.mrb[20].mxu0 %v3096_v21 }
 0x81e   : > { %4436 = vmatmul.mubr.bf16.vlgmr.msra.gmra.mrb[20].mxu1 %v3096_v21  ;;  %4117 = vmatpush1.bf16.msra.mxu0 %v3742_v20  ;;  %v3776_v20 = vunpack.c.l.s8.bf16 %v3312_v3  ;;  %v3779_v21 = vunpack.c.h.s8.bf16 %v3311_v13  ;;  %v3082_v13 = vmax.f32 %v7001_v58, 0.0 }
 0x81f   : > { %4148 = vmatprep.mubr.bf16.mxu0 %v3099_v26  ;;  %4445 = vmatpush1.bf16.msra.mxu1 %v3744_v23  ;;  %v3781_v23 = vunpack.c.h.s8.bf16 %v3313_v52 }
 0x820   : > { %4476 = vmatprep.mubr.bf16.mxu1 %v3099_v26  ;;  %4118 = vmatprep.subr.bf16.mxu0 %v3747_v6  ;;  %v3315_v6 = vld [vmem:[%s6240_s14 + $0x6a8] sm:$0xff]  ;;  %v3778_v26 = vunpack.c.h.s8.bf16 %v3310_v15  ;;  %v3328_v15 = vld [vmem:[%s6240_s14 + $0x710] sm:$0xff] }
 0x821   : > { %4446 = vmatprep.subr.bf16.mxu1 %v3749_v18  ;;  %v3780_v18 = vunpack.c.h.s8.bf16 %v3312_v3  ;;  %v3783_v29 = vunpack.c.l.s8.bf16 %v3315_v6  ;;  %v3787_v11 = vunpack.c.h.s8.bf16 %v3315_v6 }
 0x822   : > { %4119 = vmatpush1.bf16.msra.mxu0 %v3746_v31  ;;  %v3314_v31 = vld [vmem:[%s6240_s14 + $0x6a0] sm:$0xff] }
 0x823   : > { %4447 = vmatpush1.bf16.msra.mxu1 %v3748_v33  ;;  %4120 = vmatprep.subr.bf16.mxu0 %v3751_v34  ;;  %v3785_v33 = vunpack.c.l.s8.bf16 %v3317_v25  ;;  %v3316_v34 = vld [vmem:[%s6240_s14 + $0x6b0] sm:$0xff]  ;;  %v3782_v8 = vunpack.c.l.s8.bf16 %v3314_v31 }
 0x824   : > { %4448 = vmatprep.subr.bf16.mxu1 %v3753_v35  ;;  %v3784_v35 = vunpack.c.l.s8.bf16 %v3316_v34  ;;  %v3788_v27 = vunpack.c.h.s8.bf16 %v3316_v34 }
 0x826   : > { %4121 = vmatpush1.bf16.msra.mxu0 %v3750_v36  ;;  %v3789_v36 = vunpack.c.h.s8.bf16 %v3317_v25  ;;  %v3333_v25 = vld [vmem:[%s6240_s14 + $0x738] sm:$0xff] }
 0x827   : > { %4449 = vmatpush1.bf16.msra.mxu1 %v3752_v37  ;;  %4122 = vmatprep.subr.bf16.mxu0 %v3755_v28  ;;  %v3319_v37 = vld [vmem:[%s6240_s14 + $0x6c8] sm:$0xff]  ;;  %v3321_v28 = vld [vmem:[%s6240_s14 + $0x6d8] sm:$0xff] }
 0x828   : > { %4450 = vmatprep.subr.bf16.mxu1 %v3757_v38  ;;  %v3786_v38 = vunpack.c.h.s8.bf16 %v3314_v31  ;;  %v3791_v43 = vunpack.c.l.s8.bf16 %v3319_v37  ;;  %v3795_v49 = vunpack.c.h.s8.bf16 %v3319_v37  ;;  %v3817_v31 = vunpack.c.l.s8.bf16 %v3333_v25  ;;  %v3337_v37 = vld [vmem:[%s6240_s14 + $0x758] sm:$0xff] }
 0x82a   : > { %4123 = vmatpush1.bf16.msra.mxu0 %v3754_v32  ;;  %v3318_v32 = vld [vmem:[%s6240_s14 + $0x6c0] sm:$0xff] }
 0x82b   : > { %4451 = vmatpush1.bf16.msra.mxu1 %v3756_v41  ;;  %4124 = vmatprep.subr.bf16.mxu0 %v3759_v0  ;;  %v3793_v41 = vunpack.c.l.s8.bf16 %v3321_v28  ;;  %v3320_v0 = vld [vmem:[%s6240_s14 + $0x6d0] sm:$0xff]  ;;  %v3790_v44 = vunpack.c.l.s8.bf16 %v3318_v32 }
 0x82c   : > { %4452 = vmatprep.subr.bf16.mxu1 %v3761_v60  ;;  %v3792_v60 = vunpack.c.l.s8.bf16 %v3320_v0  ;;  %v3796_v53 = vunpack.c.h.s8.bf16 %v3320_v0 }
 0x82e   : > { %4125 = vmatpush1.bf16.msra.mxu0 %v3758_v51  ;;  %v3797_v51 = vunpack.c.h.s8.bf16 %v3321_v28 }
 0x82f   : > { %4453 = vmatpush1.bf16.msra.mxu1 %v3760_v47  ;;  %4126 = vmatprep.subr.bf16.mxu0 %v3763_v50  ;;  %v3323_v47 = vld [vmem:[%s6240_s14 + $0x6e8] sm:$0xff]  ;;  %v3325_v50 = vld [vmem:[%s6240_s14 + $0x6f8] sm:$0xff] }
 0x830   : > { %4454 = vmatprep.subr.bf16.mxu1 %v3765_v40  ;;  %v3794_v40 = vunpack.c.h.s8.bf16 %v3318_v32  ;;  %v3799_v45 = vunpack.c.l.s8.bf16 %v3323_v47  ;;  %v3803_v39 = vunpack.c.h.s8.bf16 %v3323_v47  ;;  %v3825_v32 = vunpack.c.l.s8.bf16 %v3337_v37  ;;  %v3341_v47 = vld [vmem:[%s6240_s14 + $0x778] sm:$0xff] }
 0x832   : > { %4127 = vmatpush1.bf16.msra.mxu0 %v3762_v55  ;;  %v3322_v55 = vld [vmem:[%s6240_s14 + $0x6e0] sm:$0xff] }
 0x833   : > { %4455 = vmatpush1.bf16.msra.mxu1 %v3764_v57  ;;  %4128 = vmatprep.subr.bf16.mxu0 %v3767_v1  ;;  %v3801_v57 = vunpack.c.l.s8.bf16 %v3325_v50  ;;  %v3324_v1 = vld [vmem:[%s6240_s14 + $0x6f0] sm:$0xff]  ;;  %v3798_v7 = vunpack.c.l.s8.bf16 %v3322_v55 }
 0x834   : > { %4456 = vmatprep.subr.bf16.mxu1 %v3769_v61  ;;  %v3800_v61 = vunpack.c.l.s8.bf16 %v3324_v1  ;;  %v3804_v52 = vunpack.c.h.s8.bf16 %v3324_v1 }
 0x836   : > { %4129 = vmatpush1.bf16.msra.mxu0 %v3766_v19  ;;  %v3805_v19 = vunpack.c.h.s8.bf16 %v3325_v50 }
 0x837   : > { %4457 = vmatpush1.bf16.msra.mxu1 %v3768_v56  ;;  %4130 = vmatprep.subr.bf16.mxu0 %v3771_v9  ;;  %v3327_v56 = vld [vmem:[%s6240_s14 + $0x708] sm:$0xff]  ;;  %v3329_v9 = vld [vmem:[%s6240_s14 + $0x718] sm:$0xff] }
 0x838   : > { %4458 = vmatprep.subr.bf16.mxu1 %v3773_v12  ;;  %v3802_v12 = vunpack.c.h.s8.bf16 %v3322_v55  ;;  %v3811_v58 = vunpack.c.h.s8.bf16 %v3327_v56  ;;  %v3813_v6 = vunpack.c.h.s8.bf16 %v3329_v9  ;;  %v3833_v55 = vunpack.c.l.s8.bf16 %v3341_v47 }
 0x83a   : > { %4131 = vmatpush1.bf16.msra.mxu0 %v3770_v14  ;;  %v3807_v14 = vunpack.c.l.s8.bf16 %v3327_v56  ;;  %v3345_v56 = vld [vmem:[%s6240_s14 + $0x798] sm:$0xff] }
 0x83b   : > { %4459 = vmatpush1.bf16.msra.mxu1 %v3772_v2  ;;  %4132 = vmatprep.subr.bf16.mxu0 %v3775_v42  ;;  %v3326_v2 = vld [vmem:[%s6240_s14 + $0x700] sm:$0xff]  ;;  %v3809_v42 = vunpack.c.l.s8.bf16 %v3329_v9 }
 0x83c   : > { %4460 = vmatprep.subr.bf16.mxu1 %v3777_v16  ;;  %v3085_v16 = vmax.f32 %v7006_v22, 0.0  ;;  %v3806_v3 = vunpack.c.l.s8.bf16 %v3326_v2  ;;  %v3812_v22 = vunpack.c.h.s8.bf16 %v3328_v15 }
 0x83e   : > { %4133 = vmatpush1.bf16.msra.mxu0 %v3774_v10  ;;  %v3098_v10 = vpack.c.bf16 %v3082_v13, %v3082_v13 }
 0x83f   : > { %4461 = vmatpush1.bf16.msra.mxu1 %v3776_v20  ;;  %4134 = vmatprep.subr.bf16.mxu0 %v3779_v21  ;;  %v3808_v20 = vunpack.c.l.s8.bf16 %v3328_v15  ;;  %v3331_v21 = vld [vmem:[%s6240_s14 + $0x728] sm:$0xff] }
 0x840   : > { %4462 = vmatprep.subr.bf16.mxu1 %v3781_v23  ;;  %v3101_v23 = vpack.c.bf16 %v3085_v16, %v3085_v16 }
 0x842   : > { %4135 = vmatpush1.bf16.msra.mxu0 %v3778_v26  ;;  %v3810_v26 = vunpack.c.h.s8.bf16 %v3326_v2  ;;  %v3344_v2 = vld [vmem:[%s6240_s14 + $0x790] sm:$0xff] }
 0x843   : > { %4463 = vmatpush1.bf16.msra.mxu1 %v3780_v18  ;;  %4136 = vmatprep.subr.bf16.mxu0 %v3783_v29  ;;  %v3815_v18 = vunpack.c.l.s8.bf16 %v3331_v21  ;;  %v3330_v29 = vld [vmem:[%s6240_s14 + $0x720] sm:$0xff]  ;;  %v3840_v15 = vunpack.c.l.s8.bf16 %v3344_v2 }
 0x844   : > { %4464 = vmatprep.subr.bf16.mxu1 %v3785_v33  ;;  %v3332_v33 = vld [vmem:[%s6240_s14 + $0x730] sm:$0xff]  ;;  %v3814_v34 = vunpack.c.l.s8.bf16 %v3330_v29  ;;  %v3818_v28 = vunpack.c.h.s8.bf16 %v3330_v29 }
 0x846   : > { %4137 = vmatpush1.bf16.msra.mxu0 %v3782_v8  ;;  %v3816_v8 = vunpack.c.l.s8.bf16 %v3332_v33 }
 0x847   : > { %4465 = vmatpush1.bf16.msra.mxu1 %v3784_v35  ;;  %4138 = vmatprep.subr.bf16.mxu0 %v3787_v11  ;;  %v3819_v35 = vunpack.c.h.s8.bf16 %v3331_v21  ;;  %v3821_v11 = vunpack.c.h.s8.bf16 %v3333_v25  ;;  %v3844_v21 = vunpack.c.h.s8.bf16 %v3344_v2 }
 0x848   : > { %4466 = vmatprep.subr.bf16.mxu1 %v3789_v36  ;;  %v3335_v36 = vld [vmem:[%s6240_s14 + $0x748] sm:$0xff] }
 0x84a   : > { %4139 = vmatpush1.bf16.msra.mxu0 %v3786_v38  ;;  %v3820_v38 = vunpack.c.h.s8.bf16 %v3332_v33  ;;  %v3351_v33 = vld [vmem:[%s6240_s14 + $0x7c8] sm:$0xff] }
 0x84b   : > { %4467 = vmatpush1.bf16.msra.mxu1 %v3788_v27  ;;  %4140 = vmatprep.subr.bf16.mxu0 %v3791_v43  ;;  %v3823_v27 = vunpack.c.l.s8.bf16 %v3335_v36  ;;  %v3334_v43 = vld [vmem:[%s6240_s14 + $0x740] sm:$0xff] }
 0x84c   : > { %4468 = vmatprep.subr.bf16.mxu1 %v3793_v41  ;;  %v3336_v41 = vld [vmem:[%s6240_s14 + $0x750] sm:$0xff]  ;;  %v3822_v0 = vunpack.c.l.s8.bf16 %v3334_v43  ;;  %v3826_v50 = vunpack.c.h.s8.bf16 %v3334_v43  ;;  %v3859_v43 = vunpack.c.h.s8.bf16 %v3351_v33 }
 0x84e   : > { %4141 = vmatpush1.bf16.msra.mxu0 %v3790_v44  ;;  %v3824_v44 = vunpack.c.l.s8.bf16 %v3336_v41 }
 0x84f   : > { %4469 = vmatpush1.bf16.msra.mxu1 %v3792_v60  ;;  %4142 = vmatprep.subr.bf16.mxu0 %v3795_v49  ;;  %v3827_v60 = vunpack.c.h.s8.bf16 %v3335_v36  ;;  %v3829_v49 = vunpack.c.h.s8.bf16 %v3337_v37  ;;  %v3350_v36 = vld [vmem:[%s6240_s14 + $0x7c0] sm:$0xff] }
 0x850   : > { %4470 = vmatprep.subr.bf16.mxu1 %v3797_v51  ;;  %v3339_v51 = vld [vmem:[%s6240_s14 + $0x768] sm:$0xff] }
 0x852   : > { %4143 = vmatpush1.bf16.msra.mxu0 %v3794_v40  ;;  %v3828_v40 = vunpack.c.h.s8.bf16 %v3336_v41  ;;  %v3355_v41 = vld [vmem:[%s6240_s14 + $0x7e8] sm:$0xff] }
 0x853   : > { %4471 = vmatpush1.bf16.msra.mxu1 %v3796_v53  ;;  %4144 = vmatprep.subr.bf16.mxu0 %v3799_v45  ;;  %v3831_v53 = vunpack.c.l.s8.bf16 %v3339_v51  ;;  %v3338_v45 = vld [vmem:[%s6240_s14 + $0x760] sm:$0xff] }
 0x854   : > { %4472 = vmatprep.subr.bf16.mxu1 %v3801_v57  ;;  %v3340_v57 = vld [vmem:[%s6240_s14 + $0x770] sm:$0xff]  ;;  %v3830_v1 = vunpack.c.l.s8.bf16 %v3338_v45  ;;  %v3834_v9 = vunpack.c.h.s8.bf16 %v3338_v45  ;;  %v3867_v45 = vunpack.c.h.s8.bf16 %v3355_v41 }
 0x856   : > { %4145 = vmatpush1.bf16.msra.mxu0 %v3798_v7  ;;  %v3832_v7 = vunpack.c.l.s8.bf16 %v3340_v57 }
 0x857   : > { %4473 = vmatpush1.bf16.msra.mxu1 %v3800_v61  ;;  %4146 = vmatprep.subr.bf16.mxu0 %v3803_v39  ;;  %v3835_v61 = vunpack.c.h.s8.bf16 %v3339_v51  ;;  %v3837_v39 = vunpack.c.h.s8.bf16 %v3341_v47  ;;  %v3354_v51 = vld [vmem:[%s6240_s14 + $0x7e0] sm:$0xff] }
 0x858   : > { %4474 = vmatprep.subr.bf16.mxu1 %v3805_v19  ;;  %v3343_v19 = vld [vmem:[%s6240_s14 + $0x788] sm:$0xff] }
 0x859   : > { %v3839_v13 = vunpack.c.l.s8.bf16 %v3343_v19  ;;  %v3843_v16 = vunpack.c.h.s8.bf16 %v3343_v19 }
 0x85a   : > { %4147 = vmatpush1.bf16.msra.mxu0 %v3802_v12  ;;  %v3836_v12 = vunpack.c.h.s8.bf16 %v3340_v57  ;;  %v3866_v57 = vunpack.c.h.s8.bf16 %v3354_v51 }
 0x85b   : > { %4475 = vmatpush1.bf16.msra.mxu1 %v3804_v52  ;;  %4157 = vmatprep.subr.bf16.mxu0 %v3807_v14  ;;  %v3342_v52 = vld [vmem:[%s6240_s14 + $0x780] sm:$0xff]  ;;  %v3841_v14 = vunpack.c.l.s8.bf16 %v3345_v56 }
 0x85c   : > { %4485 = vmatprep.subr.bf16.mxu1 %v3809_v42  ;;  %v3838_v42 = vunpack.c.l.s8.bf16 %v3342_v52 }
 0x85d   : > { %4149 = vmatmul.mubr.bf16.vlgmr.msra.gmra.mrb[20].mxu0 %v3098_v10 }
 0x85e   : > { %4477 = vmatmul.mubr.bf16.vlgmr.msra.gmra.mrb[20].mxu1 %v3098_v10  ;;  %4158 = vmatpush1.bf16.msra.mxu0 %v3806_v3  ;;  %v3845_v3 = vunpack.c.h.s8.bf16 %v3345_v56  ;;  %v3347_v10 = vld [vmem:[%s6240_s14 + $0x7a8] sm:$0xff]  ;;  %v7178_v56 = vld [vmem:[%s6242_s10 + $0x10] sm:$0xff] }
 0x85f   : > { %4189 = vmatprep.mubr.bf16.mxu0 %v3101_v23  ;;  %4486 = vmatpush1.bf16.msra.mxu1 %v3808_v20  ;;  %v3349_v20 = vld [vmem:[%s6240_s14 + $0x7b8] sm:$0xff]  ;;  %v3851_v29 = vunpack.c.h.s8.bf16 %v3347_v10 }
 0x860   : > { %4517 = vmatprep.mubr.bf16.mxu1 %v3101_v23  ;;  %4159 = vmatprep.subr.bf16.mxu0 %v3811_v58  ;;  %v3842_v58 = vunpack.c.h.s8.bf16 %v3342_v52  ;;  %v3847_v23 = vunpack.c.l.s8.bf16 %v3347_v10  ;;  %v3849_v25 = vunpack.c.l.s8.bf16 %v3349_v20  ;;  %v7190_v52 = vld [vmem:[%s6242_s10 + $0x18] sm:$0xff] }
 0x861   : > { %4487 = vmatprep.subr.bf16.mxu1 %v3813_v6  ;;  %v3346_v6 = vld [vmem:[%s6240_s14 + $0x7a0] sm:$0xff] }
 0x862   : > { %4160 = vmatpush1.bf16.msra.mxu0 %v3810_v26  ;;  %v3348_v26 = vld [vmem:[%s6240_s14 + $0x7b0] sm:$0xff] }
 0x863   : > { %4488 = vmatpush1.bf16.msra.mxu1 %v3812_v22  ;;  %4161 = vmatprep.subr.bf16.mxu0 %v3815_v18  ;;  %v3846_v22 = vunpack.c.l.s8.bf16 %v3346_v6  ;;  %v3848_v18 = vunpack.c.l.s8.bf16 %v3348_v26 }
 0x864   : > { %4489 = vmatprep.subr.bf16.mxu1 %v3817_v31  ;;  %v3853_v31 = vunpack.c.h.s8.bf16 %v3349_v20 }
 0x866   : > { %4162 = vmatpush1.bf16.msra.mxu0 %v3814_v34  ;;  %v3353_v34 = vld [vmem:[%s6240_s14 + $0x7d8] sm:$0xff] }
 0x867   : > { %4490 = vmatpush1.bf16.msra.mxu1 %v3816_v8  ;;  %4163 = vmatprep.subr.bf16.mxu0 %v3819_v35  ;;  %v3850_v8 = vunpack.c.h.s8.bf16 %v3346_v6  ;;  %v3852_v35 = vunpack.c.h.s8.bf16 %v3348_v26  ;;  %v3857_v37 = vunpack.c.l.s8.bf16 %v3353_v34 }
 0x868   : > { %4491 = vmatprep.subr.bf16.mxu1 %v3821_v11  ;;  %v3855_v11 = vunpack.c.l.s8.bf16 %v3351_v33 }
 0x86a   : > { %4164 = vmatpush1.bf16.msra.mxu0 %v3818_v28  ;;  %v3352_v28 = vld [vmem:[%s6240_s14 + $0x7d0] sm:$0xff] }
 0x86b   : > { %4492 = vmatpush1.bf16.msra.mxu1 %v3820_v38  ;;  %4165 = vmatprep.subr.bf16.mxu0 %v3823_v27  ;;  %v3854_v38 = vunpack.c.l.s8.bf16 %v3350_v36  ;;  %v3856_v27 = vunpack.c.l.s8.bf16 %v3352_v28 }
 0x86c   : > { %4493 = vmatprep.subr.bf16.mxu1 %v3825_v32  ;;  %v3861_v32 = vunpack.c.h.s8.bf16 %v3353_v34 }
 0x86e   : > { %4166 = vmatpush1.bf16.msra.mxu0 %v3822_v0  ;;  %v3357_v0 = vld [vmem:[%s6240_s14 + $0x7f8] sm:$0xff] }
 0x86f   : > { %4494 = vmatpush1.bf16.msra.mxu1 %v3824_v44  ;;  %4167 = vmatprep.subr.bf16.mxu0 %v3827_v60  ;;  %v3858_v44 = vunpack.c.h.s8.bf16 %v3350_v36  ;;  %v3860_v60 = vunpack.c.h.s8.bf16 %v3352_v28  ;;  %v3865_v47 = vunpack.c.l.s8.bf16 %v3357_v0 }
 0x870   : > { %4495 = vmatprep.subr.bf16.mxu1 %v3829_v49  ;;  %v3863_v49 = vunpack.c.l.s8.bf16 %v3355_v41 }
 0x872   : > { %4168 = vmatpush1.bf16.msra.mxu0 %v3826_v50  ;;  %v3356_v50 = vld [vmem:[%s6240_s14 + $0x7f0] sm:$0xff] }
 0x873   : > { %4496 = vmatpush1.bf16.msra.mxu1 %v3828_v40  ;;  %4169 = vmatprep.subr.bf16.mxu0 %v3831_v53  ;;  %v3862_v40 = vunpack.c.l.s8.bf16 %v3354_v51  ;;  %v3864_v53 = vunpack.c.l.s8.bf16 %v3356_v50 }
 0x874   : > { %4497 = vmatprep.subr.bf16.mxu1 %v3833_v55  ;;  %v3869_v55 = vunpack.c.h.s8.bf16 %v3357_v0 }
 0x876   : > { %4170 = vmatpush1.bf16.msra.mxu0 %v3830_v1  ;;  %v3084_v1 = vmax.f32 %v7003_v17, 0.0  ;;  %v4537_v17 = vrot.slane %v7178_v56, %v6653_v30 }
 0x877   : > { %4498 = vmatpush1.bf16.msra.mxu1 %v3832_v7  ;;  %4171 = vmatprep.subr.bf16.mxu0 %v3835_v61  ;;  %v3868_v7 = vunpack.c.h.s8.bf16 %v3356_v50 }
 0x878   : > { %4499 = vmatprep.subr.bf16.mxu1 %v3837_v39  ;;  %v3100_v61 = vpack.c.bf16 %v3084_v1, %v3084_v1  ;;  %v7173_v39 = vld [vmem:[%s6242_s10] sm:$0xff]  ;;  %v4627_v1 = vrot.slane %v7178_v56, %v6656_v48 }
 0x879   : > { %v4529_v19 = vrot.slane %v7173_v39, %v6653_v30  ;;  %v4599_v50 = vrot.slane %v7173_v39, %v6666_v5 }
 0x87a   : > { %4172 = vmatpush1.bf16.msra.mxu0 %v3834_v9  ;;  %v7183_v9 = vld [vmem:[%s6242_s10 + $0x8] sm:$0xff] }
 0x87b   : > { %4500 = vmatpush1.bf16.msra.mxu1 %v3836_v12  ;;  %4173 = vmatprep.subr.bf16.mxu0 %v3839_v13  ;;  %v4533_v12 = vrot.slane %v7183_v9, %v6653_v30  ;;  %v4549_v13 = vrot.slane %v7173_v39, %v6663_v4 }
 0x87c   : > { %4501 = vmatprep.subr.bf16.mxu1 %v3841_v14  ;;  %v4541_v14 = vrot.slane %v7190_v52, %v6653_v30 }
 0x87e   : > { %4174 = vmatpush1.bf16.msra.mxu0 %v3838_v42  ;;  %v4557_v42 = vrot.slane %v7178_v56, %v6663_v4 }
 0x87f   : > { %4502 = vmatpush1.bf16.msra.mxu1 %v3840_v15  ;;  %4175 = vmatprep.subr.bf16.mxu0 %v3843_v16  ;;  %v4553_v15 = vrot.slane %v7183_v9, %v6663_v4 }
 0x880   : > { %4503 = vmatprep.subr.bf16.mxu1 %v3845_v3 }
 0x882   : > { %4176 = vmatpush1.bf16.msra.mxu0 %v3842_v58 }
 0x883   : > { %4504 = vmatpush1.bf16.msra.mxu1 %v3844_v21  ;;  %4177 = vmatprep.subr.bf16.mxu0 %v3847_v23  ;;  %v4561_v23 = vrot.slane %v7190_v52, %v6663_v4 }
 0x884   : > { %4505 = vmatprep.subr.bf16.mxu1 %v3849_v25 }
 0x886   : > { %4178 = vmatpush1.bf16.msra.mxu0 %v3846_v22 }
 0x887   : > { %4506 = vmatpush1.bf16.msra.mxu1 %v3848_v18  ;;  %4179 = vmatprep.subr.bf16.mxu0 %v3851_v29 }
 0x888   : > { %4507 = vmatprep.subr.bf16.mxu1 %v3853_v31 }
 0x88a   : > { %4180 = vmatpush1.bf16.msra.mxu0 %v3850_v8 }
 0x88b   : > { %4508 = vmatpush1.bf16.msra.mxu1 %v3852_v35  ;;  %4181 = vmatprep.subr.bf16.mxu0 %v3855_v11 }
 0x88c   : > { %4509 = vmatprep.subr.bf16.mxu1 %v3857_v37 }
 0x88e   : > { %4182 = vmatpush1.bf16.msra.mxu0 %v3854_v38 }
 0x88f   : > { %4510 = vmatpush1.bf16.msra.mxu1 %v3856_v27  ;;  %4183 = vmatprep.subr.bf16.mxu0 %v3859_v43 }
 0x890   : > { %4511 = vmatprep.subr.bf16.mxu1 %v3861_v32 }
 0x892   : > { %4184 = vmatpush1.bf16.msra.mxu0 %v3858_v44 }
 0x893   : > { %4512 = vmatpush1.bf16.msra.mxu1 %v3860_v60  ;;  %4185 = vmatprep.subr.bf16.mxu0 %v3863_v49 }
 0x894   : > { %4513 = vmatprep.subr.bf16.mxu1 %v3865_v47 }
 0x896   : > { %4186 = vmatpush1.bf16.msra.mxu0 %v3862_v40  ;;  %v4607_v40 = vrot.slane %v7178_v56, %v6666_v5 }
 0x897   : > { %4514 = vmatpush1.bf16.msra.mxu1 %v3864_v53  ;;  %4187 = vmatprep.subr.bf16.mxu0 %v3867_v45  ;;  %v4603_v53 = vrot.slane %v7183_v9, %v6666_v5  ;;  %v4611_v45 = vrot.slane %v7190_v52, %v6666_v5 }
 0x898   : > { %4515 = vmatprep.subr.bf16.mxu1 %v3869_v55 }
 0x89a   : > { %4188 = vmatpush1.bf16.msra.mxu0 %v3866_v57  ;;  %v4619_v57 = vrot.slane %v7173_v39, %v6656_v48 }
 0x89b   : > { %4516 = vmatpush1.bf16.msra.mxu1 %v3868_v7  ;;  %v4623_v7 = vrot.slane %v7183_v9, %v6656_v48  ;;  %v4675_v9 = vld [vmem:[#allocation18 + $0x60] sm:$0xff] (!%p5051_p2) }
 0x89d   : > { %4190 = vmatmul.mubr.bf16.vlgmr.msra.gmra.mrb[20].mxu0 %v3100_v61 }
 0x89e   : > { %4518 = vmatmul.mubr.bf16.vlgmr.msra.gmra.mrb[20].mxu1 %v3100_v61  ;;  %v4631_v61 = vrot.slane %v7190_v52, %v6656_v48  ;;  %v4667_v48 = vld [vmem:[#allocation18 + $0x20] sm:$0xff] (!%p5051_p2) }
 0x89f   : > { %v4663_v52 = vld [vmem:[#allocation18] sm:$0xff] (!%p5051_p2) }
 0x970   : > { %v4191_v2 = vpop.f32.mrb[20].mxu0 }
 0x971   : > { %v4542_v16 = vmul.f32 %v4529_v19, %v4191_v2  ;;  %v4519_v3 = vpop.f32.mrb[20].mxu1  ;;  %v4193_v10 = vpop.f32.mrb[21].mxu0 }
 0x972   : > { %v4544_v20 = vmul.f32 %v4537_v17, %v4519_v3  ;;  %v4543_v58 = vmul.f32 %v4533_v12, %v4193_v10  ;;  %v4521_v21 = vpop.f32.mrb[21].mxu1  ;;  %v4195_v6 = vpop.f32.mrb[22].mxu0  ;;  %v4687_v3 = vunpack.c.l.s8.bf16 (!%p5051_p2), %v4667_v48  ;;  %v4688_v10 = vunpack.c.h.s8.bf16 (!%p5051_p2), %v4667_v48 }
 0x973   : > { %v4562_v25 = vadd.f32 %v4549_v13, %v4542_v16  ;;  %v4545_v26 = vmul.f32 %v4541_v14, %v4521_v21  ;;  %v4523_v30 = vpop.f32.mrb[22].mxu1  ;;  %v4196_v22 = vpop.f32.mrb[23].mxu0  ;;  %v4671_v21 = vld [vmem:[#allocation18 + $0x40] sm:$0xff] (!%p5051_p2) }
 0x974   : > { %v4564_v18 = vadd.f32 %v4557_v42, %v4544_v20  ;;  %v4563_v29 = vadd.f32 %v4553_v15, %v4543_v58  ;;  %v4524_v31 = vpop.f32.mrb[23].mxu1  ;;  %v4703_v20 = vunpack.c.l.s8.bf16 (!%p5051_p2), %v4675_v9  ;;  %v4704_v58 = vunpack.c.h.s8.bf16 (!%p5051_p2), %v4675_v9  ;;  %5061 = vmatprep.subr.bf16.mxu0 (!%p5051_p2), %v4687_v3  ;;  %v4644_v9 = vld [vmem:[#allocation19] sm:$0x3] (!%p5051_p2) }
 0x975   : > { %v4566_v33 = vadd.f32 %v4562_v25, %v6468_v54  ;;  %v4565_v8 = vadd.f32 %v4561_v23, %v4545_v26  ;;  %v4679_v23 = vunpack.c.l.s8.bf16 (!%p5051_p2), %v4663_v52  ;;  %v4695_v6 = vunpack.c.l.s8.bf16 (!%p5051_p2), %v4671_v21  ;;  %v4668_v25 = vld [vmem:[#allocation18 + $0x28] sm:$0xff] (!%p5051_p2) }
 0x976   : > { %v4567_v34 = vadd.f32 %v4563_v29, %v6466_v63  ;;  %v4568_v35 = vadd.f32 %v4564_v18, %v6526_v24  ;;  %v4676_v26 = vld [vmem:[#allocation18 + $0x68] sm:$0xff] (!%p5051_p2)  ;;  %5083 = vmatprep.subr.bf16.mxu1 (!%p5051_p2), %v4703_v20  ;;  %v4680_v30 = vunpack.c.h.s8.bf16 (!%p5051_p2), %v4663_v52  ;;  %v4696_v22 = vunpack.c.h.s8.bf16 (!%p5051_p2), %v4671_v21 }
 0x977   : > { %v4569_v36 = vadd.f32 %v4565_v8, %v6470_v46  ;;  %5062 = vmatpush3.bf16.msra.mxu0 (!%p5051_p2), %v4679_v23  ;;  %5084 = vmatpush3.bf16.msra.mxu1 (!%p5051_p2), %v4695_v6  ;;  %v4689_v18 = vunpack.c.l.s8.bf16 (!%p5051_p2), %v4668_v25  ;;  %v4705_v29 = vunpack.c.l.s8.bf16 (!%p5051_p2), %v4676_v26  ;;  %v4664_v31 = vld [vmem:[#allocation18 + $0x8] sm:$0xff] (!%p5051_p2)  ;;  %v4794_v23 = vrot.slane (!%p5051_p2), %v4644_v9, %v6336_v59 }
 0x978   : > { %v4570_v11 = vadd.f32 %v4567_v34, %v4566_v33  ;;  %5063 = vmatprep.subr.bf16.mxu0 (!%p5051_p2), %v4688_v10  ;;  %5085 = vmatprep.subr.bf16.mxu1 (!%p5051_p2), %v4704_v58 }
 0x97a   : > { %v4571_v37 = vadd.f32 %v4570_v11, %v4568_v35  ;;  %v4706_v11 = vunpack.c.h.s8.bf16 (!%p5051_p2), %v4676_v26 }
 0x97b   : > { %5064 = vmatpush3.bf16.msra.mxu0 (!%p5051_p2), %v4680_v30  ;;  %5086 = vmatpush3.bf16.msra.mxu1 (!%p5051_p2), %v4696_v22  ;;  %v4799_v30 = vrot.slane (!%p5051_p2), %v4644_v9, %v6345_v62 }
 0x97c   : > { %v4572_v4 = vadd.f32 %v4571_v37, %v4569_v36  ;;  %5065 = vmatprep.subr.bf16.mxu0 (!%p5051_p2), %v4689_v18  ;;  %5087 = vmatprep.subr.bf16.mxu1 (!%p5051_p2), %v4705_v29  ;;  %v4669_v37 = vld [vmem:[#allocation18 + $0x30] sm:$0xff] (!%p5051_p2) }
 0x97e   : > { %4573 = vadd.xlane.f32.xlu1 %v4572_v4  ;;  %v4677_v4 = vld [vmem:[#allocation18 + $0x70] sm:$0xff] (!%p5051_p2) }
 0xa0b   : > { %v4574_v28 = vpop.xlane.xlu1 %4573 }
 0xa0c   : > { %v4575_v38 = vmul.f32 0.001953125, %v4574_v28 }
 0xa0e   : > { %v4576_v27 = vsub.f32 %v4566_v33, %v4575_v38  ;;  %v4577_v43 = vsub.f32 %v4567_v34, %v4575_v38  ;;  %v4578_v32 = vsub.f32 %v4568_v35, %v4575_v38  ;;  %v4579_v41 = vsub.f32 %v4569_v36, %v4575_v38  ;;  %v4672_v33 = vld [vmem:[#allocation18 + $0x48] sm:$0xff] (!%p5051_p2) }
 0xa0f   : > { %v4681_v34 = vunpack.c.l.s8.bf16 (!%p5051_p2), %v4664_v31  ;;  %v4697_v8 = vunpack.c.l.s8.bf16 (!%p5051_p2), %v4672_v33  ;;  %v4690_v35 = vunpack.c.h.s8.bf16 (!%p5051_p2), %v4668_v25  ;;  %v4650_v36 = vstv (!%p5051_p2), %s4645_s29 }
 0xa10   : > { %v4580_v0 = vmul.f32 %v4576_v27, %v4576_v27  ;;  %v4581_v44 = vmul.f32 %v4577_v43, %v4577_v43  ;;  %v4582_v54 = vmul.f32 %v4578_v32, %v4578_v32  ;;  %v4583_v63 = vmul.f32 %v4579_v41, %v4579_v41 }
 0xa11   : > { %5066 = vmatpush3.bf16.msra.mxu0 (!%p5051_p2), %v4681_v34  ;;  %5088 = vmatpush3.bf16.msra.mxu1 (!%p5051_p2), %v4697_v8 }
 0xa12   : > { %v4584_v60 = vadd.f32 %v4581_v44, %v4580_v0  ;;  %5067 = vmatprep.subr.bf16.mxu0 (!%p5051_p2), %v4690_v35  ;;  %5089 = vmatprep.subr.bf16.mxu1 (!%p5051_p2), %v4706_v11  ;;  %v4691_v0 = vunpack.c.l.s8.bf16 (!%p5051_p2), %v4669_v37  ;;  %v4707_v44 = vunpack.c.l.s8.bf16 (!%p5051_p2), %v4677_v4 }
 0xa14   : > { %v4585_v49 = vadd.f32 %v4584_v60, %v4582_v54  ;;  %v4665_v54 = vld [vmem:[#allocation18 + $0x10] sm:$0xff] (!%p5051_p2) }
 0xa15   : > { %v4673_v60 = vld [vmem:[#allocation18 + $0x50] sm:$0xff] (!%p5051_p2) }
 0xa16   : > { %v4586_v51 = vadd.f32 %v4585_v49, %v4583_v63 }
 0xa18   : > { %4587 = vadd.xlane.f32.xlu1 %v4586_v51  ;;  %v4683_v51 = vunpack.c.l.s8.bf16 (!%p5051_p2), %v4665_v54 }
 0xaa5   : > { %v4588_v24 = vpop.xlane.xlu1 %4587 }
 0xaa6   : > { %v4589_v47 = vmul.f32 0.001953125, %v4588_v24  ;;  %v4699_v24 = vunpack.c.l.s8.bf16 (!%p5051_p2), %v4673_v60 }
 0xaa8   : > { %v4590_v46 = vadd.f32 1e-05, %v4589_v47  ;;  %v4692_v47 = vunpack.c.h.s8.bf16 (!%p5051_p2), %v4669_v37 }
 0xaaa   : > { %5358 = vrsqrt.f32 %v4590_v46  ;;  %v4708_v46 = vunpack.c.h.s8.bf16 (!%p5051_p2), %v4677_v4 }
 0xab4   : > { %v5359_v55 = vpop.eup %5358 }
 0xab5   : > { %v4592_v19 = vmul.f32 %v5359_v55, %v4576_v27  ;;  %v4593_v17 = vmul.f32 %v5359_v55, %v4577_v43  ;;  %v4594_v12 = vmul.f32 %v5359_v55, %v4578_v32  ;;  %v4595_v13 = vmul.f32 %v5359_v55, %v4579_v41 }
 0xab6   : > { %4643 = sbr.rel (%p5051_p2) target bundleno = 2986 (0xbaa), region = 112  ;;  %v4682_v27 = vunpack.c.h.s8.bf16 (!%p5051_p2), %v4664_v31  ;;  %v4698_v43 = vunpack.c.h.s8.bf16 (!%p5051_p2), %v4672_v33 }
 0xab7   : > { %v4612_v14 = vmul.f32 %v4599_v50, %v4592_v19  ;;  %v4613_v2 = vmul.f32 %v4603_v53, %v4593_v17  ;;  %v4614_v5 = vmul.f32 %v4607_v40, %v4594_v12  ;;  %v4615_v42 = vmul.f32 %v4611_v45, %v4595_v13  ;;  %v4670_v50 = vld [vmem:[#allocation18 + $0x38] sm:$0xff] (!%p5051_p2) }
 0xab8   : > { %5068 = vmatpush3.bf16.msra.mxu0 (!%p5051_p2), %v4682_v27  ;;  %5090 = vmatpush3.bf16.msra.mxu1 (!%p5051_p2), %v4698_v43  ;;  %v4678_v40 = vld [vmem:[#allocation18 + $0x78] sm:$0xff] (!%p5051_p2)  ;;  %v4684_v53 = vunpack.c.h.s8.bf16 (!%p5051_p2), %v4665_v54  ;;  %v4700_v45 = vunpack.c.h.s8.bf16 (!%p5051_p2), %v4673_v60  ;;  %v4693_v55 = vunpack.c.l.s8.bf16 (!%p5051_p2), %v4670_v50  ;;  %v4694_v13 = vunpack.c.h.s8.bf16 (!%p5051_p2), %v4670_v50 }
 0xab9   : > { %v7220_v15 = vadd.f32 %v4619_v57, %v4612_v14  ;;  %v4633_v39 = vadd.f32 %v4623_v7, %v4613_v2  ;;  %v7222_v16 = vadd.f32 %v4627_v1, %v4614_v5  ;;  %v4635_v56 = vadd.f32 %v4631_v61, %v4615_v42  ;;  %5069 = vmatprep.subr.bf16.mxu0 (!%p5051_p2), %v4691_v0  ;;  %v4666_v1 = vld [vmem:[#allocation18 + $0x18] sm:$0xff] (!%p5051_p2) }
 0xaba   : > { %5091 = vmatprep.subr.bf16.mxu1 (!%p5051_p2), %v4707_v44  ;;  %v4709_v57 = vunpack.c.l.s8.bf16 (!%p5051_p2), %v4678_v40  ;;  %v4674_v7 = vld [vmem:[#allocation18 + $0x58] sm:$0xff] (!%p5051_p2)  ;;  %v4685_v61 = vunpack.c.l.s8.bf16 (!%p5051_p2), %v4666_v1  ;;  %v4710_v14 = vunpack.c.h.s8.bf16 (!%p5051_p2), %v4678_v40  ;;  %v4686_v2 = vunpack.c.h.s8.bf16 (!%p5051_p2), %v4666_v1 }
 0xabb   : > { %4636 = vst [vmem:[#allocation2] sm:$0xff] %v7220_v15  ;;  %4637 = vst [vmem:[#allocation2 + $0x8] sm:$0xff] %v4633_v39  ;;  %vm4647_vm1 = vcmp.gt.f32.partialorder (!%p5051_p2), %v4633_v39, 0.0  ;;  %vm4649_vm2 = vcmp.gt.f32.partialorder (!%p5051_p2), %v4635_v56, 0.0  ;;  %v4652_v28 = vmul.f32 (!%p5051_p2), %v4650_v36, %v4633_v39  ;;  %v4654_v38 = vmul.f32 (!%p5051_p2), %v4650_v36, %v4635_v56 }
 0xabc   : > { %4638 = vst [vmem:[#allocation2 + $0x10] sm:$0xff] %v7222_v16  ;;  %4639 = vst [vmem:[#allocation2 + $0x18] sm:$0xff] %v4635_v56  ;;  %5070 = vmatpush3.bf16.msra.mxu0 (!%p5051_p2), %v4683_v51  ;;  %5092 = vmatpush3.bf16.msra.mxu1 (!%p5051_p2), %v4699_v24  ;;  %v4701_v19 = vunpack.c.l.s8.bf16 (!%p5051_p2), %v4674_v7  ;;  %v4651_v17 = vmul.f32 (!%p5051_p2), %v4650_v36, %v7220_v15  ;;  %v4653_v12 = vmul.f32 (!%p5051_p2), %v4650_v36, %v7222_v16 }
 0xabd   : > { %v4656_v32 = vsel %vm4647_vm1, %v4633_v39, %v4652_v28  ;;  %v4658_v41 = vsel %vm4649_vm2, %v4635_v56, %v4654_v38  ;;  %5071 = vmatprep.subr.bf16.mxu0 %v4692_v47  ;;  %5093 = vmatprep.subr.bf16.mxu1 %v4708_v46  ;;  %vm4646_vm3 = vcmp.gt.f32.partialorder %v7220_v15, 0.0  ;;  %vm4648_vm4 = vcmp.gt.f32.partialorder %v7222_v16, 0.0 }
 0xabe   : > { %v4660_v63 = vpack.c.bf16 %v4656_v32, %v4656_v32  ;;  %v4662_v49 = vpack.c.bf16 %v4658_v41, %v4658_v41  ;;  %v4702_v5 = vunpack.c.h.s8.bf16 %v4674_v7  ;;  %v4655_v42 = vsel %vm4646_vm3, %v7220_v15, %v4651_v17 }
 0xabf   : > { %v4657_v39 = vsel %vm4648_vm4, %v7222_v16, %v4653_v12  ;;  %v4659_v56 = vpack.c.bf16 %v4655_v42, %v4655_v42 }
 0xac0   : > { %4743 = vmatprep.mubr.bf16.mxu0 %v4660_v63  ;;  %4783 = vmatprep.mubr.bf16.mxu1 %v4662_v49  ;;  %v4661_v48 = vpack.c.bf16 %v4657_v39, %v4657_v39 }
 0xac1   : > { %5072 = vmatpush3.bf16.msra.mxu0 %v4684_v53  ;;  %5094 = vmatpush3.bf16.msra.mxu1 %v4700_v45 }
 0xac2   : > { %5073 = vmatprep.subr.bf16.mxu0 %v4693_v55  ;;  %5095 = vmatprep.subr.bf16.mxu1 %v4709_v57 }
 0xac5   : > { %5074 = vmatpush3.bf16.msra.mxu0 %v4685_v61  ;;  %5096 = vmatpush3.bf16.msra.mxu1 %v4701_v19 }
 0xac6   : > { %5075 = vmatprep.subr.bf16.mxu0 %v4694_v13  ;;  %5097 = vmatprep.subr.bf16.mxu1 %v4710_v14 }
 0xac9   : > { %5076 = vmatpush3.bf16.msra.mxu0 %v4686_v2  ;;  %5098 = vmatpush3.bf16.msra.mxu1 %v4702_v5 }
 0xacc   : > { %4744 = vmatmul.mubr.bf16.vlgmr.msra.gmra.mrb[0].mxu0 %v4659_v56  ;;  %4784 = vmatmul.mubr.bf16.vlgmr.msra.gmra.mrb[0].mxu1 %v4661_v48 }
 0xb9f   : > { %v5077_v52 = vpop.f32.mrb[0].mxu0  ;;  %v5099_v3 = vpop.f32.mrb[0].mxu1 }
 0xba0   : > { %v5078_v10 = vpop.f32.mrb[1].mxu0  ;;  %v5100_v20 = vpop.f32.mrb[1].mxu1 }
 0xba1   : > { %v5079_v58 = vadd.f32 %v5078_v10, %v5077_v52  ;;  %v5101_v21 = vadd.f32 %v5100_v20, %v5099_v3  ;;  %v5080_v15 = vpop.f32.mrb[2].mxu0  ;;  %v5102_v6 = vpop.f32.mrb[2].mxu1 }
 0xba2   : > { %v5081_v16 = vpop.f32.mrb[3].mxu0  ;;  %v5103_v25 = vpop.f32.mrb[3].mxu1 }
 0xba3   : > { %v4786_v26 = vadd.f32 %v5101_v21, %v5079_v58 }
 0xba5   : > { %v4795_v22 = vmul.f32 %v4794_v23, %v4786_v26 }
 0xba7   : > { %v4800_v18 = vadd.f32 %v4799_v30, %v4795_v22 }
 0xba9   : > { %4801 = vst [vmem:[#allocation21] sm:$0xff] %v4800_v18 }
 0xbaa PF: > { %s7372_s21 = sld [smem:[#allocation34_spill]]  ;;  %s5776_s28 = smov [#allocation21]  }
 0xbab   : > { %s4811_s19 = sshll.u32 %s5776_s28, 4  ;;  %s4812_s19 = int_to_ptr.vmem [resolvable:$true] %s4811_s19 }
 0xbac   : > { %s5654_s15 = scalar_lea.vmem %s4812_s19, 128  ;;  %p5661_p11 = scmp.lt.s32.totalorder %s4812_s19, %s4812_s19 }
 0xbad   : > { %p5655_p4 = scmp.ne.s32.totalorder %s4812_s19, %s5654_s15  ;;  %p5662_p9 = scmp.lt.s32.totalorder %s5654_s15, %s5654_s15 }
 0xbaf   : > { %p5663_p6 = por %p5662_p9, %p5661_p11 }
 0xbb0   : > { %p5294_p3 = scmp.eq.s32.totalorder %s7372_s21, 1 }
 0xbb2   : > { %p5656_p1 = pnand %p5655_p4, %p5294_p3 }
 0xbb4   : > { %p5657_p5 = pneg %p5656_p1 }
 0xbb6   : > { %p5664_p13 = pnand %p5663_p6, %p5657_p5 }
 0xbb8   : > { %5667 = shalt.err (!%p5664_p13)
}
 0xbb9   : > { %s7373_s11 = sld [smem:[#allocation43_spill]] }
 0xbbf   : > { %s5668_s1 = scalar_lea.hbm %s7373_s11, 128 }
 0xbc0   : > { %p5669_p8 = scmp.ne.s32.totalorder %s7373_s11, %s5668_s1  ;;  %p5674_p0 = scmp.lt.u32.totalorder %s5668_s1, %s7373_s11 }
 0xbc2   : > { %p5670_p7 = pnand %p5669_p8, %p5294_p3 }
 0xbc4   : > { %p5671_p12 = pneg %p5670_p7 }
 0xbc6   : > { %p5676_p10 = pnand %p5674_p0, %p5671_p12 }
 0xbc8   : > { %5679 = shalt.err (!%p5676_p10)
}
 0xbc9   : > { %5248 = dma.vmem_to_hbm [thread:$0]  (%p5294_p3), %s4812_s19, 128, %s7373_s11, [#allocation6]  }
 0xbca   : > { %5733 = dma.done.wait (%p5294_p3), [#allocation6], 128  }
 0xbcb   : > { %5735 = vsyncadd (%p5294_p3), [#allocation6], 4294967168 }
 0xbcc PF: > { %s7374_s30 = sld [smem:[#allocation33_spill]]  ;;  %s7375_s19 = sld [smem:[#allocation30_spill]] }
 0xbcd   : > { %s7376_s20 = sld [smem:[#allocation31_spill]]  ;;  %s7377_s21 = sld [smem:[#allocation38_spill]] }
 0xbce   : > { %s7378_s5 = sld [smem:[#allocation36_spill]]  ;;  %s7379_s22 = smov %s5754_s23 }
 0xbd2   : > { %s35_s10 = sadd.s32 1, %s7374_s30  }
 0xbd3   : > { %p32_p2 = scmp.ge.s32.totalorder %s35_s10, 4  }
 0xbd4   : > { %s7380_s23 = smov %s7378_s5 }
 0xbd5   :  { %34 = sbr.rel (!%p32_p2) target bundleno = 19 (0x13), region = 182 }
 0xbdc   :  { %4824 = vsyncpa [#allocation5], 1 }
 0xbdd   :  { %4826 = vsyncpa [#allocation5 + $0x1], 1 }
 0xbde   :  { %4827 = vsyncpa [#allocation8], 1 }
 0xbdf   :  { %4828 = vsyncpa [#allocation11], 1 }
 0xbe0   :  { %4830 = vsyncpa [#allocation11 + $0x1], 1 }
 0xbe1   :  { %4831 = vsyncpa [#allocation14], 1 }
 0xbe2   :  { %4833 = vsyncpa [#allocation14 + $0x1], 1 }
 0xbe3   :  { %4834 = vsyncpa [#allocation17], 1 }
 0xbe4   :  { %4836 = vsyncpa [#allocation17 + $0x1], 1 }
 0xbe5   :  { %4837 = vsyncpa [#allocation20], 1 }
 0xbe6   :  { %4838 = vsyncpa [#allocation6], 1 }
 0xbe7   :  { %4840 = vsyncpa [#allocation6 + $0x1], 1 }

</bundles_post_ra>
